<compile_context>
chip_gen: v7x
topology: tpu7x:2x2x1
jax: 0.10.0
libtpu: 0.0.40
codegen_flags: <defaults>
</compile_context>

<pallas_src>
import math
import jax
import jax.numpy as jnp
from jax.experimental import pallas as pl
from jax.experimental.pallas import tpu as pltpu

# ---------------- model hyper-parameters (small, synthetic) ----------------
D_MODEL = 32
N_HEADS = 4
D_HEAD = D_MODEL // N_HEADS
D_FF = 64
N_LAYERS = 2
SRC_VOCAB = 16
TGT_VOCAB = 16
LN_EPS = 1e-6     # Annotated-Transformer LayerNorm: (x - mean) / (std + eps)
NEG_INF = -1e9


# ----------------------- in-kernel math helpers (traced) -----------------------
def _layer_norm(x, g, b):
    d = x.shape[-1]
    mean = jnp.mean(x, axis=-1, keepdims=True)
    # torch.std default is the unbiased (N-1) estimator -> match it.
    var = jnp.sum((x - mean) ** 2, axis=-1, keepdims=True) / (d - 1)
    std = jnp.sqrt(var)
    return g * (x - mean) / (std + LN_EPS) + b


def _attention(q, k, v, bias, wo, bo, bsz, lq, lk):
    """q:(bsz*lq,D)  k,v:(bsz*lk,D)  bias:(bsz,lq,lk) additive.
    Returns the output projection (ctx @ Wo + bo): (bsz*lq, D).
    The 1/sqrt(dk) scale is already folded into Wq (so into q)."""
    qb = q.reshape(bsz, lq, D_MODEL)
    kb = k.reshape(bsz, lk, D_MODEL)
    vb = v.reshape(bsz, lk, D_MODEL)
    out = None
    for h in range(N_HEADS):                       # static, unrolled (4 heads)
        sl = slice(h * D_HEAD, (h + 1) * D_HEAD)
        qh, kh, vh = qb[:, :, sl], kb[:, :, sl], vb[:, :, sl]
        s = jnp.einsum('bqd,bkd->bqk', qh, kh,
                       preferred_element_type=jnp.float32) + bias
        s = s - jnp.max(s, axis=-1, keepdims=True)
        p = jnp.exp(s)
        p = p / jnp.sum(p, axis=-1, keepdims=True)
        ctx = jnp.einsum('bqk,bkd->bqd', p, vh,
                         preferred_element_type=jnp.float32)
        ctx = ctx.reshape(bsz * lq, D_HEAD)
        # fuse the per-head slice of the output projection into the head loop
        part = jnp.dot(ctx, wo[sl, :], preferred_element_type=jnp.float32)
        out = part if out is None else out + part
    return out + bo


def _encoder_layer(x, lp, bias, bsz, seq):
    # self-attention sub-layer (pre-norm, residual); dropout = eval identity
    xn = _layer_norm(x, lp['ln1_g'][...], lp['ln1_b'][...])
    qkv = jnp.dot(xn, lp['wqkv'][...],
                  preferred_element_type=jnp.float32) + lp['bqkv'][...]
    q = qkv[:, :D_MODEL]
    k = qkv[:, D_MODEL:2 * D_MODEL]
    v = qkv[:, 2 * D_MODEL:]
    x = x + _attention(q, k, v, bias, lp['wo'][...], lp['bo'][...], bsz, seq, seq)
    # feed-forward sub-layer
    xn = _layer_norm(x, lp['ln2_g'][...], lp['ln2_b'][...])
    h = jnp.maximum(jnp.dot(xn, lp['w1'][...],
                            preferred_element_type=jnp.float32) + lp['b1'][...], 0.0)
    y = jnp.dot(h, lp['w2'][...],
                preferred_element_type=jnp.float32) + lp['b2'][...]
    return x + y


def _decoder_layer(x, memory, lp, self_bias, cross_bias, bsz, t, s):
    # masked self-attention
    xn = _layer_norm(x, lp['ln1_g'][...], lp['ln1_b'][...])
    qkv = jnp.dot(xn, lp['wqkv'][...],
                  preferred_element_type=jnp.float32) + lp['bqkv'][...]
    q = qkv[:, :D_MODEL]
    k = qkv[:, D_MODEL:2 * D_MODEL]
    v = qkv[:, 2 * D_MODEL:]
    x = x + _attention(q, k, v, self_bias,
                       lp['wo_self'][...], lp['bo_self'][...], bsz, t, t)
    # cross-attention (K/V from encoder memory)
    xn = _layer_norm(x, lp['ln2_g'][...], lp['ln2_b'][...])
    q = jnp.dot(xn, lp['wq_cross'][...],
                preferred_element_type=jnp.float32) + lp['bq_cross'][...]
    kv = jnp.dot(memory, lp['wkv_cross'][...],
                 preferred_element_type=jnp.float32) + lp['bkv_cross'][...]
    k = kv[:, :D_MODEL]
    v = kv[:, D_MODEL:]
    x = x + _attention(q, k, v, cross_bias,
                       lp['wo_cross'][...], lp['bo_cross'][...], bsz, t, s)
    # feed-forward
    xn = _layer_norm(x, lp['ln3_g'][...], lp['ln3_b'][...])
    h = jnp.maximum(jnp.dot(xn, lp['w1'][...],
                            preferred_element_type=jnp.float32) + lp['b1'][...], 0.0)
    y = jnp.dot(h, lp['w2'][...],
                preferred_element_type=jnp.float32) + lp['b2'][...]
    return x + y


# ------------------------------ fused Pallas kernel ------------------------------
def _make_fused_kernel(treedef):
    def kernel(*refs):
        # inputs: src_x, tgt_x, enc_bias, dec_self_bias, dec_cross_bias, *params
        # output: decoder output (B*T, D)
        src_ref, tgt_ref, eb_ref, dsb_ref, dcb_ref = refs[:5]
        out_ref = refs[-1]
        kp = jax.tree_util.tree_unflatten(treedef, refs[5:-1])

        bsz, s_len, _ = eb_ref.shape
        t_len = dsb_ref.shape[1]

        enc_bias = eb_ref[...]
        dec_self_bias = dsb_ref[...]
        dec_cross_bias = dcb_ref[...]

        # ----------------- encoder -----------------
        x = src_ref[...].astype(jnp.float32)
        for li in range(N_LAYERS):
            x = _encoder_layer(x, kp['enc_layers'][li], enc_bias, bsz, s_len)
        memory = _layer_norm(x, kp['enc_norm_g'][...], kp['enc_norm_b'][...])

        # ----------------- decoder -----------------
        x = tgt_ref[...].astype(jnp.float32)
        for li in range(N_LAYERS):
            x = _decoder_layer(x, memory, kp['dec_layers'][li],
                               dec_self_bias, dec_cross_bias, bsz, t_len, s_len)
        x = _layer_norm(x, kp['dec_norm_g'][...], kp['dec_norm_b'][...])

        out_ref[...] = x.astype(out_ref.dtype)

    return kernel


# ----------------------- parameter prep (JAX, trace-time glue) -----------------------
def _prepare_kernel_params(params):
    scale = 1.0 / math.sqrt(D_HEAD)

    def r(v):                       # row-vector reshape for in-kernel broadcast
        return v.reshape(1, -1)

    def fuse_self_attn(a):
        wqkv = jnp.concatenate([a['wq'] * scale, a['wk'], a['wv']], axis=1)
        bqkv = r(jnp.concatenate([a['bq'] * scale, a['bk'], a['bv']]))
        return wqkv, bqkv, a['wo'], r(a['bo'])

    def fuse_cross_attn(a):
        wq = a['wq'] * scale
        bq = r(a['bq'] * scale)
        wkv = jnp.concatenate([a['wk'], a['wv']], axis=1)
        bkv = r(jnp.concatenate([a['bk'], a['bv']]))
        return wq, bq, wkv, bkv, a['wo'], r(a['bo'])

    enc_layers = []
    for layer in params['encoder']['layers']:
        wqkv, bqkv, wo, bo = fuse_self_attn(layer['self_attn'])
        ff = layer['ff']
        enc_layers.append(dict(
            wqkv=wqkv, bqkv=bqkv, wo=wo, bo=bo,
            w1=ff['w1'], b1=r(ff['b1']), w2=ff['w2'], b2=r(ff['b2']),
            ln1_g=r(layer['ln1_g']), ln1_b=r(layer['ln1_b']),
            ln2_g=r(layer['ln2_g']), ln2_b=r(layer['ln2_b'])))

    dec_layers = []
    for layer in params['decoder']['layers']:
        wqkv, bqkv, wo_s, bo_s = fuse_self_attn(layer['self_attn'])
        wq_c, bq_c, wkv_c, bkv_c, wo_c, bo_c = fuse_cross_attn(layer['cross_attn'])
        ff = layer['ff']
        dec_layers.append(dict(
            wqkv=wqkv, bqkv=bqkv, wo_self=wo_s, bo_self=bo_s,
            wq_cross=wq_c, bq_cross=bq_c, wkv_cross=wkv_c, bkv_cross=bkv_c,
            wo_cross=wo_c, bo_cross=bo_c,
            w1=ff['w1'], b1=r(ff['b1']), w2=ff['w2'], b2=r(ff['b2']),
            ln1_g=r(layer['ln1_g']), ln1_b=r(layer['ln1_b']),
            ln2_g=r(layer['ln2_g']), ln2_b=r(layer['ln2_b']),
            ln3_g=r(layer['ln3_g']), ln3_b=r(layer['ln3_b'])))

    return dict(
        enc_layers=enc_layers,
        enc_norm_g=r(params['encoder']['norm_g']),
        enc_norm_b=r(params['encoder']['norm_b']),
        dec_layers=dec_layers,
        dec_norm_g=r(params['decoder']['norm_g']),
        dec_norm_b=r(params['decoder']['norm_b']))


# ------------------------- embeddings & forward wrapper -------------------------
def positional_encoding(max_len, d_model):
    pos = jnp.arange(max_len, dtype=jnp.float32)[:, None]
    div = jnp.exp(jnp.arange(0, d_model, 2, dtype=jnp.float32)
                  * -(math.log(10000.0) / d_model))
    pe = jnp.zeros((max_len, d_model), jnp.float32)
    pe = pe.at[:, 0::2].set(jnp.sin(pos * div))
    pe = pe.at[:, 1::2].set(jnp.cos(pos * div))
    return pe


def embed(tokens, table, pe):
    # Embedding gather + positional-encoding add is glue (plain JAX).
    x = jnp.take(table, tokens, axis=0) * math.sqrt(D_MODEL)
    return x + pe[None, : tokens.shape[1], :]


def encoder_decoder_forward(params, src, tgt, src_mask, tgt_mask):
    # dropout is eval-mode identity (skipped).
    b, s = src.shape
    t = tgt.shape[1]

    src_x = embed(src, params['src_emb'], params['pe']).reshape(b * s, D_MODEL)
    tgt_x = embed(tgt, params['tgt_emb'], params['pe']).reshape(b * t, D_MODEL)

    # additive attention biases (0 = keep, -1e9 = masked), computed once.
    enc_bias = jnp.where(jnp.broadcast_to(src_mask, (b, s, s)) == 0,
                         NEG_INF, 0.0).astype(jnp.float32)
    dec_self_bias = jnp.where(jnp.broadcast_to(tgt_mask, (b, t, t)) == 0,
                              NEG_INF, 0.0).astype(jnp.float32)
    dec_cross_bias = jnp.where(jnp.broadcast_to(src_mask, (b, t, s)) == 0,
                               NEG_INF, 0.0).astype(jnp.float32)

    kp = _prepare_kernel_params(params)
    flat_params, treedef = jax.tree_util.tree_flatten(kp)

    out = pl.pallas_call(
        _make_fused_kernel(treedef),
        out_shape=jax.ShapeDtypeStruct((b * t, D_MODEL), jnp.float32),
        compiler_params=pltpu.CompilerParams(
            # explicit VMEM budget (well under v7x's 64 MiB physical VMEM)
            vmem_limit_bytes=32 * 1024 * 1024),
    )(src_x, tgt_x, enc_bias, dec_self_bias, dec_cross_bias, *flat_params)
    return out.reshape(b, t, D_MODEL)
    # NOTE: generator (Linear + log_softmax) is part of __init__ but is NOT
    # invoked by EncoderDecoder.forward(), matching the reference semantics.


# ------------------------------ parameter init ------------------------------
def init_params(key, max_len=64):
    keys = iter(jax.random.split(key, 256))

    def lin(din, dout):
        k1, k2 = next(keys), next(keys)
        bound = 1.0 / math.sqrt(din)
        w = jax.random.uniform(k1, (din, dout), jnp.float32, -bound, bound)
        b = jax.random.uniform(k2, (dout,), jnp.float32, -bound, bound)
        return w, b

    def attn():
        wq, bq = lin(D_MODEL, D_MODEL)
        wk, bk = lin(D_MODEL, D_MODEL)
        wv, bv = lin(D_MODEL, D_MODEL)
        wo, bo = lin(D_MODEL, D_MODEL)
        return dict(wq=wq, bq=bq, wk=wk, bk=bk, wv=wv, bv=bv, wo=wo, bo=bo)

    def ff():
        w1, b1 = lin(D_MODEL, D_FF)
        w2, b2 = lin(D_FF, D_MODEL)
        return dict(w1=w1, b1=b1, w2=w2, b2=b2)

    ones = lambda: jnp.ones((D_MODEL,), jnp.float32)
    zeros = lambda: jnp.zeros((D_MODEL,), jnp.float32)

    def enc_layer():
        return dict(self_attn=attn(), ff=ff(),
                    ln1_g=ones(), ln1_b=zeros(), ln2_g=ones(), ln2_b=zeros())

    def dec_layer():
        return dict(self_attn=attn(), cross_attn=attn(), ff=ff(),
                    ln1_g=ones(), ln1_b=zeros(), ln2_g=ones(), ln2_b=zeros(),
                    ln3_g=ones(), ln3_b=zeros())

    params = dict(
        src_emb=jax.random.normal(next(keys), (SRC_VOCAB, D_MODEL), jnp.float32),
        tgt_emb=jax.random.normal(next(keys), (TGT_VOCAB, D_MODEL), jnp.float32),
        pe=positional_encoding(max_len, D_MODEL),
        encoder=dict(layers=[enc_layer() for _ in range(N_LAYERS)],
                     norm_g=ones(), norm_b=zeros()),
        decoder=dict(layers=[dec_layer() for _ in range(N_LAYERS)],
                     norm_g=ones(), norm_b=zeros()),
    )
    gw, gb = lin(D_MODEL, TGT_VOCAB)          # generator params (unused by forward)
    params["generator"] = dict(w=gw, b=gb)
    return params


# ------------------------------------ main ------------------------------------
if __name__ == "__main__":
    key = jax.random.PRNGKey(0)
    pkey, skey, tkey = jax.random.split(key, 3)

    B, S, T = 2, 8, 8
    params = init_params(pkey)

    src = jax.random.randint(skey, (B, S), 1, SRC_VOCAB, dtype=jnp.int32)
    tgt = jax.random.randint(tkey, (B, T), 1, TGT_VOCAB, dtype=jnp.int32)

    # src_mask: (B, 1, S) padding mask (1 = keep, 0 = pad)
    src_valid = jnp.ones((B, S), jnp.float32).at[1, S - 2:].set(0.0)
    src_mask = src_valid[:, None, :]
    # tgt_mask: (B, T, T) = causal (subsequent) mask & target pad mask
    causal = jnp.tril(jnp.ones((T, T), jnp.float32))
    tgt_valid = jnp.ones((B, T), jnp.float32)
    tgt_mask = causal[None, :, :] * tgt_valid[:, None, :]

    forward = jax.jit(encoder_decoder_forward)
    out = forward(params, src, tgt, src_mask, tgt_mask)
    out = jax.block_until_ready(out)

    assert out.shape == (B, T, D_MODEL), out.shape
    assert bool(jnp.all(jnp.isfinite(out)))
    print("KERNEL_OK")
</pallas_src>

<mosaic_0001>
module attributes {stable_mosaic.version = 11 : i64} {
  func.func @kernel(%arg0: memref<16x32xf32, #tpu.memory_space<vmem>>, %arg1: memref<16x32xf32, #tpu.memory_space<vmem>>, %arg2: memref<2x8x8xf32, #tpu.memory_space<vmem>>, %arg3: memref<2x8x8xf32, #tpu.memory_space<vmem>>, %arg4: memref<2x8x8xf32, #tpu.memory_space<vmem>>, %arg5: memref<1x64xf32, #tpu.memory_space<vmem>>, %arg6: memref<1x32xf32, #tpu.memory_space<vmem>>, %arg7: memref<1x64xf32, #tpu.memory_space<vmem>>, %arg8: memref<1x32xf32, #tpu.memory_space<vmem>>, %arg9: memref<1x32xf32, #tpu.memory_space<vmem>>, %arg10: memref<1x32xf32, #tpu.memory_space<vmem>>, %arg11: memref<1x96xf32, #tpu.memory_space<vmem>>, %arg12: memref<1x32xf32, #tpu.memory_space<vmem>>, %arg13: memref<1x32xf32, #tpu.memory_space<vmem>>, %arg14: memref<1x32xf32, #tpu.memory_space<vmem>>, %arg15: memref<1x32xf32, #tpu.memory_space<vmem>>, %arg16: memref<1x32xf32, #tpu.memory_space<vmem>>, %arg17: memref<1x32xf32, #tpu.memory_space<vmem>>, %arg18: memref<32x64xf32, #tpu.memory_space<vmem>>, %arg19: memref<64x32xf32, #tpu.memory_space<vmem>>, %arg20: memref<32x64xf32, #tpu.memory_space<vmem>>, %arg21: memref<32x32xf32, #tpu.memory_space<vmem>>, %arg22: memref<32x32xf32, #tpu.memory_space<vmem>>, %arg23: memref<32x32xf32, #tpu.memory_space<vmem>>, %arg24: memref<32x96xf32, #tpu.memory_space<vmem>>, %arg25: memref<1x64xf32, #tpu.memory_space<vmem>>, %arg26: memref<1x32xf32, #tpu.memory_space<vmem>>, %arg27: memref<1x64xf32, #tpu.memory_space<vmem>>, %arg28: memref<1x32xf32, #tpu.memory_space<vmem>>, %arg29: memref<1x32xf32, #tpu.memory_space<vmem>>, %arg30: memref<1x32xf32, #tpu.memory_space<vmem>>, %arg31: memref<1x96xf32, #tpu.memory_space<vmem>>, %arg32: memref<1x32xf32, #tpu.memory_space<vmem>>, %arg33: memref<1x32xf32, #tpu.memory_space<vmem>>, %arg34: memref<1x32xf32, #tpu.memory_space<vmem>>, %arg35: memref<1x32xf32, #tpu.memory_space<vmem>>, %arg36: memref<1x32xf32, #tpu.memory_space<vmem>>, %arg37: memref<1x32xf32, #tpu.memory_space<vmem>>, %arg38: memref<32x64xf32, #tpu.memory_space<vmem>>, %arg39: memref<64x32xf32, #tpu.memory_space<vmem>>, %arg40: memref<32x64xf32, #tpu.memory_space<vmem>>, %arg41: memref<32x32xf32, #tpu.memory_space<vmem>>, %arg42: memref<32x32xf32, #tpu.memory_space<vmem>>, %arg43: memref<32x32xf32, #tpu.memory_space<vmem>>, %arg44: memref<32x96xf32, #tpu.memory_space<vmem>>, %arg45: memref<1x32xf32, #tpu.memory_space<vmem>>, %arg46: memref<1x32xf32, #tpu.memory_space<vmem>>, %arg47: memref<1x64xf32, #tpu.memory_space<vmem>>, %arg48: memref<1x32xf32, #tpu.memory_space<vmem>>, %arg49: memref<1x32xf32, #tpu.memory_space<vmem>>, %arg50: memref<1x96xf32, #tpu.memory_space<vmem>>, %arg51: memref<1x32xf32, #tpu.memory_space<vmem>>, %arg52: memref<1x32xf32, #tpu.memory_space<vmem>>, %arg53: memref<1x32xf32, #tpu.memory_space<vmem>>, %arg54: memref<1x32xf32, #tpu.memory_space<vmem>>, %arg55: memref<32x64xf32, #tpu.memory_space<vmem>>, %arg56: memref<64x32xf32, #tpu.memory_space<vmem>>, %arg57: memref<32x32xf32, #tpu.memory_space<vmem>>, %arg58: memref<32x96xf32, #tpu.memory_space<vmem>>, %arg59: memref<1x64xf32, #tpu.memory_space<vmem>>, %arg60: memref<1x32xf32, #tpu.memory_space<vmem>>, %arg61: memref<1x32xf32, #tpu.memory_space<vmem>>, %arg62: memref<1x96xf32, #tpu.memory_space<vmem>>, %arg63: memref<1x32xf32, #tpu.memory_space<vmem>>, %arg64: memref<1x32xf32, #tpu.memory_space<vmem>>, %arg65: memref<1x32xf32, #tpu.memory_space<vmem>>, %arg66: memref<1x32xf32, #tpu.memory_space<vmem>>, %arg67: memref<32x64xf32, #tpu.memory_space<vmem>>, %arg68: memref<64x32xf32, #tpu.memory_space<vmem>>, %arg69: memref<32x32xf32, #tpu.memory_space<vmem>>, %arg70: memref<32x96xf32, #tpu.memory_space<vmem>>, %arg71: memref<1x32xf32, #tpu.memory_space<vmem>>, %arg72: memref<1x32xf32, #tpu.memory_space<vmem>>, %arg73: memref<16x32xf32, #tpu.memory_space<vmem>>) attributes {dimension_semantics = [], scalar_prefetch = 0 : i64, scratch_operands = 0 : i64, tpu.core_type = #tpu.core_type<tc>} {
    %c0 = arith.constant 0 : index
    %c0_0 = arith.constant 0 : index
    %c0_1 = arith.constant 0 : index
    %0 = vector.load %arg2[%c0, %c0_0, %c0_1] : memref<2x8x8xf32, #tpu.memory_space<vmem>>, vector<2x8x8xf32>
    %c0_2 = arith.constant 0 : index
    %c0_3 = arith.constant 0 : index
    %c0_4 = arith.constant 0 : index
    %1 = vector.load %arg3[%c0_2, %c0_3, %c0_4] : memref<2x8x8xf32, #tpu.memory_space<vmem>>, vector<2x8x8xf32>
    %c0_5 = arith.constant 0 : index
    %c0_6 = arith.constant 0 : index
    %c0_7 = arith.constant 0 : index
    %2 = vector.load %arg4[%c0_5, %c0_6, %c0_7] : memref<2x8x8xf32, #tpu.memory_space<vmem>>, vector<2x8x8xf32>
    %c0_8 = arith.constant 0 : index
    %c0_9 = arith.constant 0 : index
    %3 = vector.load %arg0[%c0_8, %c0_9] : memref<16x32xf32, #tpu.memory_space<vmem>>, vector<16x32xf32>
    %c0_10 = arith.constant 0 : index
    %c0_11 = arith.constant 0 : index
    %4 = vector.load %arg52[%c0_10, %c0_11] : memref<1x32xf32, #tpu.memory_space<vmem>>, vector<1x32xf32>
    %c0_12 = arith.constant 0 : index
    %c0_13 = arith.constant 0 : index
    %5 = vector.load %arg51[%c0_12, %c0_13] : memref<1x32xf32, #tpu.memory_space<vmem>>, vector<1x32xf32>
    %cst = arith.constant dense<0.000000e+00> : vector<16xf32>
    %6 = vector.multi_reduction <add>, %3, %cst [1] : vector<16x32xf32> to vector<16xf32>
    %7 = vector.shape_cast %6 : vector<16xf32> to vector<16x1xf32>
    %cst_14 = arith.constant 3.200000e+01 : f32
    %8 = vector.broadcast %cst_14 : f32 to vector<16x1xf32>
    %9 = arith.divf %7, %8 : vector<16x1xf32>
    %10 = vector.broadcast %9 : vector<16x1xf32> to vector<16x32xf32>
    %11 = arith.subf %3, %10 : vector<16x32xf32>
    %12 = arith.mulf %11, %11 : vector<16x32xf32>
    %cst_15 = arith.constant dense<0.000000e+00> : vector<16xf32>
    %13 = vector.multi_reduction <add>, %12, %cst_15 [1] : vector<16x32xf32> to vector<16xf32>
    %14 = vector.shape_cast %13 : vector<16xf32> to vector<16x1xf32>
    %cst_16 = arith.constant 3.100000e+01 : f32
    %15 = vector.broadcast %cst_16 : f32 to vector<16x1xf32>
    %16 = arith.divf %14, %15 : vector<16x1xf32>
    %17 = math.sqrt %16 : vector<16x1xf32>
    %18 = vector.broadcast %9 : vector<16x1xf32> to vector<16x32xf32>
    %19 = arith.subf %3, %18 : vector<16x32xf32>
    %20 = vector.broadcast %4 : vector<1x32xf32> to vector<16x32xf32>
    %21 = arith.mulf %20, %19 : vector<16x32xf32>
    %cst_17 = arith.constant 9.99999997E-7 : f32
    %22 = vector.broadcast %cst_17 : f32 to vector<16x1xf32>
    %23 = arith.addf %17, %22 : vector<16x1xf32>
    %24 = vector.broadcast %23 : vector<16x1xf32> to vector<16x32xf32>
    %25 = arith.divf %21, %24 : vector<16x32xf32>
    %26 = vector.broadcast %5 : vector<1x32xf32> to vector<16x32xf32>
    %27 = arith.addf %25, %26 : vector<16x32xf32>
    %c0_18 = arith.constant 0 : index
    %c0_19 = arith.constant 0 : index
    %28 = vector.load %arg58[%c0_18, %c0_19] : memref<32x96xf32, #tpu.memory_space<vmem>>, vector<32x96xf32>
    %cst_20 = arith.constant dense<0.000000e+00> : vector<16x96xf32>
    %29 = tpu.matmul %27, %28, %cst_20 {dimension_numbers = #tpu.dot_dimension_numbers<[1], [0], [0], [1], [0, 0, 1, 1], [], []>} : vector<16x32xf32>, vector<32x96xf32>, vector<16x96xf32> -> vector<16x96xf32>
    %c0_21 = arith.constant 0 : index
    %c0_22 = arith.constant 0 : index
    %30 = vector.load %arg50[%c0_21, %c0_22] : memref<1x96xf32, #tpu.memory_space<vmem>>, vector<1x96xf32>
    %31 = vector.broadcast %30 : vector<1x96xf32> to vector<16x96xf32>
    %32 = arith.addf %29, %31 : vector<16x96xf32>
    %33 = vector.extract_strided_slice %32 {offsets = [0, 0], sizes = [16, 32], strides = [1, 1]} : vector<16x96xf32> to vector<16x32xf32>
    %34 = vector.extract_strided_slice %32 {offsets = [0, 32], sizes = [16, 32], strides = [1, 1]} : vector<16x96xf32> to vector<16x32xf32>
    %35 = vector.extract_strided_slice %32 {offsets = [0, 64], sizes = [16, 32], strides = [1, 1]} : vector<16x96xf32> to vector<16x32xf32>
    %c0_23 = arith.constant 0 : index
    %c0_24 = arith.constant 0 : index
    %36 = vector.load %arg57[%c0_23, %c0_24] : memref<32x32xf32, #tpu.memory_space<vmem>>, vector<32x32xf32>
    %c0_25 = arith.constant 0 : index
    %c0_26 = arith.constant 0 : index
    %37 = vector.load %arg49[%c0_25, %c0_26] : memref<1x32xf32, #tpu.memory_space<vmem>>, vector<1x32xf32>
    %38 = vector.shape_cast %33 : vector<16x32xf32> to vector<2x8x32xf32>
    %39 = vector.shape_cast %34 : vector<16x32xf32> to vector<2x8x32xf32>
    %40 = vector.shape_cast %35 : vector<16x32xf32> to vector<2x8x32xf32>
    %41 = vector.extract_strided_slice %38 {offsets = [0, 0, 0], sizes = [2, 8, 8], strides = [1, 1, 1]} : vector<2x8x32xf32> to vector<2x8x8xf32>
    %42 = vector.extract_strided_slice %39 {offsets = [0, 0, 0], sizes = [2, 8, 8], strides = [1, 1, 1]} : vector<2x8x32xf32> to vector<2x8x8xf32>
    %43 = vector.extract_strided_slice %40 {offsets = [0, 0, 0], sizes = [2, 8, 8], strides = [1, 1, 1]} : vector<2x8x32xf32> to vector<2x8x8xf32>
    "tpu.trace_start"() <{level = 10 : i32, message = "bqd,bkd->bqk"}> : () -> ()
    %cst_27 = arith.constant dense<0.000000e+00> : vector<2x8x8xf32>
    %44 = tpu.matmul %41, %42, %cst_27 {dimension_numbers = #tpu.dot_dimension_numbers<[2], [2], [1], [1], [0, 0, 0, 1, 1, 1], [0], [0]>} : vector<2x8x8xf32>, vector<2x8x8xf32>, vector<2x8x8xf32> -> vector<2x8x8xf32>
    "tpu.trace_stop"() : () -> ()
    %45 = arith.addf %44, %0 : vector<2x8x8xf32>
    %cst_28 = arith.constant dense<0xFF800000> : vector<2x8xf32>
    %46 = vector.multi_reduction <maximumf>, %45, %cst_28 [2] : vector<2x8x8xf32> to vector<2x8xf32>
    %47 = vector.shape_cast %46 : vector<2x8xf32> to vector<2x8x1xf32>
    %48 = vector.broadcast %47 : vector<2x8x1xf32> to vector<2x8x8xf32>
    %49 = arith.subf %45, %48 : vector<2x8x8xf32>
    %50 = math.exp %49 : vector<2x8x8xf32>
    %cst_29 = arith.constant dense<0.000000e+00> : vector<2x8xf32>
    %51 = vector.multi_reduction <add>, %50, %cst_29 [2] : vector<2x8x8xf32> to vector<2x8xf32>
    %52 = vector.shape_cast %51 : vector<2x8xf32> to vector<2x8x1xf32>
    %53 = vector.broadcast %52 : vector<2x8x1xf32> to vector<2x8x8xf32>
    %54 = arith.divf %50, %53 : vector<2x8x8xf32>
    "tpu.trace_start"() <{level = 10 : i32, message = "bqk,bkd->bqd"}> : () -> ()
    %cst_30 = arith.constant dense<0.000000e+00> : vector<2x8x8xf32>
    %55 = tpu.matmul %54, %43, %cst_30 {dimension_numbers = #tpu.dot_dimension_numbers<[2], [1], [1], [2], [0, 0, 0, 1, 1, 2], [0], [0]>} : vector<2x8x8xf32>, vector<2x8x8xf32>, vector<2x8x8xf32> -> vector<2x8x8xf32>
    "tpu.trace_stop"() : () -> ()
    %56 = vector.shape_cast %55 : vector<2x8x8xf32> to vector<16x8xf32>
    %57 = vector.extract_strided_slice %36 {offsets = [0, 0], sizes = [8, 32], strides = [1, 1]} : vector<32x32xf32> to vector<8x32xf32>
    %cst_31 = arith.constant dense<0.000000e+00> : vector<16x32xf32>
    %58 = tpu.matmul %56, %57, %cst_31 {dimension_numbers = #tpu.dot_dimension_numbers<[1], [0], [0], [1], [0, 0, 1, 1], [], []>} : vector<16x8xf32>, vector<8x32xf32>, vector<16x32xf32> -> vector<16x32xf32>
    %59 = vector.extract_strided_slice %38 {offsets = [0, 0, 8], sizes = [2, 8, 8], strides = [1, 1, 1]} : vector<2x8x32xf32> to vector<2x8x8xf32>
    %60 = vector.extract_strided_slice %39 {offsets = [0, 0, 8], sizes = [2, 8, 8], strides = [1, 1, 1]} : vector<2x8x32xf32> to vector<2x8x8xf32>
    %61 = vector.extract_strided_slice %40 {offsets = [0, 0, 8], sizes = [2, 8, 8], strides = [1, 1, 1]} : vector<2x8x32xf32> to vector<2x8x8xf32>
    "tpu.trace_start"() <{level = 10 : i32, message = "bqd,bkd->bqk"}> : () -> ()
    %cst_32 = arith.constant dense<0.000000e+00> : vector<2x8x8xf32>
    %62 = tpu.matmul %59, %60, %cst_32 {dimension_numbers = #tpu.dot_dimension_numbers<[2], [2], [1], [1], [0, 0, 0, 1, 1, 1], [0], [0]>} : vector<2x8x8xf32>, vector<2x8x8xf32>, vector<2x8x8xf32> -> vector<2x8x8xf32>
    "tpu.trace_stop"() : () -> ()
    %63 = arith.addf %62, %0 : vector<2x8x8xf32>
    %cst_33 = arith.constant dense<0xFF800000> : vector<2x8xf32>
    %64 = vector.multi_reduction <maximumf>, %63, %cst_33 [2] : vector<2x8x8xf32> to vector<2x8xf32>
    %65 = vector.shape_cast %64 : vector<2x8xf32> to vector<2x8x1xf32>
    %66 = vector.broadcast %65 : vector<2x8x1xf32> to vector<2x8x8xf32>
    %67 = arith.subf %63, %66 : vector<2x8x8xf32>
    %68 = math.exp %67 : vector<2x8x8xf32>
    %cst_34 = arith.constant dense<0.000000e+00> : vector<2x8xf32>
    %69 = vector.multi_reduction <add>, %68, %cst_34 [2] : vector<2x8x8xf32> to vector<2x8xf32>
    %70 = vector.shape_cast %69 : vector<2x8xf32> to vector<2x8x1xf32>
    %71 = vector.broadcast %70 : vector<2x8x1xf32> to vector<2x8x8xf32>
    %72 = arith.divf %68, %71 : vector<2x8x8xf32>
    "tpu.trace_start"() <{level = 10 : i32, message = "bqk,bkd->bqd"}> : () -> ()
    %cst_35 = arith.constant dense<0.000000e+00> : vector<2x8x8xf32>
    %73 = tpu.matmul %72, %61, %cst_35 {dimension_numbers = #tpu.dot_dimension_numbers<[2], [1], [1], [2], [0, 0, 0, 1, 1, 2], [0], [0]>} : vector<2x8x8xf32>, vector<2x8x8xf32>, vector<2x8x8xf32> -> vector<2x8x8xf32>
    "tpu.trace_stop"() : () -> ()
    %74 = vector.shape_cast %73 : vector<2x8x8xf32> to vector<16x8xf32>
    %75 = vector.extract_strided_slice %36 {offsets = [8, 0], sizes = [8, 32], strides = [1, 1]} : vector<32x32xf32> to vector<8x32xf32>
    %cst_36 = arith.constant dense<0.000000e+00> : vector<16x32xf32>
    %76 = tpu.matmul %74, %75, %cst_36 {dimension_numbers = #tpu.dot_dimension_numbers<[1], [0], [0], [1], [0, 0, 1, 1], [], []>} : vector<16x8xf32>, vector<8x32xf32>, vector<16x32xf32> -> vector<16x32xf32>
    %77 = arith.addf %58, %76 : vector<16x32xf32>
    %78 = vector.extract_strided_slice %38 {offsets = [0, 0, 16], sizes = [2, 8, 8], strides = [1, 1, 1]} : vector<2x8x32xf32> to vector<2x8x8xf32>
    %79 = vector.extract_strided_slice %39 {offsets = [0, 0, 16], sizes = [2, 8, 8], strides = [1, 1, 1]} : vector<2x8x32xf32> to vector<2x8x8xf32>
    %80 = vector.extract_strided_slice %40 {offsets = [0, 0, 16], sizes = [2, 8, 8], strides = [1, 1, 1]} : vector<2x8x32xf32> to vector<2x8x8xf32>
    "tpu.trace_start"() <{level = 10 : i32, message = "bqd,bkd->bqk"}> : () -> ()
    %cst_37 = arith.constant dense<0.000000e+00> : vector<2x8x8xf32>
    %81 = tpu.matmul %78, %79, %cst_37 {dimension_numbers = #tpu.dot_dimension_numbers<[2], [2], [1], [1], [0, 0, 0, 1, 1, 1], [0], [0]>} : vector<2x8x8xf32>, vector<2x8x8xf32>, vector<2x8x8xf32> -> vector<2x8x8xf32>
    "tpu.trace_stop"() : () -> ()
    %82 = arith.addf %81, %0 : vector<2x8x8xf32>
    %cst_38 = arith.constant dense<0xFF800000> : vector<2x8xf32>
    %83 = vector.multi_reduction <maximumf>, %82, %cst_38 [2] : vector<2x8x8xf32> to vector<2x8xf32>
    %84 = vector.shape_cast %83 : vector<2x8xf32> to vector<2x8x1xf32>
    %85 = vector.broadcast %84 : vector<2x8x1xf32> to vector<2x8x8xf32>
    %86 = arith.subf %82, %85 : vector<2x8x8xf32>
    %87 = math.exp %86 : vector<2x8x8xf32>
    %cst_39 = arith.constant dense<0.000000e+00> : vector<2x8xf32>
    %88 = vector.multi_reduction <add>, %87, %cst_39 [2] : vector<2x8x8xf32> to vector<2x8xf32>
    %89 = vector.shape_cast %88 : vector<2x8xf32> to vector<2x8x1xf32>
    %90 = vector.broadcast %89 : vector<2x8x1xf32> to vector<2x8x8xf32>
    %91 = arith.divf %87, %90 : vector<2x8x8xf32>
    "tpu.trace_start"() <{level = 10 : i32, message = "bqk,bkd->bqd"}> : () -> ()
    %cst_40 = arith.constant dense<0.000000e+00> : vector<2x8x8xf32>
    %92 = tpu.matmul %91, %80, %cst_40 {dimension_numbers = #tpu.dot_dimension_numbers<[2], [1], [1], [2], [0, 0, 0, 1, 1, 2], [0], [0]>} : vector<2x8x8xf32>, vector<2x8x8xf32>, vector<2x8x8xf32> -> vector<2x8x8xf32>
    "tpu.trace_stop"() : () -> ()
    %93 = vector.shape_cast %92 : vector<2x8x8xf32> to vector<16x8xf32>
    %94 = vector.extract_strided_slice %36 {offsets = [16, 0], sizes = [8, 32], strides = [1, 1]} : vector<32x32xf32> to vector<8x32xf32>
    %cst_41 = arith.constant dense<0.000000e+00> : vector<16x32xf32>
    %95 = tpu.matmul %93, %94, %cst_41 {dimension_numbers = #tpu.dot_dimension_numbers<[1], [0], [0], [1], [0, 0, 1, 1], [], []>} : vector<16x8xf32>, vector<8x32xf32>, vector<16x32xf32> -> vector<16x32xf32>
    %96 = arith.addf %77, %95 : vector<16x32xf32>
    %97 = vector.extract_strided_slice %38 {offsets = [0, 0, 24], sizes = [2, 8, 8], strides = [1, 1, 1]} : vector<2x8x32xf32> to vector<2x8x8xf32>
    %98 = vector.extract_strided_slice %39 {offsets = [0, 0, 24], sizes = [2, 8, 8], strides = [1, 1, 1]} : vector<2x8x32xf32> to vector<2x8x8xf32>
    %99 = vector.extract_strided_slice %40 {offsets = [0, 0, 24], sizes = [2, 8, 8], strides = [1, 1, 1]} : vector<2x8x32xf32> to vector<2x8x8xf32>
    "tpu.trace_start"() <{level = 10 : i32, message = "bqd,bkd->bqk"}> : () -> ()
    %cst_42 = arith.constant dense<0.000000e+00> : vector<2x8x8xf32>
    %100 = tpu.matmul %97, %98, %cst_42 {dimension_numbers = #tpu.dot_dimension_numbers<[2], [2], [1], [1], [0, 0, 0, 1, 1, 1], [0], [0]>} : vector<2x8x8xf32>, vector<2x8x8xf32>, vector<2x8x8xf32> -> vector<2x8x8xf32>
    "tpu.trace_stop"() : () -> ()
    %101 = arith.addf %100, %0 : vector<2x8x8xf32>
    %cst_43 = arith.constant dense<0xFF800000> : vector<2x8xf32>
    %102 = vector.multi_reduction <maximumf>, %101, %cst_43 [2] : vector<2x8x8xf32> to vector<2x8xf32>
    %103 = vector.shape_cast %102 : vector<2x8xf32> to vector<2x8x1xf32>
    %104 = vector.broadcast %103 : vector<2x8x1xf32> to vector<2x8x8xf32>
    %105 = arith.subf %101, %104 : vector<2x8x8xf32>
    %106 = math.exp %105 : vector<2x8x8xf32>
    %cst_44 = arith.constant dense<0.000000e+00> : vector<2x8xf32>
    %107 = vector.multi_reduction <add>, %106, %cst_44 [2] : vector<2x8x8xf32> to vector<2x8xf32>
    %108 = vector.shape_cast %107 : vector<2x8xf32> to vector<2x8x1xf32>
    %109 = vector.broadcast %108 : vector<2x8x1xf32> to vector<2x8x8xf32>
    %110 = arith.divf %106, %109 : vector<2x8x8xf32>
    "tpu.trace_start"() <{level = 10 : i32, message = "bqk,bkd->bqd"}> : () -> ()
    %cst_45 = arith.constant dense<0.000000e+00> : vector<2x8x8xf32>
    %111 = tpu.matmul %110, %99, %cst_45 {dimension_numbers = #tpu.dot_dimension_numbers<[2], [1], [1], [2], [0, 0, 0, 1, 1, 2], [0], [0]>} : vector<2x8x8xf32>, vector<2x8x8xf32>, vector<2x8x8xf32> -> vector<2x8x8xf32>
    "tpu.trace_stop"() : () -> ()
    %112 = vector.shape_cast %111 : vector<2x8x8xf32> to vector<16x8xf32>
    %113 = vector.extract_strided_slice %36 {offsets = [24, 0], sizes = [8, 32], strides = [1, 1]} : vector<32x32xf32> to vector<8x32xf32>
    %cst_46 = arith.constant dense<0.000000e+00> : vector<16x32xf32>
    %114 = tpu.matmul %112, %113, %cst_46 {dimension_numbers = #tpu.dot_dimension_numbers<[1], [0], [0], [1], [0, 0, 1, 1], [], []>} : vector<16x8xf32>, vector<8x32xf32>, vector<16x32xf32> -> vector<16x32xf32>
    %115 = arith.addf %96, %114 : vector<16x32xf32>
    %116 = vector.broadcast %37 : vector<1x32xf32> to vector<16x32xf32>
    %117 = arith.addf %115, %116 : vector<16x32xf32>
    %118 = arith.addf %3, %117 : vector<16x32xf32>
    %c0_47 = arith.constant 0 : index
    %c0_48 = arith.constant 0 : index
    %119 = vector.load %arg54[%c0_47, %c0_48] : memref<1x32xf32, #tpu.memory_space<vmem>>, vector<1x32xf32>
    %c0_49 = arith.constant 0 : index
    %c0_50 = arith.constant 0 : index
    %120 = vector.load %arg53[%c0_49, %c0_50] : memref<1x32xf32, #tpu.memory_space<vmem>>, vector<1x32xf32>
    %cst_51 = arith.constant dense<0.000000e+00> : vector<16xf32>
    %121 = vector.multi_reduction <add>, %118, %cst_51 [1] : vector<16x32xf32> to vector<16xf32>
    %122 = vector.shape_cast %121 : vector<16xf32> to vector<16x1xf32>
    %cst_52 = arith.constant 3.200000e+01 : f32
    %123 = vector.broadcast %cst_52 : f32 to vector<16x1xf32>
    %124 = arith.divf %122, %123 : vector<16x1xf32>
    %125 = vector.broadcast %124 : vector<16x1xf32> to vector<16x32xf32>
    %126 = arith.subf %118, %125 : vector<16x32xf32>
    %127 = arith.mulf %126, %126 : vector<16x32xf32>
    %cst_53 = arith.constant dense<0.000000e+00> : vector<16xf32>
    %128 = vector.multi_reduction <add>, %127, %cst_53 [1] : vector<16x32xf32> to vector<16xf32>
    %129 = vector.shape_cast %128 : vector<16xf32> to vector<16x1xf32>
    %cst_54 = arith.constant 3.100000e+01 : f32
    %130 = vector.broadcast %cst_54 : f32 to vector<16x1xf32>
    %131 = arith.divf %129, %130 : vector<16x1xf32>
    %132 = math.sqrt %131 : vector<16x1xf32>
    %133 = vector.broadcast %124 : vector<16x1xf32> to vector<16x32xf32>
    %134 = arith.subf %118, %133 : vector<16x32xf32>
    %135 = vector.broadcast %119 : vector<1x32xf32> to vector<16x32xf32>
    %136 = arith.mulf %135, %134 : vector<16x32xf32>
    %cst_55 = arith.constant 9.99999997E-7 : f32
    %137 = vector.broadcast %cst_55 : f32 to vector<16x1xf32>
    %138 = arith.addf %132, %137 : vector<16x1xf32>
    %139 = vector.broadcast %138 : vector<16x1xf32> to vector<16x32xf32>
    %140 = arith.divf %136, %139 : vector<16x32xf32>
    %141 = vector.broadcast %120 : vector<1x32xf32> to vector<16x32xf32>
    %142 = arith.addf %140, %141 : vector<16x32xf32>
    %c0_56 = arith.constant 0 : index
    %c0_57 = arith.constant 0 : index
    %143 = vector.load %arg55[%c0_56, %c0_57] : memref<32x64xf32, #tpu.memory_space<vmem>>, vector<32x64xf32>
    %cst_58 = arith.constant dense<0.000000e+00> : vector<16x64xf32>
    %144 = tpu.matmul %142, %143, %cst_58 {dimension_numbers = #tpu.dot_dimension_numbers<[1], [0], [0], [1], [0, 0, 1, 1], [], []>} : vector<16x32xf32>, vector<32x64xf32>, vector<16x64xf32> -> vector<16x64xf32>
    %c0_59 = arith.constant 0 : index
    %c0_60 = arith.constant 0 : index
    %145 = vector.load %arg47[%c0_59, %c0_60] : memref<1x64xf32, #tpu.memory_space<vmem>>, vector<1x64xf32>
    %146 = vector.broadcast %145 : vector<1x64xf32> to vector<16x64xf32>
    %147 = arith.addf %144, %146 : vector<16x64xf32>
    %cst_61 = arith.constant 0.000000e+00 : f32
    %148 = vector.broadcast %cst_61 : f32 to vector<16x64xf32>
    %149 = arith.maximumf %147, %148 : vector<16x64xf32>
    %c0_62 = arith.constant 0 : index
    %c0_63 = arith.constant 0 : index
    %150 = vector.load %arg56[%c0_62, %c0_63] : memref<64x32xf32, #tpu.memory_space<vmem>>, vector<64x32xf32>
    %cst_64 = arith.constant dense<0.000000e+00> : vector<16x32xf32>
    %151 = tpu.matmul %149, %150, %cst_64 {dimension_numbers = #tpu.dot_dimension_numbers<[1], [0], [0], [1], [0, 0, 1, 1], [], []>} : vector<16x64xf32>, vector<64x32xf32>, vector<16x32xf32> -> vector<16x32xf32>
    %c0_65 = arith.constant 0 : index
    %c0_66 = arith.constant 0 : index
    %152 = vector.load %arg48[%c0_65, %c0_66] : memref<1x32xf32, #tpu.memory_space<vmem>>, vector<1x32xf32>
    %153 = vector.broadcast %152 : vector<1x32xf32> to vector<16x32xf32>
    %154 = arith.addf %151, %153 : vector<16x32xf32>
    %155 = arith.addf %118, %154 : vector<16x32xf32>
    %c0_67 = arith.constant 0 : index
    %c0_68 = arith.constant 0 : index
    %156 = vector.load %arg64[%c0_67, %c0_68] : memref<1x32xf32, #tpu.memory_space<vmem>>, vector<1x32xf32>
    %c0_69 = arith.constant 0 : index
    %c0_70 = arith.constant 0 : index
    %157 = vector.load %arg63[%c0_69, %c0_70] : memref<1x32xf32, #tpu.memory_space<vmem>>, vector<1x32xf32>
    %cst_71 = arith.constant dense<0.000000e+00> : vector<16xf32>
    %158 = vector.multi_reduction <add>, %155, %cst_71 [1] : vector<16x32xf32> to vector<16xf32>
    %159 = vector.shape_cast %158 : vector<16xf32> to vector<16x1xf32>
    %cst_72 = arith.constant 3.200000e+01 : f32
    %160 = vector.broadcast %cst_72 : f32 to vector<16x1xf32>
    %161 = arith.divf %159, %160 : vector<16x1xf32>
    %162 = vector.broadcast %161 : vector<16x1xf32> to vector<16x32xf32>
    %163 = arith.subf %155, %162 : vector<16x32xf32>
    %164 = arith.mulf %163, %163 : vector<16x32xf32>
    %cst_73 = arith.constant dense<0.000000e+00> : vector<16xf32>
    %165 = vector.multi_reduction <add>, %164, %cst_73 [1] : vector<16x32xf32> to vector<16xf32>
    %166 = vector.shape_cast %165 : vector<16xf32> to vector<16x1xf32>
    %cst_74 = arith.constant 3.100000e+01 : f32
    %167 = vector.broadcast %cst_74 : f32 to vector<16x1xf32>
    %168 = arith.divf %166, %167 : vector<16x1xf32>
    %169 = math.sqrt %168 : vector<16x1xf32>
    %170 = vector.broadcast %161 : vector<16x1xf32> to vector<16x32xf32>
    %171 = arith.subf %155, %170 : vector<16x32xf32>
    %172 = vector.broadcast %156 : vector<1x32xf32> to vector<16x32xf32>
    %173 = arith.mulf %172, %171 : vector<16x32xf32>
    %cst_75 = arith.constant 9.99999997E-7 : f32
    %174 = vector.broadcast %cst_75 : f32 to vector<16x1xf32>
    %175 = arith.addf %169, %174 : vector<16x1xf32>
    %176 = vector.broadcast %175 : vector<16x1xf32> to vector<16x32xf32>
    %177 = arith.divf %173, %176 : vector<16x32xf32>
    %178 = vector.broadcast %157 : vector<1x32xf32> to vector<16x32xf32>
    %179 = arith.addf %177, %178 : vector<16x32xf32>
    %c0_76 = arith.constant 0 : index
    %c0_77 = arith.constant 0 : index
    %180 = vector.load %arg70[%c0_76, %c0_77] : memref<32x96xf32, #tpu.memory_space<vmem>>, vector<32x96xf32>
    %cst_78 = arith.constant dense<0.000000e+00> : vector<16x96xf32>
    %181 = tpu.matmul %179, %180, %cst_78 {dimension_numbers = #tpu.dot_dimension_numbers<[1], [0], [0], [1], [0, 0, 1, 1], [], []>} : vector<16x32xf32>, vector<32x96xf32>, vector<16x96xf32> -> vector<16x96xf32>
    %c0_79 = arith.constant 0 : index
    %c0_80 = arith.constant 0 : index
    %182 = vector.load %arg62[%c0_79, %c0_80] : memref<1x96xf32, #tpu.memory_space<vmem>>, vector<1x96xf32>
    %183 = vector.broadcast %182 : vector<1x96xf32> to vector<16x96xf32>
    %184 = arith.addf %181, %183 : vector<16x96xf32>
    %185 = vector.extract_strided_slice %184 {offsets = [0, 0], sizes = [16, 32], strides = [1, 1]} : vector<16x96xf32> to vector<16x32xf32>
    %186 = vector.extract_strided_slice %184 {offsets = [0, 32], sizes = [16, 32], strides = [1, 1]} : vector<16x96xf32> to vector<16x32xf32>
    %187 = vector.extract_strided_slice %184 {offsets = [0, 64], sizes = [16, 32], strides = [1, 1]} : vector<16x96xf32> to vector<16x32xf32>
    %c0_81 = arith.constant 0 : index
    %c0_82 = arith.constant 0 : index
    %188 = vector.load %arg69[%c0_81, %c0_82] : memref<32x32xf32, #tpu.memory_space<vmem>>, vector<32x32xf32>
    %c0_83 = arith.constant 0 : index
    %c0_84 = arith.constant 0 : index
    %189 = vector.load %arg61[%c0_83, %c0_84] : memref<1x32xf32, #tpu.memory_space<vmem>>, vector<1x32xf32>
    %190 = vector.shape_cast %185 : vector<16x32xf32> to vector<2x8x32xf32>
    %191 = vector.shape_cast %186 : vector<16x32xf32> to vector<2x8x32xf32>
    %192 = vector.shape_cast %187 : vector<16x32xf32> to vector<2x8x32xf32>
    %193 = vector.extract_strided_slice %190 {offsets = [0, 0, 0], sizes = [2, 8, 8], strides = [1, 1, 1]} : vector<2x8x32xf32> to vector<2x8x8xf32>
    %194 = vector.extract_strided_slice %191 {offsets = [0, 0, 0], sizes = [2, 8, 8], strides = [1, 1, 1]} : vector<2x8x32xf32> to vector<2x8x8xf32>
    %195 = vector.extract_strided_slice %192 {offsets = [0, 0, 0], sizes = [2, 8, 8], strides = [1, 1, 1]} : vector<2x8x32xf32> to vector<2x8x8xf32>
    "tpu.trace_start"() <{level = 10 : i32, message = "bqd,bkd->bqk"}> : () -> ()
    %cst_85 = arith.constant dense<0.000000e+00> : vector<2x8x8xf32>
    %196 = tpu.matmul %193, %194, %cst_85 {dimension_numbers = #tpu.dot_dimension_numbers<[2], [2], [1], [1], [0, 0, 0, 1, 1, 1], [0], [0]>} : vector<2x8x8xf32>, vector<2x8x8xf32>, vector<2x8x8xf32> -> vector<2x8x8xf32>
    "tpu.trace_stop"() : () -> ()
    %197 = arith.addf %196, %0 : vector<2x8x8xf32>
    %cst_86 = arith.constant dense<0xFF800000> : vector<2x8xf32>
    %198 = vector.multi_reduction <maximumf>, %197, %cst_86 [2] : vector<2x8x8xf32> to vector<2x8xf32>
    %199 = vector.shape_cast %198 : vector<2x8xf32> to vector<2x8x1xf32>
    %200 = vector.broadcast %199 : vector<2x8x1xf32> to vector<2x8x8xf32>
    %201 = arith.subf %197, %200 : vector<2x8x8xf32>
    %202 = math.exp %201 : vector<2x8x8xf32>
    %cst_87 = arith.constant dense<0.000000e+00> : vector<2x8xf32>
    %203 = vector.multi_reduction <add>, %202, %cst_87 [2] : vector<2x8x8xf32> to vector<2x8xf32>
    %204 = vector.shape_cast %203 : vector<2x8xf32> to vector<2x8x1xf32>
    %205 = vector.broadcast %204 : vector<2x8x1xf32> to vector<2x8x8xf32>
    %206 = arith.divf %202, %205 : vector<2x8x8xf32>
    "tpu.trace_start"() <{level = 10 : i32, message = "bqk,bkd->bqd"}> : () -> ()
    %cst_88 = arith.constant dense<0.000000e+00> : vector<2x8x8xf32>
    %207 = tpu.matmul %206, %195, %cst_88 {dimension_numbers = #tpu.dot_dimension_numbers<[2], [1], [1], [2], [0, 0, 0, 1, 1, 2], [0], [0]>} : vector<2x8x8xf32>, vector<2x8x8xf32>, vector<2x8x8xf32> -> vector<2x8x8xf32>
    "tpu.trace_stop"() : () -> ()
    %208 = vector.shape_cast %207 : vector<2x8x8xf32> to vector<16x8xf32>
    %209 = vector.extract_strided_slice %188 {offsets = [0, 0], sizes = [8, 32], strides = [1, 1]} : vector<32x32xf32> to vector<8x32xf32>
    %cst_89 = arith.constant dense<0.000000e+00> : vector<16x32xf32>
    %210 = tpu.matmul %208, %209, %cst_89 {dimension_numbers = #tpu.dot_dimension_numbers<[1], [0], [0], [1], [0, 0, 1, 1], [], []>} : vector<16x8xf32>, vector<8x32xf32>, vector<16x32xf32> -> vector<16x32xf32>
    %211 = vector.extract_strided_slice %190 {offsets = [0, 0, 8], sizes = [2, 8, 8], strides = [1, 1, 1]} : vector<2x8x32xf32> to vector<2x8x8xf32>
    %212 = vector.extract_strided_slice %191 {offsets = [0, 0, 8], sizes = [2, 8, 8], strides = [1, 1, 1]} : vector<2x8x32xf32> to vector<2x8x8xf32>
    %213 = vector.extract_strided_slice %192 {offsets = [0, 0, 8], sizes = [2, 8, 8], strides = [1, 1, 1]} : vector<2x8x32xf32> to vector<2x8x8xf32>
    "tpu.trace_start"() <{level = 10 : i32, message = "bqd,bkd->bqk"}> : () -> ()
    %cst_90 = arith.constant dense<0.000000e+00> : vector<2x8x8xf32>
    %214 = tpu.matmul %211, %212, %cst_90 {dimension_numbers = #tpu.dot_dimension_numbers<[2], [2], [1], [1], [0, 0, 0, 1, 1, 1], [0], [0]>} : vector<2x8x8xf32>, vector<2x8x8xf32>, vector<2x8x8xf32> -> vector<2x8x8xf32>
    "tpu.trace_stop"() : () -> ()
    %215 = arith.addf %214, %0 : vector<2x8x8xf32>
    %cst_91 = arith.constant dense<0xFF800000> : vector<2x8xf32>
    %216 = vector.multi_reduction <maximumf>, %215, %cst_91 [2] : vector<2x8x8xf32> to vector<2x8xf32>
    %217 = vector.shape_cast %216 : vector<2x8xf32> to vector<2x8x1xf32>
    %218 = vector.broadcast %217 : vector<2x8x1xf32> to vector<2x8x8xf32>
    %219 = arith.subf %215, %218 : vector<2x8x8xf32>
    %220 = math.exp %219 : vector<2x8x8xf32>
    %cst_92 = arith.constant dense<0.000000e+00> : vector<2x8xf32>
    %221 = vector.multi_reduction <add>, %220, %cst_92 [2] : vector<2x8x8xf32> to vector<2x8xf32>
    %222 = vector.shape_cast %221 : vector<2x8xf32> to vector<2x8x1xf32>
    %223 = vector.broadcast %222 : vector<2x8x1xf32> to vector<2x8x8xf32>
    %224 = arith.divf %220, %223 : vector<2x8x8xf32>
    "tpu.trace_start"() <{level = 10 : i32, message = "bqk,bkd->bqd"}> : () -> ()
    %cst_93 = arith.constant dense<0.000000e+00> : vector<2x8x8xf32>
    %225 = tpu.matmul %224, %213, %cst_93 {dimension_numbers = #tpu.dot_dimension_numbers<[2], [1], [1], [2], [0, 0, 0, 1, 1, 2], [0], [0]>} : vector<2x8x8xf32>, vector<2x8x8xf32>, vector<2x8x8xf32> -> vector<2x8x8xf32>
    "tpu.trace_stop"() : () -> ()
    %226 = vector.shape_cast %225 : vector<2x8x8xf32> to vector<16x8xf32>
    %227 = vector.extract_strided_slice %188 {offsets = [8, 0], sizes = [8, 32], strides = [1, 1]} : vector<32x32xf32> to vector<8x32xf32>
    %cst_94 = arith.constant dense<0.000000e+00> : vector<16x32xf32>
    %228 = tpu.matmul %226, %227, %cst_94 {dimension_numbers = #tpu.dot_dimension_numbers<[1], [0], [0], [1], [0, 0, 1, 1], [], []>} : vector<16x8xf32>, vector<8x32xf32>, vector<16x32xf32> -> vector<16x32xf32>
    %229 = arith.addf %210, %228 : vector<16x32xf32>
    %230 = vector.extract_strided_slice %190 {offsets = [0, 0, 16], sizes = [2, 8, 8], strides = [1, 1, 1]} : vector<2x8x32xf32> to vector<2x8x8xf32>
    %231 = vector.extract_strided_slice %191 {offsets = [0, 0, 16], sizes = [2, 8, 8], strides = [1, 1, 1]} : vector<2x8x32xf32> to vector<2x8x8xf32>
    %232 = vector.extract_strided_slice %192 {offsets = [0, 0, 16], sizes = [2, 8, 8], strides = [1, 1, 1]} : vector<2x8x32xf32> to vector<2x8x8xf32>
    "tpu.trace_start"() <{level = 10 : i32, message = "bqd,bkd->bqk"}> : () -> ()
    %cst_95 = arith.constant dense<0.000000e+00> : vector<2x8x8xf32>
    %233 = tpu.matmul %230, %231, %cst_95 {dimension_numbers = #tpu.dot_dimension_numbers<[2], [2], [1], [1], [0, 0, 0, 1, 1, 1], [0], [0]>} : vector<2x8x8xf32>, vector<2x8x8xf32>, vector<2x8x8xf32> -> vector<2x8x8xf32>
    "tpu.trace_stop"() : () -> ()
    %234 = arith.addf %233, %0 : vector<2x8x8xf32>
    %cst_96 = arith.constant dense<0xFF800000> : vector<2x8xf32>
    %235 = vector.multi_reduction <maximumf>, %234, %cst_96 [2] : vector<2x8x8xf32> to vector<2x8xf32>
    %236 = vector.shape_cast %235 : vector<2x8xf32> to vector<2x8x1xf32>
    %237 = vector.broadcast %236 : vector<2x8x1xf32> to vector<2x8x8xf32>
    %238 = arith.subf %234, %237 : vector<2x8x8xf32>
    %239 = math.exp %238 : vector<2x8x8xf32>
    %cst_97 = arith.constant dense<0.000000e+00> : vector<2x8xf32>
    %240 = vector.multi_reduction <add>, %239, %cst_97 [2] : vector<2x8x8xf32> to vector<2x8xf32>
    %241 = vector.shape_cast %240 : vector<2x8xf32> to vector<2x8x1xf32>
    %242 = vector.broadcast %241 : vector<2x8x1xf32> to vector<2x8x8xf32>
    %243 = arith.divf %239, %242 : vector<2x8x8xf32>
    "tpu.trace_start"() <{level = 10 : i32, message = "bqk,bkd->bqd"}> : () -> ()
    %cst_98 = arith.constant dense<0.000000e+00> : vector<2x8x8xf32>
    %244 = tpu.matmul %243, %232, %cst_98 {dimension_numbers = #tpu.dot_dimension_numbers<[2], [1], [1], [2], [0, 0, 0, 1, 1, 2], [0], [0]>} : vector<2x8x8xf32>, vector<2x8x8xf32>, vector<2x8x8xf32> -> vector<2x8x8xf32>
    "tpu.trace_stop"() : () -> ()
    %245 = vector.shape_cast %244 : vector<2x8x8xf32> to vector<16x8xf32>
    %246 = vector.extract_strided_slice %188 {offsets = [16, 0], sizes = [8, 32], strides = [1, 1]} : vector<32x32xf32> to vector<8x32xf32>
    %cst_99 = arith.constant dense<0.000000e+00> : vector<16x32xf32>
    %247 = tpu.matmul %245, %246, %cst_99 {dimension_numbers = #tpu.dot_dimension_numbers<[1], [0], [0], [1], [0, 0, 1, 1], [], []>} : vector<16x8xf32>, vector<8x32xf32>, vector<16x32xf32> -> vector<16x32xf32>
    %248 = arith.addf %229, %247 : vector<16x32xf32>
    %249 = vector.extract_strided_slice %190 {offsets = [0, 0, 24], sizes = [2, 8, 8], strides = [1, 1, 1]} : vector<2x8x32xf32> to vector<2x8x8xf32>
    %250 = vector.extract_strided_slice %191 {offsets = [0, 0, 24], sizes = [2, 8, 8], strides = [1, 1, 1]} : vector<2x8x32xf32> to vector<2x8x8xf32>
    %251 = vector.extract_strided_slice %192 {offsets = [0, 0, 24], sizes = [2, 8, 8], strides = [1, 1, 1]} : vector<2x8x32xf32> to vector<2x8x8xf32>
    "tpu.trace_start"() <{level = 10 : i32, message = "bqd,bkd->bqk"}> : () -> ()
    %cst_100 = arith.constant dense<0.000000e+00> : vector<2x8x8xf32>
    %252 = tpu.matmul %249, %250, %cst_100 {dimension_numbers = #tpu.dot_dimension_numbers<[2], [2], [1], [1], [0, 0, 0, 1, 1, 1], [0], [0]>} : vector<2x8x8xf32>, vector<2x8x8xf32>, vector<2x8x8xf32> -> vector<2x8x8xf32>
    "tpu.trace_stop"() : () -> ()
    %253 = arith.addf %252, %0 : vector<2x8x8xf32>
    %cst_101 = arith.constant dense<0xFF800000> : vector<2x8xf32>
    %254 = vector.multi_reduction <maximumf>, %253, %cst_101 [2] : vector<2x8x8xf32> to vector<2x8xf32>
    %255 = vector.shape_cast %254 : vector<2x8xf32> to vector<2x8x1xf32>
    %256 = vector.broadcast %255 : vector<2x8x1xf32> to vector<2x8x8xf32>
    %257 = arith.subf %253, %256 : vector<2x8x8xf32>
    %258 = math.exp %257 : vector<2x8x8xf32>
    %cst_102 = arith.constant dense<0.000000e+00> : vector<2x8xf32>
    %259 = vector.multi_reduction <add>, %258, %cst_102 [2] : vector<2x8x8xf32> to vector<2x8xf32>
    %260 = vector.shape_cast %259 : vector<2x8xf32> to vector<2x8x1xf32>
    %261 = vector.broadcast %260 : vector<2x8x1xf32> to vector<2x8x8xf32>
    %262 = arith.divf %258, %261 : vector<2x8x8xf32>
    "tpu.trace_start"() <{level = 10 : i32, message = "bqk,bkd->bqd"}> : () -> ()
    %cst_103 = arith.constant dense<0.000000e+00> : vector<2x8x8xf32>
    %263 = tpu.matmul %262, %251, %cst_103 {dimension_numbers = #tpu.dot_dimension_numbers<[2], [1], [1], [2], [0, 0, 0, 1, 1, 2], [0], [0]>} : vector<2x8x8xf32>, vector<2x8x8xf32>, vector<2x8x8xf32> -> vector<2x8x8xf32>
    "tpu.trace_stop"() : () -> ()
    %264 = vector.shape_cast %263 : vector<2x8x8xf32> to vector<16x8xf32>
    %265 = vector.extract_strided_slice %188 {offsets = [24, 0], sizes = [8, 32], strides = [1, 1]} : vector<32x32xf32> to vector<8x32xf32>
    %cst_104 = arith.constant dense<0.000000e+00> : vector<16x32xf32>
    %266 = tpu.matmul %264, %265, %cst_104 {dimension_numbers = #tpu.dot_dimension_numbers<[1], [0], [0], [1], [0, 0, 1, 1], [], []>} : vector<16x8xf32>, vector<8x32xf32>, vector<16x32xf32> -> vector<16x32xf32>
    %267 = arith.addf %248, %266 : vector<16x32xf32>
    %268 = vector.broadcast %189 : vector<1x32xf32> to vector<16x32xf32>
    %269 = arith.addf %267, %268 : vector<16x32xf32>
    %270 = arith.addf %155, %269 : vector<16x32xf32>
    %c0_105 = arith.constant 0 : index
    %c0_106 = arith.constant 0 : index
    %271 = vector.load %arg66[%c0_105, %c0_106] : memref<1x32xf32, #tpu.memory_space<vmem>>, vector<1x32xf32>
    %c0_107 = arith.constant 0 : index
    %c0_108 = arith.constant 0 : index
    %272 = vector.load %arg65[%c0_107, %c0_108] : memref<1x32xf32, #tpu.memory_space<vmem>>, vector<1x32xf32>
    %cst_109 = arith.constant dense<0.000000e+00> : vector<16xf32>
    %273 = vector.multi_reduction <add>, %270, %cst_109 [1] : vector<16x32xf32> to vector<16xf32>
    %274 = vector.shape_cast %273 : vector<16xf32> to vector<16x1xf32>
    %cst_110 = arith.constant 3.200000e+01 : f32
    %275 = vector.broadcast %cst_110 : f32 to vector<16x1xf32>
    %276 = arith.divf %274, %275 : vector<16x1xf32>
    %277 = vector.broadcast %276 : vector<16x1xf32> to vector<16x32xf32>
    %278 = arith.subf %270, %277 : vector<16x32xf32>
    %279 = arith.mulf %278, %278 : vector<16x32xf32>
    %cst_111 = arith.constant dense<0.000000e+00> : vector<16xf32>
    %280 = vector.multi_reduction <add>, %279, %cst_111 [1] : vector<16x32xf32> to vector<16xf32>
    %281 = vector.shape_cast %280 : vector<16xf32> to vector<16x1xf32>
    %cst_112 = arith.constant 3.100000e+01 : f32
    %282 = vector.broadcast %cst_112 : f32 to vector<16x1xf32>
    %283 = arith.divf %281, %282 : vector<16x1xf32>
    %284 = math.sqrt %283 : vector<16x1xf32>
    %285 = vector.broadcast %276 : vector<16x1xf32> to vector<16x32xf32>
    %286 = arith.subf %270, %285 : vector<16x32xf32>
    %287 = vector.broadcast %271 : vector<1x32xf32> to vector<16x32xf32>
    %288 = arith.mulf %287, %286 : vector<16x32xf32>
    %cst_113 = arith.constant 9.99999997E-7 : f32
    %289 = vector.broadcast %cst_113 : f32 to vector<16x1xf32>
    %290 = arith.addf %284, %289 : vector<16x1xf32>
    %291 = vector.broadcast %290 : vector<16x1xf32> to vector<16x32xf32>
    %292 = arith.divf %288, %291 : vector<16x32xf32>
    %293 = vector.broadcast %272 : vector<1x32xf32> to vector<16x32xf32>
    %294 = arith.addf %292, %293 : vector<16x32xf32>
    %c0_114 = arith.constant 0 : index
    %c0_115 = arith.constant 0 : index
    %295 = vector.load %arg67[%c0_114, %c0_115] : memref<32x64xf32, #tpu.memory_space<vmem>>, vector<32x64xf32>
    %cst_116 = arith.constant dense<0.000000e+00> : vector<16x64xf32>
    %296 = tpu.matmul %294, %295, %cst_116 {dimension_numbers = #tpu.dot_dimension_numbers<[1], [0], [0], [1], [0, 0, 1, 1], [], []>} : vector<16x32xf32>, vector<32x64xf32>, vector<16x64xf32> -> vector<16x64xf32>
    %c0_117 = arith.constant 0 : index
    %c0_118 = arith.constant 0 : index
    %297 = vector.load %arg59[%c0_117, %c0_118] : memref<1x64xf32, #tpu.memory_space<vmem>>, vector<1x64xf32>
    %298 = vector.broadcast %297 : vector<1x64xf32> to vector<16x64xf32>
    %299 = arith.addf %296, %298 : vector<16x64xf32>
    %cst_119 = arith.constant 0.000000e+00 : f32
    %300 = vector.broadcast %cst_119 : f32 to vector<16x64xf32>
    %301 = arith.maximumf %299, %300 : vector<16x64xf32>
    %c0_120 = arith.constant 0 : index
    %c0_121 = arith.constant 0 : index
    %302 = vector.load %arg68[%c0_120, %c0_121] : memref<64x32xf32, #tpu.memory_space<vmem>>, vector<64x32xf32>
    %cst_122 = arith.constant dense<0.000000e+00> : vector<16x32xf32>
    %303 = tpu.matmul %301, %302, %cst_122 {dimension_numbers = #tpu.dot_dimension_numbers<[1], [0], [0], [1], [0, 0, 1, 1], [], []>} : vector<16x64xf32>, vector<64x32xf32>, vector<16x32xf32> -> vector<16x32xf32>
    %c0_123 = arith.constant 0 : index
    %c0_124 = arith.constant 0 : index
    %304 = vector.load %arg60[%c0_123, %c0_124] : memref<1x32xf32, #tpu.memory_space<vmem>>, vector<1x32xf32>
    %305 = vector.broadcast %304 : vector<1x32xf32> to vector<16x32xf32>
    %306 = arith.addf %303, %305 : vector<16x32xf32>
    %307 = arith.addf %270, %306 : vector<16x32xf32>
    %c0_125 = arith.constant 0 : index
    %c0_126 = arith.constant 0 : index
    %308 = vector.load %arg72[%c0_125, %c0_126] : memref<1x32xf32, #tpu.memory_space<vmem>>, vector<1x32xf32>
    %c0_127 = arith.constant 0 : index
    %c0_128 = arith.constant 0 : index
    %309 = vector.load %arg71[%c0_127, %c0_128] : memref<1x32xf32, #tpu.memory_space<vmem>>, vector<1x32xf32>
    %cst_129 = arith.constant dense<0.000000e+00> : vector<16xf32>
    %310 = vector.multi_reduction <add>, %307, %cst_129 [1] : vector<16x32xf32> to vector<16xf32>
    %311 = vector.shape_cast %310 : vector<16xf32> to vector<16x1xf32>
    %cst_130 = arith.constant 3.200000e+01 : f32
    %312 = vector.broadcast %cst_130 : f32 to vector<16x1xf32>
    %313 = arith.divf %311, %312 : vector<16x1xf32>
    %314 = vector.broadcast %313 : vector<16x1xf32> to vector<16x32xf32>
    %315 = arith.subf %307, %314 : vector<16x32xf32>
    %316 = arith.mulf %315, %315 : vector<16x32xf32>
    %cst_131 = arith.constant dense<0.000000e+00> : vector<16xf32>
    %317 = vector.multi_reduction <add>, %316, %cst_131 [1] : vector<16x32xf32> to vector<16xf32>
    %318 = vector.shape_cast %317 : vector<16xf32> to vector<16x1xf32>
    %cst_132 = arith.constant 3.100000e+01 : f32
    %319 = vector.broadcast %cst_132 : f32 to vector<16x1xf32>
    %320 = arith.divf %318, %319 : vector<16x1xf32>
    %321 = math.sqrt %320 : vector<16x1xf32>
    %322 = vector.broadcast %313 : vector<16x1xf32> to vector<16x32xf32>
    %323 = arith.subf %307, %322 : vector<16x32xf32>
    %324 = vector.broadcast %308 : vector<1x32xf32> to vector<16x32xf32>
    %325 = arith.mulf %324, %323 : vector<16x32xf32>
    %cst_133 = arith.constant 9.99999997E-7 : f32
    %326 = vector.broadcast %cst_133 : f32 to vector<16x1xf32>
    %327 = arith.addf %321, %326 : vector<16x1xf32>
    %328 = vector.broadcast %327 : vector<16x1xf32> to vector<16x32xf32>
    %329 = arith.divf %325, %328 : vector<16x32xf32>
    %330 = vector.broadcast %309 : vector<1x32xf32> to vector<16x32xf32>
    %331 = arith.addf %329, %330 : vector<16x32xf32>
    %c0_134 = arith.constant 0 : index
    %c0_135 = arith.constant 0 : index
    %332 = vector.load %arg1[%c0_134, %c0_135] : memref<16x32xf32, #tpu.memory_space<vmem>>, vector<16x32xf32>
    %c0_136 = arith.constant 0 : index
    %c0_137 = arith.constant 0 : index
    %333 = vector.load %arg13[%c0_136, %c0_137] : memref<1x32xf32, #tpu.memory_space<vmem>>, vector<1x32xf32>
    %c0_138 = arith.constant 0 : index
    %c0_139 = arith.constant 0 : index
    %334 = vector.load %arg12[%c0_138, %c0_139] : memref<1x32xf32, #tpu.memory_space<vmem>>, vector<1x32xf32>
    %cst_140 = arith.constant dense<0.000000e+00> : vector<16xf32>
    %335 = vector.multi_reduction <add>, %332, %cst_140 [1] : vector<16x32xf32> to vector<16xf32>
    %336 = vector.shape_cast %335 : vector<16xf32> to vector<16x1xf32>
    %cst_141 = arith.constant 3.200000e+01 : f32
    %337 = vector.broadcast %cst_141 : f32 to vector<16x1xf32>
    %338 = arith.divf %336, %337 : vector<16x1xf32>
    %339 = vector.broadcast %338 : vector<16x1xf32> to vector<16x32xf32>
    %340 = arith.subf %332, %339 : vector<16x32xf32>
    %341 = arith.mulf %340, %340 : vector<16x32xf32>
    %cst_142 = arith.constant dense<0.000000e+00> : vector<16xf32>
    %342 = vector.multi_reduction <add>, %341, %cst_142 [1] : vector<16x32xf32> to vector<16xf32>
    %343 = vector.shape_cast %342 : vector<16xf32> to vector<16x1xf32>
    %cst_143 = arith.constant 3.100000e+01 : f32
    %344 = vector.broadcast %cst_143 : f32 to vector<16x1xf32>
    %345 = arith.divf %343, %344 : vector<16x1xf32>
    %346 = math.sqrt %345 : vector<16x1xf32>
    %347 = vector.broadcast %338 : vector<16x1xf32> to vector<16x32xf32>
    %348 = arith.subf %332, %347 : vector<16x32xf32>
    %349 = vector.broadcast %333 : vector<1x32xf32> to vector<16x32xf32>
    %350 = arith.mulf %349, %348 : vector<16x32xf32>
    %cst_144 = arith.constant 9.99999997E-7 : f32
    %351 = vector.broadcast %cst_144 : f32 to vector<16x1xf32>
    %352 = arith.addf %346, %351 : vector<16x1xf32>
    %353 = vector.broadcast %352 : vector<16x1xf32> to vector<16x32xf32>
    %354 = arith.divf %350, %353 : vector<16x32xf32>
    %355 = vector.broadcast %334 : vector<1x32xf32> to vector<16x32xf32>
    %356 = arith.addf %354, %355 : vector<16x32xf32>
    %c0_145 = arith.constant 0 : index
    %c0_146 = arith.constant 0 : index
    %357 = vector.load %arg24[%c0_145, %c0_146] : memref<32x96xf32, #tpu.memory_space<vmem>>, vector<32x96xf32>
    %cst_147 = arith.constant dense<0.000000e+00> : vector<16x96xf32>
    %358 = tpu.matmul %356, %357, %cst_147 {dimension_numbers = #tpu.dot_dimension_numbers<[1], [0], [0], [1], [0, 0, 1, 1], [], []>} : vector<16x32xf32>, vector<32x96xf32>, vector<16x96xf32> -> vector<16x96xf32>
    %c0_148 = arith.constant 0 : index
    %c0_149 = arith.constant 0 : index
    %359 = vector.load %arg11[%c0_148, %c0_149] : memref<1x96xf32, #tpu.memory_space<vmem>>, vector<1x96xf32>
    %360 = vector.broadcast %359 : vector<1x96xf32> to vector<16x96xf32>
    %361 = arith.addf %358, %360 : vector<16x96xf32>
    %362 = vector.extract_strided_slice %361 {offsets = [0, 0], sizes = [16, 32], strides = [1, 1]} : vector<16x96xf32> to vector<16x32xf32>
    %363 = vector.extract_strided_slice %361 {offsets = [0, 32], sizes = [16, 32], strides = [1, 1]} : vector<16x96xf32> to vector<16x32xf32>
    %364 = vector.extract_strided_slice %361 {offsets = [0, 64], sizes = [16, 32], strides = [1, 1]} : vector<16x96xf32> to vector<16x32xf32>
    %c0_150 = arith.constant 0 : index
    %c0_151 = arith.constant 0 : index
    %365 = vector.load %arg22[%c0_150, %c0_151] : memref<32x32xf32, #tpu.memory_space<vmem>>, vector<32x32xf32>
    %c0_152 = arith.constant 0 : index
    %c0_153 = arith.constant 0 : index
    %366 = vector.load %arg9[%c0_152, %c0_153] : memref<1x32xf32, #tpu.memory_space<vmem>>, vector<1x32xf32>
    %367 = vector.shape_cast %362 : vector<16x32xf32> to vector<2x8x32xf32>
    %368 = vector.shape_cast %363 : vector<16x32xf32> to vector<2x8x32xf32>
    %369 = vector.shape_cast %364 : vector<16x32xf32> to vector<2x8x32xf32>
    %370 = vector.extract_strided_slice %367 {offsets = [0, 0, 0], sizes = [2, 8, 8], strides = [1, 1, 1]} : vector<2x8x32xf32> to vector<2x8x8xf32>
    %371 = vector.extract_strided_slice %368 {offsets = [0, 0, 0], sizes = [2, 8, 8], strides = [1, 1, 1]} : vector<2x8x32xf32> to vector<2x8x8xf32>
    %372 = vector.extract_strided_slice %369 {offsets = [0, 0, 0], sizes = [2, 8, 8], strides = [1, 1, 1]} : vector<2x8x32xf32> to vector<2x8x8xf32>
    "tpu.trace_start"() <{level = 10 : i32, message = "bqd,bkd->bqk"}> : () -> ()
    %cst_154 = arith.constant dense<0.000000e+00> : vector<2x8x8xf32>
    %373 = tpu.matmul %370, %371, %cst_154 {dimension_numbers = #tpu.dot_dimension_numbers<[2], [2], [1], [1], [0, 0, 0, 1, 1, 1], [0], [0]>} : vector<2x8x8xf32>, vector<2x8x8xf32>, vector<2x8x8xf32> -> vector<2x8x8xf32>
    "tpu.trace_stop"() : () -> ()
    %374 = arith.addf %373, %1 : vector<2x8x8xf32>
    %cst_155 = arith.constant dense<0xFF800000> : vector<2x8xf32>
    %375 = vector.multi_reduction <maximumf>, %374, %cst_155 [2] : vector<2x8x8xf32> to vector<2x8xf32>
    %376 = vector.shape_cast %375 : vector<2x8xf32> to vector<2x8x1xf32>
    %377 = vector.broadcast %376 : vector<2x8x1xf32> to vector<2x8x8xf32>
    %378 = arith.subf %374, %377 : vector<2x8x8xf32>
    %379 = math.exp %378 : vector<2x8x8xf32>
    %cst_156 = arith.constant dense<0.000000e+00> : vector<2x8xf32>
    %380 = vector.multi_reduction <add>, %379, %cst_156 [2] : vector<2x8x8xf32> to vector<2x8xf32>
    %381 = vector.shape_cast %380 : vector<2x8xf32> to vector<2x8x1xf32>
    %382 = vector.broadcast %381 : vector<2x8x1xf32> to vector<2x8x8xf32>
    %383 = arith.divf %379, %382 : vector<2x8x8xf32>
    "tpu.trace_start"() <{level = 10 : i32, message = "bqk,bkd->bqd"}> : () -> ()
    %cst_157 = arith.constant dense<0.000000e+00> : vector<2x8x8xf32>
    %384 = tpu.matmul %383, %372, %cst_157 {dimension_numbers = #tpu.dot_dimension_numbers<[2], [1], [1], [2], [0, 0, 0, 1, 1, 2], [0], [0]>} : vector<2x8x8xf32>, vector<2x8x8xf32>, vector<2x8x8xf32> -> vector<2x8x8xf32>
    "tpu.trace_stop"() : () -> ()
    %385 = vector.shape_cast %384 : vector<2x8x8xf32> to vector<16x8xf32>
    %386 = vector.extract_strided_slice %365 {offsets = [0, 0], sizes = [8, 32], strides = [1, 1]} : vector<32x32xf32> to vector<8x32xf32>
    %cst_158 = arith.constant dense<0.000000e+00> : vector<16x32xf32>
    %387 = tpu.matmul %385, %386, %cst_158 {dimension_numbers = #tpu.dot_dimension_numbers<[1], [0], [0], [1], [0, 0, 1, 1], [], []>} : vector<16x8xf32>, vector<8x32xf32>, vector<16x32xf32> -> vector<16x32xf32>
    %388 = vector.extract_strided_slice %367 {offsets = [0, 0, 8], sizes = [2, 8, 8], strides = [1, 1, 1]} : vector<2x8x32xf32> to vector<2x8x8xf32>
    %389 = vector.extract_strided_slice %368 {offsets = [0, 0, 8], sizes = [2, 8, 8], strides = [1, 1, 1]} : vector<2x8x32xf32> to vector<2x8x8xf32>
    %390 = vector.extract_strided_slice %369 {offsets = [0, 0, 8], sizes = [2, 8, 8], strides = [1, 1, 1]} : vector<2x8x32xf32> to vector<2x8x8xf32>
    "tpu.trace_start"() <{level = 10 : i32, message = "bqd,bkd->bqk"}> : () -> ()
    %cst_159 = arith.constant dense<0.000000e+00> : vector<2x8x8xf32>
    %391 = tpu.matmul %388, %389, %cst_159 {dimension_numbers = #tpu.dot_dimension_numbers<[2], [2], [1], [1], [0, 0, 0, 1, 1, 1], [0], [0]>} : vector<2x8x8xf32>, vector<2x8x8xf32>, vector<2x8x8xf32> -> vector<2x8x8xf32>
    "tpu.trace_stop"() : () -> ()
    %392 = arith.addf %391, %1 : vector<2x8x8xf32>
    %cst_160 = arith.constant dense<0xFF800000> : vector<2x8xf32>
    %393 = vector.multi_reduction <maximumf>, %392, %cst_160 [2] : vector<2x8x8xf32> to vector<2x8xf32>
    %394 = vector.shape_cast %393 : vector<2x8xf32> to vector<2x8x1xf32>
    %395 = vector.broadcast %394 : vector<2x8x1xf32> to vector<2x8x8xf32>
    %396 = arith.subf %392, %395 : vector<2x8x8xf32>
    %397 = math.exp %396 : vector<2x8x8xf32>
    %cst_161 = arith.constant dense<0.000000e+00> : vector<2x8xf32>
    %398 = vector.multi_reduction <add>, %397, %cst_161 [2] : vector<2x8x8xf32> to vector<2x8xf32>
    %399 = vector.shape_cast %398 : vector<2x8xf32> to vector<2x8x1xf32>
    %400 = vector.broadcast %399 : vector<2x8x1xf32> to vector<2x8x8xf32>
    %401 = arith.divf %397, %400 : vector<2x8x8xf32>
    "tpu.trace_start"() <{level = 10 : i32, message = "bqk,bkd->bqd"}> : () -> ()
    %cst_162 = arith.constant dense<0.000000e+00> : vector<2x8x8xf32>
    %402 = tpu.matmul %401, %390, %cst_162 {dimension_numbers = #tpu.dot_dimension_numbers<[2], [1], [1], [2], [0, 0, 0, 1, 1, 2], [0], [0]>} : vector<2x8x8xf32>, vector<2x8x8xf32>, vector<2x8x8xf32> -> vector<2x8x8xf32>
    "tpu.trace_stop"() : () -> ()
    %403 = vector.shape_cast %402 : vector<2x8x8xf32> to vector<16x8xf32>
    %404 = vector.extract_strided_slice %365 {offsets = [8, 0], sizes = [8, 32], strides = [1, 1]} : vector<32x32xf32> to vector<8x32xf32>
    %cst_163 = arith.constant dense<0.000000e+00> : vector<16x32xf32>
    %405 = tpu.matmul %403, %404, %cst_163 {dimension_numbers = #tpu.dot_dimension_numbers<[1], [0], [0], [1], [0, 0, 1, 1], [], []>} : vector<16x8xf32>, vector<8x32xf32>, vector<16x32xf32> -> vector<16x32xf32>
    %406 = arith.addf %387, %405 : vector<16x32xf32>
    %407 = vector.extract_strided_slice %367 {offsets = [0, 0, 16], sizes = [2, 8, 8], strides = [1, 1, 1]} : vector<2x8x32xf32> to vector<2x8x8xf32>
    %408 = vector.extract_strided_slice %368 {offsets = [0, 0, 16], sizes = [2, 8, 8], strides = [1, 1, 1]} : vector<2x8x32xf32> to vector<2x8x8xf32>
    %409 = vector.extract_strided_slice %369 {offsets = [0, 0, 16], sizes = [2, 8, 8], strides = [1, 1, 1]} : vector<2x8x32xf32> to vector<2x8x8xf32>
    "tpu.trace_start"() <{level = 10 : i32, message = "bqd,bkd->bqk"}> : () -> ()
    %cst_164 = arith.constant dense<0.000000e+00> : vector<2x8x8xf32>
    %410 = tpu.matmul %407, %408, %cst_164 {dimension_numbers = #tpu.dot_dimension_numbers<[2], [2], [1], [1], [0, 0, 0, 1, 1, 1], [0], [0]>} : vector<2x8x8xf32>, vector<2x8x8xf32>, vector<2x8x8xf32> -> vector<2x8x8xf32>
    "tpu.trace_stop"() : () -> ()
    %411 = arith.addf %410, %1 : vector<2x8x8xf32>
    %cst_165 = arith.constant dense<0xFF800000> : vector<2x8xf32>
    %412 = vector.multi_reduction <maximumf>, %411, %cst_165 [2] : vector<2x8x8xf32> to vector<2x8xf32>
    %413 = vector.shape_cast %412 : vector<2x8xf32> to vector<2x8x1xf32>
    %414 = vector.broadcast %413 : vector<2x8x1xf32> to vector<2x8x8xf32>
    %415 = arith.subf %411, %414 : vector<2x8x8xf32>
    %416 = math.exp %415 : vector<2x8x8xf32>
    %cst_166 = arith.constant dense<0.000000e+00> : vector<2x8xf32>
    %417 = vector.multi_reduction <add>, %416, %cst_166 [2] : vector<2x8x8xf32> to vector<2x8xf32>
    %418 = vector.shape_cast %417 : vector<2x8xf32> to vector<2x8x1xf32>
    %419 = vector.broadcast %418 : vector<2x8x1xf32> to vector<2x8x8xf32>
    %420 = arith.divf %416, %419 : vector<2x8x8xf32>
    "tpu.trace_start"() <{level = 10 : i32, message = "bqk,bkd->bqd"}> : () -> ()
    %cst_167 = arith.constant dense<0.000000e+00> : vector<2x8x8xf32>
    %421 = tpu.matmul %420, %409, %cst_167 {dimension_numbers = #tpu.dot_dimension_numbers<[2], [1], [1], [2], [0, 0, 0, 1, 1, 2], [0], [0]>} : vector<2x8x8xf32>, vector<2x8x8xf32>, vector<2x8x8xf32> -> vector<2x8x8xf32>
    "tpu.trace_stop"() : () -> ()
    %422 = vector.shape_cast %421 : vector<2x8x8xf32> to vector<16x8xf32>
    %423 = vector.extract_strided_slice %365 {offsets = [16, 0], sizes = [8, 32], strides = [1, 1]} : vector<32x32xf32> to vector<8x32xf32>
    %cst_168 = arith.constant dense<0.000000e+00> : vector<16x32xf32>
    %424 = tpu.matmul %422, %423, %cst_168 {dimension_numbers = #tpu.dot_dimension_numbers<[1], [0], [0], [1], [0, 0, 1, 1], [], []>} : vector<16x8xf32>, vector<8x32xf32>, vector<16x32xf32> -> vector<16x32xf32>
    %425 = arith.addf %406, %424 : vector<16x32xf32>
    %426 = vector.extract_strided_slice %367 {offsets = [0, 0, 24], sizes = [2, 8, 8], strides = [1, 1, 1]} : vector<2x8x32xf32> to vector<2x8x8xf32>
    %427 = vector.extract_strided_slice %368 {offsets = [0, 0, 24], sizes = [2, 8, 8], strides = [1, 1, 1]} : vector<2x8x32xf32> to vector<2x8x8xf32>
    %428 = vector.extract_strided_slice %369 {offsets = [0, 0, 24], sizes = [2, 8, 8], strides = [1, 1, 1]} : vector<2x8x32xf32> to vector<2x8x8xf32>
    "tpu.trace_start"() <{level = 10 : i32, message = "bqd,bkd->bqk"}> : () -> ()
    %cst_169 = arith.constant dense<0.000000e+00> : vector<2x8x8xf32>
    %429 = tpu.matmul %426, %427, %cst_169 {dimension_numbers = #tpu.dot_dimension_numbers<[2], [2], [1], [1], [0, 0, 0, 1, 1, 1], [0], [0]>} : vector<2x8x8xf32>, vector<2x8x8xf32>, vector<2x8x8xf32> -> vector<2x8x8xf32>
    "tpu.trace_stop"() : () -> ()
    %430 = arith.addf %429, %1 : vector<2x8x8xf32>
    %cst_170 = arith.constant dense<0xFF800000> : vector<2x8xf32>
    %431 = vector.multi_reduction <maximumf>, %430, %cst_170 [2] : vector<2x8x8xf32> to vector<2x8xf32>
    %432 = vector.shape_cast %431 : vector<2x8xf32> to vector<2x8x1xf32>
    %433 = vector.broadcast %432 : vector<2x8x1xf32> to vector<2x8x8xf32>
    %434 = arith.subf %430, %433 : vector<2x8x8xf32>
    %435 = math.exp %434 : vector<2x8x8xf32>
    %cst_171 = arith.constant dense<0.000000e+00> : vector<2x8xf32>
    %436 = vector.multi_reduction <add>, %435, %cst_171 [2] : vector<2x8x8xf32> to vector<2x8xf32>
    %437 = vector.shape_cast %436 : vector<2x8xf32> to vector<2x8x1xf32>
    %438 = vector.broadcast %437 : vector<2x8x1xf32> to vector<2x8x8xf32>
    %439 = arith.divf %435, %438 : vector<2x8x8xf32>
    "tpu.trace_start"() <{level = 10 : i32, message = "bqk,bkd->bqd"}> : () -> ()
    %cst_172 = arith.constant dense<0.000000e+00> : vector<2x8x8xf32>
    %440 = tpu.matmul %439, %428, %cst_172 {dimension_numbers = #tpu.dot_dimension_numbers<[2], [1], [1], [2], [0, 0, 0, 1, 1, 2], [0], [0]>} : vector<2x8x8xf32>, vector<2x8x8xf32>, vector<2x8x8xf32> -> vector<2x8x8xf32>
    "tpu.trace_stop"() : () -> ()
    %441 = vector.shape_cast %440 : vector<2x8x8xf32> to vector<16x8xf32>
    %442 = vector.extract_strided_slice %365 {offsets = [24, 0], sizes = [8, 32], strides = [1, 1]} : vector<32x32xf32> to vector<8x32xf32>
    %cst_173 = arith.constant dense<0.000000e+00> : vector<16x32xf32>
    %443 = tpu.matmul %441, %442, %cst_173 {dimension_numbers = #tpu.dot_dimension_numbers<[1], [0], [0], [1], [0, 0, 1, 1], [], []>} : vector<16x8xf32>, vector<8x32xf32>, vector<16x32xf32> -> vector<16x32xf32>
    %444 = arith.addf %425, %443 : vector<16x32xf32>
    %445 = vector.broadcast %366 : vector<1x32xf32> to vector<16x32xf32>
    %446 = arith.addf %444, %445 : vector<16x32xf32>
    %447 = arith.addf %332, %446 : vector<16x32xf32>
    %c0_174 = arith.constant 0 : index
    %c0_175 = arith.constant 0 : index
    %448 = vector.load %arg15[%c0_174, %c0_175] : memref<1x32xf32, #tpu.memory_space<vmem>>, vector<1x32xf32>
    %c0_176 = arith.constant 0 : index
    %c0_177 = arith.constant 0 : index
    %449 = vector.load %arg14[%c0_176, %c0_177] : memref<1x32xf32, #tpu.memory_space<vmem>>, vector<1x32xf32>
    %cst_178 = arith.constant dense<0.000000e+00> : vector<16xf32>
    %450 = vector.multi_reduction <add>, %447, %cst_178 [1] : vector<16x32xf32> to vector<16xf32>
    %451 = vector.shape_cast %450 : vector<16xf32> to vector<16x1xf32>
    %cst_179 = arith.constant 3.200000e+01 : f32
    %452 = vector.broadcast %cst_179 : f32 to vector<16x1xf32>
    %453 = arith.divf %451, %452 : vector<16x1xf32>
    %454 = vector.broadcast %453 : vector<16x1xf32> to vector<16x32xf32>
    %455 = arith.subf %447, %454 : vector<16x32xf32>
    %456 = arith.mulf %455, %455 : vector<16x32xf32>
    %cst_180 = arith.constant dense<0.000000e+00> : vector<16xf32>
    %457 = vector.multi_reduction <add>, %456, %cst_180 [1] : vector<16x32xf32> to vector<16xf32>
    %458 = vector.shape_cast %457 : vector<16xf32> to vector<16x1xf32>
    %cst_181 = arith.constant 3.100000e+01 : f32
    %459 = vector.broadcast %cst_181 : f32 to vector<16x1xf32>
    %460 = arith.divf %458, %459 : vector<16x1xf32>
    %461 = math.sqrt %460 : vector<16x1xf32>
    %462 = vector.broadcast %453 : vector<16x1xf32> to vector<16x32xf32>
    %463 = arith.subf %447, %462 : vector<16x32xf32>
    %464 = vector.broadcast %448 : vector<1x32xf32> to vector<16x32xf32>
    %465 = arith.mulf %464, %463 : vector<16x32xf32>
    %cst_182 = arith.constant 9.99999997E-7 : f32
    %466 = vector.broadcast %cst_182 : f32 to vector<16x1xf32>
    %467 = arith.addf %461, %466 : vector<16x1xf32>
    %468 = vector.broadcast %467 : vector<16x1xf32> to vector<16x32xf32>
    %469 = arith.divf %465, %468 : vector<16x32xf32>
    %470 = vector.broadcast %449 : vector<1x32xf32> to vector<16x32xf32>
    %471 = arith.addf %469, %470 : vector<16x32xf32>
    %c0_183 = arith.constant 0 : index
    %c0_184 = arith.constant 0 : index
    %472 = vector.load %arg23[%c0_183, %c0_184] : memref<32x32xf32, #tpu.memory_space<vmem>>, vector<32x32xf32>
    %cst_185 = arith.constant dense<0.000000e+00> : vector<16x32xf32>
    %473 = tpu.matmul %471, %472, %cst_185 {dimension_numbers = #tpu.dot_dimension_numbers<[1], [0], [0], [1], [0, 0, 1, 1], [], []>} : vector<16x32xf32>, vector<32x32xf32>, vector<16x32xf32> -> vector<16x32xf32>
    %c0_186 = arith.constant 0 : index
    %c0_187 = arith.constant 0 : index
    %474 = vector.load %arg10[%c0_186, %c0_187] : memref<1x32xf32, #tpu.memory_space<vmem>>, vector<1x32xf32>
    %475 = vector.broadcast %474 : vector<1x32xf32> to vector<16x32xf32>
    %476 = arith.addf %473, %475 : vector<16x32xf32>
    %c0_188 = arith.constant 0 : index
    %c0_189 = arith.constant 0 : index
    %477 = vector.load %arg20[%c0_188, %c0_189] : memref<32x64xf32, #tpu.memory_space<vmem>>, vector<32x64xf32>
    %cst_190 = arith.constant dense<0.000000e+00> : vector<16x64xf32>
    %478 = tpu.matmul %331, %477, %cst_190 {dimension_numbers = #tpu.dot_dimension_numbers<[1], [0], [0], [1], [0, 0, 1, 1], [], []>} : vector<16x32xf32>, vector<32x64xf32>, vector<16x64xf32> -> vector<16x64xf32>
    %c0_191 = arith.constant 0 : index
    %c0_192 = arith.constant 0 : index
    %479 = vector.load %arg7[%c0_191, %c0_192] : memref<1x64xf32, #tpu.memory_space<vmem>>, vector<1x64xf32>
    %480 = vector.broadcast %479 : vector<1x64xf32> to vector<16x64xf32>
    %481 = arith.addf %478, %480 : vector<16x64xf32>
    %482 = vector.extract_strided_slice %481 {offsets = [0, 0], sizes = [16, 32], strides = [1, 1]} : vector<16x64xf32> to vector<16x32xf32>
    %483 = vector.extract_strided_slice %481 {offsets = [0, 32], sizes = [16, 32], strides = [1, 1]} : vector<16x64xf32> to vector<16x32xf32>
    %c0_193 = arith.constant 0 : index
    %c0_194 = arith.constant 0 : index
    %484 = vector.load %arg21[%c0_193, %c0_194] : memref<32x32xf32, #tpu.memory_space<vmem>>, vector<32x32xf32>
    %c0_195 = arith.constant 0 : index
    %c0_196 = arith.constant 0 : index
    %485 = vector.load %arg8[%c0_195, %c0_196] : memref<1x32xf32, #tpu.memory_space<vmem>>, vector<1x32xf32>
    %486 = vector.shape_cast %476 : vector<16x32xf32> to vector<2x8x32xf32>
    %487 = vector.shape_cast %482 : vector<16x32xf32> to vector<2x8x32xf32>
    %488 = vector.shape_cast %483 : vector<16x32xf32> to vector<2x8x32xf32>
    %489 = vector.extract_strided_slice %486 {offsets = [0, 0, 0], sizes = [2, 8, 8], strides = [1, 1, 1]} : vector<2x8x32xf32> to vector<2x8x8xf32>
    %490 = vector.extract_strided_slice %487 {offsets = [0, 0, 0], sizes = [2, 8, 8], strides = [1, 1, 1]} : vector<2x8x32xf32> to vector<2x8x8xf32>
    %491 = vector.extract_strided_slice %488 {offsets = [0, 0, 0], sizes = [2, 8, 8], strides = [1, 1, 1]} : vector<2x8x32xf32> to vector<2x8x8xf32>
    "tpu.trace_start"() <{level = 10 : i32, message = "bqd,bkd->bqk"}> : () -> ()
    %cst_197 = arith.constant dense<0.000000e+00> : vector<2x8x8xf32>
    %492 = tpu.matmul %489, %490, %cst_197 {dimension_numbers = #tpu.dot_dimension_numbers<[2], [2], [1], [1], [0, 0, 0, 1, 1, 1], [0], [0]>} : vector<2x8x8xf32>, vector<2x8x8xf32>, vector<2x8x8xf32> -> vector<2x8x8xf32>
    "tpu.trace_stop"() : () -> ()
    %493 = arith.addf %492, %2 : vector<2x8x8xf32>
    %cst_198 = arith.constant dense<0xFF800000> : vector<2x8xf32>
    %494 = vector.multi_reduction <maximumf>, %493, %cst_198 [2] : vector<2x8x8xf32> to vector<2x8xf32>
    %495 = vector.shape_cast %494 : vector<2x8xf32> to vector<2x8x1xf32>
    %496 = vector.broadcast %495 : vector<2x8x1xf32> to vector<2x8x8xf32>
    %497 = arith.subf %493, %496 : vector<2x8x8xf32>
    %498 = math.exp %497 : vector<2x8x8xf32>
    %cst_199 = arith.constant dense<0.000000e+00> : vector<2x8xf32>
    %499 = vector.multi_reduction <add>, %498, %cst_199 [2] : vector<2x8x8xf32> to vector<2x8xf32>
    %500 = vector.shape_cast %499 : vector<2x8xf32> to vector<2x8x1xf32>
    %501 = vector.broadcast %500 : vector<2x8x1xf32> to vector<2x8x8xf32>
    %502 = arith.divf %498, %501 : vector<2x8x8xf32>
    "tpu.trace_start"() <{level = 10 : i32, message = "bqk,bkd->bqd"}> : () -> ()
    %cst_200 = arith.constant dense<0.000000e+00> : vector<2x8x8xf32>
    %503 = tpu.matmul %502, %491, %cst_200 {dimension_numbers = #tpu.dot_dimension_numbers<[2], [1], [1], [2], [0, 0, 0, 1, 1, 2], [0], [0]>} : vector<2x8x8xf32>, vector<2x8x8xf32>, vector<2x8x8xf32> -> vector<2x8x8xf32>
    "tpu.trace_stop"() : () -> ()
    %504 = vector.shape_cast %503 : vector<2x8x8xf32> to vector<16x8xf32>
    %505 = vector.extract_strided_slice %484 {offsets = [0, 0], sizes = [8, 32], strides = [1, 1]} : vector<32x32xf32> to vector<8x32xf32>
    %cst_201 = arith.constant dense<0.000000e+00> : vector<16x32xf32>
    %506 = tpu.matmul %504, %505, %cst_201 {dimension_numbers = #tpu.dot_dimension_numbers<[1], [0], [0], [1], [0, 0, 1, 1], [], []>} : vector<16x8xf32>, vector<8x32xf32>, vector<16x32xf32> -> vector<16x32xf32>
    %507 = vector.extract_strided_slice %486 {offsets = [0, 0, 8], sizes = [2, 8, 8], strides = [1, 1, 1]} : vector<2x8x32xf32> to vector<2x8x8xf32>
    %508 = vector.extract_strided_slice %487 {offsets = [0, 0, 8], sizes = [2, 8, 8], strides = [1, 1, 1]} : vector<2x8x32xf32> to vector<2x8x8xf32>
    %509 = vector.extract_strided_slice %488 {offsets = [0, 0, 8], sizes = [2, 8, 8], strides = [1, 1, 1]} : vector<2x8x32xf32> to vector<2x8x8xf32>
    "tpu.trace_start"() <{level = 10 : i32, message = "bqd,bkd->bqk"}> : () -> ()
    %cst_202 = arith.constant dense<0.000000e+00> : vector<2x8x8xf32>
    %510 = tpu.matmul %507, %508, %cst_202 {dimension_numbers = #tpu.dot_dimension_numbers<[2], [2], [1], [1], [0, 0, 0, 1, 1, 1], [0], [0]>} : vector<2x8x8xf32>, vector<2x8x8xf32>, vector<2x8x8xf32> -> vector<2x8x8xf32>
    "tpu.trace_stop"() : () -> ()
    %511 = arith.addf %510, %2 : vector<2x8x8xf32>
    %cst_203 = arith.constant dense<0xFF800000> : vector<2x8xf32>
    %512 = vector.multi_reduction <maximumf>, %511, %cst_203 [2] : vector<2x8x8xf32> to vector<2x8xf32>
    %513 = vector.shape_cast %512 : vector<2x8xf32> to vector<2x8x1xf32>
    %514 = vector.broadcast %513 : vector<2x8x1xf32> to vector<2x8x8xf32>
    %515 = arith.subf %511, %514 : vector<2x8x8xf32>
    %516 = math.exp %515 : vector<2x8x8xf32>
    %cst_204 = arith.constant dense<0.000000e+00> : vector<2x8xf32>
    %517 = vector.multi_reduction <add>, %516, %cst_204 [2] : vector<2x8x8xf32> to vector<2x8xf32>
    %518 = vector.shape_cast %517 : vector<2x8xf32> to vector<2x8x1xf32>
    %519 = vector.broadcast %518 : vector<2x8x1xf32> to vector<2x8x8xf32>
    %520 = arith.divf %516, %519 : vector<2x8x8xf32>
    "tpu.trace_start"() <{level = 10 : i32, message = "bqk,bkd->bqd"}> : () -> ()
    %cst_205 = arith.constant dense<0.000000e+00> : vector<2x8x8xf32>
    %521 = tpu.matmul %520, %509, %cst_205 {dimension_numbers = #tpu.dot_dimension_numbers<[2], [1], [1], [2], [0, 0, 0, 1, 1, 2], [0], [0]>} : vector<2x8x8xf32>, vector<2x8x8xf32>, vector<2x8x8xf32> -> vector<2x8x8xf32>
    "tpu.trace_stop"() : () -> ()
    %522 = vector.shape_cast %521 : vector<2x8x8xf32> to vector<16x8xf32>
    %523 = vector.extract_strided_slice %484 {offsets = [8, 0], sizes = [8, 32], strides = [1, 1]} : vector<32x32xf32> to vector<8x32xf32>
    %cst_206 = arith.constant dense<0.000000e+00> : vector<16x32xf32>
    %524 = tpu.matmul %522, %523, %cst_206 {dimension_numbers = #tpu.dot_dimension_numbers<[1], [0], [0], [1], [0, 0, 1, 1], [], []>} : vector<16x8xf32>, vector<8x32xf32>, vector<16x32xf32> -> vector<16x32xf32>
    %525 = arith.addf %506, %524 : vector<16x32xf32>
    %526 = vector.extract_strided_slice %486 {offsets = [0, 0, 16], sizes = [2, 8, 8], strides = [1, 1, 1]} : vector<2x8x32xf32> to vector<2x8x8xf32>
    %527 = vector.extract_strided_slice %487 {offsets = [0, 0, 16], sizes = [2, 8, 8], strides = [1, 1, 1]} : vector<2x8x32xf32> to vector<2x8x8xf32>
    %528 = vector.extract_strided_slice %488 {offsets = [0, 0, 16], sizes = [2, 8, 8], strides = [1, 1, 1]} : vector<2x8x32xf32> to vector<2x8x8xf32>
    "tpu.trace_start"() <{level = 10 : i32, message = "bqd,bkd->bqk"}> : () -> ()
    %cst_207 = arith.constant dense<0.000000e+00> : vector<2x8x8xf32>
    %529 = tpu.matmul %526, %527, %cst_207 {dimension_numbers = #tpu.dot_dimension_numbers<[2], [2], [1], [1], [0, 0, 0, 1, 1, 1], [0], [0]>} : vector<2x8x8xf32>, vector<2x8x8xf32>, vector<2x8x8xf32> -> vector<2x8x8xf32>
    "tpu.trace_stop"() : () -> ()
    %530 = arith.addf %529, %2 : vector<2x8x8xf32>
    %cst_208 = arith.constant dense<0xFF800000> : vector<2x8xf32>
    %531 = vector.multi_reduction <maximumf>, %530, %cst_208 [2] : vector<2x8x8xf32> to vector<2x8xf32>
    %532 = vector.shape_cast %531 : vector<2x8xf32> to vector<2x8x1xf32>
    %533 = vector.broadcast %532 : vector<2x8x1xf32> to vector<2x8x8xf32>
    %534 = arith.subf %530, %533 : vector<2x8x8xf32>
    %535 = math.exp %534 : vector<2x8x8xf32>
    %cst_209 = arith.constant dense<0.000000e+00> : vector<2x8xf32>
    %536 = vector.multi_reduction <add>, %535, %cst_209 [2] : vector<2x8x8xf32> to vector<2x8xf32>
    %537 = vector.shape_cast %536 : vector<2x8xf32> to vector<2x8x1xf32>
    %538 = vector.broadcast %537 : vector<2x8x1xf32> to vector<2x8x8xf32>
    %539 = arith.divf %535, %538 : vector<2x8x8xf32>
    "tpu.trace_start"() <{level = 10 : i32, message = "bqk,bkd->bqd"}> : () -> ()
    %cst_210 = arith.constant dense<0.000000e+00> : vector<2x8x8xf32>
    %540 = tpu.matmul %539, %528, %cst_210 {dimension_numbers = #tpu.dot_dimension_numbers<[2], [1], [1], [2], [0, 0, 0, 1, 1, 2], [0], [0]>} : vector<2x8x8xf32>, vector<2x8x8xf32>, vector<2x8x8xf32> -> vector<2x8x8xf32>
    "tpu.trace_stop"() : () -> ()
    %541 = vector.shape_cast %540 : vector<2x8x8xf32> to vector<16x8xf32>
    %542 = vector.extract_strided_slice %484 {offsets = [16, 0], sizes = [8, 32], strides = [1, 1]} : vector<32x32xf32> to vector<8x32xf32>
    %cst_211 = arith.constant dense<0.000000e+00> : vector<16x32xf32>
    %543 = tpu.matmul %541, %542, %cst_211 {dimension_numbers = #tpu.dot_dimension_numbers<[1], [0], [0], [1], [0, 0, 1, 1], [], []>} : vector<16x8xf32>, vector<8x32xf32>, vector<16x32xf32> -> vector<16x32xf32>
    %544 = arith.addf %525, %543 : vector<16x32xf32>
    %545 = vector.extract_strided_slice %486 {offsets = [0, 0, 24], sizes = [2, 8, 8], strides = [1, 1, 1]} : vector<2x8x32xf32> to vector<2x8x8xf32>
    %546 = vector.extract_strided_slice %487 {offsets = [0, 0, 24], sizes = [2, 8, 8], strides = [1, 1, 1]} : vector<2x8x32xf32> to vector<2x8x8xf32>
    %547 = vector.extract_strided_slice %488 {offsets = [0, 0, 24], sizes = [2, 8, 8], strides = [1, 1, 1]} : vector<2x8x32xf32> to vector<2x8x8xf32>
    "tpu.trace_start"() <{level = 10 : i32, message = "bqd,bkd->bqk"}> : () -> ()
    %cst_212 = arith.constant dense<0.000000e+00> : vector<2x8x8xf32>
    %548 = tpu.matmul %545, %546, %cst_212 {dimension_numbers = #tpu.dot_dimension_numbers<[2], [2], [1], [1], [0, 0, 0, 1, 1, 1], [0], [0]>} : vector<2x8x8xf32>, vector<2x8x8xf32>, vector<2x8x8xf32> -> vector<2x8x8xf32>
    "tpu.trace_stop"() : () -> ()
    %549 = arith.addf %548, %2 : vector<2x8x8xf32>
    %cst_213 = arith.constant dense<0xFF800000> : vector<2x8xf32>
    %550 = vector.multi_reduction <maximumf>, %549, %cst_213 [2] : vector<2x8x8xf32> to vector<2x8xf32>
    %551 = vector.shape_cast %550 : vector<2x8xf32> to vector<2x8x1xf32>
    %552 = vector.broadcast %551 : vector<2x8x1xf32> to vector<2x8x8xf32>
    %553 = arith.subf %549, %552 : vector<2x8x8xf32>
    %554 = math.exp %553 : vector<2x8x8xf32>
    %cst_214 = arith.constant dense<0.000000e+00> : vector<2x8xf32>
    %555 = vector.multi_reduction <add>, %554, %cst_214 [2] : vector<2x8x8xf32> to vector<2x8xf32>
    %556 = vector.shape_cast %555 : vector<2x8xf32> to vector<2x8x1xf32>
    %557 = vector.broadcast %556 : vector<2x8x1xf32> to vector<2x8x8xf32>
    %558 = arith.divf %554, %557 : vector<2x8x8xf32>
    "tpu.trace_start"() <{level = 10 : i32, message = "bqk,bkd->bqd"}> : () -> ()
    %cst_215 = arith.constant dense<0.000000e+00> : vector<2x8x8xf32>
    %559 = tpu.matmul %558, %547, %cst_215 {dimension_numbers = #tpu.dot_dimension_numbers<[2], [1], [1], [2], [0, 0, 0, 1, 1, 2], [0], [0]>} : vector<2x8x8xf32>, vector<2x8x8xf32>, vector<2x8x8xf32> -> vector<2x8x8xf32>
    "tpu.trace_stop"() : () -> ()
    %560 = vector.shape_cast %559 : vector<2x8x8xf32> to vector<16x8xf32>
    %561 = vector.extract_strided_slice %484 {offsets = [24, 0], sizes = [8, 32], strides = [1, 1]} : vector<32x32xf32> to vector<8x32xf32>
    %cst_216 = arith.constant dense<0.000000e+00> : vector<16x32xf32>
    %562 = tpu.matmul %560, %561, %cst_216 {dimension_numbers = #tpu.dot_dimension_numbers<[1], [0], [0], [1], [0, 0, 1, 1], [], []>} : vector<16x8xf32>, vector<8x32xf32>, vector<16x32xf32> -> vector<16x32xf32>
    %563 = arith.addf %544, %562 : vector<16x32xf32>
    %564 = vector.broadcast %485 : vector<1x32xf32> to vector<16x32xf32>
    %565 = arith.addf %563, %564 : vector<16x32xf32>
    %566 = arith.addf %447, %565 : vector<16x32xf32>
    %c0_217 = arith.constant 0 : index
    %c0_218 = arith.constant 0 : index
    %567 = vector.load %arg17[%c0_217, %c0_218] : memref<1x32xf32, #tpu.memory_space<vmem>>, vector<1x32xf32>
    %c0_219 = arith.constant 0 : index
    %c0_220 = arith.constant 0 : index
    %568 = vector.load %arg16[%c0_219, %c0_220] : memref<1x32xf32, #tpu.memory_space<vmem>>, vector<1x32xf32>
    %cst_221 = arith.constant dense<0.000000e+00> : vector<16xf32>
    %569 = vector.multi_reduction <add>, %566, %cst_221 [1] : vector<16x32xf32> to vector<16xf32>
    %570 = vector.shape_cast %569 : vector<16xf32> to vector<16x1xf32>
    %cst_222 = arith.constant 3.200000e+01 : f32
    %571 = vector.broadcast %cst_222 : f32 to vector<16x1xf32>
    %572 = arith.divf %570, %571 : vector<16x1xf32>
    %573 = vector.broadcast %572 : vector<16x1xf32> to vector<16x32xf32>
    %574 = arith.subf %566, %573 : vector<16x32xf32>
    %575 = arith.mulf %574, %574 : vector<16x32xf32>
    %cst_223 = arith.constant dense<0.000000e+00> : vector<16xf32>
    %576 = vector.multi_reduction <add>, %575, %cst_223 [1] : vector<16x32xf32> to vector<16xf32>
    %577 = vector.shape_cast %576 : vector<16xf32> to vector<16x1xf32>
    %cst_224 = arith.constant 3.100000e+01 : f32
    %578 = vector.broadcast %cst_224 : f32 to vector<16x1xf32>
    %579 = arith.divf %577, %578 : vector<16x1xf32>
    %580 = math.sqrt %579 : vector<16x1xf32>
    %581 = vector.broadcast %572 : vector<16x1xf32> to vector<16x32xf32>
    %582 = arith.subf %566, %581 : vector<16x32xf32>
    %583 = vector.broadcast %567 : vector<1x32xf32> to vector<16x32xf32>
    %584 = arith.mulf %583, %582 : vector<16x32xf32>
    %cst_225 = arith.constant 9.99999997E-7 : f32
    %585 = vector.broadcast %cst_225 : f32 to vector<16x1xf32>
    %586 = arith.addf %580, %585 : vector<16x1xf32>
    %587 = vector.broadcast %586 : vector<16x1xf32> to vector<16x32xf32>
    %588 = arith.divf %584, %587 : vector<16x32xf32>
    %589 = vector.broadcast %568 : vector<1x32xf32> to vector<16x32xf32>
    %590 = arith.addf %588, %589 : vector<16x32xf32>
    %c0_226 = arith.constant 0 : index
    %c0_227 = arith.constant 0 : index
    %591 = vector.load %arg18[%c0_226, %c0_227] : memref<32x64xf32, #tpu.memory_space<vmem>>, vector<32x64xf32>
    %cst_228 = arith.constant dense<0.000000e+00> : vector<16x64xf32>
    %592 = tpu.matmul %590, %591, %cst_228 {dimension_numbers = #tpu.dot_dimension_numbers<[1], [0], [0], [1], [0, 0, 1, 1], [], []>} : vector<16x32xf32>, vector<32x64xf32>, vector<16x64xf32> -> vector<16x64xf32>
    %c0_229 = arith.constant 0 : index
    %c0_230 = arith.constant 0 : index
    %593 = vector.load %arg5[%c0_229, %c0_230] : memref<1x64xf32, #tpu.memory_space<vmem>>, vector<1x64xf32>
    %594 = vector.broadcast %593 : vector<1x64xf32> to vector<16x64xf32>
    %595 = arith.addf %592, %594 : vector<16x64xf32>
    %cst_231 = arith.constant 0.000000e+00 : f32
    %596 = vector.broadcast %cst_231 : f32 to vector<16x64xf32>
    %597 = arith.maximumf %595, %596 : vector<16x64xf32>
    %c0_232 = arith.constant 0 : index
    %c0_233 = arith.constant 0 : index
    %598 = vector.load %arg19[%c0_232, %c0_233] : memref<64x32xf32, #tpu.memory_space<vmem>>, vector<64x32xf32>
    %cst_234 = arith.constant dense<0.000000e+00> : vector<16x32xf32>
    %599 = tpu.matmul %597, %598, %cst_234 {dimension_numbers = #tpu.dot_dimension_numbers<[1], [0], [0], [1], [0, 0, 1, 1], [], []>} : vector<16x64xf32>, vector<64x32xf32>, vector<16x32xf32> -> vector<16x32xf32>
    %c0_235 = arith.constant 0 : index
    %c0_236 = arith.constant 0 : index
    %600 = vector.load %arg6[%c0_235, %c0_236] : memref<1x32xf32, #tpu.memory_space<vmem>>, vector<1x32xf32>
    %601 = vector.broadcast %600 : vector<1x32xf32> to vector<16x32xf32>
    %602 = arith.addf %599, %601 : vector<16x32xf32>
    %603 = arith.addf %566, %602 : vector<16x32xf32>
    %c0_237 = arith.constant 0 : index
    %c0_238 = arith.constant 0 : index
    %604 = vector.load %arg33[%c0_237, %c0_238] : memref<1x32xf32, #tpu.memory_space<vmem>>, vector<1x32xf32>
    %c0_239 = arith.constant 0 : index
    %c0_240 = arith.constant 0 : index
    %605 = vector.load %arg32[%c0_239, %c0_240] : memref<1x32xf32, #tpu.memory_space<vmem>>, vector<1x32xf32>
    %cst_241 = arith.constant dense<0.000000e+00> : vector<16xf32>
    %606 = vector.multi_reduction <add>, %603, %cst_241 [1] : vector<16x32xf32> to vector<16xf32>
    %607 = vector.shape_cast %606 : vector<16xf32> to vector<16x1xf32>
    %cst_242 = arith.constant 3.200000e+01 : f32
    %608 = vector.broadcast %cst_242 : f32 to vector<16x1xf32>
    %609 = arith.divf %607, %608 : vector<16x1xf32>
    %610 = vector.broadcast %609 : vector<16x1xf32> to vector<16x32xf32>
    %611 = arith.subf %603, %610 : vector<16x32xf32>
    %612 = arith.mulf %611, %611 : vector<16x32xf32>
    %cst_243 = arith.constant dense<0.000000e+00> : vector<16xf32>
    %613 = vector.multi_reduction <add>, %612, %cst_243 [1] : vector<16x32xf32> to vector<16xf32>
    %614 = vector.shape_cast %613 : vector<16xf32> to vector<16x1xf32>
    %cst_244 = arith.constant 3.100000e+01 : f32
    %615 = vector.broadcast %cst_244 : f32 to vector<16x1xf32>
    %616 = arith.divf %614, %615 : vector<16x1xf32>
    %617 = math.sqrt %616 : vector<16x1xf32>
    %618 = vector.broadcast %609 : vector<16x1xf32> to vector<16x32xf32>
    %619 = arith.subf %603, %618 : vector<16x32xf32>
    %620 = vector.broadcast %604 : vector<1x32xf32> to vector<16x32xf32>
    %621 = arith.mulf %620, %619 : vector<16x32xf32>
    %cst_245 = arith.constant 9.99999997E-7 : f32
    %622 = vector.broadcast %cst_245 : f32 to vector<16x1xf32>
    %623 = arith.addf %617, %622 : vector<16x1xf32>
    %624 = vector.broadcast %623 : vector<16x1xf32> to vector<16x32xf32>
    %625 = arith.divf %621, %624 : vector<16x32xf32>
    %626 = vector.broadcast %605 : vector<1x32xf32> to vector<16x32xf32>
    %627 = arith.addf %625, %626 : vector<16x32xf32>
    %c0_246 = arith.constant 0 : index
    %c0_247 = arith.constant 0 : index
    %628 = vector.load %arg44[%c0_246, %c0_247] : memref<32x96xf32, #tpu.memory_space<vmem>>, vector<32x96xf32>
    %cst_248 = arith.constant dense<0.000000e+00> : vector<16x96xf32>
    %629 = tpu.matmul %627, %628, %cst_248 {dimension_numbers = #tpu.dot_dimension_numbers<[1], [0], [0], [1], [0, 0, 1, 1], [], []>} : vector<16x32xf32>, vector<32x96xf32>, vector<16x96xf32> -> vector<16x96xf32>
    %c0_249 = arith.constant 0 : index
    %c0_250 = arith.constant 0 : index
    %630 = vector.load %arg31[%c0_249, %c0_250] : memref<1x96xf32, #tpu.memory_space<vmem>>, vector<1x96xf32>
    %631 = vector.broadcast %630 : vector<1x96xf32> to vector<16x96xf32>
    %632 = arith.addf %629, %631 : vector<16x96xf32>
    %633 = vector.extract_strided_slice %632 {offsets = [0, 0], sizes = [16, 32], strides = [1, 1]} : vector<16x96xf32> to vector<16x32xf32>
    %634 = vector.extract_strided_slice %632 {offsets = [0, 32], sizes = [16, 32], strides = [1, 1]} : vector<16x96xf32> to vector<16x32xf32>
    %635 = vector.extract_strided_slice %632 {offsets = [0, 64], sizes = [16, 32], strides = [1, 1]} : vector<16x96xf32> to vector<16x32xf32>
    %c0_251 = arith.constant 0 : index
    %c0_252 = arith.constant 0 : index
    %636 = vector.load %arg42[%c0_251, %c0_252] : memref<32x32xf32, #tpu.memory_space<vmem>>, vector<32x32xf32>
    %c0_253 = arith.constant 0 : index
    %c0_254 = arith.constant 0 : index
    %637 = vector.load %arg29[%c0_253, %c0_254] : memref<1x32xf32, #tpu.memory_space<vmem>>, vector<1x32xf32>
    %638 = vector.shape_cast %633 : vector<16x32xf32> to vector<2x8x32xf32>
    %639 = vector.shape_cast %634 : vector<16x32xf32> to vector<2x8x32xf32>
    %640 = vector.shape_cast %635 : vector<16x32xf32> to vector<2x8x32xf32>
    %641 = vector.extract_strided_slice %638 {offsets = [0, 0, 0], sizes = [2, 8, 8], strides = [1, 1, 1]} : vector<2x8x32xf32> to vector<2x8x8xf32>
    %642 = vector.extract_strided_slice %639 {offsets = [0, 0, 0], sizes = [2, 8, 8], strides = [1, 1, 1]} : vector<2x8x32xf32> to vector<2x8x8xf32>
    %643 = vector.extract_strided_slice %640 {offsets = [0, 0, 0], sizes = [2, 8, 8], strides = [1, 1, 1]} : vector<2x8x32xf32> to vector<2x8x8xf32>
    "tpu.trace_start"() <{level = 10 : i32, message = "bqd,bkd->bqk"}> : () -> ()
    %cst_255 = arith.constant dense<0.000000e+00> : vector<2x8x8xf32>
    %644 = tpu.matmul %641, %642, %cst_255 {dimension_numbers = #tpu.dot_dimension_numbers<[2], [2], [1], [1], [0, 0, 0, 1, 1, 1], [0], [0]>} : vector<2x8x8xf32>, vector<2x8x8xf32>, vector<2x8x8xf32> -> vector<2x8x8xf32>
    "tpu.trace_stop"() : () -> ()
    %645 = arith.addf %644, %1 : vector<2x8x8xf32>
    %cst_256 = arith.constant dense<0xFF800000> : vector<2x8xf32>
    %646 = vector.multi_reduction <maximumf>, %645, %cst_256 [2] : vector<2x8x8xf32> to vector<2x8xf32>
    %647 = vector.shape_cast %646 : vector<2x8xf32> to vector<2x8x1xf32>
    %648 = vector.broadcast %647 : vector<2x8x1xf32> to vector<2x8x8xf32>
    %649 = arith.subf %645, %648 : vector<2x8x8xf32>
    %650 = math.exp %649 : vector<2x8x8xf32>
    %cst_257 = arith.constant dense<0.000000e+00> : vector<2x8xf32>
    %651 = vector.multi_reduction <add>, %650, %cst_257 [2] : vector<2x8x8xf32> to vector<2x8xf32>
    %652 = vector.shape_cast %651 : vector<2x8xf32> to vector<2x8x1xf32>
    %653 = vector.broadcast %652 : vector<2x8x1xf32> to vector<2x8x8xf32>
    %654 = arith.divf %650, %653 : vector<2x8x8xf32>
    "tpu.trace_start"() <{level = 10 : i32, message = "bqk,bkd->bqd"}> : () -> ()
    %cst_258 = arith.constant dense<0.000000e+00> : vector<2x8x8xf32>
    %655 = tpu.matmul %654, %643, %cst_258 {dimension_numbers = #tpu.dot_dimension_numbers<[2], [1], [1], [2], [0, 0, 0, 1, 1, 2], [0], [0]>} : vector<2x8x8xf32>, vector<2x8x8xf32>, vector<2x8x8xf32> -> vector<2x8x8xf32>
    "tpu.trace_stop"() : () -> ()
    %656 = vector.shape_cast %655 : vector<2x8x8xf32> to vector<16x8xf32>
    %657 = vector.extract_strided_slice %636 {offsets = [0, 0], sizes = [8, 32], strides = [1, 1]} : vector<32x32xf32> to vector<8x32xf32>
    %cst_259 = arith.constant dense<0.000000e+00> : vector<16x32xf32>
    %658 = tpu.matmul %656, %657, %cst_259 {dimension_numbers = #tpu.dot_dimension_numbers<[1], [0], [0], [1], [0, 0, 1, 1], [], []>} : vector<16x8xf32>, vector<8x32xf32>, vector<16x32xf32> -> vector<16x32xf32>
    %659 = vector.extract_strided_slice %638 {offsets = [0, 0, 8], sizes = [2, 8, 8], strides = [1, 1, 1]} : vector<2x8x32xf32> to vector<2x8x8xf32>
    %660 = vector.extract_strided_slice %639 {offsets = [0, 0, 8], sizes = [2, 8, 8], strides = [1, 1, 1]} : vector<2x8x32xf32> to vector<2x8x8xf32>
    %661 = vector.extract_strided_slice %640 {offsets = [0, 0, 8], sizes = [2, 8, 8], strides = [1, 1, 1]} : vector<2x8x32xf32> to vector<2x8x8xf32>
    "tpu.trace_start"() <{level = 10 : i32, message = "bqd,bkd->bqk"}> : () -> ()
    %cst_260 = arith.constant dense<0.000000e+00> : vector<2x8x8xf32>
    %662 = tpu.matmul %659, %660, %cst_260 {dimension_numbers = #tpu.dot_dimension_numbers<[2], [2], [1], [1], [0, 0, 0, 1, 1, 1], [0], [0]>} : vector<2x8x8xf32>, vector<2x8x8xf32>, vector<2x8x8xf32> -> vector<2x8x8xf32>
    "tpu.trace_stop"() : () -> ()
    %663 = arith.addf %662, %1 : vector<2x8x8xf32>
    %cst_261 = arith.constant dense<0xFF800000> : vector<2x8xf32>
    %664 = vector.multi_reduction <maximumf>, %663, %cst_261 [2] : vector<2x8x8xf32> to vector<2x8xf32>
    %665 = vector.shape_cast %664 : vector<2x8xf32> to vector<2x8x1xf32>
    %666 = vector.broadcast %665 : vector<2x8x1xf32> to vector<2x8x8xf32>
    %667 = arith.subf %663, %666 : vector<2x8x8xf32>
    %668 = math.exp %667 : vector<2x8x8xf32>
    %cst_262 = arith.constant dense<0.000000e+00> : vector<2x8xf32>
    %669 = vector.multi_reduction <add>, %668, %cst_262 [2] : vector<2x8x8xf32> to vector<2x8xf32>
    %670 = vector.shape_cast %669 : vector<2x8xf32> to vector<2x8x1xf32>
    %671 = vector.broadcast %670 : vector<2x8x1xf32> to vector<2x8x8xf32>
    %672 = arith.divf %668, %671 : vector<2x8x8xf32>
    "tpu.trace_start"() <{level = 10 : i32, message = "bqk,bkd->bqd"}> : () -> ()
    %cst_263 = arith.constant dense<0.000000e+00> : vector<2x8x8xf32>
    %673 = tpu.matmul %672, %661, %cst_263 {dimension_numbers = #tpu.dot_dimension_numbers<[2], [1], [1], [2], [0, 0, 0, 1, 1, 2], [0], [0]>} : vector<2x8x8xf32>, vector<2x8x8xf32>, vector<2x8x8xf32> -> vector<2x8x8xf32>
    "tpu.trace_stop"() : () -> ()
    %674 = vector.shape_cast %673 : vector<2x8x8xf32> to vector<16x8xf32>
    %675 = vector.extract_strided_slice %636 {offsets = [8, 0], sizes = [8, 32], strides = [1, 1]} : vector<32x32xf32> to vector<8x32xf32>
    %cst_264 = arith.constant dense<0.000000e+00> : vector<16x32xf32>
    %676 = tpu.matmul %674, %675, %cst_264 {dimension_numbers = #tpu.dot_dimension_numbers<[1], [0], [0], [1], [0, 0, 1, 1], [], []>} : vector<16x8xf32>, vector<8x32xf32>, vector<16x32xf32> -> vector<16x32xf32>
    %677 = arith.addf %658, %676 : vector<16x32xf32>
    %678 = vector.extract_strided_slice %638 {offsets = [0, 0, 16], sizes = [2, 8, 8], strides = [1, 1, 1]} : vector<2x8x32xf32> to vector<2x8x8xf32>
    %679 = vector.extract_strided_slice %639 {offsets = [0, 0, 16], sizes = [2, 8, 8], strides = [1, 1, 1]} : vector<2x8x32xf32> to vector<2x8x8xf32>
    %680 = vector.extract_strided_slice %640 {offsets = [0, 0, 16], sizes = [2, 8, 8], strides = [1, 1, 1]} : vector<2x8x32xf32> to vector<2x8x8xf32>
    "tpu.trace_start"() <{level = 10 : i32, message = "bqd,bkd->bqk"}> : () -> ()
    %cst_265 = arith.constant dense<0.000000e+00> : vector<2x8x8xf32>
    %681 = tpu.matmul %678, %679, %cst_265 {dimension_numbers = #tpu.dot_dimension_numbers<[2], [2], [1], [1], [0, 0, 0, 1, 1, 1], [0], [0]>} : vector<2x8x8xf32>, vector<2x8x8xf32>, vector<2x8x8xf32> -> vector<2x8x8xf32>
    "tpu.trace_stop"() : () -> ()
    %682 = arith.addf %681, %1 : vector<2x8x8xf32>
    %cst_266 = arith.constant dense<0xFF800000> : vector<2x8xf32>
    %683 = vector.multi_reduction <maximumf>, %682, %cst_266 [2] : vector<2x8x8xf32> to vector<2x8xf32>
    %684 = vector.shape_cast %683 : vector<2x8xf32> to vector<2x8x1xf32>
    %685 = vector.broadcast %684 : vector<2x8x1xf32> to vector<2x8x8xf32>
    %686 = arith.subf %682, %685 : vector<2x8x8xf32>
    %687 = math.exp %686 : vector<2x8x8xf32>
    %cst_267 = arith.constant dense<0.000000e+00> : vector<2x8xf32>
    %688 = vector.multi_reduction <add>, %687, %cst_267 [2] : vector<2x8x8xf32> to vector<2x8xf32>
    %689 = vector.shape_cast %688 : vector<2x8xf32> to vector<2x8x1xf32>
    %690 = vector.broadcast %689 : vector<2x8x1xf32> to vector<2x8x8xf32>
    %691 = arith.divf %687, %690 : vector<2x8x8xf32>
    "tpu.trace_start"() <{level = 10 : i32, message = "bqk,bkd->bqd"}> : () -> ()
    %cst_268 = arith.constant dense<0.000000e+00> : vector<2x8x8xf32>
    %692 = tpu.matmul %691, %680, %cst_268 {dimension_numbers = #tpu.dot_dimension_numbers<[2], [1], [1], [2], [0, 0, 0, 1, 1, 2], [0], [0]>} : vector<2x8x8xf32>, vector<2x8x8xf32>, vector<2x8x8xf32> -> vector<2x8x8xf32>
    "tpu.trace_stop"() : () -> ()
    %693 = vector.shape_cast %692 : vector<2x8x8xf32> to vector<16x8xf32>
    %694 = vector.extract_strided_slice %636 {offsets = [16, 0], sizes = [8, 32], strides = [1, 1]} : vector<32x32xf32> to vector<8x32xf32>
    %cst_269 = arith.constant dense<0.000000e+00> : vector<16x32xf32>
    %695 = tpu.matmul %693, %694, %cst_269 {dimension_numbers = #tpu.dot_dimension_numbers<[1], [0], [0], [1], [0, 0, 1, 1], [], []>} : vector<16x8xf32>, vector<8x32xf32>, vector<16x32xf32> -> vector<16x32xf32>
    %696 = arith.addf %677, %695 : vector<16x32xf32>
    %697 = vector.extract_strided_slice %638 {offsets = [0, 0, 24], sizes = [2, 8, 8], strides = [1, 1, 1]} : vector<2x8x32xf32> to vector<2x8x8xf32>
    %698 = vector.extract_strided_slice %639 {offsets = [0, 0, 24], sizes = [2, 8, 8], strides = [1, 1, 1]} : vector<2x8x32xf32> to vector<2x8x8xf32>
    %699 = vector.extract_strided_slice %640 {offsets = [0, 0, 24], sizes = [2, 8, 8], strides = [1, 1, 1]} : vector<2x8x32xf32> to vector<2x8x8xf32>
    "tpu.trace_start"() <{level = 10 : i32, message = "bqd,bkd->bqk"}> : () -> ()
    %cst_270 = arith.constant dense<0.000000e+00> : vector<2x8x8xf32>
    %700 = tpu.matmul %697, %698, %cst_270 {dimension_numbers = #tpu.dot_dimension_numbers<[2], [2], [1], [1], [0, 0, 0, 1, 1, 1], [0], [0]>} : vector<2x8x8xf32>, vector<2x8x8xf32>, vector<2x8x8xf32> -> vector<2x8x8xf32>
    "tpu.trace_stop"() : () -> ()
    %701 = arith.addf %700, %1 : vector<2x8x8xf32>
    %cst_271 = arith.constant dense<0xFF800000> : vector<2x8xf32>
    %702 = vector.multi_reduction <maximumf>, %701, %cst_271 [2] : vector<2x8x8xf32> to vector<2x8xf32>
    %703 = vector.shape_cast %702 : vector<2x8xf32> to vector<2x8x1xf32>
    %704 = vector.broadcast %703 : vector<2x8x1xf32> to vector<2x8x8xf32>
    %705 = arith.subf %701, %704 : vector<2x8x8xf32>
    %706 = math.exp %705 : vector<2x8x8xf32>
    %cst_272 = arith.constant dense<0.000000e+00> : vector<2x8xf32>
    %707 = vector.multi_reduction <add>, %706, %cst_272 [2] : vector<2x8x8xf32> to vector<2x8xf32>
    %708 = vector.shape_cast %707 : vector<2x8xf32> to vector<2x8x1xf32>
    %709 = vector.broadcast %708 : vector<2x8x1xf32> to vector<2x8x8xf32>
    %710 = arith.divf %706, %709 : vector<2x8x8xf32>
    "tpu.trace_start"() <{level = 10 : i32, message = "bqk,bkd->bqd"}> : () -> ()
    %cst_273 = arith.constant dense<0.000000e+00> : vector<2x8x8xf32>
    %711 = tpu.matmul %710, %699, %cst_273 {dimension_numbers = #tpu.dot_dimension_numbers<[2], [1], [1], [2], [0, 0, 0, 1, 1, 2], [0], [0]>} : vector<2x8x8xf32>, vector<2x8x8xf32>, vector<2x8x8xf32> -> vector<2x8x8xf32>
    "tpu.trace_stop"() : () -> ()
    %712 = vector.shape_cast %711 : vector<2x8x8xf32> to vector<16x8xf32>
    %713 = vector.extract_strided_slice %636 {offsets = [24, 0], sizes = [8, 32], strides = [1, 1]} : vector<32x32xf32> to vector<8x32xf32>
    %cst_274 = arith.constant dense<0.000000e+00> : vector<16x32xf32>
    %714 = tpu.matmul %712, %713, %cst_274 {dimension_numbers = #tpu.dot_dimension_numbers<[1], [0], [0], [1], [0, 0, 1, 1], [], []>} : vector<16x8xf32>, vector<8x32xf32>, vector<16x32xf32> -> vector<16x32xf32>
    %715 = arith.addf %696, %714 : vector<16x32xf32>
    %716 = vector.broadcast %637 : vector<1x32xf32> to vector<16x32xf32>
    %717 = arith.addf %715, %716 : vector<16x32xf32>
    %718 = arith.addf %603, %717 : vector<16x32xf32>
    %c0_275 = arith.constant 0 : index
    %c0_276 = arith.constant 0 : index
    %719 = vector.load %arg35[%c0_275, %c0_276] : memref<1x32xf32, #tpu.memory_space<vmem>>, vector<1x32xf32>
    %c0_277 = arith.constant 0 : index
    %c0_278 = arith.constant 0 : index
    %720 = vector.load %arg34[%c0_277, %c0_278] : memref<1x32xf32, #tpu.memory_space<vmem>>, vector<1x32xf32>
    %cst_279 = arith.constant dense<0.000000e+00> : vector<16xf32>
    %721 = vector.multi_reduction <add>, %718, %cst_279 [1] : vector<16x32xf32> to vector<16xf32>
    %722 = vector.shape_cast %721 : vector<16xf32> to vector<16x1xf32>
    %cst_280 = arith.constant 3.200000e+01 : f32
    %723 = vector.broadcast %cst_280 : f32 to vector<16x1xf32>
    %724 = arith.divf %722, %723 : vector<16x1xf32>
    %725 = vector.broadcast %724 : vector<16x1xf32> to vector<16x32xf32>
    %726 = arith.subf %718, %725 : vector<16x32xf32>
    %727 = arith.mulf %726, %726 : vector<16x32xf32>
    %cst_281 = arith.constant dense<0.000000e+00> : vector<16xf32>
    %728 = vector.multi_reduction <add>, %727, %cst_281 [1] : vector<16x32xf32> to vector<16xf32>
    %729 = vector.shape_cast %728 : vector<16xf32> to vector<16x1xf32>
    %cst_282 = arith.constant 3.100000e+01 : f32
    %730 = vector.broadcast %cst_282 : f32 to vector<16x1xf32>
    %731 = arith.divf %729, %730 : vector<16x1xf32>
    %732 = math.sqrt %731 : vector<16x1xf32>
    %733 = vector.broadcast %724 : vector<16x1xf32> to vector<16x32xf32>
    %734 = arith.subf %718, %733 : vector<16x32xf32>
    %735 = vector.broadcast %719 : vector<1x32xf32> to vector<16x32xf32>
    %736 = arith.mulf %735, %734 : vector<16x32xf32>
    %cst_283 = arith.constant 9.99999997E-7 : f32
    %737 = vector.broadcast %cst_283 : f32 to vector<16x1xf32>
    %738 = arith.addf %732, %737 : vector<16x1xf32>
    %739 = vector.broadcast %738 : vector<16x1xf32> to vector<16x32xf32>
    %740 = arith.divf %736, %739 : vector<16x32xf32>
    %741 = vector.broadcast %720 : vector<1x32xf32> to vector<16x32xf32>
    %742 = arith.addf %740, %741 : vector<16x32xf32>
    %c0_284 = arith.constant 0 : index
    %c0_285 = arith.constant 0 : index
    %743 = vector.load %arg43[%c0_284, %c0_285] : memref<32x32xf32, #tpu.memory_space<vmem>>, vector<32x32xf32>
    %cst_286 = arith.constant dense<0.000000e+00> : vector<16x32xf32>
    %744 = tpu.matmul %742, %743, %cst_286 {dimension_numbers = #tpu.dot_dimension_numbers<[1], [0], [0], [1], [0, 0, 1, 1], [], []>} : vector<16x32xf32>, vector<32x32xf32>, vector<16x32xf32> -> vector<16x32xf32>
    %c0_287 = arith.constant 0 : index
    %c0_288 = arith.constant 0 : index
    %745 = vector.load %arg30[%c0_287, %c0_288] : memref<1x32xf32, #tpu.memory_space<vmem>>, vector<1x32xf32>
    %746 = vector.broadcast %745 : vector<1x32xf32> to vector<16x32xf32>
    %747 = arith.addf %744, %746 : vector<16x32xf32>
    %c0_289 = arith.constant 0 : index
    %c0_290 = arith.constant 0 : index
    %748 = vector.load %arg40[%c0_289, %c0_290] : memref<32x64xf32, #tpu.memory_space<vmem>>, vector<32x64xf32>
    %cst_291 = arith.constant dense<0.000000e+00> : vector<16x64xf32>
    %749 = tpu.matmul %331, %748, %cst_291 {dimension_numbers = #tpu.dot_dimension_numbers<[1], [0], [0], [1], [0, 0, 1, 1], [], []>} : vector<16x32xf32>, vector<32x64xf32>, vector<16x64xf32> -> vector<16x64xf32>
    %c0_292 = arith.constant 0 : index
    %c0_293 = arith.constant 0 : index
    %750 = vector.load %arg27[%c0_292, %c0_293] : memref<1x64xf32, #tpu.memory_space<vmem>>, vector<1x64xf32>
    %751 = vector.broadcast %750 : vector<1x64xf32> to vector<16x64xf32>
    %752 = arith.addf %749, %751 : vector<16x64xf32>
    %753 = vector.extract_strided_slice %752 {offsets = [0, 0], sizes = [16, 32], strides = [1, 1]} : vector<16x64xf32> to vector<16x32xf32>
    %754 = vector.extract_strided_slice %752 {offsets = [0, 32], sizes = [16, 32], strides = [1, 1]} : vector<16x64xf32> to vector<16x32xf32>
    %c0_294 = arith.constant 0 : index
    %c0_295 = arith.constant 0 : index
    %755 = vector.load %arg41[%c0_294, %c0_295] : memref<32x32xf32, #tpu.memory_space<vmem>>, vector<32x32xf32>
    %c0_296 = arith.constant 0 : index
    %c0_297 = arith.constant 0 : index
    %756 = vector.load %arg28[%c0_296, %c0_297] : memref<1x32xf32, #tpu.memory_space<vmem>>, vector<1x32xf32>
    %757 = vector.shape_cast %747 : vector<16x32xf32> to vector<2x8x32xf32>
    %758 = vector.shape_cast %753 : vector<16x32xf32> to vector<2x8x32xf32>
    %759 = vector.shape_cast %754 : vector<16x32xf32> to vector<2x8x32xf32>
    %760 = vector.extract_strided_slice %757 {offsets = [0, 0, 0], sizes = [2, 8, 8], strides = [1, 1, 1]} : vector<2x8x32xf32> to vector<2x8x8xf32>
    %761 = vector.extract_strided_slice %758 {offsets = [0, 0, 0], sizes = [2, 8, 8], strides = [1, 1, 1]} : vector<2x8x32xf32> to vector<2x8x8xf32>
    %762 = vector.extract_strided_slice %759 {offsets = [0, 0, 0], sizes = [2, 8, 8], strides = [1, 1, 1]} : vector<2x8x32xf32> to vector<2x8x8xf32>
    "tpu.trace_start"() <{level = 10 : i32, message = "bqd,bkd->bqk"}> : () -> ()
    %cst_298 = arith.constant dense<0.000000e+00> : vector<2x8x8xf32>
    %763 = tpu.matmul %760, %761, %cst_298 {dimension_numbers = #tpu.dot_dimension_numbers<[2], [2], [1], [1], [0, 0, 0, 1, 1, 1], [0], [0]>} : vector<2x8x8xf32>, vector<2x8x8xf32>, vector<2x8x8xf32> -> vector<2x8x8xf32>
    "tpu.trace_stop"() : () -> ()
    %764 = arith.addf %763, %2 : vector<2x8x8xf32>
    %cst_299 = arith.constant dense<0xFF800000> : vector<2x8xf32>
    %765 = vector.multi_reduction <maximumf>, %764, %cst_299 [2] : vector<2x8x8xf32> to vector<2x8xf32>
    %766 = vector.shape_cast %765 : vector<2x8xf32> to vector<2x8x1xf32>
    %767 = vector.broadcast %766 : vector<2x8x1xf32> to vector<2x8x8xf32>
    %768 = arith.subf %764, %767 : vector<2x8x8xf32>
    %769 = math.exp %768 : vector<2x8x8xf32>
    %cst_300 = arith.constant dense<0.000000e+00> : vector<2x8xf32>
    %770 = vector.multi_reduction <add>, %769, %cst_300 [2] : vector<2x8x8xf32> to vector<2x8xf32>
    %771 = vector.shape_cast %770 : vector<2x8xf32> to vector<2x8x1xf32>
    %772 = vector.broadcast %771 : vector<2x8x1xf32> to vector<2x8x8xf32>
    %773 = arith.divf %769, %772 : vector<2x8x8xf32>
    "tpu.trace_start"() <{level = 10 : i32, message = "bqk,bkd->bqd"}> : () -> ()
    %cst_301 = arith.constant dense<0.000000e+00> : vector<2x8x8xf32>
    %774 = tpu.matmul %773, %762, %cst_301 {dimension_numbers = #tpu.dot_dimension_numbers<[2], [1], [1], [2], [0, 0, 0, 1, 1, 2], [0], [0]>} : vector<2x8x8xf32>, vector<2x8x8xf32>, vector<2x8x8xf32> -> vector<2x8x8xf32>
    "tpu.trace_stop"() : () -> ()
    %775 = vector.shape_cast %774 : vector<2x8x8xf32> to vector<16x8xf32>
    %776 = vector.extract_strided_slice %755 {offsets = [0, 0], sizes = [8, 32], strides = [1, 1]} : vector<32x32xf32> to vector<8x32xf32>
    %cst_302 = arith.constant dense<0.000000e+00> : vector<16x32xf32>
    %777 = tpu.matmul %775, %776, %cst_302 {dimension_numbers = #tpu.dot_dimension_numbers<[1], [0], [0], [1], [0, 0, 1, 1], [], []>} : vector<16x8xf32>, vector<8x32xf32>, vector<16x32xf32> -> vector<16x32xf32>
    %778 = vector.extract_strided_slice %757 {offsets = [0, 0, 8], sizes = [2, 8, 8], strides = [1, 1, 1]} : vector<2x8x32xf32> to vector<2x8x8xf32>
    %779 = vector.extract_strided_slice %758 {offsets = [0, 0, 8], sizes = [2, 8, 8], strides = [1, 1, 1]} : vector<2x8x32xf32> to vector<2x8x8xf32>
    %780 = vector.extract_strided_slice %759 {offsets = [0, 0, 8], sizes = [2, 8, 8], strides = [1, 1, 1]} : vector<2x8x32xf32> to vector<2x8x8xf32>
    "tpu.trace_start"() <{level = 10 : i32, message = "bqd,bkd->bqk"}> : () -> ()
    %cst_303 = arith.constant dense<0.000000e+00> : vector<2x8x8xf32>
    %781 = tpu.matmul %778, %779, %cst_303 {dimension_numbers = #tpu.dot_dimension_numbers<[2], [2], [1], [1], [0, 0, 0, 1, 1, 1], [0], [0]>} : vector<2x8x8xf32>, vector<2x8x8xf32>, vector<2x8x8xf32> -> vector<2x8x8xf32>
    "tpu.trace_stop"() : () -> ()
    %782 = arith.addf %781, %2 : vector<2x8x8xf32>
    %cst_304 = arith.constant dense<0xFF800000> : vector<2x8xf32>
    %783 = vector.multi_reduction <maximumf>, %782, %cst_304 [2] : vector<2x8x8xf32> to vector<2x8xf32>
    %784 = vector.shape_cast %783 : vector<2x8xf32> to vector<2x8x1xf32>
    %785 = vector.broadcast %784 : vector<2x8x1xf32> to vector<2x8x8xf32>
    %786 = arith.subf %782, %785 : vector<2x8x8xf32>
    %787 = math.exp %786 : vector<2x8x8xf32>
    %cst_305 = arith.constant dense<0.000000e+00> : vector<2x8xf32>
    %788 = vector.multi_reduction <add>, %787, %cst_305 [2] : vector<2x8x8xf32> to vector<2x8xf32>
    %789 = vector.shape_cast %788 : vector<2x8xf32> to vector<2x8x1xf32>
    %790 = vector.broadcast %789 : vector<2x8x1xf32> to vector<2x8x8xf32>
    %791 = arith.divf %787, %790 : vector<2x8x8xf32>
    "tpu.trace_start"() <{level = 10 : i32, message = "bqk,bkd->bqd"}> : () -> ()
    %cst_306 = arith.constant dense<0.000000e+00> : vector<2x8x8xf32>
    %792 = tpu.matmul %791, %780, %cst_306 {dimension_numbers = #tpu.dot_dimension_numbers<[2], [1], [1], [2], [0, 0, 0, 1, 1, 2], [0], [0]>} : vector<2x8x8xf32>, vector<2x8x8xf32>, vector<2x8x8xf32> -> vector<2x8x8xf32>
    "tpu.trace_stop"() : () -> ()
    %793 = vector.shape_cast %792 : vector<2x8x8xf32> to vector<16x8xf32>
    %794 = vector.extract_strided_slice %755 {offsets = [8, 0], sizes = [8, 32], strides = [1, 1]} : vector<32x32xf32> to vector<8x32xf32>
    %cst_307 = arith.constant dense<0.000000e+00> : vector<16x32xf32>
    %795 = tpu.matmul %793, %794, %cst_307 {dimension_numbers = #tpu.dot_dimension_numbers<[1], [0], [0], [1], [0, 0, 1, 1], [], []>} : vector<16x8xf32>, vector<8x32xf32>, vector<16x32xf32> -> vector<16x32xf32>
    %796 = arith.addf %777, %795 : vector<16x32xf32>
    %797 = vector.extract_strided_slice %757 {offsets = [0, 0, 16], sizes = [2, 8, 8], strides = [1, 1, 1]} : vector<2x8x32xf32> to vector<2x8x8xf32>
    %798 = vector.extract_strided_slice %758 {offsets = [0, 0, 16], sizes = [2, 8, 8], strides = [1, 1, 1]} : vector<2x8x32xf32> to vector<2x8x8xf32>
    %799 = vector.extract_strided_slice %759 {offsets = [0, 0, 16], sizes = [2, 8, 8], strides = [1, 1, 1]} : vector<2x8x32xf32> to vector<2x8x8xf32>
    "tpu.trace_start"() <{level = 10 : i32, message = "bqd,bkd->bqk"}> : () -> ()
    %cst_308 = arith.constant dense<0.000000e+00> : vector<2x8x8xf32>
    %800 = tpu.matmul %797, %798, %cst_308 {dimension_numbers = #tpu.dot_dimension_numbers<[2], [2], [1], [1], [0, 0, 0, 1, 1, 1], [0], [0]>} : vector<2x8x8xf32>, vector<2x8x8xf32>, vector<2x8x8xf32> -> vector<2x8x8xf32>
    "tpu.trace_stop"() : () -> ()
    %801 = arith.addf %800, %2 : vector<2x8x8xf32>
    %cst_309 = arith.constant dense<0xFF800000> : vector<2x8xf32>
    %802 = vector.multi_reduction <maximumf>, %801, %cst_309 [2] : vector<2x8x8xf32> to vector<2x8xf32>
    %803 = vector.shape_cast %802 : vector<2x8xf32> to vector<2x8x1xf32>
    %804 = vector.broadcast %803 : vector<2x8x1xf32> to vector<2x8x8xf32>
    %805 = arith.subf %801, %804 : vector<2x8x8xf32>
    %806 = math.exp %805 : vector<2x8x8xf32>
    %cst_310 = arith.constant dense<0.000000e+00> : vector<2x8xf32>
    %807 = vector.multi_reduction <add>, %806, %cst_310 [2] : vector<2x8x8xf32> to vector<2x8xf32>
    %808 = vector.shape_cast %807 : vector<2x8xf32> to vector<2x8x1xf32>
    %809 = vector.broadcast %808 : vector<2x8x1xf32> to vector<2x8x8xf32>
    %810 = arith.divf %806, %809 : vector<2x8x8xf32>
    "tpu.trace_start"() <{level = 10 : i32, message = "bqk,bkd->bqd"}> : () -> ()
    %cst_311 = arith.constant dense<0.000000e+00> : vector<2x8x8xf32>
    %811 = tpu.matmul %810, %799, %cst_311 {dimension_numbers = #tpu.dot_dimension_numbers<[2], [1], [1], [2], [0, 0, 0, 1, 1, 2], [0], [0]>} : vector<2x8x8xf32>, vector<2x8x8xf32>, vector<2x8x8xf32> -> vector<2x8x8xf32>
    "tpu.trace_stop"() : () -> ()
    %812 = vector.shape_cast %811 : vector<2x8x8xf32> to vector<16x8xf32>
    %813 = vector.extract_strided_slice %755 {offsets = [16, 0], sizes = [8, 32], strides = [1, 1]} : vector<32x32xf32> to vector<8x32xf32>
    %cst_312 = arith.constant dense<0.000000e+00> : vector<16x32xf32>
    %814 = tpu.matmul %812, %813, %cst_312 {dimension_numbers = #tpu.dot_dimension_numbers<[1], [0], [0], [1], [0, 0, 1, 1], [], []>} : vector<16x8xf32>, vector<8x32xf32>, vector<16x32xf32> -> vector<16x32xf32>
    %815 = arith.addf %796, %814 : vector<16x32xf32>
    %816 = vector.extract_strided_slice %757 {offsets = [0, 0, 24], sizes = [2, 8, 8], strides = [1, 1, 1]} : vector<2x8x32xf32> to vector<2x8x8xf32>
    %817 = vector.extract_strided_slice %758 {offsets = [0, 0, 24], sizes = [2, 8, 8], strides = [1, 1, 1]} : vector<2x8x32xf32> to vector<2x8x8xf32>
    %818 = vector.extract_strided_slice %759 {offsets = [0, 0, 24], sizes = [2, 8, 8], strides = [1, 1, 1]} : vector<2x8x32xf32> to vector<2x8x8xf32>
    "tpu.trace_start"() <{level = 10 : i32, message = "bqd,bkd->bqk"}> : () -> ()
    %cst_313 = arith.constant dense<0.000000e+00> : vector<2x8x8xf32>
    %819 = tpu.matmul %816, %817, %cst_313 {dimension_numbers = #tpu.dot_dimension_numbers<[2], [2], [1], [1], [0, 0, 0, 1, 1, 1], [0], [0]>} : vector<2x8x8xf32>, vector<2x8x8xf32>, vector<2x8x8xf32> -> vector<2x8x8xf32>
    "tpu.trace_stop"() : () -> ()
    %820 = arith.addf %819, %2 : vector<2x8x8xf32>
    %cst_314 = arith.constant dense<0xFF800000> : vector<2x8xf32>
    %821 = vector.multi_reduction <maximumf>, %820, %cst_314 [2] : vector<2x8x8xf32> to vector<2x8xf32>
    %822 = vector.shape_cast %821 : vector<2x8xf32> to vector<2x8x1xf32>
    %823 = vector.broadcast %822 : vector<2x8x1xf32> to vector<2x8x8xf32>
    %824 = arith.subf %820, %823 : vector<2x8x8xf32>
    %825 = math.exp %824 : vector<2x8x8xf32>
    %cst_315 = arith.constant dense<0.000000e+00> : vector<2x8xf32>
    %826 = vector.multi_reduction <add>, %825, %cst_315 [2] : vector<2x8x8xf32> to vector<2x8xf32>
    %827 = vector.shape_cast %826 : vector<2x8xf32> to vector<2x8x1xf32>
    %828 = vector.broadcast %827 : vector<2x8x1xf32> to vector<2x8x8xf32>
    %829 = arith.divf %825, %828 : vector<2x8x8xf32>
    "tpu.trace_start"() <{level = 10 : i32, message = "bqk,bkd->bqd"}> : () -> ()
    %cst_316 = arith.constant dense<0.000000e+00> : vector<2x8x8xf32>
    %830 = tpu.matmul %829, %818, %cst_316 {dimension_numbers = #tpu.dot_dimension_numbers<[2], [1], [1], [2], [0, 0, 0, 1, 1, 2], [0], [0]>} : vector<2x8x8xf32>, vector<2x8x8xf32>, vector<2x8x8xf32> -> vector<2x8x8xf32>
    "tpu.trace_stop"() : () -> ()
    %831 = vector.shape_cast %830 : vector<2x8x8xf32> to vector<16x8xf32>
    %832 = vector.extract_strided_slice %755 {offsets = [24, 0], sizes = [8, 32], strides = [1, 1]} : vector<32x32xf32> to vector<8x32xf32>
    %cst_317 = arith.constant dense<0.000000e+00> : vector<16x32xf32>
    %833 = tpu.matmul %831, %832, %cst_317 {dimension_numbers = #tpu.dot_dimension_numbers<[1], [0], [0], [1], [0, 0, 1, 1], [], []>} : vector<16x8xf32>, vector<8x32xf32>, vector<16x32xf32> -> vector<16x32xf32>
    %834 = arith.addf %815, %833 : vector<16x32xf32>
    %835 = vector.broadcast %756 : vector<1x32xf32> to vector<16x32xf32>
    %836 = arith.addf %834, %835 : vector<16x32xf32>
    %837 = arith.addf %718, %836 : vector<16x32xf32>
    %c0_318 = arith.constant 0 : index
    %c0_319 = arith.constant 0 : index
    %838 = vector.load %arg37[%c0_318, %c0_319] : memref<1x32xf32, #tpu.memory_space<vmem>>, vector<1x32xf32>
    %c0_320 = arith.constant 0 : index
    %c0_321 = arith.constant 0 : index
    %839 = vector.load %arg36[%c0_320, %c0_321] : memref<1x32xf32, #tpu.memory_space<vmem>>, vector<1x32xf32>
    %cst_322 = arith.constant dense<0.000000e+00> : vector<16xf32>
    %840 = vector.multi_reduction <add>, %837, %cst_322 [1] : vector<16x32xf32> to vector<16xf32>
    %841 = vector.shape_cast %840 : vector<16xf32> to vector<16x1xf32>
    %cst_323 = arith.constant 3.200000e+01 : f32
    %842 = vector.broadcast %cst_323 : f32 to vector<16x1xf32>
    %843 = arith.divf %841, %842 : vector<16x1xf32>
    %844 = vector.broadcast %843 : vector<16x1xf32> to vector<16x32xf32>
    %845 = arith.subf %837, %844 : vector<16x32xf32>
    %846 = arith.mulf %845, %845 : vector<16x32xf32>
    %cst_324 = arith.constant dense<0.000000e+00> : vector<16xf32>
    %847 = vector.multi_reduction <add>, %846, %cst_324 [1] : vector<16x32xf32> to vector<16xf32>
    %848 = vector.shape_cast %847 : vector<16xf32> to vector<16x1xf32>
    %cst_325 = arith.constant 3.100000e+01 : f32
    %849 = vector.broadcast %cst_325 : f32 to vector<16x1xf32>
    %850 = arith.divf %848, %849 : vector<16x1xf32>
    %851 = math.sqrt %850 : vector<16x1xf32>
    %852 = vector.broadcast %843 : vector<16x1xf32> to vector<16x32xf32>
    %853 = arith.subf %837, %852 : vector<16x32xf32>
    %854 = vector.broadcast %838 : vector<1x32xf32> to vector<16x32xf32>
    %855 = arith.mulf %854, %853 : vector<16x32xf32>
    %cst_326 = arith.constant 9.99999997E-7 : f32
    %856 = vector.broadcast %cst_326 : f32 to vector<16x1xf32>
    %857 = arith.addf %851, %856 : vector<16x1xf32>
    %858 = vector.broadcast %857 : vector<16x1xf32> to vector<16x32xf32>
    %859 = arith.divf %855, %858 : vector<16x32xf32>
    %860 = vector.broadcast %839 : vector<1x32xf32> to vector<16x32xf32>
    %861 = arith.addf %859, %860 : vector<16x32xf32>
    %c0_327 = arith.constant 0 : index
    %c0_328 = arith.constant 0 : index
    %862 = vector.load %arg38[%c0_327, %c0_328] : memref<32x64xf32, #tpu.memory_space<vmem>>, vector<32x64xf32>
    %cst_329 = arith.constant dense<0.000000e+00> : vector<16x64xf32>
    %863 = tpu.matmul %861, %862, %cst_329 {dimension_numbers = #tpu.dot_dimension_numbers<[1], [0], [0], [1], [0, 0, 1, 1], [], []>} : vector<16x32xf32>, vector<32x64xf32>, vector<16x64xf32> -> vector<16x64xf32>
    %c0_330 = arith.constant 0 : index
    %c0_331 = arith.constant 0 : index
    %864 = vector.load %arg25[%c0_330, %c0_331] : memref<1x64xf32, #tpu.memory_space<vmem>>, vector<1x64xf32>
    %865 = vector.broadcast %864 : vector<1x64xf32> to vector<16x64xf32>
    %866 = arith.addf %863, %865 : vector<16x64xf32>
    %cst_332 = arith.constant 0.000000e+00 : f32
    %867 = vector.broadcast %cst_332 : f32 to vector<16x64xf32>
    %868 = arith.maximumf %866, %867 : vector<16x64xf32>
    %c0_333 = arith.constant 0 : index
    %c0_334 = arith.constant 0 : index
    %869 = vector.load %arg39[%c0_333, %c0_334] : memref<64x32xf32, #tpu.memory_space<vmem>>, vector<64x32xf32>
    %cst_335 = arith.constant dense<0.000000e+00> : vector<16x32xf32>
    %870 = tpu.matmul %868, %869, %cst_335 {dimension_numbers = #tpu.dot_dimension_numbers<[1], [0], [0], [1], [0, 0, 1, 1], [], []>} : vector<16x64xf32>, vector<64x32xf32>, vector<16x32xf32> -> vector<16x32xf32>
    %c0_336 = arith.constant 0 : index
    %c0_337 = arith.constant 0 : index
    %871 = vector.load %arg26[%c0_336, %c0_337] : memref<1x32xf32, #tpu.memory_space<vmem>>, vector<1x32xf32>
    %872 = vector.broadcast %871 : vector<1x32xf32> to vector<16x32xf32>
    %873 = arith.addf %870, %872 : vector<16x32xf32>
    %874 = arith.addf %837, %873 : vector<16x32xf32>
    %c0_338 = arith.constant 0 : index
    %c0_339 = arith.constant 0 : index
    %875 = vector.load %arg46[%c0_338, %c0_339] : memref<1x32xf32, #tpu.memory_space<vmem>>, vector<1x32xf32>
    %c0_340 = arith.constant 0 : index
    %c0_341 = arith.constant 0 : index
    %876 = vector.load %arg45[%c0_340, %c0_341] : memref<1x32xf32, #tpu.memory_space<vmem>>, vector<1x32xf32>
    %cst_342 = arith.constant dense<0.000000e+00> : vector<16xf32>
    %877 = vector.multi_reduction <add>, %874, %cst_342 [1] : vector<16x32xf32> to vector<16xf32>
    %878 = vector.shape_cast %877 : vector<16xf32> to vector<16x1xf32>
    %cst_343 = arith.constant 3.200000e+01 : f32
    %879 = vector.broadcast %cst_343 : f32 to vector<16x1xf32>
    %880 = arith.divf %878, %879 : vector<16x1xf32>
    %881 = vector.broadcast %880 : vector<16x1xf32> to vector<16x32xf32>
    %882 = arith.subf %874, %881 : vector<16x32xf32>
    %883 = arith.mulf %882, %882 : vector<16x32xf32>
    %cst_344 = arith.constant dense<0.000000e+00> : vector<16xf32>
    %884 = vector.multi_reduction <add>, %883, %cst_344 [1] : vector<16x32xf32> to vector<16xf32>
    %885 = vector.shape_cast %884 : vector<16xf32> to vector<16x1xf32>
    %cst_345 = arith.constant 3.100000e+01 : f32
    %886 = vector.broadcast %cst_345 : f32 to vector<16x1xf32>
    %887 = arith.divf %885, %886 : vector<16x1xf32>
    %888 = math.sqrt %887 : vector<16x1xf32>
    %889 = vector.broadcast %880 : vector<16x1xf32> to vector<16x32xf32>
    %890 = arith.subf %874, %889 : vector<16x32xf32>
    %891 = vector.broadcast %875 : vector<1x32xf32> to vector<16x32xf32>
    %892 = arith.mulf %891, %890 : vector<16x32xf32>
    %cst_346 = arith.constant 9.99999997E-7 : f32
    %893 = vector.broadcast %cst_346 : f32 to vector<16x1xf32>
    %894 = arith.addf %888, %893 : vector<16x1xf32>
    %895 = vector.broadcast %894 : vector<16x1xf32> to vector<16x32xf32>
    %896 = arith.divf %892, %895 : vector<16x32xf32>
    %897 = vector.broadcast %876 : vector<1x32xf32> to vector<16x32xf32>
    %898 = arith.addf %896, %897 : vector<16x32xf32>
    %c0_347 = arith.constant 0 : index
    %c0_348 = arith.constant 0 : index
    %899 = vector.load %arg73[%c0_347, %c0_348] : memref<16x32xf32, #tpu.memory_space<vmem>>, vector<16x32xf32>
    tpu.vector_store %arg73[%c0_347, %c0_348], %898 {strides = array<i32>} : memref<16x32xf32, #tpu.memory_space<vmem>>, vector<16x32xf32>,
    return
  }
}

</mosaic_0001>

<bundles_post_ra>
// kernel: encoder_decoder_forward.1
= control target key start
LH: loop header
LB: loop body
LE: loop exit
PB: predicated region body
PF: predicated region fallthrough
CT: control target
= control target key end

     0   :  { %s15270_s6 = smov 1   ;;  %s15271_s10 = smov 2   ;;  %s17208_s0 = inlined_call_operand.smem [shape: u32[74], index: -1, kind: input, shape index: {}] }
   0x1   :  { %s15385_s5 = sld [smem:[%s17208_s0]]   ;;  %s15272_s14 = smov 3  }
   0x2   :  { %s15390_s9 = sld [smem:[%s17208_s0 + %s15270_s6]]   ;;  %s15273_s18 = smov 4  }
   0x3   :  { %s15395_s13 = sld [smem:[%s17208_s0 + %s15271_s10]]   ;;  %s15274_s22 = smov 5  }
   0x4   :  { %s15400_s17 = sld [smem:[%s17208_s0 + %s15272_s14]]   ;;  %s15275_s26 = smov 6  }
   0x5   :  { %s15405_s21 = sld [smem:[%s17208_s0 + %s15273_s18]]   ;;  %s15276_s30 = smov 7  }
   0x6   :  { %s15410_s25 = sld [smem:[%s17208_s0 + %s15274_s22]]   ;;  %s15277_s4 = smov 8  }
   0x7   :  { %17237 = sst [smem:[#allocation43_spill]] %s15385_s5  ;;  %s15278_s10 = smov 9  }
   0x8   :  { %17238 = sst [smem:[#allocation44_spill]] %s15390_s9  ;;  %s15279_s15 = smov 10  }
   0x9   :  { %17239 = sst [smem:[#allocation45_spill]] %s15395_s13  ;;  %s15280_s20 = smov 11  }
   0xa   :  { %17240 = sst [smem:[#allocation46_spill]] %s15400_s17  ;;  %s15282_s1 = smov 13  }
   0xb   :  { %17241 = sst [smem:[#allocation47_spill]] %s15405_s21  ;;  %s15283_s7 = smov 14  }
   0xc   :  { %17242 = sst [smem:[#allocation48_spill]] %s15410_s25  ;;  %s15285_s22 = smov 16  }
   0xd   :  { %s15415_s29 = sld [smem:[%s17208_s0 + %s15275_s26]]   ;;  %s15281_s26 = smov 12  }
   0xe   :  { %s15420_s3 = sld [smem:[%s17208_s0 + %s15276_s30]]   ;;  %s15286_s28 = smov 17  }
   0xf   :  { %s15425_s8 = sld [smem:[%s17208_s0 + %s15277_s4]]  }
  0x10   :  { %s15430_s14 = sld [smem:[%s17208_s0 + %s15278_s10]]  }
  0x11   :  { %s15435_s19 = sld [smem:[%s17208_s0 + %s15279_s15]]   ;;  %s15284_s15 = smov 15  }
  0x12   :  { %s15440_s24 = sld [smem:[%s17208_s0 + %s15280_s20]]  }
  0x13   :  { %17243 = sst [smem:[#allocation49_spill]] %s15415_s29 }
  0x14   :  { %17244 = sst [smem:[#allocation50_spill]] %s15420_s3 }
  0x15   :  { %17245 = sst [smem:[#allocation51_spill]] %s15425_s8 }
  0x16   :  { %17246 = sst [smem:[#allocation52_spill]] %s15430_s14 }
  0x17   :  { %17247 = sst [smem:[#allocation53_spill]] %s15435_s19 }
  0x18   :  { %17248 = sst [smem:[#allocation54_spill]] %s15440_s24 }
  0x19   :  { %s15445_s30 = sld [smem:[%s17208_s0 + %s15281_s26]]  }
  0x1a   :  { %s15450_s6 = sld [smem:[%s17208_s0 + %s15282_s1]]  }
  0x1b   :  { %s15455_s12 = sld [smem:[%s17208_s0 + %s15283_s7]]   ;;  %s15287_s7 = smov 18  }
  0x1c   :  { %s15460_s20 = sld [smem:[%s17208_s0 + %s15284_s15]]   ;;  %s15288_s15 = smov 19  }
  0x1d   :  { %s15465_s27 = sld [smem:[%s17208_s0 + %s15285_s22]]   ;;  %s15289_s22 = smov 20  }
  0x1e   :  { %s15470_s4 = sld [smem:[%s17208_s0 + %s15286_s28]]   ;;  %s15290_s28 = smov 21  }
  0x1f   :  { %17249 = sst [smem:[#allocation55_spill]] %s15445_s30 }
  0x20   :  { %17250 = sst [smem:[#allocation56_spill]] %s15450_s6 }
  0x21   :  { %17251 = sst [smem:[#allocation57_spill]] %s15455_s12 }
  0x22   :  { %17252 = sst [smem:[#allocation58_spill]] %s15460_s20 }
  0x23   :  { %17253 = sst [smem:[#allocation59_spill]] %s15465_s27 }
  0x24   :  { %17254 = sst [smem:[#allocation60_spill]] %s15470_s4 }
  0x25   :  { %s15475_s29 = sld [smem:[%s17208_s0 + %s15287_s7]]   ;;  %s15291_s7 = smov 22  }
  0x26   :  { %s15480_s25 = sld [smem:[%s17208_s0 + %s15288_s15]]   ;;  %s15292_s15 = smov 23  }
  0x27   :  { %s15485_s27 = sld [smem:[%s17208_s0 + %s15289_s22]]   ;;  %s15293_s22 = smov 24  }
  0x28   :  { %s15490_s4 = sld [smem:[%s17208_s0 + %s15290_s28]]   ;;  %s15294_s28 = smov 25  }
  0x29   :  { %s15505_s8 = sld [smem:[%s17208_s0 + %s15293_s22]]   ;;  %s15297_s22 = smov 28  }
  0x2a   :  { %s15525_s3 = sld [smem:[%s17208_s0 + %s15297_s22]]   ;;  %s15301_s22 = smov 32  }
  0x2b   :  { %17255 = sst [smem:[#allocation61_spill]] %s15475_s29 }
  0x2c   :  { %17256 = sst [smem:[#allocation62_spill]] %s15480_s25 }
  0x2d   :  { %17257 = sst [smem:[#allocation63_spill]] %s15485_s27 }
  0x2e   :  { %17258 = sst [smem:[#allocation64_spill]] %s15490_s4 }
  0x2f   :  { %s15495_s29 = sld [smem:[%s17208_s0 + %s15291_s7]]   ;;  %s15295_s7 = smov 26  }
  0x30   :  { %s15500_s25 = sld [smem:[%s17208_s0 + %s15292_s15]]   ;;  %s15296_s15 = smov 27  }
  0x31   :  { %17261 = sst [smem:[#allocation67_spill]] %s15505_s8 }
  0x32   :  { %s15510_s4 = sld [smem:[%s17208_s0 + %s15294_s28]]   ;;  %s15298_s28 = smov 29  }
  0x33   :  { %s15515_s21 = sld [smem:[%s17208_s0 + %s15295_s7]]   ;;  %s15299_s7 = smov 30  }
  0x34   :  { %s15520_s19 = sld [smem:[%s17208_s0 + %s15296_s15]]   ;;  %s15300_s15 = smov 31  }
  0x35   :  { %17259 = sst [smem:[#allocation65_spill]] %s15495_s29 }
  0x36   :  { %17260 = sst [smem:[#allocation66_spill]] %s15500_s25 }
  0x37   :  { %17265 = sst [smem:[#allocation71_spill]] %s15525_s3 }
  0x38   :  { %17262 = sst [smem:[#allocation68_spill]] %s15510_s4 }
  0x39   :  { %17263 = sst [smem:[#allocation69_spill]] %s15515_s21 }
  0x3a   :  { %17264 = sst [smem:[#allocation70_spill]] %s15520_s19 }
  0x3b   :  { %s15530_s4 = sld [smem:[%s17208_s0 + %s15298_s28]]   ;;  %s15302_s28 = smov 33  }
  0x3c   :  { %s15535_s21 = sld [smem:[%s17208_s0 + %s15299_s7]]   ;;  %s15303_s7 = smov 34  }
  0x3d   :  { %s15540_s19 = sld [smem:[%s17208_s0 + %s15300_s15]]   ;;  %s15304_s15 = smov 35  }
  0x3e   :  { %s15545_s3 = sld [smem:[%s17208_s0 + %s15301_s22]]   ;;  %s15305_s22 = smov 36  }
  0x41   :  { %17266 = sst [smem:[#allocation72_spill]] %s15530_s4 }
  0x42   :  { %17267 = sst [smem:[#allocation73_spill]] %s15535_s21 }
  0x43   :  { %17268 = sst [smem:[#allocation74_spill]] %s15540_s19 }
  0x44   :  { %17269 = sst [smem:[#allocation75_spill]] %s15545_s3 }
  0x45   :  { %s15550_s4 = sld [smem:[%s17208_s0 + %s15302_s28]]   ;;  %s15306_s28 = smov 37  }
  0x46   :  { %s15555_s21 = sld [smem:[%s17208_s0 + %s15303_s7]]   ;;  %s15307_s7 = smov 38  }
  0x47   :  { %s15560_s19 = sld [smem:[%s17208_s0 + %s15304_s15]]   ;;  %s15308_s15 = smov 39  }
  0x48   :  { %s15565_s3 = sld [smem:[%s17208_s0 + %s15305_s22]]   ;;  %s15309_s22 = smov 40  }
  0x4b   :  { %17270 = sst [smem:[#allocation76_spill]] %s15550_s4 }
  0x4c   :  { %17271 = sst [smem:[#allocation77_spill]] %s15555_s21 }
  0x4d   :  { %17272 = sst [smem:[#allocation78_spill]] %s15560_s19 }
  0x4e   :  { %17273 = sst [smem:[#allocation79_spill]] %s15565_s3 }
  0x4f   :  { %s15570_s4 = sld [smem:[%s17208_s0 + %s15306_s28]]   ;;  %s15310_s28 = smov 41  }
  0x50   :  { %s15575_s21 = sld [smem:[%s17208_s0 + %s15307_s7]]   ;;  %s15311_s7 = smov 42  }
  0x51   :  { %s15580_s19 = sld [smem:[%s17208_s0 + %s15308_s15]]   ;;  %s15312_s15 = smov 43  }
  0x52   :  { %s15585_s3 = sld [smem:[%s17208_s0 + %s15309_s22]]   ;;  %s15313_s22 = smov 44  }
  0x55   :  { %17274 = sst [smem:[#allocation80_spill]] %s15570_s4 }
  0x56   :  { %17275 = sst [smem:[#allocation81_spill]] %s15575_s21 }
  0x57   :  { %17276 = sst [smem:[#allocation82_spill]] %s15580_s19 }
  0x58   :  { %17277 = sst [smem:[#allocation83_spill]] %s15585_s3 }
  0x59   :  { %s15590_s4 = sld [smem:[%s17208_s0 + %s15310_s28]]   ;;  %s15314_s28 = smov 45  }
  0x5a   :  { %s15595_s21 = sld [smem:[%s17208_s0 + %s15311_s7]]   ;;  %s15315_s7 = smov 46  }
  0x5b   :  { %s15600_s19 = sld [smem:[%s17208_s0 + %s15312_s15]]   ;;  %s15316_s15 = smov 47  }
  0x5c   :  { %s15605_s3 = sld [smem:[%s17208_s0 + %s15313_s22]]   ;;  %s15317_s22 = smov 48  }
  0x5f   :  { %17278 = sst [smem:[#allocation84_spill]] %s15590_s4 }
  0x60   :  { %17279 = sst [smem:[#allocation85_spill]] %s15595_s21 }
  0x61   :  { %17280 = sst [smem:[#allocation86_spill]] %s15600_s19 }
  0x62   :  { %17281 = sst [smem:[#allocation87_spill]] %s15605_s3 }
  0x63   :  { %s15610_s4 = sld [smem:[%s17208_s0 + %s15314_s28]]   ;;  %s15318_s28 = smov 49  }
  0x64   :  { %s15615_s21 = sld [smem:[%s17208_s0 + %s15315_s7]]   ;;  %s15319_s7 = smov 50  }
  0x65   :  { %s15620_s19 = sld [smem:[%s17208_s0 + %s15316_s15]]   ;;  %s15320_s15 = smov 51  }
  0x66   :  { %s15625_s3 = sld [smem:[%s17208_s0 + %s15317_s22]]   ;;  %s15321_s22 = smov 52  }
  0x67   :  { %s15630_s12 = sld [smem:[%s17208_s0 + %s15318_s28]]   ;;  %s15322_s28 = smov 53  }
  0x68   :  { %s15635_s20 = sld [smem:[%s17208_s0 + %s15319_s7]]   ;;  %s15323_s7 = smov 54  }
  0x69   :  { %s15640_s25 = sld [smem:[%s17208_s0 + %s15320_s15]]   ;;  %s15324_s15 = smov 55  }
  0x6a   :  { %s15645_s27 = sld [smem:[%s17208_s0 + %s15321_s22]]   ;;  %s15325_s22 = smov 56  }
  0x6b   :  { %s15650_s14 = sld [smem:[%s17208_s0 + %s15322_s28]]   ;;  %s15326_s28 = smov 57  }
  0x6c   :  { %s15655_s29 = sld [smem:[%s17208_s0 + %s15323_s7]]   ;;  %s15327_s7 = smov 58  }
  0x6d   :  { %s15660_s17 = sld [smem:[%s17208_s0 + %s15324_s15]]   ;;  %s15328_s15 = smov 59  }
  0x6e   :  { %17282 = sst [smem:[#allocation88_spill]] %s15635_s20 }
  0x6f   :  { %s15665_s24 = sld [smem:[%s17208_s0 + %s15325_s22]]   ;;  %s15329_s22 = smov 60  }
  0x70   :  { %s15670_s30 = sld [smem:[%s17208_s0 + %s15326_s28]]   ;;  %s15330_s28 = smov 61  }
  0x71   :  { %s15675_s6 = sld [smem:[%s17208_s0 + %s15327_s7]]   ;;  %s15331_s7 = smov 62  }
  0x72   :  { %s15680_s8 = sld [smem:[%s17208_s0 + %s15328_s15]]   ;;  %s15332_s15 = smov 63  }
  0x73   :  { %17283 = sst [smem:[#allocation89_spill]] %s15660_s17 }
  0x74   :  { %s15685_s9 = sld [smem:[%s17208_s0 + %s15329_s22]]   ;;  %s15333_s22 = smov 64  }
  0x75   :  { %17284 = sst [smem:[#allocation90_spill]] %s15665_s24 }
  0x76   :  { %17285 = sst [smem:[#allocation91_spill]] %s15670_s30 }
  0x77   :  { %17286 = sst [smem:[#allocation92_spill]] %s15675_s6 }
  0x78   :  { %s15690_s24 = sld [smem:[%s17208_s0 + %s15330_s28]]   ;;  %s15334_s28 = smov 65  }
  0x79   :  { %s15695_s17 = sld [smem:[%s17208_s0 + %s15331_s7]]   ;;  %s15335_s7 = smov 66  }
  0x7a   :  { %s15700_s30 = sld [smem:[%s17208_s0 + %s15332_s15]]   ;;  %s15336_s15 = smov 67  }
  0x7b   :  { %s15705_s13 = sld [smem:[%s17208_s0 + %s15333_s22]]   ;;  %s15337_s22 = smov 68  }
  0x7c   :  { %s15710_s20 = sld [smem:[%s17208_s0 + %s15334_s28]]   ;;  %s15338_s28 = smov 69  }
  0x7d   :  { %s15720_s6 = sld [smem:[%s17208_s0 + %s15336_s15]]   ;;  %s15340_s15 = smov 71  }
  0x7e   :  { %s15725_s5 = sld [smem:[%s17208_s0 + %s15337_s22]]   ;;  %s15341_s22 = smov 72  }
  0x7f   :  { %17287 = sst [smem:[#allocation93_spill]] %s15695_s17 }
  0x80   :  { %17288 = sst [smem:[#allocation94_spill]] %s15700_s30 }
  0x81   :  { %s15715_s17 = sld [smem:[%s17208_s0 + %s15335_s7]]   ;;  %s15339_s7 = smov 70  }
  0x82   :  { %17289 = sst [smem:[#allocation95_spill]] %s15710_s20 }
  0x83   :  { %17290 = sst [smem:[#allocation96_spill]] %s15720_s6 }
  0x84   :  { %17291 = sst [smem:[#allocation97_spill]] %s15725_s5 }
  0x85   :  { %s15730_s20 = sld [smem:[%s17208_s0 + %s15338_s28]]   ;;  %s15342_s28 = smov 73  }
  0x86   :  { %s15735_s30 = sld [smem:[%s17208_s0 + %s15339_s7]]  }
  0x87   :  { %s15740_s6 = sld [smem:[%s17208_s0 + %s15340_s15]]  }
  0x88   :  { %s15745_s5 = sld [smem:[%s17208_s0 + %s15341_s22]]  }
  0x8b   :  { %17292 = sst [smem:[#allocation98_spill]] %s15730_s20 }
  0x8c   :  { %s15750_s20 = sld [smem:[%s17208_s0 + %s15342_s28]]  }
  0x8d   :  { %152 = vsyncpa [#allocation3], 0 }
  0x8e   :  { %153 = vsyncpa [#allocation6], 0 }
  0x8f   :  { %154 = vsyncpa [#allocation9], 0 }
  0x90   :  { %155 = vsyncpa [#allocation12], 0 }
  0x91   :  { %156 = vsyncpa [#allocation15], 0 }
  0x92   :  { %157 = vsyncpa [#allocation18], 0 }
  0x93   :  { %158 = vsyncpa [#allocation21], 0 }
  0x94   :  { %159 = vsyncpa [#allocation24], 0 }
  0x95   :  { %160 = vsyncpa [#allocation27], 0 }
  0x96   :  { %161 = vsyncpa [#allocation30], 0 }
  0x97   :  { %162 = vsyncpa [#allocation4], 0  ;;  %s15343_s7 = smov [#allocation5]   ;;  %s15344_s11 = smov [#allocation8]  }
  0x98   :  { %s269_s10 = sshll.u32 %s15343_s7, 4  ;;  %s289_s15 = sshll.u32 %s15344_s11, 4  ;;  %s270_s10 = int_to_ptr.vmem [resolvable:$true] %s269_s10  ;;  %s290_s15 = int_to_ptr.vmem [resolvable:$true] %s289_s15 }
  0x99   :  { %s14830_s0 = scalar_lea.hbm %s15615_s21, 16 }
  0x9a   :  { %p14831_p0 = scmp.ne.s32.totalorder %s15615_s21, %s14830_s0  ;;  %p14834_p1 = scmp.lt.u32.totalorder %s14830_s0, %s15615_s21 }
  0x9c   :  { %p14836_p2 = pnand %p14834_p1, %p14831_p0 }
  0x9e   :  { %14839 = shalt.err (!%p14836_p2)
}
  0x9f   :  { %s14840_s16 = scalar_lea.vmem %s270_s10, 16  ;;  %s14844_s18 = scalar_lea.vmem %s270_s10, 32 }
  0xa0   :  { %p14841_p3 = scmp.ne.s32.totalorder %s270_s10, %s14840_s16  ;;  %p14845_p4 = scmp.lt.s32.totalorder %s270_s10, %s270_s10 }
  0xa1   :  { %p14846_p5 = scmp.lt.s32.totalorder %s14844_s18, %s14840_s16 }
  0xa3   :  { %p14847_p6 = por %p14846_p5, %p14845_p4 }
  0xa5   :  { %p14848_p7 = pnand %p14847_p6, %p14841_p3 }
  0xa7   :  { %14851 = shalt.err (!%p14848_p7)
}
  0xa8   :  { %272 = dma.hbm_to_vmem [thread:$0]  %s15615_s21, 16, %s270_s10, [#allocation6]  }
  0xa9   :  { %s14852_s22 = scalar_lea.hbm %s15625_s3, 16 }
  0xaa   :  { %p14853_p8 = scmp.ne.s32.totalorder %s15625_s3, %s14852_s22  ;;  %p14856_p9 = scmp.lt.u32.totalorder %s14852_s22, %s15625_s3 }
  0xac   :  { %p14858_p10 = pnand %p14856_p9, %p14853_p8 }
  0xae   :  { %14861 = shalt.err (!%p14858_p10)
}
  0xaf   :  { %s14862_s23 = scalar_lea.vmem %s290_s15, 16  ;;  %s14866_s26 = scalar_lea.vmem %s290_s15, 32 }
  0xb0   :  { %p14863_p11 = scmp.ne.s32.totalorder %s290_s15, %s14862_s23  ;;  %p14867_p12 = scmp.lt.s32.totalorder %s290_s15, %s290_s15 }
  0xb1   :  { %p14868_p13 = scmp.lt.s32.totalorder %s14866_s26, %s14862_s23 }
  0xb3   :  { %p14869_p0 = por %p14868_p13, %p14867_p12 }
  0xb5   :  { %p14870_p1 = pnand %p14869_p0, %p14863_p11 }
  0xb7   :  { %14873 = shalt.err (!%p14870_p1)
}
  0xb8   :  { %292 = dma.hbm_to_vmem [thread:$0]  %s15625_s3, 16, %s290_s15, [#allocation9]  }
  0xb9   :  { %s15345_s28 = smov [#allocation11]   ;;  %s15346_s1 = smov [#allocation14]  }
  0xba   :  { %s311_s21 = sshll.u32 %s15345_s28, 4  ;;  %s331_s2 = sshll.u32 %s15346_s1, 4  ;;  %s312_s21 = int_to_ptr.vmem [resolvable:$true] %s311_s21  ;;  %s332_s2 = int_to_ptr.vmem [resolvable:$true] %s331_s2 }
  0xbb   :  { %s14874_s7 = scalar_lea.hbm %s15640_s25, 16 }
  0xbc   :  { %p14875_p2 = scmp.ne.s32.totalorder %s15640_s25, %s14874_s7  ;;  %p14878_p3 = scmp.lt.u32.totalorder %s14874_s7, %s15640_s25 }
  0xbe   :  { %p14880_p4 = pnand %p14878_p3, %p14875_p2 }
  0xc0   :  { %14883 = shalt.err (!%p14880_p4)
}
  0xc1   :  { %s14884_s10 = scalar_lea.vmem %s312_s21, 16  ;;  %s14888_s11 = scalar_lea.vmem %s312_s21, 32 }
  0xc2   :  { %p14885_p5 = scmp.ne.s32.totalorder %s312_s21, %s14884_s10  ;;  %p14889_p6 = scmp.lt.s32.totalorder %s312_s21, %s312_s21 }
  0xc3   :  { %p14890_p7 = scmp.lt.s32.totalorder %s14888_s11, %s14884_s10 }
  0xc5   :  { %p14891_p8 = por %p14890_p7, %p14889_p6 }
  0xc7   :  { %p14892_p9 = pnand %p14891_p8, %p14885_p5 }
  0xc9   :  { %14895 = shalt.err (!%p14892_p9)
}
  0xca   :  { %314 = dma.hbm_to_vmem [thread:$0]  %s15640_s25, 16, %s312_s21, [#allocation12]  }
  0xcb   :  { %s14896_s3 = scalar_lea.hbm %s15650_s14, 16 }
  0xcc   :  { %p14897_p10 = scmp.ne.s32.totalorder %s15650_s14, %s14896_s3  ;;  %p14900_p11 = scmp.lt.u32.totalorder %s14896_s3, %s15650_s14 }
  0xce   :  { %p14902_p12 = pnand %p14900_p11, %p14897_p10 }
  0xd0   :  { %14905 = shalt.err (!%p14902_p12)
}
  0xd1   :  { %s14906_s15 = scalar_lea.vmem %s332_s2, 16  ;;  %s14910_s0 = scalar_lea.vmem %s332_s2, 32 }
  0xd2   :  { %p14907_p13 = scmp.ne.s32.totalorder %s332_s2, %s14906_s15  ;;  %p14911_p0 = scmp.lt.s32.totalorder %s332_s2, %s332_s2 }
  0xd3   :  { %p14912_p1 = scmp.lt.s32.totalorder %s14910_s0, %s14906_s15 }
  0xd5   :  { %p14913_p2 = por %p14912_p1, %p14911_p0 }
  0xd7   :  { %p14914_p3 = pnand %p14913_p2, %p14907_p13 }
  0xd9   :  { %14917 = shalt.err (!%p14914_p3)
}
  0xda   :  { %334 = dma.hbm_to_vmem [thread:$0]  %s15650_s14, 16, %s332_s2, [#allocation15]  }
  0xdb   :  { %s15347_s16 = smov [#allocation17]   ;;  %s15348_s18 = smov [#allocation20]  }
  0xdc   :  { %s359_s25 = sshll.u32 %s15347_s16, 4  ;;  %s379_s22 = sshll.u32 %s15348_s18, 4  ;;  %s360_s25 = int_to_ptr.vmem [resolvable:$true] %s359_s25  ;;  %s380_s22 = int_to_ptr.vmem [resolvable:$true] %s379_s22 }
  0xdd   :  { %s14918_s23 = scalar_lea.hbm %s15680_s8, 16 }
  0xde   :  { %p14919_p4 = scmp.ne.s32.totalorder %s15680_s8, %s14918_s23  ;;  %p14922_p5 = scmp.lt.u32.totalorder %s14918_s23, %s15680_s8 }
  0xe0   :  { %p14924_p6 = pnand %p14922_p5, %p14919_p4 }
  0xe2   :  { %14927 = shalt.err (!%p14924_p6)
}
  0xe3   :  { %s14928_s26 = scalar_lea.vmem %s360_s25, 16  ;;  %s14932_s28 = scalar_lea.vmem %s360_s25, 32 }
  0xe4   :  { %p14929_p7 = scmp.ne.s32.totalorder %s360_s25, %s14928_s26  ;;  %p14933_p8 = scmp.lt.s32.totalorder %s360_s25, %s360_s25 }
  0xe5   :  { %p14934_p9 = scmp.lt.s32.totalorder %s14932_s28, %s14928_s26 }
  0xe7   :  { %p14935_p10 = por %p14934_p9, %p14933_p8 }
  0xe9   :  { %p14936_p11 = pnand %p14935_p10, %p14929_p7 }
  0xeb   :  { %14939 = shalt.err (!%p14936_p11)
}
  0xec   :  { %362 = dma.hbm_to_vmem [thread:$0]  %s15680_s8, 16, %s360_s25, [#allocation18]  }
  0xed   :  { %s14940_s14 = scalar_lea.hbm %s15690_s24, 16 }
  0xee   :  { %p14941_p12 = scmp.ne.s32.totalorder %s15690_s24, %s14940_s14  ;;  %p14944_p13 = scmp.lt.u32.totalorder %s14940_s14, %s15690_s24 }
  0xf0   :  { %p14946_p0 = pnand %p14944_p13, %p14941_p12 }
  0xf2   :  { %14949 = shalt.err (!%p14946_p0)
}
  0xf3   :  { %s14950_s21 = scalar_lea.vmem %s380_s22, 16  ;;  %s14954_s1 = scalar_lea.vmem %s380_s22, 32 }
  0xf4   :  { %p14951_p1 = scmp.ne.s32.totalorder %s380_s22, %s14950_s21  ;;  %p14955_p2 = scmp.lt.s32.totalorder %s380_s22, %s380_s22 }
  0xf5   :  { %p14956_p3 = scmp.lt.s32.totalorder %s14954_s1, %s14950_s21 }
  0xf7   :  { %p14957_p4 = por %p14956_p3, %p14955_p2 }
  0xf9   :  { %p14958_p5 = pnand %p14957_p4, %p14951_p1 }
  0xfb   :  { %14961 = shalt.err (!%p14958_p5)
}
  0xfc   :  { %382 = dma.hbm_to_vmem [thread:$0]  %s15690_s24, 16, %s380_s22, [#allocation21]  }
  0xfd   :  { %s15349_s2 = smov [#allocation23]   ;;  %s15350_s7 = smov [#allocation26]  }
  0xfe   :  { %s401_s8 = sshll.u32 %s15349_s2, 4  ;;  %s421_s10 = sshll.u32 %s15350_s7, 4  ;;  %s402_s8 = int_to_ptr.vmem [resolvable:$true] %s401_s8  ;;  %s422_s10 = int_to_ptr.vmem [resolvable:$true] %s421_s10 }
  0xff   :  { %s14962_s11 = scalar_lea.hbm %s15705_s13, 16 }
 0x100   :  { %p14963_p6 = scmp.ne.s32.totalorder %s15705_s13, %s14962_s11  ;;  %p14966_p7 = scmp.lt.u32.totalorder %s14962_s11, %s15705_s13 }
 0x102   :  { %p14968_p8 = pnand %p14966_p7, %p14963_p6 }
 0x104   :  { %14971 = shalt.err (!%p14968_p8)
}
 0x105   :  { %s14972_s3 = scalar_lea.vmem %s402_s8, 16  ;;  %s14976_s15 = scalar_lea.vmem %s402_s8, 32 }
 0x106   :  { %p14973_p9 = scmp.ne.s32.totalorder %s402_s8, %s14972_s3  ;;  %p14977_p10 = scmp.lt.s32.totalorder %s402_s8, %s402_s8 }
 0x107   :  { %p14978_p11 = scmp.lt.s32.totalorder %s14976_s15, %s14972_s3 }
 0x109   :  { %p14979_p12 = por %p14978_p11, %p14977_p10 }
 0x10b   :  { %p14980_p13 = pnand %p14979_p12, %p14973_p9 }
 0x10d   :  { %14983 = shalt.err (!%p14980_p13)
}
 0x10e   :  { %404 = dma.hbm_to_vmem [thread:$0]  %s15705_s13, 16, %s402_s8, [#allocation24]  }
 0x10f   :  { %s14984_s24 = scalar_lea.hbm %s15715_s17, 16 }
 0x110   :  { %p14985_p0 = scmp.ne.s32.totalorder %s15715_s17, %s14984_s24  ;;  %p14988_p1 = scmp.lt.u32.totalorder %s14984_s24, %s15715_s17 }
 0x112   :  { %p14990_p2 = pnand %p14988_p1, %p14985_p0 }
 0x114   :  { %14993 = shalt.err (!%p14990_p2)
}
 0x115   :  { %s14994_s0 = scalar_lea.vmem %s422_s10, 16  ;;  %s14998_s16 = scalar_lea.vmem %s422_s10, 32 }
 0x116   :  { %p14995_p3 = scmp.ne.s32.totalorder %s422_s10, %s14994_s0  ;;  %p14999_p4 = scmp.lt.s32.totalorder %s422_s10, %s422_s10 }
 0x117   :  { %p15000_p5 = scmp.lt.s32.totalorder %s14998_s16, %s14994_s0 }
 0x119   :  { %p15001_p6 = por %p15000_p5, %p14999_p4 }
 0x11b   :  { %p15002_p7 = pnand %p15001_p6, %p14995_p3 }
 0x11d   :  { %15005 = shalt.err (!%p15002_p7)
}
 0x11e   :  { %424 = dma.hbm_to_vmem [thread:$0]  %s15715_s17, 16, %s422_s10, [#allocation27]  }
 0x11f   :  { %s15351_s25 = smov [#allocation2]   ;;  %s15352_s18 = smov [#allocation7]  }
 0x120   :  { %s259_s13 = sshll.u32 %s15351_s25, 4  ;;  %s279_s22 = sshll.u32 %s15352_s18, 4  ;;  %s260_s13 = int_to_ptr.vmem [resolvable:$true] %s259_s13  ;;  %s280_s22 = int_to_ptr.vmem [resolvable:$true] %s279_s22 }
 0x121   :  { %s15006_s23 = scalar_lea.hbm %s15610_s4, 16 }
 0x122   :  { %p15007_p8 = scmp.ne.s32.totalorder %s15610_s4, %s15006_s23  ;;  %p15010_p9 = scmp.lt.u32.totalorder %s15006_s23, %s15610_s4 }
 0x124   :  { %p15012_p10 = pnand %p15010_p9, %p15007_p8 }
 0x126   :  { %15015 = shalt.err (!%p15012_p10)
}
 0x127   :  { %s15016_s26 = scalar_lea.vmem %s260_s13, 16  ;;  %s15020_s28 = scalar_lea.vmem %s260_s13, 32 }
 0x128   :  { %p15017_p11 = scmp.ne.s32.totalorder %s260_s13, %s15016_s26  ;;  %p15021_p12 = scmp.lt.s32.totalorder %s260_s13, %s260_s13 }
 0x129   :  { %p15022_p13 = scmp.lt.s32.totalorder %s15020_s28, %s15016_s26 }
 0x12b   :  { %p15023_p0 = por %p15022_p13, %p15021_p12 }
 0x12d   :  { %p15024_p1 = pnand %p15023_p0, %p15017_p11 }
 0x12f   :  { %15027 = shalt.err (!%p15024_p1)
}
 0x130   :  { %262 = dma.hbm_to_vmem [thread:$0]  %s15610_s4, 16, %s260_s13, [#allocation3]  }
 0x131   :  { %s15028_s17 = scalar_lea.hbm %s15620_s19, 16 }
 0x132   :  { %p15029_p2 = scmp.ne.s32.totalorder %s15620_s19, %s15028_s17  ;;  %p15032_p3 = scmp.lt.u32.totalorder %s15028_s17, %s15620_s19 }
 0x134   :  { %p15034_p4 = pnand %p15032_p3, %p15029_p2 }
 0x136   :  { %15037 = shalt.err (!%p15034_p4)
}
 0x137   :  { %s15038_s14 = scalar_lea.vmem %s280_s22, 16  ;;  %s15042_s21 = scalar_lea.vmem %s280_s22, 32 }
 0x138   :  { %p15039_p5 = scmp.ne.s32.totalorder %s280_s22, %s15038_s14  ;;  %p15043_p6 = scmp.lt.s32.totalorder %s280_s22, %s280_s22 }
 0x139   :  { %p15044_p7 = scmp.lt.s32.totalorder %s15042_s21, %s15038_s14 }
 0x13b   :  { %p15045_p8 = por %p15044_p7, %p15043_p6 }
 0x13d   :  { %p15046_p9 = pnand %p15045_p8, %p15039_p5 }
 0x13f   :  { %15049 = shalt.err (!%p15046_p9)
}
 0x140   :  { %282 = dma.hbm_to_vmem [thread:$0]  %s15620_s19, 16, %s280_s22, [#allocation6]  }
 0x141   :  { %s15353_s1 = smov [#allocation10]   ;;  %s15354_s2 = smov [#allocation13]  }
 0x142   :  { %s299_s4 = sshll.u32 %s15353_s1, 4  ;;  %s321_s8 = sshll.u32 %s15354_s2, 4  ;;  %s300_s4 = int_to_ptr.vmem [resolvable:$true] %s299_s4  ;;  %s322_s8 = int_to_ptr.vmem [resolvable:$true] %s321_s8 }
 0x143   :  { %s15050_s7 = scalar_lea.hbm %s15630_s12, 16 }
 0x144   :  { %p15051_p10 = scmp.ne.s32.totalorder %s15630_s12, %s15050_s7  ;;  %p15054_p11 = scmp.lt.u32.totalorder %s15050_s7, %s15630_s12 }
 0x146   :  { %p15056_p12 = pnand %p15054_p11, %p15051_p10 }
 0x148   :  { %15059 = shalt.err (!%p15056_p12)
}
 0x149   :  { %s15060_s10 = scalar_lea.vmem %s300_s4, 16  ;;  %s15064_s11 = scalar_lea.vmem %s300_s4, 32 }
 0x14a   :  { %p15061_p13 = scmp.ne.s32.totalorder %s300_s4, %s15060_s10  ;;  %p15065_p0 = scmp.lt.s32.totalorder %s300_s4, %s300_s4 }
 0x14b   :  { %p15066_p1 = scmp.lt.s32.totalorder %s15064_s11, %s15060_s10 }
 0x14d   :  { %p15067_p2 = por %p15066_p1, %p15065_p0 }
 0x14f   :  { %p15068_p3 = pnand %p15067_p2, %p15061_p13 }
 0x151   :  { %15071 = shalt.err (!%p15068_p3)
}
 0x152   :  { %302 = dma.hbm_to_vmem [thread:$0]  %s15630_s12, 16, %s300_s4, [#allocation9]  }
 0x153   :  { %s15072_s19 = scalar_lea.hbm %s15645_s27, 16 }
 0x154   :  { %p15073_p4 = scmp.ne.s32.totalorder %s15645_s27, %s15072_s19  ;;  %p15076_p5 = scmp.lt.u32.totalorder %s15072_s19, %s15645_s27 }
 0x156   :  { %p15078_p6 = pnand %p15076_p5, %p15073_p4 }
 0x158   :  { %15081 = shalt.err (!%p15078_p6)
}
 0x159   :  { %s15082_s3 = scalar_lea.vmem %s322_s8, 16  ;;  %s15086_s15 = scalar_lea.vmem %s322_s8, 32 }
 0x15a   :  { %p15083_p7 = scmp.ne.s32.totalorder %s322_s8, %s15082_s3  ;;  %p15087_p8 = scmp.lt.s32.totalorder %s322_s8, %s322_s8 }
 0x15b   :  { %p15088_p9 = scmp.lt.s32.totalorder %s15086_s15, %s15082_s3 }
 0x15d   :  { %p15089_p10 = por %p15088_p9, %p15087_p8 }
 0x15f   :  { %p15090_p11 = pnand %p15089_p10, %p15083_p7 }
 0x161   :  { %15093 = shalt.err (!%p15090_p11)
}
 0x162   :  { %324 = dma.hbm_to_vmem [thread:$0]  %s15645_s27, 16, %s322_s8, [#allocation12]  }
 0x163   :  { %s15355_s24 = smov [#allocation16]   ;;  %s15356_s0 = smov [#allocation19]  }
 0x164   :  { %s341_s12 = sshll.u32 %s15355_s24, 4  ;;  %s369_s16 = sshll.u32 %s15356_s0, 4  ;;  %s342_s12 = int_to_ptr.vmem [resolvable:$true] %s341_s12  ;;  %s370_s16 = int_to_ptr.vmem [resolvable:$true] %s369_s16 }
 0x165   :  { %s15094_s25 = scalar_lea.hbm %s15655_s29, 16 }
 0x166   :  { %p15095_p12 = scmp.ne.s32.totalorder %s15655_s29, %s15094_s25  ;;  %p15098_p13 = scmp.lt.u32.totalorder %s15094_s25, %s15655_s29 }
 0x168   :  { %p15100_p0 = pnand %p15098_p13, %p15095_p12 }
 0x16a   :  { %15103 = shalt.err (!%p15100_p0)
}
 0x16b   :  { %s15104_s13 = scalar_lea.vmem %s342_s12, 16  ;;  %s15108_s18 = scalar_lea.vmem %s342_s12, 32 }
 0x16c   :  { %p15105_p1 = scmp.ne.s32.totalorder %s342_s12, %s15104_s13  ;;  %p15109_p2 = scmp.lt.s32.totalorder %s342_s12, %s342_s12 }
 0x16d   :  { %p15110_p3 = scmp.lt.s32.totalorder %s15108_s18, %s15104_s13 }
 0x16f   :  { %p15111_p4 = por %p15110_p3, %p15109_p2 }
 0x171   :  { %p15112_p5 = pnand %p15111_p4, %p15105_p1 }
 0x173   :  { %15115 = shalt.err (!%p15112_p5)
}
 0x174   :  { %344 = dma.hbm_to_vmem [thread:$0]  %s15655_s29, 16, %s342_s12, [#allocation15]  }
 0x175   :  { %s15116_s27 = scalar_lea.hbm %s15685_s9, 16 }
 0x176   :  { %p15117_p6 = scmp.ne.s32.totalorder %s15685_s9, %s15116_s27  ;;  %p15120_p7 = scmp.lt.u32.totalorder %s15116_s27, %s15685_s9 }
 0x178   :  { %p15122_p8 = pnand %p15120_p7, %p15117_p6 }
 0x17a   :  { %15125 = shalt.err (!%p15122_p8)
}
 0x17b   :  { %s15126_s22 = scalar_lea.vmem %s370_s16, 16  ;;  %s15130_s23 = scalar_lea.vmem %s370_s16, 32 }
 0x17c   :  { %p15127_p9 = scmp.ne.s32.totalorder %s370_s16, %s15126_s22  ;;  %p15131_p10 = scmp.lt.s32.totalorder %s370_s16, %s370_s16 }
 0x17d   :  { %p15132_p11 = scmp.lt.s32.totalorder %s15130_s23, %s15126_s22 }
 0x17f   :  { %p15133_p12 = por %p15132_p11, %p15131_p10 }
 0x181   :  { %p15134_p13 = pnand %p15133_p12, %p15127_p9 }
 0x183   :  { %15137 = shalt.err (!%p15134_p13)
}
 0x184   :  { %s17293_s26 = sld [smem:[#allocation94_spill]]  ;;  %s15357_s28 = smov [#allocation22]  }
 0x185   :  { %372 = dma.hbm_to_vmem [thread:$0]  %s15685_s9, 16, %s370_s16, [#allocation18]  }
 0x186   :  { %s391_s29 = sshll.u32 %s15357_s28, 4  ;;  %s15358_s17 = smov [#allocation25]   ;;  %s392_s29 = int_to_ptr.vmem [resolvable:$true] %s391_s29 }
 0x187   :  { %s411_s14 = sshll.u32 %s15358_s17, 4  ;;  %s412_s14 = int_to_ptr.vmem [resolvable:$true] %s411_s14 }
 0x18a   :  { %s15138_s21 = scalar_lea.hbm %s17293_s26, 16 }
 0x18b   :  { %p15139_p0 = scmp.ne.s32.totalorder %s17293_s26, %s15138_s21  ;;  %p15142_p1 = scmp.lt.u32.totalorder %s15138_s21, %s17293_s26 }
 0x18d   :  { %p15144_p2 = pnand %p15142_p1, %p15139_p0 }
 0x18f   :  { %15147 = shalt.err (!%p15144_p2)
}
 0x190   :  { %s15148_s1 = scalar_lea.vmem %s392_s29, 16  ;;  %s15152_s4 = scalar_lea.vmem %s392_s29, 32 }
 0x191   :  { %p15149_p3 = scmp.ne.s32.totalorder %s392_s29, %s15148_s1  ;;  %p15153_p4 = scmp.lt.s32.totalorder %s392_s29, %s392_s29 }
 0x192   :  { %p15154_p5 = scmp.lt.s32.totalorder %s15152_s4, %s15148_s1 }
 0x194   :  { %p15155_p6 = por %p15154_p5, %p15153_p4 }
 0x196   :  { %p15156_p7 = pnand %p15155_p6, %p15149_p3 }
 0x198   :  { %15159 = shalt.err (!%p15156_p7)
}
 0x199   :  { %s17294_s9 = sld [smem:[#allocation95_spill]] }
 0x19a   :  { %394 = dma.hbm_to_vmem [thread:$0]  %s17293_s26, 16, %s392_s29, [#allocation21]  }
 0x19f   :  { %s15160_s2 = scalar_lea.hbm %s17294_s9, 16 }
 0x1a0   :  { %p15161_p8 = scmp.ne.s32.totalorder %s17294_s9, %s15160_s2  ;;  %p15164_p9 = scmp.lt.u32.totalorder %s15160_s2, %s17294_s9 }
 0x1a2   :  { %p15166_p10 = pnand %p15164_p9, %p15161_p8 }
 0x1a4   :  { %15169 = shalt.err (!%p15166_p10)
}
 0x1a5   :  { %s15170_s8 = scalar_lea.vmem %s412_s14, 16  ;;  %s15174_s7 = scalar_lea.vmem %s412_s14, 32 }
 0x1a6   :  { %p15171_p11 = scmp.ne.s32.totalorder %s412_s14, %s15170_s8  ;;  %p15175_p12 = scmp.lt.s32.totalorder %s412_s14, %s412_s14 }
 0x1a7   :  { %p15176_p13 = scmp.lt.s32.totalorder %s15174_s7, %s15170_s8 }
 0x1a9   :  { %p15177_p0 = por %p15176_p13, %p15175_p12 }
 0x1ab   :  { %p15178_p1 = pnand %p15177_p0, %p15171_p11 }
 0x1ad   :  { %15181 = shalt.err (!%p15178_p1)
}
 0x1ae   :  { %414 = dma.hbm_to_vmem [thread:$0]  %s17294_s9, 16, %s412_s14, [#allocation24]  }
 0x1af   :  { %s15359_s10 = smov [#allocation28]   ;;  %s15360_s19 = smov [#allocation29]  }
 0x1b0   :  { %s439_s11 = sshll.u32 %s15359_s10, 4  ;;  %s449_s3 = sshll.u32 %s15360_s19, 4  ;;  %s440_s11 = int_to_ptr.vmem [resolvable:$true] %s439_s11  ;;  %s450_s3 = int_to_ptr.vmem [resolvable:$true] %s449_s3 }
 0x1b1   :  { %s15182_s15 = scalar_lea.hbm %s15740_s6, 16 }
 0x1b2   :  { %p15183_p2 = scmp.ne.s32.totalorder %s15740_s6, %s15182_s15  ;;  %p15186_p3 = scmp.lt.u32.totalorder %s15182_s15, %s15740_s6 }
 0x1b4   :  { %p15188_p4 = pnand %p15186_p3, %p15183_p2 }
 0x1b6   :  { %15191 = shalt.err (!%p15188_p4)
}
 0x1b7   :  { %s15192_s24 = scalar_lea.vmem %s440_s11, 16  ;;  %s15196_s12 = scalar_lea.vmem %s440_s11, 32 }
 0x1b8   :  { %p15193_p5 = scmp.ne.s32.totalorder %s440_s11, %s15192_s24  ;;  %p15197_p6 = scmp.lt.s32.totalorder %s440_s11, %s440_s11 }
 0x1b9   :  { %p15198_p7 = scmp.lt.s32.totalorder %s15196_s12, %s15192_s24 }
 0x1bb   :  { %p15199_p8 = por %p15198_p7, %p15197_p6 }
 0x1bd   :  { %p15200_p9 = pnand %p15199_p8, %p15193_p5 }
 0x1bf   :  { %15203 = shalt.err (!%p15200_p9)
}
 0x1c0   :  { %442 = dma.hbm_to_vmem [thread:$0]  %s15740_s6, 16, %s440_s11, [#allocation27]  }
 0x1c1   :  { %s15204_s0 = scalar_lea.hbm %s15745_s5, 16 }
 0x1c2   :  { %p15205_p10 = scmp.ne.s32.totalorder %s15745_s5, %s15204_s0  ;;  %p15208_p11 = scmp.lt.u32.totalorder %s15204_s0, %s15745_s5 }
 0x1c4   :  { %p15210_p12 = pnand %p15208_p11, %p15205_p10 }
 0x1c6   :  { %15213 = shalt.err (!%p15210_p12)
}
 0x1c7   :  { %s15214_s16 = scalar_lea.vmem %s450_s3, 16  ;;  %s15218_s25 = scalar_lea.vmem %s450_s3, 32 }
 0x1c8   :  { %p15215_p13 = scmp.ne.s32.totalorder %s450_s3, %s15214_s16  ;;  %p15219_p0 = scmp.lt.s32.totalorder %s450_s3, %s450_s3 }
 0x1c9   :  { %p15220_p1 = scmp.lt.s32.totalorder %s15218_s25, %s15214_s16 }
 0x1cb   :  { %p15221_p2 = por %p15220_p1, %p15219_p0 }
 0x1cd   :  { %p15222_p3 = pnand %p15221_p2, %p15215_p13 }
 0x1cf   :  { %15225 = shalt.err (!%p15222_p3)
}
 0x1d0   :  { %452 = dma.hbm_to_vmem [thread:$0]  %s15745_s5, 16, %s450_s3, [#allocation30]  }
 0x1d1   :  { %15248 = dma.done.wait [#allocation3], 16  }
 0x1d2   :  { %15249 = vsyncadd [#allocation3], 4294967280 }
 0x1d3   :  { %15250 = dma.done.wait [#allocation6], 32  }
 0x1d4   :  { %15251 = vsyncadd [#allocation6], 4294967264 }
 0x1d5   :  { %15252 = dma.done.wait [#allocation9], 32  }
 0x1d6   :  { %15253 = vsyncadd [#allocation9], 4294967264 }
 0x1d7   :  { %15254 = dma.done.wait [#allocation12], 32  }
 0x1d8   :  { %15255 = vsyncadd [#allocation12], 4294967264 }
 0x1d9   :  { %15256 = dma.done.wait [#allocation15], 32  }
 0x1da   :  { %15257 = vsyncadd [#allocation15], 4294967264 }
 0x1db   :  { %15258 = dma.done.wait [#allocation18], 32  }
 0x1dc   :  { %15259 = vsyncadd [#allocation18], 4294967264 }
 0x1dd   :  { %15260 = dma.done.wait [#allocation21], 32  }
 0x1de   :  { %15261 = vsyncadd [#allocation21], 4294967264 }
 0x1df   :  { %15262 = dma.done.wait [#allocation24], 32  }
 0x1e0   :  { %15263 = vsyncadd [#allocation24], 4294967264 }
 0x1e1   :  { %15264 = dma.done.wait [#allocation27], 32  }
 0x1e2   :  { %15265 = vsyncadd [#allocation27], 4294967264 }
 0x1e3   :  { %15266 = dma.done.wait [#allocation30], 16  }
 0x1e4   :  { %15267 = vsyncadd [#allocation30], 4294967280  ;;  %s17295_s5 = sld [smem:[#allocation43_spill]]  ;;  %vm517_vm0 = vcmask 261120   ;;  %s17296_s6 = sld [smem:[#allocation92_spill]]  ;;  %v15361_v46 = vmov 0.0  }
 0x1e5   :  { %v12779_v36 = vld [vmem:[#allocation13] ss:$0 sm:$0xff]  ;;  %s17297_s13 = sld [smem:[#allocation88_spill]]  ;;  %v12780_v39 = vld [vmem:[#allocation11] ss:$0 sm:$0xff]  ;;  %13446 = vmatprep.subr.mxu0 %v15361_v46  ;;  %vm15362_vm5 = vmmov 0  }
 0x1e6   :  { %13448 = vmatprep.mubr.msk.f32.mxu0 %vm15362_vm5, %v15361_v46  ;;  %s15363_s18 = smov 96   ;;  %s17298_s27 = sld [smem:[#allocation45_spill]]  ;;  %vm676_vm6 = vcmask 64512   ;;  %vm2497_vm11 = vcmask 523264  }
 0x1e7   :  { %s15364_s22 = smov 88   ;;  %s15365_s23 = smov 120  }
 0x1e8   :  { %s15366_s26 = smov 80   ;;  %s15367_s28 = smov 64  }
 0x1e9   :  { %s15368_s29 = smov 56   ;;  %s15369_s17 = smov 112  }
 0x1ea   :  { %v15825_v0 = vld [vmem:[%s17295_s5] sm:$0xff]  ;;  %v15828_v1 = vld [vmem:[%s17295_s5 + $0x8] sm:$0xff]  ;;  %v578_v16 = vld [vmem:[%s17296_s6 + $0x10] sm:$0xff]  ;;  %s15370_s14 = smov 48   ;;  %s15371_s21 = smov 72  }
 0x1eb   :  { %v518_v2 = vsel %vm517_vm0, %v15825_v0, 0.0  ;;  %v521_v3 = vsel %vm517_vm0, %v15828_v1, 0.0  ;;  %v576_v14 = vld [vmem:[%s17296_s6] sm:$0xff]  ;;  %v577_v15 = vld [vmem:[%s17296_s6 + $0x8] sm:$0xff]  ;;  %v579_v18 = vld [vmem:[%s17296_s6 + $0x18] sm:$0xff]  ;;  %s15372_s1 = smov 104  }
 0x1ec   :  { %519 = vadd.xlane.f32.xlu0 %v518_v2  ;;  %v14233_v17 = vpack.c.bf16 %v577_v15, %v576_v14  ;;  %v14237_v19 = vpack.c.bf16 %v579_v18, %v578_v16  ;;  %v12781_v47 = vld [vmem:[%s17297_s13] ss:$0 sm:$0xff]  ;;  %v15872_v56 = vld [vmem:[%s17298_s27 + $0x8] sm:$0xff]  ;;  %s17299_s4 = sld [smem:[#allocation91_spill]]  ;;  %s15373_s9 = smov 40  }
 0x1ed   :  { %v15881_v61 = vld [vmem:[%s17298_s27] sm:$0xff]  ;;  %s17300_s2 = sld [smem:[#allocation89_spill]]  ;;  %s17301_s8 = sld [smem:[#allocation90_spill]] }
 0x1ee   :  { %14234 = vmatprep.subr.bf16.mxu1 %v14233_v17  ;;  %s17303_s7 = sld [smem:[#allocation98_spill]]  ;;  %s17304_s10 = sld [smem:[#allocation44_spill]] }
 0x1ef   :  { %14236 = vmatpush3.bf16.msra.mxu1 %v14233_v17  ;;  %s17305_s11 = sld [smem:[#allocation96_spill]]  ;;  %s17306_s19 = sld [smem:[#allocation67_spill]] }
 0x1f0   :  { %522 = vadd.xlane.f32.xlu0 %v521_v3  ;;  %14238 = vmatprep.subr.bf16.mxu1 %v14237_v19  ;;  %s17307_s3 = sld [smem:[#allocation97_spill]]  ;;  %s17308_s15 = sld [smem:[#allocation56_spill]] }
 0x1f1   :  { %s17309_s24 = sld [smem:[#allocation55_spill]]  ;;  %s17310_s12 = sld [smem:[#allocation54_spill]] }
 0x1f2   :  { %s17311_s0 = sld [smem:[#allocation46_spill]]  ;;  %s17312_s16 = sld [smem:[#allocation65_spill]] }
 0x1f3   :  { %14240 = vmatpush3.bf16.msra.mxu1 %v14237_v19  ;;  %s17313_s25 = sld [smem:[#allocation52_spill]]  ;;  %s17314_s5 = sld [smem:[#allocation63_spill]] }
 0x1f4   :  { %13436 = vmatprep.subr.mxu1 %v15361_v46  ;;  %s17315_s6 = sld [smem:[#allocation66_spill]] }
 0x1f5   :  { %s17316_s13 = sld [smem:[#allocation58_spill]] }
 0x279   :  { %v520_v4 = vpop.xlane.xlu0 %519 }
 0x27a   :  { %v525_v5 = vmul.f32 0.03125, %v520_v4 }
 0x27c   :  { %v527_v6 = vsub.f32 %v15825_v0, %v525_v5 }
 0x27d   :  { %v523_v7 = vpop.xlane.xlu0 %522 }
 0x27e   :  { %v526_v8 = vmul.f32 0.03125, %v523_v7  ;;  %v529_v9 = vmul.f32 %v527_v6, %v527_v6  ;;  %v560_v37 = vmul.f32 %v12779_v36, %v527_v6 }
 0x280   :  { %v528_v10 = vsub.f32 %v15828_v1, %v526_v8  ;;  %v531_v11 = vsel %vm517_vm0, %v529_v9, 0.0 }
 0x281   :  { %532 = vadd.xlane.f32.xlu1 %v531_v11 }
 0x282   :  { %v530_v12 = vmul.f32 %v528_v10, %v528_v10  ;;  %v561_v41 = vmul.f32 %v12779_v36, %v528_v10 }
 0x284   :  { %v534_v13 = vsel %vm517_vm0, %v530_v12, 0.0 }
 0x285   :  { %535 = vadd.xlane.f32.xlu1 %v534_v13 }
 0x30e   :  { %v533_v20 = vpop.xlane.xlu1 %532 }
 0x30f   :  { %v538_v21 = vmul.f32 0.032258064, %v533_v20 }
 0x311   :  { %14536 = vrsqrt.f32 %v538_v21  ;;  %vm542_vm1 = vcmp.eq.f32.partialorder %v538_v21, inf  ;;  %v545_v26 = vand.u32 2147483648, %v538_v21  ;;  %vm544_vm2 = vcmp.eq.f32.partialorder %v538_v21, 0.0 }
 0x312   :  { %v536_v22 = vpop.xlane.xlu1 %535 }
 0x313   :  { %v539_v23 = vmul.f32 0.032258064, %v536_v22 }
 0x315   :  { %14538 = vrsqrt.f32 %v539_v23  ;;  %vm549_vm3 = vcmp.eq.f32.partialorder %v539_v23, inf  ;;  %v552_v32 = vand.u32 2147483648, %v539_v23  ;;  %vm551_vm4 = vcmp.eq.f32.partialorder %v539_v23, 0.0 }
 0x31b   :  { %v14537_v24 = vpop.eup %14536 }
 0x31c   :  { %v541_v25 = vmul.f32 %v14537_v24, %v538_v21 }
 0x31e   :  { %v543_v27 = vsel %vm542_vm1, %v538_v21, %v541_v25 }
 0x31f   :  { %v14539_v28 = vpop.eup %14538  ;;  %v546_v29 = vsel %vm544_vm2, %v545_v26, %v543_v27 }
 0x320   :  { %v548_v30 = vmul.f32 %v14539_v28, %v539_v23  ;;  %v562_v31 = vadd.f32 1e-06, %v546_v29 }
 0x322   :  { %v550_v33 = vsel %vm549_vm3, %v539_v23, %v548_v30  ;;  %14540 = vrcp.f32 %v562_v31 }
 0x323   :  { %v553_v34 = vsel %vm551_vm4, %v552_v32, %v550_v33 }
 0x324   :  { %v563_v35 = vadd.f32 1e-06, %v553_v34 }
 0x326   :  { %14542 = vrcp.f32 %v563_v35 }
 0x32c   :  { %v14541_v38 = vpop.eup %14540 }
 0x32d   :  { %v565_v40 = vmul.f32 %v14541_v38, %v560_v37 }
 0x32f   :  { %v574_v42 = vadd.f32 %v12780_v39, %v565_v40 }
 0x330   :  { %v14543_v43 = vpop.eup %14542 }
 0x331   :  { %v567_v44 = vmul.f32 %v14543_v43, %v561_v41  ;;  %13433 = vmatprep.mubr.msk.f32.mxu1 %vm517_vm0, %v574_v42 }
 0x333   :  { %v575_v45 = vadd.f32 %v12780_v39, %v567_v44 }
 0x335   :  { %13434 = vmatmul.mubr.msk.f32.vlgmr.msra.gmra.mrb[0].mxu1 %vm517_vm0, %v575_v45 }
 0x336   :  { %13438 = vmatprep.mubr.msk.f32.mxu1 %vm15362_vm5, %v15361_v46 }
 0x408   :  { %v13435_v48 = vpop.f32.mrb[0].mxu1 }
 0x409   :  { %v15851_v49 = vadd.f32 %v13435_v48, %v12781_v47  ;;  %v659_v50 = vpop.f32.mrb[1].mxu1 }
 0x40a   :  { %v15853_v51 = vadd.f32 %v12781_v47, %v659_v50 }
 0x40b   :  { %752 = vrot.lane.b32.xlu1 %v15851_v49, %s15363_s18 }
 0x40c   :  { %674 = vrot.lane.b32.xlu0 %v15853_v51, %s15363_s18 }
 0x47d   :  { %v753_v53 = vpop.permute.xlu1 %752 }
 0x47e   :  { %v675_v52 = vpop.permute.xlu0 %674 }
 0x47f   :  { %13437 = vmatpush3.xpose.msk.msra.mxu1 %vm676_vm6, %v675_v52 }
 0x480   :  { %13441 = vmatprep.subr.mxu1 %v15361_v46 }
 0x482   :  { %13439 = vmatmul.mubr.msk.f32.vlgmr.msra.gmra.mrb[2].mxu1 %vm676_vm6, %v15853_v51 }
 0x483   :  { %13442 = vmatpush3.xpose.msk.msra.mxu1 %vm676_vm6, %v753_v53  ;;  %13443 = vmatprep.mubr.msk.f32.mxu1 %vm15362_vm5, %v15361_v46 }
 0x484   :  { %13451 = vmatprep.subr.mxu1 %v15361_v46 }
 0x486   :  { %13444 = vmatmul.mubr.msk.f32.vlgmr.msra.gmra.mrb[4].mxu1 %vm676_vm6, %v15851_v49 }
 0x487   :  { %13453 = vmatprep.mubr.msk.f32.mxu1 %vm15362_vm5, %v15361_v46 }
 0x555   :  { %v747_v54 = vpop.f32.mrb[2].mxu1 }
 0x556   :  { %v13440_v55 = vpop.f32.mrb[3].mxu1  ;;  %v748_v62 = vadd.f32 %v747_v54, %v15881_v61 }
 0x558   :  { %v828_v63 = vsel %vm676_vm6, %v748_v62, -inf }
 0x559   :  { %v824_v57 = vpop.f32.mrb[4].mxu1 }
 0x55a   :  { %v825_v58 = vadd.f32 %v824_v57, %v15872_v56  ;;  %v13445_v59 = vpop.f32.mrb[5].mxu1 }
 0x55c   :  { %v831_v60 = vsel %vm676_vm6, %v825_v58, -inf }
 0x55d   :  { %832 = vmax.xlane.f32.xlu1 %v831_v60 }
 0x56e   :  { %1082 = vrot.lane.b32.xlu1 %v15851_v49, %s15364_s22 }
 0x572   :  { %1080 = vrot.lane.b32.xlu1 %v15851_v49, %s15365_s23 }
 0x596   :  { %829 = vmax.xlane.f32.xlu1 %v828_v63 }
 0x5a7   :  { %1004 = vrot.lane.b32.xlu1 %v15853_v51, %s15364_s22 }
 0x5ab   :  { %1002 = vrot.lane.b32.xlu1 %v15853_v51, %s15365_s23 }
 0x5af   :  { %1496 = vrot.lane.b32.xlu1 %v15853_v51, %s15366_s26 }
 0x5ea   :  { %v833_v2 = vpop.xlane.xlu1 %832 }
 0x5eb   :  { %v835_v3 = vsub.f32 %v825_v58, %v833_v2 }
 0x5ed   :  { %v838_v4 = vmul.f32 1.442695, %v835_v3 }
 0x5ee   :  { %v1083_v7 = vpop.permute.xlu1 %1082 }
 0x5ef   :  { %14544 = vpow2.f32 %v838_v4 }
 0x5f2   :  { %v1081_v8 = vpop.permute.xlu1 %1080 }
 0x5f9   :  { %v14545_v5 = vpop.eup %14544 }
 0x5fa   :  { %v843_v6 = vsel %vm676_vm6, %v14545_v5, 0.0 }
 0x5fb   :  { %844 = vadd.xlane.f32.xlu0 %v843_v6 }
 0x611   :  { %926 = vrot.lane.b32.xlu0 %v15851_v49, %s15367_s28 }
 0x623   :  { %v830_v9 = vpop.xlane.xlu1 %829 }
 0x624   :  { %v834_v10 = vsub.f32 %v748_v62, %v830_v9 }
 0x626   :  { %v836_v11 = vmul.f32 1.442695, %v834_v10 }
 0x627   :  { %v1005_v21 = vpop.permute.xlu1 %1004 }
 0x628   :  { %14546 = vpow2.f32 %v836_v11 }
 0x62b   :  { %v1003_v23 = vpop.permute.xlu1 %1002 }
 0x62f   :  { %v1497_v42 = vpop.permute.xlu1 %1496 }
 0x632   :  { %v14547_v12 = vpop.eup %14546 }
 0x633   :  { %v840_v13 = vsel %vm676_vm6, %v14547_v12, 0.0 }
 0x634   :  { %841 = vadd.xlane.f32.xlu0 %v840_v13  ;;  %v668_v13 = vld [vmem:[%s17299_s4] sm:$0xff] }
 0x64a   :  { %850 = vrot.lane.b32.xlu0 %v15853_v51, %s15367_s28 }
 0x688   :  { %v845_v14 = vpop.xlane.xlu0 %844 }
 0x689   :  { %14548 = vrcp.f32 %v845_v14 }
 0x68c   :  { %v927_v15 = vpop.permute.xlu0 %926 }
 0x68d   :  { %13452 = vmatpush3.msra.mxu1 %v927_v15 }
 0x68e   :  { %13461 = vmatprep.subr.mxu1 %v15361_v46 }
 0x693   :  { %v14549_v16 = vpop.eup %14548 }
 0x694   :  { %v849_v17 = vmul.f32 %v14549_v16, %v14545_v5 }
 0x696   :  { %13454 = vmatmul.mubr.msk.f32.vlgmr.msra.gmra.mrb[6].mxu1 %vm676_vm6, %v849_v17 }
 0x697   :  { %13462 = vmatpush3.xpose.msk.msra.mxu1 %vm676_vm6, %v1083_v7  ;;  %13463 = vmatprep.mubr.msk.f32.mxu1 %vm15362_vm5, %v15361_v46 }
 0x698   :  { %13471 = vmatprep.subr.mxu1 %v15361_v46 }
 0x69a   :  { %13464 = vmatmul.mubr.msk.f32.vlgmr.msra.gmra.mrb[8].mxu1 %vm676_vm6, %v1081_v8 }
 0x69b   :  { %13473 = vmatprep.mubr.msk.f32.mxu1 %vm15362_vm5, %v15361_v46 }
 0x6c1   :  { %v842_v18 = vpop.xlane.xlu0 %841 }
 0x6c2   :  { %14550 = vrcp.f32 %v842_v18 }
 0x6c5   :  { %v851_v19 = vpop.permute.xlu0 %850 }
 0x6c6   :  { %13447 = vmatpush3.msra.mxu0 %v851_v19 }
 0x6c7   :  { %13456 = vmatprep.subr.mxu0 %v15361_v46 }
 0x6cc   :  { %v14551_v20 = vpop.eup %14550 }
 0x6cd   :  { %v847_v22 = vmul.f32 %v14551_v20, %v14547_v12  ;;  %v669_v12 = vld [vmem:[%s17299_s4 + $0x8] sm:$0xff] }
 0x6cf   :  { %13449 = vmatmul.mubr.msk.f32.vlgmr.msra.gmra.mrb[0].mxu0 %vm676_vm6, %v847_v22 }
 0x6d0   :  { %13457 = vmatpush3.xpose.msk.msra.mxu0 %vm676_vm6, %v1005_v21  ;;  %13458 = vmatprep.mubr.msk.f32.mxu0 %vm15362_vm5, %v15361_v46 }
 0x6d1   :  { %13466 = vmatprep.subr.mxu0 %v15361_v46 }
 0x6d3   :  { %13459 = vmatmul.mubr.msk.f32.vlgmr.msra.gmra.mrb[2].mxu0 %vm676_vm6, %v1003_v23 }
 0x6d4   :  { %13468 = vmatprep.mubr.msk.f32.mxu0 %vm15362_vm5, %v15361_v46 }
 0x769   :  { %v15915_v24 = vpop.f32.mrb[6].mxu1 }
 0x76a   :  { %v13455_v25 = vpop.f32.mrb[7].mxu1 }
 0x76d   :  { %v1154_v26 = vpop.f32.mrb[8].mxu1 }
 0x76e   :  { %v1155_v27 = vadd.f32 %v1154_v26, %v15872_v56  ;;  %v13465_v28 = vpop.f32.mrb[9].mxu1 }
 0x770   :  { %v1161_v29 = vsel %vm676_vm6, %v1155_v27, -inf }
 0x771   :  { %1162 = vmax.xlane.f32.xlu0 %v1161_v29  ;;  %v670_v29 = vld [vmem:[%s17299_s4 + $0x10] sm:$0xff] }
 0x787   :  { %1256 = vrot.lane.b32.xlu0 %v15851_v49, %s15368_s29 }
 0x78b   :  { %1494 = vrot.lane.b32.xlu0 %v15853_v51, %s15369_s17 }
 0x78f   :  { %1572 = vrot.lane.b32.xlu0 %v15851_v49, %s15369_s17 }
 0x7a2   :  { %v15925_v30 = vpop.f32.mrb[0].mxu0 }
 0x7a3   :  { %v13450_v31 = vpop.f32.mrb[1].mxu0 }
 0x7a6   :  { %v1076_v32 = vpop.f32.mrb[2].mxu0 }
 0x7a7   :  { %v13460_v33 = vpop.f32.mrb[3].mxu0  ;;  %v1077_v40 = vadd.f32 %v1076_v32, %v15881_v61 }
 0x7a9   :  { %v1158_v41 = vsel %vm676_vm6, %v1077_v40, -inf }
 0x7fe   :  { %v1163_v34 = vpop.xlane.xlu0 %1162 }
 0x7ff   :  { %v1165_v35 = vsub.f32 %v1155_v27, %v1163_v34 }
 0x801   :  { %v1168_v36 = vmul.f32 1.442695, %v1165_v35 }
 0x802   :  { %v1257_v37 = vpop.permute.xlu0 %1256 }
 0x803   :  { %14552 = vpow2.f32 %v1168_v36  ;;  %13472 = vmatpush3.msra.mxu1 %v1257_v37 }
 0x804   :  { %13486 = vmatprep.subr.mxu1 %v15361_v46 }
 0x806   :  { %v1495_v47 = vpop.permute.xlu0 %1494 }
 0x80a   :  { %v1573_v50 = vpop.permute.xlu0 %1572 }
 0x80d   :  { %v14553_v38 = vpop.eup %14552 }
 0x80e   :  { %v1173_v39 = vsel %vm676_vm6, %v14553_v38, 0.0 }
 0x80f   :  { %1174 = vadd.xlane.f32.xlu1 %v1173_v39 }
 0x820   :  { %1574 = vrot.lane.b32.xlu1 %v15851_v49, %s15366_s26 }
 0x844   :  { %1159 = vmax.xlane.f32.xlu1 %v1158_v41 }
 0x89c   :  { %v1175_v43 = vpop.xlane.xlu1 %1174 }
 0x89d   :  { %14554 = vrcp.f32 %v1175_v43 }
 0x8a0   :  { %v1575_v48 = vpop.permute.xlu1 %1574 }
 0x8a7   :  { %v14555_v44 = vpop.eup %14554 }
 0x8a8   :  { %v1179_v45 = vmul.f32 %v14555_v44, %v14553_v38 }
 0x8aa   :  { %13474 = vmatmul.mubr.msk.f32.vlgmr.msra.gmra.mrb[10].mxu1 %vm676_vm6, %v1179_v45 }
 0x8ab   :  { %13487 = vmatpush3.xpose.msk.msra.mxu1 %vm676_vm6, %v1497_v42  ;;  %13488 = vmatprep.mubr.msk.f32.mxu1 %vm15362_vm5, %v15361_v46 }
 0x8ac   :  { %13491 = vmatprep.subr.mxu1 %v15361_v46 }
 0x8ae   :  { %13489 = vmatmul.mubr.msk.f32.vlgmr.msra.gmra.mrb[12].mxu1 %vm676_vm6, %v1495_v47 }
 0x8af   :  { %13492 = vmatpush3.xpose.msk.msra.mxu1 %vm676_vm6, %v1575_v48  ;;  %13493 = vmatprep.mubr.msk.f32.mxu1 %vm15362_vm5, %v15361_v46 }
 0x8b0   :  { %13501 = vmatprep.subr.mxu1 %v15361_v46 }
 0x8b2   :  { %13494 = vmatmul.mubr.msk.f32.vlgmr.msra.gmra.mrb[14].mxu1 %vm676_vm6, %v1573_v50 }
 0x8b3   :  { %13503 = vmatprep.mubr.msk.f32.mxu1 %vm15362_vm5, %v15361_v46 }
 0x8d1   :  { %v1160_v52 = vpop.xlane.xlu1 %1159 }
 0x8d2   :  { %v1164_v53 = vsub.f32 %v1077_v40, %v1160_v52 }
 0x8d4   :  { %v1166_v54 = vmul.f32 1.442695, %v1164_v53 }
 0x8d6   :  { %14556 = vpow2.f32 %v1166_v54 }
 0x8e0   :  { %v14557_v55 = vpop.eup %14556 }
 0x8e1   :  { %v1170_v57 = vsel %vm676_vm6, %v14557_v55, 0.0 }
 0x8e2   :  { %1171 = vadd.xlane.f32.xlu0 %v1170_v57 }
 0x8f8   :  { %1180 = vrot.lane.b32.xlu0 %v15853_v51, %s15368_s29 }
 0x8fc   :  { %1748 = vrot.lane.b32.xlu0 %v15851_v49, %s15370_s14 }
 0x900   :  { %1909 = vrot.lane.b32.xlu0 %v15853_v51, %s15371_s21 }
 0x904   :  { %1987 = vrot.lane.b32.xlu0 %v15851_v49, %s15371_s21 }
 0x908   :  { %1907 = vrot.lane.b32.xlu0 %v15853_v51, %s15372_s1 }
 0x96f   :  { %v1172_v58 = vpop.xlane.xlu0 %1171 }
 0x970   :  { %14558 = vrcp.f32 %v1172_v58 }
 0x973   :  { %v1181_v59 = vpop.permute.xlu0 %1180 }
 0x974   :  { %13467 = vmatpush3.msra.mxu0 %v1181_v59 }
 0x975   :  { %13476 = vmatprep.subr.mxu0 %v669_v12 }
 0x977   :  { %v1749_v60 = vpop.permute.xlu0 %1748 }
 0x978   :  { %13502 = vmatpush3.msra.mxu1 %v1749_v60 }
 0x979   :  { %13511 = vmatprep.subr.mxu1 %v15361_v46 }
 0x97a   :  { %v14559_v62 = vpop.eup %14558 }
 0x97b   :  { %v1177_v63 = vmul.f32 %v14559_v62, %v14557_v55  ;;  %v1910_v32 = vpop.permute.xlu0 %1909 }
 0x97d   :  { %13469 = vmatmul.mubr.msk.f32.vlgmr.msra.gmra.mrb[4].mxu0 %vm676_vm6, %v1177_v63  ;;  %v1328_v2 = vpop.f32.mrb[10].mxu1 }
 0x97e   :  { %v13475_v3 = vpop.f32.mrb[11].mxu1  ;;  %13477 = vmatpush3.msra.mxu0 %v669_v12 }
 0x97f   :  { %13481 = vmatprep.subr.mxu0 %v668_v13  ;;  %v1988_v35 = vpop.permute.xlu0 %1987 }
 0x981   :  { %v1568_v4 = vpop.f32.mrb[12].mxu1 }
 0x982   :  { %v1569_v5 = vadd.f32 %v1568_v4, %v15881_v61  ;;  %v13490_v6 = vpop.f32.mrb[13].mxu1 }
 0x983   :  { %v1908_v36 = vpop.permute.xlu0 %1907 }
 0x984   :  { %v1650_v7 = vsel %vm676_vm6, %v1569_v5, -inf }
 0x985   :  { %1651 = vmax.xlane.f32.xlu1 %v1650_v7  ;;  %v1646_v8 = vpop.f32.mrb[14].mxu1 }
 0x986   :  { %v1647_v9 = vadd.f32 %v1646_v8, %v15872_v56  ;;  %v13495_v10 = vpop.f32.mrb[15].mxu1 }
 0x987   :  { %v671_v10 = vld [vmem:[%s17299_s4 + $0x18] sm:$0xff]  ;;  %s17318_s4 = sld [smem:[#allocation50_spill]] }
 0x988   :  { %v1653_v11 = vsel %vm676_vm6, %v1647_v9, -inf }
 0x989   :  { %1654 = vmax.xlane.f32.xlu1 %v1653_v11 }
 0xa12   :  { %v1652_v14 = vpop.xlane.xlu1 %1651 }
 0xa13   :  { %v1656_v15 = vsub.f32 %v1569_v5, %v1652_v14  ;;  %v12816_v14 = vld [vmem:[#allocation10] ss:$0 sm:$0xff] }
 0xa15   :  { %v1658_v16 = vmul.f32 1.442695, %v1656_v15 }
 0xa16   :  { %v1655_v17 = vpop.xlane.xlu1 %1654 }
 0xa17   :  { %14560 = vpow2.f32 %v1658_v16  ;;  %v1657_v18 = vsub.f32 %v1647_v9, %v1655_v17 }
 0xa19   :  { %v1660_v19 = vmul.f32 1.442695, %v1657_v18 }
 0xa1b   :  { %14562 = vpow2.f32 %v1660_v19 }
 0xa21   :  { %v14561_v20 = vpop.eup %14560 }
 0xa22   :  { %v1662_v21 = vsel %vm676_vm6, %v14561_v20, 0.0 }
 0xa23   :  { %1663 = vadd.xlane.f32.xlu1 %v1662_v21 }
 0xa25   :  { %v14563_v22 = vpop.eup %14562 }
 0xa26   :  { %v1665_v23 = vsel %vm676_vm6, %v14563_v22, 0.0 }
 0xa27   :  { %1666 = vadd.xlane.f32.xlu1 %v1665_v23 }
 0xa38   :  { %1672 = vrot.lane.b32.xlu1 %v15853_v51, %s15370_s14 }
 0xa3c   :  { %1985 = vrot.lane.b32.xlu1 %v15851_v49, %s15372_s1 }
 0xa50   :  { %v1252_v25 = vpop.f32.mrb[4].mxu0 }
 0xa51   :  { %v13470_v26 = vpop.f32.mrb[5].mxu0  ;;  %13478 = vmatprep.mubr.msk.f32.mxu0 %vm676_vm6, %v1252_v25 }
 0xa52   :  { %13479 = vmatmul.mubr.msk.f32.vlgmr.msra.gmra.mrb[6].mxu0 %vm676_vm6, %v1328_v2 }
 0xa53   :  { %13483 = vmatprep.mubr.msk.f32.mxu0 %vm676_vm6, %v15925_v30  ;;  %13482 = vmatpush3.msra.mxu0 %v668_v13 }
 0xa54   :  { %13496 = vmatprep.subr.mxu0 %v15361_v46 }
 0xa5a   :  { %13484 = vmatmul.mubr.msk.f32.vlgmr.msra.gmra.mrb[6].mxu0 %vm676_vm6, %v15915_v24 }
 0xa5b   :  { %13498 = vmatprep.mubr.msk.f32.mxu0 %vm15362_vm5, %v15361_v46 }
 0xab0   :  { %v1664_v27 = vpop.xlane.xlu1 %1663 }
 0xab1   :  { %14564 = vrcp.f32 %v1664_v27 }
 0xab4   :  { %v1667_v28 = vpop.xlane.xlu1 %1666 }
 0xab5   :  { %14566 = vrcp.f32 %v1667_v28 }
 0xab8   :  { %v1673_v31 = vpop.permute.xlu1 %1672 }
 0xab9   :  { %13497 = vmatpush3.msra.mxu0 %v1673_v31 }
 0xaba   :  { %13506 = vmatprep.subr.mxu0 %v670_v29 }
 0xabb   :  { %v14565_v33 = vpop.eup %14564 }
 0xabc   :  { %v1669_v30 = vmul.f32 %v14565_v33, %v14561_v20  ;;  %v1986_v41 = vpop.permute.xlu1 %1985  ;;  %v2388_v33 = vld [vmem:[%s17300_s2] sm:$0xff] }
 0xabe   :  { %13499 = vmatmul.mubr.msk.f32.vlgmr.msra.gmra.mrb[8].mxu0 %vm676_vm6, %v1669_v30  ;;  %v2389_v30 = vld [vmem:[%s17300_s2 + $0x8] sm:$0xff] }
 0xabf   :  { %v14567_v34 = vpop.eup %14566  ;;  %13507 = vmatpush3.msra.mxu0 %v670_v29 }
 0xac0   :  { %v1671_v24 = vmul.f32 %v14567_v34, %v14563_v22  ;;  %13516 = vmatprep.subr.mxu0 %v15361_v46  ;;  %v2390_v34 = vld [vmem:[%s17300_s2 + $0x10] sm:$0xff] }
 0xac2   :  { %13504 = vmatmul.mubr.msk.f32.vlgmr.msra.gmra.mrb[16].mxu1 %vm676_vm6, %v1671_v24  ;;  %v2391_v24 = vld [vmem:[%s17300_s2 + $0x18] sm:$0xff]  ;;  %s17319_s2 = sld [smem:[#allocation53_spill]] }
 0xac3   :  { %13512 = vmatpush3.xpose.msk.msra.mxu1 %vm676_vm6, %v1910_v32  ;;  %13513 = vmatprep.mubr.msk.f32.mxu1 %vm15362_vm5, %v15361_v46 }
 0xac4   :  { %13521 = vmatprep.subr.mxu1 %v15361_v46 }
 0xac6   :  { %13514 = vmatmul.mubr.msk.f32.vlgmr.msra.gmra.mrb[18].mxu1 %vm676_vm6, %v1908_v36  ;;  %v14245_v36 = vpack.c.bf16 %v2391_v24, %v2390_v34 }
 0xac7   :  { %13523 = vmatprep.mubr.msk.f32.mxu1 %vm15362_vm5, %v15361_v46 }
 0xb91   :  { %v1744_v37 = vpop.f32.mrb[8].mxu0 }
 0xb92   :  { %v13500_v38 = vpop.f32.mrb[9].mxu0  ;;  %13508 = vmatprep.mubr.msk.f32.mxu0 %vm676_vm6, %v1744_v37  ;;  %v2482_v37 = vld [vmem:[%s17301_s8] sm:$0xff] }
 0xb93   :  { %v2483_v38 = vld [vmem:[%s17301_s8 + $0x8] sm:$0xff] }
 0xb95   :  { %v1820_v39 = vpop.f32.mrb[16].mxu1 }
 0xb96   :  { %v13505_v40 = vpop.f32.mrb[17].mxu1  ;;  %13509 = vmatmul.mubr.msk.f32.vlgmr.msra.gmra.mrb[6].mxu0 %vm676_vm6, %v1820_v39  ;;  %v2484_v39 = vld [vmem:[%s17301_s8 + $0x10] sm:$0xff] }
 0xb97   :  { %13517 = vmatpush3.xpose.msk.msra.mxu0 %vm676_vm6, %v1988_v35  ;;  %13518 = vmatprep.mubr.msk.f32.mxu0 %vm15362_vm5, %v15361_v46  ;;  %v14241_v35 = vpack.c.bf16 %v2389_v30, %v2388_v33  ;;  %v14249_v40 = vpack.c.bf16 %v2483_v38, %v2482_v37 }
 0xb98   :  { %13526 = vmatprep.subr.mxu0 %v15361_v46 }
 0xb99   :  { %v1981_v42 = vpop.f32.mrb[18].mxu1 }
 0xb9a   :  { %v1982_v43 = vadd.f32 %v1981_v42, %v15881_v61  ;;  %v13515_v44 = vpop.f32.mrb[19].mxu1  ;;  %13519 = vmatmul.mubr.msk.f32.vlgmr.msra.gmra.mrb[10].mxu0 %vm676_vm6, %v1986_v41  ;;  %v2485_v41 = vld [vmem:[%s17301_s8 + $0x18] sm:$0xff] }
 0xb9b   :  { %13528 = vmatprep.mubr.msk.f32.mxu0 %vm15362_vm5, %v15361_v46  ;;  %v14253_v42 = vpack.c.bf16 %v2485_v41, %v2484_v39  ;;  %v2487_v44 = vld [vmem:[%s17301_s8 + $0x28] sm:$0xff] }
 0xb9c   :  { %v2063_v45 = vsel %vm676_vm6, %v1982_v43, -inf  ;;  %v2640_v41 = vld [vmem:[%s15735_s30 + $0x8] sm:$0xff] }
 0xb9d   :  { %2064 = vmax.xlane.f32.xlu0 %v2063_v45 }
 0xc2a   :  { %v2065_v47 = vpop.xlane.xlu0 %2064 }
 0xc2b   :  { %v2069_v48 = vsub.f32 %v1982_v43, %v2065_v47  ;;  %v2486_v43 = vld [vmem:[%s17301_s8 + $0x20] sm:$0xff] }
 0xc2c   :  { %v14257_v45 = vpack.c.bf16 %v2487_v44, %v2486_v43  ;;  %v2642_v44 = vld [vmem:[%s15735_s30 + $0x18] sm:$0xff] }
 0xc2d   :  { %v2071_v50 = vmul.f32 1.442695, %v2069_v48 }
 0xc2f   :  { %14568 = vpow2.f32 %v2071_v50 }
 0xc39   :  { %v14569_v52 = vpop.eup %14568 }
 0xc3a   :  { %v2075_v53 = vsel %vm676_vm6, %v14569_v52, 0.0 }
 0xc3b   :  { %2076 = vadd.xlane.f32.xlu0 %v2075_v53 }
 0xc6d   :  { %v2059_v54 = vpop.f32.mrb[10].mxu0 }
 0xc6e   :  { %v2060_v55 = vadd.f32 %v2059_v54, %v15872_v56  ;;  %v13520_v57 = vpop.f32.mrb[11].mxu0 }
 0xc70   :  { %v2066_v58 = vsel %vm676_vm6, %v2060_v55, -inf }
 0xc71   :  { %2067 = vmax.xlane.f32.xlu1 %v2066_v58 }
 0xc82   :  { %2161 = vrot.lane.b32.xlu1 %v15851_v49, %s15373_s9 }
 0xcc8   :  { %v2077_v4 = vpop.xlane.xlu0 %2076 }
 0xcfe   :  { %v2068_v59 = vpop.xlane.xlu1 %2067 }
 0xcff   :  { %v2070_v60 = vsub.f32 %v2060_v55, %v2068_v59 }
 0xd01   :  { %v2073_v62 = vmul.f32 1.442695, %v2070_v60 }
 0xd02   :  { %v2162_v63 = vpop.permute.xlu1 %2161 }
 0xd03   :  { %14570 = vpow2.f32 %v2073_v62  ;;  %13527 = vmatpush3.msra.mxu0 %v2162_v63 }
 0xd04   :  { %14572 = vrcp.f32 %v2077_v4  ;;  %13531 = vmatprep.subr.mxu0 %v671_v10 }
 0xd0d   :  { %v14571_v2 = vpop.eup %14570 }
 0xd0e   :  { %v2078_v3 = vsel %vm676_vm6, %v14571_v2, 0.0  ;;  %v14573_v6 = vpop.eup %14572 }
 0xd0f   :  { %2079 = vadd.xlane.f32.xlu0 %v2078_v3  ;;  %v2082_v7 = vmul.f32 %v14573_v6, %v14569_v52 }
 0xd25   :  { %2085 = vrot.lane.b32.xlu0 %v15853_v51, %s15373_s9 }
 0xd9c   :  { %v2080_v5 = vpop.xlane.xlu0 %2079 }
 0xd9d   :  { %14574 = vrcp.f32 %v2080_v5  ;;  %v12817_v5 = vld [vmem:[#allocation16] ss:$0 sm:$0xff] }
 0xda0   :  { %v2086_v49 = vpop.permute.xlu0 %2085 }
 0xda1   :  { %13522 = vmatpush3.msra.mxu1 %v2086_v49 }
 0xda2   :  { %13524 = vmatmul.mubr.msk.f32.vlgmr.msra.gmra.mrb[20].mxu1 %vm676_vm6, %v2082_v7  ;;  %14242 = vmatprep.subr.bf16.mxu1 %v14241_v35 }
 0xda3   :  { %14244 = vmatpush3.bf16.msra.mxu1 %v14241_v35 }
 0xda4   :  { %14246 = vmatprep.subr.bf16.mxu1 %v14245_v36 }
 0xda7   :  { %v14575_v8 = vpop.eup %14574  ;;  %14248 = vmatpush3.bf16.msra.mxu1 %v14245_v36 }
 0xda8   :  { %v2084_v9 = vmul.f32 %v14575_v8, %v14571_v2 }
 0xdaa   :  { %13529 = vmatmul.mubr.msk.f32.vlgmr.msra.gmra.mrb[12].mxu0 %vm676_vm6, %v2084_v9  ;;  %v12818_v9 = vld [vmem:[#allocation14] ss:$0 sm:$0xff] }
 0xdab   :  { %13532 = vmatpush3.msra.mxu0 %v671_v10 }
 0xdac   :  { %14250 = vmatprep.subr.bf16.mxu0 %v14249_v40 }
 0xe75   :  { %v2157_v11 = vpop.f32.mrb[20].mxu1 }
 0xe76   :  { %v13525_v12 = vpop.f32.mrb[21].mxu1  ;;  %13533 = vmatprep.mubr.msk.f32.mxu0 %vm676_vm6, %v2157_v11 }
 0xe7d   :  { %v2233_v51 = vpop.f32.mrb[12].mxu0 }
 0xe7e   :  { %v13530_v13 = vpop.f32.mrb[13].mxu0  ;;  %13534 = vmatmul.mubr.msk.f32.vlgmr.msra.gmra.mrb[6].mxu0 %vm676_vm6, %v2233_v51 }
 0xe7f   :  { %14252 = vmatpush3.bf16.msra.mxu0 %v14249_v40  ;;  %v2488_v13 = vld [vmem:[%s17301_s8 + $0x30] sm:$0xff]  ;;  %v2639_v40 = vld [vmem:[%s15735_s30] sm:$0xff] }
 0xe80   :  { %14254 = vmatprep.subr.bf16.mxu0 %v14253_v42  ;;  %v14265_v43 = vpack.c.bf16 %v2640_v41, %v2639_v40 }
 0xe82   :  { %14266 = vmatprep.subr.bf16.mxu1 %v14265_v43 }
 0xe83   :  { %14256 = vmatpush3.bf16.msra.mxu0 %v14253_v42  ;;  %v2641_v42 = vld [vmem:[%s15735_s30 + $0x10] sm:$0xff]  ;;  %s17302_s30 = sld [smem:[#allocation93_spill]] }
 0xe84   :  { %14258 = vmatprep.subr.bf16.mxu0 %v14257_v45 }
 0xe87   :  { %14260 = vmatpush3.bf16.msra.mxu0 %v14257_v45  ;;  %v14269_v45 = vpack.c.bf16 %v2642_v44, %v2641_v42 }
 0xf51   :  { %v13535_v15 = vpop.f32.mrb[6].mxu0 }
 0xf52   :  { %v2327_v16 = vadd.f32 %v13535_v15, %v12816_v14  ;;  %v2309_v17 = vpop.f32.mrb[7].mxu0 }
 0xf53   :  { %v2326_v18 = vadd.f32 %v12816_v14, %v2309_v17  ;;  %v2489_v14 = vld [vmem:[%s17301_s8 + $0x38] sm:$0xff]  ;;  %s17320_s8 = sld [smem:[#allocation47_spill]] }
 0xf54   :  { %v16016_v19 = vadd.f32 %v2327_v16, %v15828_v1  ;;  %v14261_v15 = vpack.c.bf16 %v2489_v14, %v2488_v13  ;;  %v12819_v16 = vld [vmem:[#allocation7] ss:$0 sm:$0xff]  ;;  %v12827_v13 = vld [vmem:[%s17302_s30] ss:$0 sm:$0xff]  ;;  %s17321_s30 = sld [smem:[#allocation64_spill]] }
 0xf55   :  { %v16019_v20 = vadd.f32 %v2326_v18, %v15825_v0 }
 0xf56   :  { %v2335_v21 = vsel %vm517_vm0, %v16016_v19, 0.0  ;;  %14262 = vmatprep.subr.bf16.mxu0 %v14261_v15 }
 0xf57   :  { %2336 = vadd.xlane.f32.xlu0 %v2335_v21  ;;  %v2332_v22 = vsel %vm517_vm0, %v16019_v20, 0.0  ;;  %14264 = vmatpush3.bf16.msra.mxu0 %v14261_v15 }
 0xf58   :  { %2333 = vadd.xlane.f32.xlu1 %v2332_v22  ;;  %13587 = vmatprep.subr.mxu0 %v15361_v46 }
 0xfe4   :  { %v2337_v23 = vpop.xlane.xlu0 %2336 }
 0xfe5   :  { %v2339_v25 = vmul.f32 0.03125, %v2337_v23  ;;  %v2334_v26 = vpop.xlane.xlu1 %2333 }
 0xfe6   :  { %v2338_v1 = vmul.f32 0.03125, %v2334_v26  ;;  %v12822_v26 = vld [vmem:[#allocation8] ss:$0 sm:$0xff] }
 0xfe7   :  { %v2341_v27 = vsub.f32 %v16016_v19, %v2339_v25 }
 0xfe8   :  { %v2340_v0 = vsub.f32 %v16019_v20, %v2338_v1 }
 0xfe9   :  { %v2343_v28 = vmul.f32 %v2341_v27, %v2341_v27  ;;  %v2373_v6 = vmul.f32 %v12817_v5, %v2341_v27 }
 0xfea   :  { %v2342_v29 = vmul.f32 %v2340_v0, %v2340_v0  ;;  %v2372_v7 = vmul.f32 %v12817_v5, %v2340_v0  ;;  %v12825_v5 = vld [vmem:[#allocation23] ss:$0 sm:$0xff] }
 0xfeb   :  { %v2347_v31 = vsel %vm517_vm0, %v2343_v28, 0.0 }
 0xfec   :  { %2348 = vadd.xlane.f32.xlu1 %v2347_v31  ;;  %v2344_v32 = vsel %vm517_vm0, %v2342_v29, 0.0 }
 0xfed   :  { %2345 = vadd.xlane.f32.xlu0 %v2344_v32 }
0x1079   :  { %v2349_v47 = vpop.xlane.xlu1 %2348 }
0x107a   :  { %v2351_v48 = vmul.f32 0.032258064, %v2349_v47  ;;  %v2346_v50 = vpop.xlane.xlu0 %2345 }
0x107b   :  { %v2350_v52 = vmul.f32 0.032258064, %v2346_v50 }
0x107c   :  { %14576 = vrsqrt.f32 %v2351_v48  ;;  %vm2361_vm7 = vcmp.eq.f32.partialorder %v2351_v48, inf  ;;  %v2364_v57 = vand.u32 2147483648, %v2351_v48  ;;  %vm2363_vm8 = vcmp.eq.f32.partialorder %v2351_v48, 0.0 }
0x107d   :  { %14578 = vrsqrt.f32 %v2350_v52  ;;  %vm2354_vm9 = vcmp.eq.f32.partialorder %v2350_v52, inf  ;;  %v2357_v60 = vand.u32 2147483648, %v2350_v52  ;;  %vm2356_vm10 = vcmp.eq.f32.partialorder %v2350_v52, 0.0 }
0x1086   :  { %v14577_v53 = vpop.eup %14576 }
0x1087   :  { %v14579_v54 = vpop.eup %14578  ;;  %v2360_v55 = vmul.f32 %v14577_v53, %v2351_v48 }
0x1088   :  { %v2353_v58 = vmul.f32 %v14579_v54, %v2350_v52 }
0x1089   :  { %v2362_v59 = vsel %vm2361_vm7, %v2351_v48, %v2360_v55 }
0x108a   :  { %v2365_v62 = vsel %vm2363_vm8, %v2364_v57, %v2362_v59  ;;  %v2355_v63 = vsel %vm2354_vm9, %v2350_v52, %v2353_v58 }
0x108b   :  { %v2375_v2 = vadd.f32 1e-06, %v2365_v62  ;;  %v2358_v3 = vsel %vm2356_vm10, %v2357_v60, %v2355_v63 }
0x108c   :  { %v2374_v4 = vadd.f32 1e-06, %v2358_v3 }
0x108d   :  { %14580 = vrcp.f32 %v2375_v2 }
0x108e   :  { %14582 = vrcp.f32 %v2374_v4 }
0x1097   :  { %v14581_v49 = vpop.eup %14580 }
0x1098   :  { %v14583_v8 = vpop.eup %14582  ;;  %v2379_v10 = vmul.f32 %v14581_v49, %v2373_v6 }
0x1099   :  { %v2377_v11 = vmul.f32 %v14583_v8, %v2372_v7 }
0x109a   :  { %v2387_v51 = vadd.f32 %v12818_v9, %v2379_v10 }
0x109b   :  { %v2386_v12 = vadd.f32 %v12818_v9, %v2377_v11  ;;  %v12826_v9 = vld [vmem:[#allocation22] ss:$0 sm:$0xff] }
0x109d   :  { %13544 = vmatprep.mubr.msk.f32.mxu1 %vm517_vm0, %v2386_v12 }
0x109e   :  { %13545 = vmatmul.mubr.msk.f32.vlgmr.msra.gmra.mrb[22].mxu1 %vm517_vm0, %v2387_v51 }
0x109f   :  { %14268 = vmatpush3.bf16.msra.mxu1 %v14265_v43 }
0x10a0   :  { %14270 = vmatprep.subr.bf16.mxu1 %v14269_v45 }
0x10a3   :  { %14272 = vmatpush3.bf16.msra.mxu1 %v14269_v45 }
0x10a4   :  { %13577 = vmatprep.subr.mxu1 %v15361_v46 }
0x1171   :  { %v13546_v17 = vpop.f32.mrb[22].mxu1 }
0x1172   :  { %v2477_v18 = vadd.f32 %v13546_v17, %v12819_v16  ;;  %v2471_v21 = vpop.f32.mrb[23].mxu1 }
0x1173   :  { %v2472_v22 = vadd.f32 %v12819_v16, %v2471_v21 }
0x1174   :  { %v2481_v25 = vmax.f32 %v2477_v18, 0.0 }
0x1175   :  { %v2480_v23 = vmax.f32 %v2472_v22, 0.0 }
0x1177   :  { %13563 = vmatprep.mubr.msk.f32.mxu0 %vm2497_vm11, %v2480_v23 }
0x1178   :  { %13564 = vmatmul.mubr.msk.f32.vlgmr.msra.gmra.mrb[14].mxu0 %vm2497_vm11, %v2481_v25 }
0x1179   :  { %13589 = vmatprep.mubr.msk.f32.mxu0 %vm15362_vm5, %v15361_v46 }
0x124b   :  { %v13565_v1 = vpop.f32.mrb[14].mxu0 }
0x124c   :  { %v2576_v27 = vadd.f32 %v13565_v1, %v12822_v26  ;;  %v2570_v0 = vpop.f32.mrb[15].mxu0 }
0x124d   :  { %v2571_v28 = vadd.f32 %v12822_v26, %v2570_v0 }
0x124e   :  { %v16049_v29 = vadd.f32 %v2576_v27, %v16016_v19 }
0x124f   :  { %v16052_v31 = vadd.f32 %v2571_v28, %v16019_v20 }
0x1250   :  { %v2586_v32 = vsel %vm517_vm0, %v16049_v29, 0.0 }
0x1251   :  { %2587 = vadd.xlane.f32.xlu1 %v2586_v32  ;;  %v2583_v33 = vsel %vm517_vm0, %v16052_v31, 0.0 }
0x1252   :  { %2584 = vadd.xlane.f32.xlu0 %v2583_v33 }
0x12de   :  { %v2588_v30 = vpop.xlane.xlu1 %2587 }
0x12df   :  { %v2590_v34 = vmul.f32 0.03125, %v2588_v30  ;;  %v2585_v35 = vpop.xlane.xlu0 %2584 }
0x12e0   :  { %v2589_v19 = vmul.f32 0.03125, %v2585_v35 }
0x12e1   :  { %v2592_v24 = vsub.f32 %v16049_v29, %v2590_v34 }
0x12e2   :  { %v2591_v20 = vsub.f32 %v16052_v31, %v2589_v19 }
0x12e3   :  { %v2594_v36 = vmul.f32 %v2592_v24, %v2592_v24  ;;  %v2624_v6 = vmul.f32 %v12825_v5, %v2592_v24 }
0x12e4   :  { %v2593_v37 = vmul.f32 %v2591_v20, %v2591_v20  ;;  %v2623_v7 = vmul.f32 %v12825_v5, %v2591_v20 }
0x12e5   :  { %v2598_v38 = vsel %vm517_vm0, %v2594_v36, 0.0 }
0x12e6   :  { %2599 = vadd.xlane.f32.xlu1 %v2598_v38  ;;  %v2595_v39 = vsel %vm517_vm0, %v2593_v37, 0.0 }
0x12e7   :  { %2596 = vadd.xlane.f32.xlu0 %v2595_v39 }
0x1373   :  { %v2600_v47 = vpop.xlane.xlu1 %2599 }
0x1374   :  { %v2602_v48 = vmul.f32 0.032258064, %v2600_v47  ;;  %v2597_v50 = vpop.xlane.xlu0 %2596 }
0x1375   :  { %v2601_v52 = vmul.f32 0.032258064, %v2597_v50 }
0x1376   :  { %14584 = vrsqrt.f32 %v2602_v48  ;;  %vm2612_vm12 = vcmp.eq.f32.partialorder %v2602_v48, inf  ;;  %v2615_v57 = vand.u32 2147483648, %v2602_v48  ;;  %vm2614_vm13 = vcmp.eq.f32.partialorder %v2602_v48, 0.0 }
0x1377   :  { %14586 = vrsqrt.f32 %v2601_v52  ;;  %vm2605_vm14 = vcmp.eq.f32.partialorder %v2601_v52, inf  ;;  %v2608_v60 = vand.u32 2147483648, %v2601_v52  ;;  %vm2607_vm15 = vcmp.eq.f32.partialorder %v2601_v52, 0.0 }
0x1380   :  { %v14585_v53 = vpop.eup %14584 }
0x1381   :  { %v14587_v54 = vpop.eup %14586  ;;  %v2611_v55 = vmul.f32 %v14585_v53, %v2602_v48 }
0x1382   :  { %v2604_v58 = vmul.f32 %v14587_v54, %v2601_v52  ;;  %v16133_v54 = vld [vmem:[%s17298_s27 + $0x8] sm:$0xff] }
0x1383   :  { %v2613_v59 = vsel %vm2612_vm12, %v2602_v48, %v2611_v55 }
0x1384   :  { %v2616_v62 = vsel %vm2614_vm13, %v2615_v57, %v2613_v59  ;;  %v2606_v63 = vsel %vm2605_vm14, %v2601_v52, %v2604_v58 }
0x1385   :  { %v2626_v2 = vadd.f32 1e-06, %v2616_v62  ;;  %v2609_v3 = vsel %vm2607_vm15, %v2608_v60, %v2606_v63 }
0x1386   :  { %v2625_v4 = vadd.f32 1e-06, %v2609_v3 }
0x1387   :  { %14588 = vrcp.f32 %v2626_v2 }
0x1388   :  { %14590 = vrcp.f32 %v2625_v4 }
0x1391   :  { %v14589_v49 = vpop.eup %14588 }
0x1392   :  { %v14591_v8 = vpop.eup %14590  ;;  %v2630_v10 = vmul.f32 %v14589_v49, %v2624_v6 }
0x1393   :  { %v2628_v11 = vmul.f32 %v14591_v8, %v2623_v7  ;;  %v16150_v7 = vld [vmem:[%s17298_s27] sm:$0xff]  ;;  %s17317_s27 = sld [smem:[#allocation57_spill]] }
0x1394   :  { %v2638_v51 = vadd.f32 %v12826_v9, %v2630_v10 }
0x1395   :  { %v2637_v12 = vadd.f32 %v12826_v9, %v2628_v11 }
0x1397   :  { %13574 = vmatprep.mubr.msk.f32.mxu1 %vm517_vm0, %v2637_v12 }
0x1398   :  { %13575 = vmatmul.mubr.msk.f32.vlgmr.msra.gmra.mrb[24].mxu1 %vm517_vm0, %v2638_v51 }
0x1399   :  { %13579 = vmatprep.mubr.msk.f32.mxu1 %vm15362_vm5, %v15361_v46 }
0x146b   :  { %v13576_v14 = vpop.f32.mrb[24].mxu1 }
0x146c   :  { %v16072_v15 = vadd.f32 %v13576_v14, %v12827_v13  ;;  %v2722_v16 = vpop.f32.mrb[25].mxu1 }
0x146d   :  { %v16074_v17 = vadd.f32 %v12827_v13, %v2722_v16 }
0x146e   :  { %2814 = vrot.lane.b32.xlu1 %v16072_v15, %s15363_s18 }
0x146f   :  { %2737 = vrot.lane.b32.xlu0 %v16074_v17, %s15363_s18 }
0x14e0   :  { %v2815_v21 = vpop.permute.xlu1 %2814 }
0x14e1   :  { %v2738_v18 = vpop.permute.xlu0 %2737 }
0x14e2   :  { %13578 = vmatpush3.xpose.msk.msra.mxu1 %vm676_vm6, %v2738_v18 }
0x14e3   :  { %13582 = vmatprep.subr.mxu1 %v15361_v46 }
0x14e5   :  { %13580 = vmatmul.mubr.msk.f32.vlgmr.msra.gmra.mrb[26].mxu1 %vm676_vm6, %v16074_v17 }
0x14e6   :  { %13583 = vmatpush3.xpose.msk.msra.mxu1 %vm676_vm6, %v2815_v21  ;;  %13584 = vmatprep.mubr.msk.f32.mxu1 %vm15362_vm5, %v15361_v46 }
0x14e7   :  { %13592 = vmatprep.subr.mxu1 %v15361_v46 }
0x14e9   :  { %13585 = vmatmul.mubr.msk.f32.vlgmr.msra.gmra.mrb[28].mxu1 %vm676_vm6, %v16072_v15 }
0x14ea   :  { %13594 = vmatprep.mubr.msk.f32.mxu1 %vm15362_vm5, %v15361_v46 }
0x15b8   :  { %v2809_v22 = vpop.f32.mrb[26].mxu1 }
0x15b9   :  { %v13581_v23 = vpop.f32.mrb[27].mxu1  ;;  %v2810_v0 = vadd.f32 %v2809_v22, %v15881_v61 }
0x15bb   :  { %v2890_v28 = vsel %vm676_vm6, %v2810_v0, -inf }
0x15bc   :  { %v2886_v25 = vpop.f32.mrb[28].mxu1 }
0x15bd   :  { %v2887_v26 = vadd.f32 %v2886_v25, %v15872_v56  ;;  %v13586_v1 = vpop.f32.mrb[29].mxu1 }
0x15bf   :  { %v2893_v27 = vsel %vm676_vm6, %v2887_v26, -inf }
0x15c0   :  { %2894 = vmax.xlane.f32.xlu1 %v2893_v27 }
0x15d1   :  { %3144 = vrot.lane.b32.xlu1 %v16072_v15, %s15364_s22 }
0x15d5   :  { %3142 = vrot.lane.b32.xlu1 %v16072_v15, %s15365_s23 }
0x15f9   :  { %2891 = vmax.xlane.f32.xlu1 %v2890_v28 }
0x160a   :  { %3066 = vrot.lane.b32.xlu1 %v16074_v17, %s15364_s22 }
0x160e   :  { %3064 = vrot.lane.b32.xlu1 %v16074_v17, %s15365_s23 }
0x1612   :  { %3558 = vrot.lane.b32.xlu1 %v16074_v17, %s15366_s26 }
0x164d   :  { %v2895_v56 = vpop.xlane.xlu1 %2894 }
0x164e   :  { %v2897_v32 = vsub.f32 %v2887_v26, %v2895_v56 }
0x1650   :  { %v2900_v33 = vmul.f32 1.442695, %v2897_v32 }
0x1651   :  { %v3145_v61 = vpop.permute.xlu1 %3144 }
0x1652   :  { %14592 = vpow2.f32 %v2900_v33 }
0x1655   :  { %v3143_v35 = vpop.permute.xlu1 %3142 }
0x165c   :  { %v14593_v30 = vpop.eup %14592 }
0x165d   :  { %v2905_v34 = vsel %vm676_vm6, %v14593_v30, 0.0 }
0x165e   :  { %2906 = vadd.xlane.f32.xlu0 %v2905_v34 }
0x1674   :  { %2988 = vrot.lane.b32.xlu0 %v16072_v15, %s15367_s28 }
0x1686   :  { %v2892_v19 = vpop.xlane.xlu1 %2891 }
0x1687   :  { %v2896_v24 = vsub.f32 %v2810_v0, %v2892_v19 }
0x1689   :  { %v2898_v20 = vmul.f32 1.442695, %v2896_v24 }
0x168a   :  { %v3067_v45 = vpop.permute.xlu1 %3066 }
0x168b   :  { %14594 = vpow2.f32 %v2898_v20 }
0x168e   :  { %v3065_v48 = vpop.permute.xlu1 %3064 }
0x1692   :  { %v3559_v10 = vpop.permute.xlu1 %3558 }
0x1695   :  { %v14595_v36 = vpop.eup %14594 }
0x1696   :  { %v2902_v37 = vsel %vm676_vm6, %v14595_v36, 0.0 }
0x1697   :  { %2903 = vadd.xlane.f32.xlu0 %v2902_v37  ;;  %v2731_v37 = vld [vmem:[%s17303_s7] sm:$0xff] }
0x16ad   :  { %2912 = vrot.lane.b32.xlu0 %v16074_v17, %s15367_s28 }
0x16eb   :  { %v2907_v38 = vpop.xlane.xlu0 %2906 }
0x16ec   :  { %14596 = vrcp.f32 %v2907_v38 }
0x16ef   :  { %v2989_v39 = vpop.permute.xlu0 %2988 }
0x16f0   :  { %13593 = vmatpush3.msra.mxu1 %v2989_v39 }
0x16f1   :  { %13602 = vmatprep.subr.mxu1 %v15361_v46 }
0x16f6   :  { %v14597_v40 = vpop.eup %14596 }
0x16f7   :  { %v2911_v41 = vmul.f32 %v14597_v40, %v14593_v30 }
0x16f9   :  { %13595 = vmatmul.mubr.msk.f32.vlgmr.msra.gmra.mrb[30].mxu1 %vm676_vm6, %v2911_v41 }
0x16fa   :  { %13603 = vmatpush3.xpose.msk.msra.mxu1 %vm676_vm6, %v3145_v61  ;;  %13604 = vmatprep.mubr.msk.f32.mxu1 %vm15362_vm5, %v15361_v46 }
0x16fb   :  { %13612 = vmatprep.subr.mxu1 %v15361_v46 }
0x16fd   :  { %13605 = vmatmul.mubr.msk.f32.vlgmr.msra.gmra.mrb[32].mxu1 %vm676_vm6, %v3143_v35 }
0x16fe   :  { %13614 = vmatprep.mubr.msk.f32.mxu1 %vm15362_vm5, %v15361_v46 }
0x1724   :  { %v2904_v42 = vpop.xlane.xlu0 %2903 }
0x1725   :  { %14598 = vrcp.f32 %v2904_v42 }
0x1728   :  { %v2913_v43 = vpop.permute.xlu0 %2912 }
0x1729   :  { %13588 = vmatpush3.msra.mxu0 %v2913_v43 }
0x172a   :  { %13597 = vmatprep.subr.mxu0 %v15361_v46 }
0x172f   :  { %v14599_v44 = vpop.eup %14598 }
0x1730   :  { %v2909_v47 = vmul.f32 %v14599_v44, %v14595_v36  ;;  %v2732_v36 = vld [vmem:[%s17303_s7 + $0x8] sm:$0xff] }
0x1732   :  { %13590 = vmatmul.mubr.msk.f32.vlgmr.msra.gmra.mrb[16].mxu0 %vm676_vm6, %v2909_v47 }
0x1733   :  { %13598 = vmatpush3.xpose.msk.msra.mxu0 %vm676_vm6, %v3067_v45  ;;  %13599 = vmatprep.mubr.msk.f32.mxu0 %vm15362_vm5, %v15361_v46 }
0x1734   :  { %13607 = vmatprep.subr.mxu0 %v15361_v46 }
0x1736   :  { %13600 = vmatmul.mubr.msk.f32.vlgmr.msra.gmra.mrb[18].mxu0 %vm676_vm6, %v3065_v48 }
0x1737   :  { %13609 = vmatprep.mubr.msk.f32.mxu0 %vm15362_vm5, %v15361_v46 }
0x17cc   :  { %v16130_v50 = vpop.f32.mrb[30].mxu1 }
0x17cd   :  { %v13596_v52 = vpop.f32.mrb[31].mxu1 }
0x17d0   :  { %v3216_v53 = vpop.f32.mrb[32].mxu1 }
0x17d1   :  { %v3217_v55 = vadd.f32 %v16133_v54, %v3216_v53  ;;  %v13606_v57 = vpop.f32.mrb[33].mxu1 }
0x17d3   :  { %v3223_v58 = vsel %vm676_vm6, %v3217_v55, -inf }
0x17d4   :  { %3224 = vmax.xlane.f32.xlu0 %v3223_v58  ;;  %v2733_v58 = vld [vmem:[%s17303_s7 + $0x10] sm:$0xff] }
0x17ea   :  { %3318 = vrot.lane.b32.xlu0 %v16072_v15, %s15368_s29 }
0x17ee   :  { %3556 = vrot.lane.b32.xlu0 %v16074_v17, %s15369_s17 }
0x17f2   :  { %3634 = vrot.lane.b32.xlu0 %v16072_v15, %s15369_s17 }
0x1805   :  { %v16143_v59 = vpop.f32.mrb[16].mxu0 }
0x1806   :  { %v13591_v60 = vpop.f32.mrb[17].mxu0 }
0x1809   :  { %v3138_v62 = vpop.f32.mrb[18].mxu0 }
0x180a   :  { %v13601_v63 = vpop.f32.mrb[19].mxu0  ;;  %v3139_v8 = vadd.f32 %v16150_v7, %v3138_v62 }
0x180c   :  { %v3220_v9 = vsel %vm676_vm6, %v3139_v8, -inf }
0x1861   :  { %v3225_v2 = vpop.xlane.xlu0 %3224 }
0x1862   :  { %v3227_v3 = vsub.f32 %v3217_v55, %v3225_v2 }
0x1864   :  { %v3230_v4 = vmul.f32 1.442695, %v3227_v3 }
0x1865   :  { %v3319_v5 = vpop.permute.xlu0 %3318 }
0x1866   :  { %14600 = vpow2.f32 %v3230_v4  ;;  %13613 = vmatpush3.msra.mxu1 %v3319_v5 }
0x1867   :  { %13627 = vmatprep.subr.mxu1 %v15361_v46 }
0x1869   :  { %v3557_v13 = vpop.permute.xlu0 %3556 }
0x186d   :  { %v3635_v16 = vpop.permute.xlu0 %3634 }
0x1870   :  { %v14601_v6 = vpop.eup %14600 }
0x1871   :  { %v3235_v49 = vsel %vm676_vm6, %v14601_v6, 0.0 }
0x1872   :  { %3236 = vadd.xlane.f32.xlu1 %v3235_v49 }
0x1883   :  { %3636 = vrot.lane.b32.xlu1 %v16072_v15, %s15366_s26 }
0x18a7   :  { %3221 = vmax.xlane.f32.xlu1 %v3220_v9 }
0x18ff   :  { %v3237_v11 = vpop.xlane.xlu1 %3236 }
0x1900   :  { %14602 = vrcp.f32 %v3237_v11 }
0x1903   :  { %v3637_v14 = vpop.permute.xlu1 %3636 }
0x190a   :  { %v14603_v12 = vpop.eup %14602 }
0x190b   :  { %v3241_v51 = vmul.f32 %v14603_v12, %v14601_v6 }
0x190d   :  { %13615 = vmatmul.mubr.msk.f32.vlgmr.msra.gmra.mrb[34].mxu1 %vm676_vm6, %v3241_v51 }
0x190e   :  { %13628 = vmatpush3.xpose.msk.msra.mxu1 %vm676_vm6, %v3559_v10  ;;  %13629 = vmatprep.mubr.msk.f32.mxu1 %vm15362_vm5, %v15361_v46 }
0x190f   :  { %13632 = vmatprep.subr.mxu1 %v15361_v46 }
0x1911   :  { %13630 = vmatmul.mubr.msk.f32.vlgmr.msra.gmra.mrb[36].mxu1 %vm676_vm6, %v3557_v13 }
0x1912   :  { %13633 = vmatpush3.xpose.msk.msra.mxu1 %vm676_vm6, %v3637_v14  ;;  %13634 = vmatprep.mubr.msk.f32.mxu1 %vm15362_vm5, %v15361_v46 }
0x1913   :  { %13642 = vmatprep.subr.mxu1 %v15361_v46 }
0x1915   :  { %13635 = vmatmul.mubr.msk.f32.vlgmr.msra.gmra.mrb[38].mxu1 %vm676_vm6, %v3635_v16 }
0x1916   :  { %13644 = vmatprep.mubr.msk.f32.mxu1 %vm15362_vm5, %v15361_v46 }
0x1934   :  { %v3222_v18 = vpop.xlane.xlu1 %3221 }
0x1935   :  { %v3226_v21 = vsub.f32 %v3139_v8, %v3222_v18 }
0x1937   :  { %v3228_v22 = vmul.f32 1.442695, %v3226_v21 }
0x1939   :  { %14604 = vpow2.f32 %v3228_v22 }
0x1943   :  { %v14605_v23 = vpop.eup %14604 }
0x1944   :  { %v3232_v25 = vsel %vm676_vm6, %v14605_v23, 0.0 }
0x1945   :  { %3233 = vadd.xlane.f32.xlu0 %v3232_v25 }
0x195b   :  { %3242 = vrot.lane.b32.xlu0 %v16074_v17, %s15368_s29 }
0x195f   :  { %3810 = vrot.lane.b32.xlu0 %v16072_v15, %s15370_s14 }
0x1963   :  { %3971 = vrot.lane.b32.xlu0 %v16074_v17, %s15371_s21 }
0x1967   :  { %4049 = vrot.lane.b32.xlu0 %v16072_v15, %s15371_s21 }
0x196b   :  { %3969 = vrot.lane.b32.xlu0 %v16074_v17, %s15372_s1 }
0x19d2   :  { %v3234_v26 = vpop.xlane.xlu0 %3233 }
0x19d3   :  { %14606 = vrcp.f32 %v3234_v26 }
0x19d6   :  { %v3243_v1 = vpop.permute.xlu0 %3242 }
0x19d7   :  { %13608 = vmatpush3.msra.mxu0 %v3243_v1 }
0x19d8   :  { %13617 = vmatprep.subr.mxu0 %v2732_v36 }
0x19da   :  { %v3811_v27 = vpop.permute.xlu0 %3810 }
0x19db   :  { %13643 = vmatpush3.msra.mxu1 %v3811_v27 }
0x19dc   :  { %13652 = vmatprep.subr.mxu1 %v15361_v46 }
0x19dd   :  { %v14607_v0 = vpop.eup %14606 }
0x19de   :  { %v3239_v28 = vmul.f32 %v14607_v0, %v14605_v23  ;;  %v3972_v62 = vpop.permute.xlu0 %3971 }
0x19e0   :  { %13610 = vmatmul.mubr.msk.f32.vlgmr.msra.gmra.mrb[20].mxu0 %vm676_vm6, %v3239_v28  ;;  %v3390_v56 = vpop.f32.mrb[34].mxu1 }
0x19e1   :  { %v13616_v32 = vpop.f32.mrb[35].mxu1  ;;  %13618 = vmatpush3.msra.mxu0 %v2732_v36  ;;  %v12862_v36 = vld [vmem:[#allocation20] ss:$0 sm:$0xff] }
0x19e2   :  { %13622 = vmatprep.subr.mxu0 %v2731_v37  ;;  %v4050_v3 = vpop.permute.xlu0 %4049 }
0x19e4   :  { %v3630_v33 = vpop.f32.mrb[36].mxu1 }
0x19e5   :  { %v3631_v30 = vadd.f32 %v16150_v7, %v3630_v33  ;;  %v13631_v34 = vpop.f32.mrb[37].mxu1 }
0x19e6   :  { %v3970_v4 = vpop.permute.xlu0 %3969 }
0x19e7   :  { %v3712_v61 = vsel %vm676_vm6, %v3631_v30, -inf }
0x19e8   :  { %3713 = vmax.xlane.f32.xlu1 %v3712_v61  ;;  %v3708_v35 = vpop.f32.mrb[38].mxu1 }
0x19e9   :  { %v3709_v19 = vadd.f32 %v16133_v54, %v3708_v35  ;;  %v13636_v24 = vpop.f32.mrb[39].mxu1  ;;  %v2734_v35 = vld [vmem:[%s17303_s7 + $0x18] sm:$0xff]  ;;  %s17322_s7 = sld [smem:[#allocation51_spill]] }
0x19eb   :  { %v3715_v20 = vsel %vm676_vm6, %v3709_v19, -inf }
0x19ec   :  { %3716 = vmax.xlane.f32.xlu1 %v3715_v20 }
0x1a75   :  { %v3714_v38 = vpop.xlane.xlu1 %3713 }
0x1a76   :  { %v3718_v39 = vsub.f32 %v3631_v30, %v3714_v38 }
0x1a78   :  { %v3720_v40 = vmul.f32 1.442695, %v3718_v39 }
0x1a79   :  { %v3717_v41 = vpop.xlane.xlu1 %3716 }
0x1a7a   :  { %14608 = vpow2.f32 %v3720_v40  ;;  %v3719_v42 = vsub.f32 %v3709_v19, %v3717_v41 }
0x1a7c   :  { %v3722_v43 = vmul.f32 1.442695, %v3719_v42 }
0x1a7e   :  { %14610 = vpow2.f32 %v3722_v43  ;;  %v16243_v43 = vld [vmem:[%s17304_s10] sm:$0xff] }
0x1a84   :  { %v14609_v44 = vpop.eup %14608 }
0x1a85   :  { %v3724_v45 = vsel %vm676_vm6, %v14609_v44, 0.0 }
0x1a86   :  { %3725 = vadd.xlane.f32.xlu1 %v3724_v45  ;;  %v16248_v45 = vld [vmem:[%s17304_s10 + $0x8] sm:$0xff]  ;;  %s17323_s10 = sld [smem:[#allocation61_spill]] }
0x1a88   :  { %v14611_v47 = vpop.eup %14610 }
0x1a89   :  { %v3727_v48 = vsel %vm676_vm6, %v14611_v47, 0.0 }
0x1a8a   :  { %3728 = vadd.xlane.f32.xlu1 %v3727_v48  ;;  %v4704_v48 = vsel %vm517_vm0, %v16243_v43, 0.0 }
0x1a9b   :  { %3734 = vrot.lane.b32.xlu1 %v16074_v17, %s15370_s14 }
0x1a9f   :  { %4047 = vrot.lane.b32.xlu1 %v16072_v15, %s15372_s1 }
0x1ab3   :  { %v3314_v52 = vpop.f32.mrb[20].mxu0 }
0x1ab4   :  { %v13611_v53 = vpop.f32.mrb[21].mxu0  ;;  %13619 = vmatprep.mubr.msk.f32.mxu0 %vm676_vm6, %v3314_v52 }
0x1ab5   :  { %13620 = vmatmul.mubr.msk.f32.vlgmr.msra.gmra.mrb[22].mxu0 %vm676_vm6, %v3390_v56 }
0x1ab6   :  { %13624 = vmatprep.mubr.msk.f32.mxu0 %vm676_vm6, %v16143_v59  ;;  %13623 = vmatpush3.msra.mxu0 %v2731_v37 }
0x1ab7   :  { %13637 = vmatprep.subr.mxu0 %v15361_v46 }
0x1abd   :  { %13625 = vmatmul.mubr.msk.f32.vlgmr.msra.gmra.mrb[22].mxu0 %vm676_vm6, %v16130_v50 }
0x1abe   :  { %13639 = vmatprep.mubr.msk.f32.mxu0 %vm15362_vm5, %v15361_v46 }
0x1b13   :  { %v3726_v55 = vpop.xlane.xlu1 %3725 }
0x1b14   :  { %14612 = vrcp.f32 %v3726_v55 }
0x1b17   :  { %v3729_v57 = vpop.xlane.xlu1 %3728 }
0x1b18   :  { %14614 = vrcp.f32 %v3729_v57 }
0x1b1b   :  { %v3735_v60 = vpop.permute.xlu1 %3734 }
0x1b1c   :  { %13638 = vmatpush3.msra.mxu0 %v3735_v60 }
0x1b1d   :  { %13647 = vmatprep.subr.mxu0 %v2733_v58 }
0x1b1e   :  { %v14613_v63 = vpop.eup %14612 }
0x1b1f   :  { %v3731_v59 = vmul.f32 %v14613_v63, %v14609_v44  ;;  %v4048_v9 = vpop.permute.xlu1 %4047 }
0x1b21   :  { %13640 = vmatmul.mubr.msk.f32.vlgmr.msra.gmra.mrb[24].mxu0 %vm676_vm6, %v3731_v59 }
0x1b22   :  { %v14615_v2 = vpop.eup %14614  ;;  %13648 = vmatpush3.msra.mxu0 %v2733_v58 }
0x1b23   :  { %v3733_v50 = vmul.f32 %v14615_v2, %v14611_v47  ;;  %13657 = vmatprep.subr.mxu0 %v15361_v46 }
0x1b25   :  { %13645 = vmatmul.mubr.msk.f32.vlgmr.msra.gmra.mrb[40].mxu1 %vm676_vm6, %v3733_v50 }
0x1b26   :  { %13653 = vmatpush3.xpose.msk.msra.mxu1 %vm676_vm6, %v3972_v62  ;;  %13654 = vmatprep.mubr.msk.f32.mxu1 %vm15362_vm5, %v15361_v46 }
0x1b27   :  { %13662 = vmatprep.subr.mxu1 %v15361_v46 }
0x1b29   :  { %13655 = vmatmul.mubr.msk.f32.vlgmr.msra.gmra.mrb[42].mxu1 %vm676_vm6, %v3970_v4 }
0x1b2a   :  { %13664 = vmatprep.mubr.msk.f32.mxu1 %vm15362_vm5, %v15361_v46 }
0x1bf4   :  { %v3806_v5 = vpop.f32.mrb[24].mxu0 }
0x1bf5   :  { %v13641_v6 = vpop.f32.mrb[25].mxu0  ;;  %13649 = vmatprep.mubr.msk.f32.mxu0 %vm676_vm6, %v3806_v5 }
0x1bf8   :  { %v3882_v49 = vpop.f32.mrb[40].mxu1 }
0x1bf9   :  { %v13646_v8 = vpop.f32.mrb[41].mxu1  ;;  %13650 = vmatmul.mubr.msk.f32.vlgmr.msra.gmra.mrb[22].mxu0 %vm676_vm6, %v3882_v49 }
0x1bfa   :  { %13658 = vmatpush3.xpose.msk.msra.mxu0 %vm676_vm6, %v4050_v3  ;;  %13659 = vmatprep.mubr.msk.f32.mxu0 %vm15362_vm5, %v15361_v46 }
0x1bfb   :  { %13667 = vmatprep.subr.mxu0 %v15361_v46 }
0x1bfc   :  { %v4043_v10 = vpop.f32.mrb[42].mxu1 }
0x1bfd   :  { %v4044_v11 = vadd.f32 %v16150_v7, %v4043_v10  ;;  %v13656_v12 = vpop.f32.mrb[43].mxu1  ;;  %13660 = vmatmul.mubr.msk.f32.vlgmr.msra.gmra.mrb[26].mxu0 %vm676_vm6, %v4048_v9 }
0x1bfe   :  { %13669 = vmatprep.mubr.msk.f32.mxu0 %vm15362_vm5, %v15361_v46  ;;  %v4451_v12 = vld [vmem:[%s17305_s11 + $0x8] sm:$0xff] }
0x1bff   :  { %v4125_v51 = vsel %vm676_vm6, %v4044_v11, -inf }
0x1c00   :  { %4126 = vmax.xlane.f32.xlu0 %v4125_v51  ;;  %v4452_v51 = vld [vmem:[%s17305_s11 + $0x10] sm:$0xff] }
0x1c8d   :  { %v4127_v13 = vpop.xlane.xlu0 %4126 }
0x1c8e   :  { %v4131_v14 = vsub.f32 %v4044_v11, %v4127_v13  ;;  %v4450_v11 = vld [vmem:[%s17305_s11] sm:$0xff] }
0x1c8f   :  { %v14273_v13 = vpack.c.bf16 %v4451_v12, %v4450_v11  ;;  %v12873_v11 = vld [vmem:[%s17308_s15] ss:$0 sm:$0xff]  ;;  %v12864_v12 = vld [vmem:[#allocation25] ss:$0 sm:$0xff]  ;;  %s17327_s15 = sld [smem:[#allocation48_spill]] }
0x1c90   :  { %v4133_v16 = vmul.f32 1.442695, %v4131_v14  ;;  %v4453_v14 = vld [vmem:[%s17305_s11 + $0x18] sm:$0xff]  ;;  %s17324_s11 = sld [smem:[#allocation62_spill]] }
0x1c92   :  { %14616 = vpow2.f32 %v4133_v16  ;;  %v14277_v16 = vpack.c.bf16 %v4453_v14, %v4452_v51  ;;  %v4762_v14 = vld [vmem:[%s17306_s19 + $0x10] sm:$0xff] }
0x1c9c   :  { %v14617_v18 = vpop.eup %14616 }
0x1c9d   :  { %v4137_v21 = vsel %vm676_vm6, %v14617_v18, 0.0 }
0x1c9e   :  { %4138 = vadd.xlane.f32.xlu0 %v4137_v21  ;;  %v4761_v21 = vld [vmem:[%s17306_s19 + $0x8] sm:$0xff] }
0x1cd0   :  { %v4121_v22 = vpop.f32.mrb[26].mxu0 }
0x1cd1   :  { %v4122_v7 = vadd.f32 %v16133_v54, %v4121_v22  ;;  %v13661_v23 = vpop.f32.mrb[27].mxu0 }
0x1cd2   :  { %v4545_v23 = vld [vmem:[%s17307_s3 + $0x8] sm:$0xff] }
0x1cd3   :  { %v4128_v25 = vsel %vm676_vm6, %v4122_v7, -inf }
0x1cd4   :  { %4129 = vmax.xlane.f32.xlu1 %v4128_v25  ;;  %v4546_v25 = vld [vmem:[%s17307_s3 + $0x10] sm:$0xff] }
0x1ce5   :  { %4223 = vrot.lane.b32.xlu1 %v16072_v15, %s15373_s9 }
0x1d2b   :  { %v4139_v54 = vpop.xlane.xlu0 %4138 }
0x1d61   :  { %v4130_v26 = vpop.xlane.xlu1 %4129 }
0x1d62   :  { %v4132_v1 = vsub.f32 %v4122_v7, %v4130_v26  ;;  %v4544_v7 = vld [vmem:[%s17307_s3] sm:$0xff] }
0x1d63   :  { %v14281_v26 = vpack.c.bf16 %v4545_v23, %v4544_v7 }
0x1d64   :  { %v4135_v27 = vmul.f32 1.442695, %v4132_v1  ;;  %v4547_v1 = vld [vmem:[%s17307_s3 + $0x18] sm:$0xff] }
0x1d65   :  { %v4224_v0 = vpop.permute.xlu1 %4223 }
0x1d66   :  { %14618 = vpow2.f32 %v4135_v27  ;;  %13668 = vmatpush3.msra.mxu0 %v4224_v0  ;;  %v14285_v27 = vpack.c.bf16 %v4547_v1, %v4546_v25  ;;  %v4548_v0 = vld [vmem:[%s17307_s3 + $0x20] sm:$0xff] }
0x1d67   :  { %14620 = vrcp.f32 %v4139_v54  ;;  %13672 = vmatprep.subr.mxu0 %v2734_v35 }
0x1d70   :  { %v14619_v28 = vpop.eup %14618 }
0x1d71   :  { %v4140_v56 = vsel %vm676_vm6, %v14619_v28, 0.0  ;;  %v14621_v33 = vpop.eup %14620 }
0x1d72   :  { %4141 = vadd.xlane.f32.xlu0 %v4140_v56  ;;  %v4144_v30 = vmul.f32 %v14621_v33, %v14617_v18  ;;  %v4760_v18 = vld [vmem:[%s17306_s19] sm:$0xff] }
0x1d73   :  { %v16286_v22 = vpack.c.bf16 %v4761_v21, %v4760_v18 }
0x1d88   :  { %4147 = vrot.lane.b32.xlu0 %v16074_v17, %s15373_s9 }
0x1dff   :  { %v4142_v32 = vpop.xlane.xlu0 %4141 }
0x1e00   :  { %14622 = vrcp.f32 %v4142_v32 }
0x1e03   :  { %v4148_v15 = vpop.permute.xlu0 %4147 }
0x1e04   :  { %13663 = vmatpush3.msra.mxu1 %v4148_v15 }
0x1e05   :  { %13665 = vmatmul.mubr.msk.f32.vlgmr.msra.gmra.mrb[44].mxu1 %vm676_vm6, %v4144_v30  ;;  %14274 = vmatprep.subr.bf16.mxu1 %v14273_v13 }
0x1e06   :  { %14276 = vmatpush3.bf16.msra.mxu1 %v14273_v13 }
0x1e07   :  { %14278 = vmatprep.subr.bf16.mxu1 %v14277_v16 }
0x1e0a   :  { %v14623_v34 = vpop.eup %14622  ;;  %14280 = vmatpush3.bf16.msra.mxu1 %v14277_v16  ;;  %v4763_v16 = vld [vmem:[%s17306_s19 + $0x18] sm:$0xff]  ;;  %s17325_s19 = sld [smem:[#allocation60_spill]] }
0x1e0b   :  { %v4146_v61 = vmul.f32 %v14623_v34, %v14619_v28  ;;  %14298 = vmatprep.subr.bf16.mxu1 %v16286_v22  ;;  %v4549_v28 = vld [vmem:[%s17307_s3 + $0x28] sm:$0xff]  ;;  %v14301_v25 = vpack.c.bf16 %v4763_v16, %v4762_v14 }
0x1e0c   :  { %v14289_v56 = vpack.c.bf16 %v4549_v28, %v4548_v0  ;;  %v4551_v28 = vld [vmem:[%s17307_s3 + $0x38] sm:$0xff] }
0x1e0d   :  { %13670 = vmatmul.mubr.msk.f32.vlgmr.msra.gmra.mrb[28].mxu0 %vm676_vm6, %v4146_v61 }
0x1e0e   :  { %13673 = vmatpush3.msra.mxu0 %v2734_v35 }
0x1e0f   :  { %14282 = vmatprep.subr.bf16.mxu0 %v14281_v26 }
0x1ed8   :  { %v4219_v17 = vpop.f32.mrb[44].mxu1 }
0x1ed9   :  { %v13666_v19 = vpop.f32.mrb[45].mxu1  ;;  %13674 = vmatprep.mubr.msk.f32.mxu0 %vm676_vm6, %v4219_v17 }
0x1ee0   :  { %v4295_v24 = vpop.f32.mrb[28].mxu0 }
0x1ee1   :  { %v13671_v20 = vpop.f32.mrb[29].mxu0  ;;  %13675 = vmatmul.mubr.msk.f32.vlgmr.msra.gmra.mrb[22].mxu0 %vm676_vm6, %v4295_v24 }
0x1ee2   :  { %14284 = vmatpush3.bf16.msra.mxu0 %v14281_v26  ;;  %v12874_v26 = vld [vmem:[%s17309_s24] ss:$0 sm:$0xff]  ;;  %s17328_s24 = sld [smem:[#allocation49_spill]] }
0x1ee3   :  { %14286 = vmatprep.subr.bf16.mxu0 %v14285_v27 }
0x1ee6   :  { %14288 = vmatpush3.bf16.msra.mxu0 %v14285_v27 }
0x1ee7   :  { %14290 = vmatprep.subr.bf16.mxu0 %v14289_v56 }
0x1eea   :  { %14292 = vmatpush3.bf16.msra.mxu0 %v14289_v56 }
0x1fb4   :  { %v13676_v37 = vpop.f32.mrb[22].mxu0 }
0x1fb5   :  { %v4389_v38 = vadd.f32 %v13676_v37, %v12862_v36  ;;  %v4371_v39 = vpop.f32.mrb[23].mxu0 }
0x1fb6   :  { %v4388_v40 = vadd.f32 %v12862_v36, %v4371_v39 }
0x1fb7   :  { %v16237_v41 = vadd.f32 %v4389_v38, %v16049_v29  ;;  %v4707_v29 = vsel %vm517_vm0, %v16248_v45, 0.0 }
0x1fb8   :  { %v16240_v42 = vadd.f32 %v4388_v40, %v16052_v31 }
0x1fb9   :  { %v4397_v44 = vsel %vm517_vm0, %v16237_v41, 0.0 }
0x1fba   :  { %4398 = vadd.xlane.f32.xlu0 %v4397_v44  ;;  %v4394_v47 = vsel %vm517_vm0, %v16240_v42, 0.0 }
0x1fbb   :  { %4395 = vadd.xlane.f32.xlu1 %v4394_v47 }
0x1fbe   :  { %4705 = vadd.xlane.f32.xlu0 %v4704_v48 }
0x1fbf   :  { %4708 = vadd.xlane.f32.xlu1 %v4707_v29 }
0x2047   :  { %v4399_v31 = vpop.xlane.xlu0 %4398 }
0x2048   :  { %v4401_v52 = vmul.f32 0.03125, %v4399_v31  ;;  %v4396_v53 = vpop.xlane.xlu1 %4395 }
0x2049   :  { %v4400_v55 = vmul.f32 0.03125, %v4396_v53 }
0x204a   :  { %v16257_v57 = vsub.f32 %v16237_v41, %v4401_v52 }
0x204b   :  { %v16260_v58 = vsub.f32 %v16240_v42, %v4400_v55  ;;  %v4706_v60 = vpop.xlane.xlu0 %4705 }
0x204c   :  { %v4710_v62 = vmul.f32 0.03125, %v4706_v60  ;;  %v4709_v63 = vpop.xlane.xlu1 %4708  ;;  %v4405_v59 = vmul.f32 %v16257_v57, %v16257_v57 }
0x204d   :  { %v4711_v2 = vmul.f32 0.03125, %v4709_v63  ;;  %v4404_v3 = vmul.f32 %v16260_v58, %v16260_v58 }
0x204e   :  { %v16267_v50 = vsub.f32 %v16243_v43, %v4710_v62  ;;  %v4409_v4 = vsel %vm517_vm0, %v4405_v59, 0.0 }
0x204f   :  { %v16271_v5 = vsub.f32 %v16248_v45, %v4711_v2  ;;  %4410 = vadd.xlane.f32.xlu1 %v4409_v4  ;;  %v4406_v6 = vsel %vm517_vm0, %v4404_v3, 0.0 }
0x2050   :  { %4407 = vadd.xlane.f32.xlu0 %v4406_v6  ;;  %v4714_v49 = vmul.f32 %v16267_v50, %v16267_v50  ;;  %v12863_v6 = vld [vmem:[#allocation26] ss:$0 sm:$0xff]  ;;  %v4744_v18 = vmul.f32 %v12873_v11, %v16267_v50 }
0x2051   :  { %v4715_v8 = vmul.f32 %v16271_v5, %v16271_v5 }
0x2052   :  { %v4716_v9 = vsel %vm517_vm0, %v4714_v49, 0.0  ;;  %v4435_v49 = vmul.f32 %v12863_v6, %v16257_v57 }
0x2053   :  { %v4719_v10 = vsel %vm517_vm0, %v4715_v8, 0.0 }
0x2054   :  { %4717 = vadd.xlane.f32.xlu0 %v4716_v9  ;;  %4720 = vadd.xlane.f32.xlu1 %v4719_v10  ;;  %v4434_v9 = vmul.f32 %v12863_v6, %v16260_v58  ;;  %v4745_v58 = vmul.f32 %v12873_v11, %v16271_v5  ;;  %v4550_v5 = vld [vmem:[%s17307_s3 + $0x30] sm:$0xff]  ;;  %s17326_s3 = sld [smem:[#allocation59_spill]] }
0x2055   :  { %v14293_v56 = vpack.c.bf16 %v4551_v28, %v4550_v5 }
0x2057   :  { %14294 = vmatprep.subr.bf16.mxu0 %v14293_v56 }
0x2058   :  { %14296 = vmatpush3.bf16.msra.mxu0 %v14293_v56 }
0x2059   :  { %13728 = vmatprep.subr.mxu0 %v15361_v46 }
0x20dc   :  { %v4411_v54 = vpop.xlane.xlu1 %4410 }
0x20dd   :  { %v4413_v32 = vmul.f32 0.032258064, %v4411_v54  ;;  %v4408_v33 = vpop.xlane.xlu0 %4407 }
0x20de   :  { %v4412_v15 = vmul.f32 0.032258064, %v4408_v33 }
0x20df   :  { %14624 = vrsqrt.f32 %v4413_v32  ;;  %vm4423_vm1 = vcmp.eq.f32.partialorder %v4413_v32, inf  ;;  %v4426_v20 = vand.u32 2147483648, %v4413_v32  ;;  %vm4425_vm2 = vcmp.eq.f32.partialorder %v4413_v32, 0.0 }
0x20e0   :  { %14626 = vrsqrt.f32 %v4412_v15  ;;  %vm4416_vm3 = vcmp.eq.f32.partialorder %v4412_v15, inf  ;;  %v4419_v38 = vand.u32 2147483648, %v4412_v15  ;;  %vm4418_vm4 = vcmp.eq.f32.partialorder %v4412_v15, 0.0 }
0x20e1   :  { %v4718_v30 = vpop.xlane.xlu0 %4717  ;;  %v4721_v34 = vpop.xlane.xlu1 %4720 }
0x20e2   :  { %v4722_v61 = vmul.f32 0.032258064, %v4718_v30  ;;  %v4723_v35 = vmul.f32 0.032258064, %v4721_v34 }
0x20e4   :  { %14628 = vrsqrt.f32 %v4722_v61  ;;  %vm4726_vm7 = vcmp.eq.f32.partialorder %v4722_v61, inf  ;;  %vm4728_vm8 = vcmp.eq.f32.partialorder %v4722_v61, 0.0  ;;  %v4729_v53 = vand.u32 2147483648, %v4722_v61 }
0x20e5   :  { %14630 = vrsqrt.f32 %v4723_v35  ;;  %vm4733_vm9 = vcmp.eq.f32.partialorder %v4723_v35, inf  ;;  %v4736_v62 = vand.u32 2147483648, %v4723_v35  ;;  %vm4735_vm10 = vcmp.eq.f32.partialorder %v4723_v35, 0.0 }
0x20e9   :  { %v14625_v17 = vpop.eup %14624 }
0x20ea   :  { %v14627_v19 = vpop.eup %14626  ;;  %v4422_v24 = vmul.f32 %v14625_v17, %v4413_v32 }
0x20eb   :  { %v4415_v36 = vmul.f32 %v14627_v19, %v4412_v15 }
0x20ec   :  { %v4424_v37 = vsel %vm4423_vm1, %v4413_v32, %v4422_v24 }
0x20ed   :  { %v4427_v39 = vsel %vm4425_vm2, %v4426_v20, %v4424_v37  ;;  %v4417_v40 = vsel %vm4416_vm3, %v4412_v15, %v4415_v36  ;;  %v16339_v37 = vld [vmem:[#allocation19] ss:$0 sm:$0xff] }
0x20ee   :  { %v14629_v44 = vpop.eup %14628  ;;  %v4437_v47 = vadd.f32 1e-06, %v4427_v39  ;;  %v4420_v48 = vsel %vm4418_vm4, %v4419_v38, %v4417_v40 }
0x20ef   :  { %v14631_v29 = vpop.eup %14630  ;;  %v4725_v31 = vmul.f32 %v14629_v44, %v4722_v61  ;;  %v4436_v52 = vadd.f32 1e-06, %v4420_v48  ;;  %v16347_v48 = vld [vmem:[%s17311_s0 + $0x8] sm:$0xff] }
0x20f0   :  { %v4732_v55 = vmul.f32 %v14631_v29, %v4723_v35  ;;  %14632 = vrcp.f32 %v4437_v47 }
0x20f1   :  { %v4727_v60 = vsel %vm4726_vm7, %v4722_v61, %v4725_v31  ;;  %14634 = vrcp.f32 %v4436_v52  ;;  %v12875_v61 = vld [vmem:[%s17310_s12] ss:$0 sm:$0xff]  ;;  %s17329_s12 = sld [smem:[#allocation87_spill]] }
0x20f2   :  { %v4734_v63 = vsel %vm4733_vm9, %v4723_v35, %v4732_v55  ;;  %v4730_v59 = vsel %vm4728_vm8, %v4729_v53, %v4727_v60  ;;  %v16356_v55 = vld [vmem:[%s17311_s0] sm:$0xff] }
0x20f3   :  { %v4737_v2 = vsel %vm4735_vm10, %v4736_v62, %v4734_v63  ;;  %v4746_v3 = vadd.f32 1e-06, %v4730_v59 }
0x20f4   :  { %v4747_v4 = vadd.f32 1e-06, %v4737_v2 }
0x20f5   :  { %14636 = vrcp.f32 %v4746_v3 }
0x20f6   :  { %14638 = vrcp.f32 %v4747_v4 }
0x20fa   :  { %v14633_v8 = vpop.eup %14632 }
0x20fb   :  { %v14635_v10 = vpop.eup %14634  ;;  %v4441_v51 = vmul.f32 %v14633_v8, %v4435_v49 }
0x20fc   :  { %v4439_v13 = vmul.f32 %v14635_v10, %v4434_v9 }
0x20fd   :  { %v4449_v23 = vadd.f32 %v12864_v12, %v4441_v51 }
0x20fe   :  { %v4448_v21 = vadd.f32 %v12864_v12, %v4439_v13 }
0x20ff   :  { %v14637_v7 = vpop.eup %14636 }
0x2100   :  { %v14639_v1 = vpop.eup %14638  ;;  %13685 = vmatprep.mubr.msk.f32.mxu1 %vm517_vm0, %v4448_v21  ;;  %v4749_v57 = vmul.f32 %v14637_v7, %v4744_v18 }
0x2101   :  { %13686 = vmatmul.mubr.msk.f32.vlgmr.msra.gmra.mrb[46].mxu1 %vm517_vm0, %v4449_v23  ;;  %v4751_v50 = vmul.f32 %v14639_v1, %v4745_v58 }
0x2102   :  { %14300 = vmatpush3.bf16.msra.mxu1 %v16286_v22  ;;  %v4758_v27 = vadd.f32 %v12874_v26, %v4749_v57  ;;  %v12865_v22 = vld [vmem:[#allocation17] ss:$0 sm:$0xff] }
0x2103   :  { %14302 = vmatprep.subr.bf16.mxu1 %v14301_v25  ;;  %v4759_v0 = vadd.f32 %v12874_v26, %v4751_v50 }
0x2104   :  { %13715 = vmatprep.mubr.msk.f32.mxu1 %vm517_vm0, %v4758_v27 }
0x2106   :  { %14304 = vmatpush3.bf16.msra.mxu1 %v14301_v25 }
0x2107   :  { %13718 = vmatprep.subr.mxu1 %v15361_v46 }
0x2109   :  { %13716 = vmatmul.mubr.msk.f32.vlgmr.msra.gmra.mrb[48].mxu1 %vm517_vm0, %v4759_v0 }
0x210a   :  { %13720 = vmatprep.mubr.msk.f32.mxu1 %vm15362_vm5, %v15361_v46 }
0x21d4   :  { %v13687_v54 = vpop.f32.mrb[46].mxu1 }
0x21d5   :  { %v4539_v32 = vadd.f32 %v13687_v54, %v12865_v22  ;;  %v4533_v33 = vpop.f32.mrb[47].mxu1 }
0x21d6   :  { %v4534_v15 = vadd.f32 %v12865_v22, %v4533_v33 }
0x21d7   :  { %v4543_v34 = vmax.f32 %v4539_v32, 0.0 }
0x21d8   :  { %v4542_v30 = vmax.f32 %v4534_v15, 0.0 }
0x21da   :  { %13704 = vmatprep.mubr.msk.f32.mxu0 %vm2497_vm11, %v4542_v30 }
0x21db   :  { %13705 = vmatmul.mubr.msk.f32.vlgmr.msra.gmra.mrb[30].mxu0 %vm2497_vm11, %v4543_v34 }
0x21dc   :  { %v13717_v35 = vpop.f32.mrb[48].mxu1  ;;  %13730 = vmatprep.mubr.msk.f32.mxu0 %vm15362_vm5, %v15361_v46 }
0x21dd   :  { %v16319_v17 = vadd.f32 %v13717_v35, %v12875_v61  ;;  %v4843_v19 = vpop.f32.mrb[49].mxu1 }
0x21de   :  { %v16321_v24 = vadd.f32 %v12875_v61, %v4843_v19 }
0x21df   :  { %4935 = vrot.lane.b32.xlu1 %v16319_v17, %s15363_s18 }
0x21e0   :  { %4858 = vrot.lane.b32.xlu0 %v16321_v24, %s15363_s18 }
0x2251   :  { %v4936_v36 = vpop.permute.xlu1 %4935 }
0x2252   :  { %v4859_v20 = vpop.permute.xlu0 %4858 }
0x2253   :  { %13719 = vmatpush3.xpose.msk.msra.mxu1 %vm676_vm6, %v4859_v20 }
0x2254   :  { %13723 = vmatprep.subr.mxu1 %v15361_v46 }
0x2256   :  { %13721 = vmatmul.mubr.msk.f32.vlgmr.msra.gmra.mrb[50].mxu1 %vm676_vm6, %v16321_v24 }
0x2257   :  { %13724 = vmatpush3.xpose.msk.msra.mxu1 %vm676_vm6, %v4936_v36  ;;  %13725 = vmatprep.mubr.msk.f32.mxu1 %vm15362_vm5, %v15361_v46 }
0x2258   :  { %13733 = vmatprep.subr.mxu1 %v15361_v46 }
0x225a   :  { %13726 = vmatmul.mubr.msk.f32.vlgmr.msra.gmra.mrb[52].mxu1 %vm676_vm6, %v16319_v17 }
0x225b   :  { %13735 = vmatprep.mubr.msk.f32.mxu1 %vm15362_vm5, %v15361_v46 }
0x22ae   :  { %v13706_v38 = vpop.f32.mrb[30].mxu0 }
0x22af   :  { %v16342_v39 = vadd.f32 %v13706_v38, %v16339_v37  ;;  %v16344_v40 = vpop.f32.mrb[31].mxu0 }
0x2329   :  { %v4930_v44 = vpop.f32.mrb[50].mxu1 }
0x232a   :  { %v13722_v47 = vpop.f32.mrb[51].mxu1  ;;  %v4931_v60 = vadd.f32 %v4930_v44, %v16356_v55 }
0x232c   :  { %v5011_v62 = vsel %vm676_vm6, %v4931_v60, -inf }
0x232d   :  { %v5007_v29 = vpop.f32.mrb[52].mxu1 }
0x232e   :  { %v5008_v31 = vadd.f32 %v5007_v29, %v16347_v48  ;;  %v13727_v52 = vpop.f32.mrb[53].mxu1 }
0x2330   :  { %v5014_v53 = vsel %vm676_vm6, %v5008_v31, -inf }
0x2331   :  { %5015 = vmax.xlane.f32.xlu1 %v5014_v53 }
0x2342   :  { %5265 = vrot.lane.b32.xlu1 %v16319_v17, %s15364_s22 }
0x2346   :  { %5263 = vrot.lane.b32.xlu1 %v16319_v17, %s15365_s23 }
0x236a   :  { %5012 = vmax.xlane.f32.xlu1 %v5011_v62 }
0x237b   :  { %5187 = vrot.lane.b32.xlu1 %v16321_v24, %s15364_s22 }
0x237f   :  { %5185 = vrot.lane.b32.xlu1 %v16321_v24, %s15365_s23 }
0x2383   :  { %5679 = vrot.lane.b32.xlu1 %v16321_v24, %s15366_s26 }
0x23be   :  { %v5016_v63 = vpop.xlane.xlu1 %5015 }
0x23bf   :  { %v5018_v59 = vsub.f32 %v5008_v31, %v5016_v63 }
0x23c1   :  { %v5021_v2 = vmul.f32 1.442695, %v5018_v59 }
0x23c2   :  { %v5266_v6 = vpop.permute.xlu1 %5265 }
0x23c3   :  { %14640 = vpow2.f32 %v5021_v2 }
0x23c6   :  { %v5264_v49 = vpop.permute.xlu1 %5263 }
0x23cd   :  { %v14641_v3 = vpop.eup %14640 }
0x23ce   :  { %v5026_v4 = vsel %vm676_vm6, %v14641_v3, 0.0 }
0x23cf   :  { %5027 = vadd.xlane.f32.xlu0 %v5026_v4 }
0x23e5   :  { %5109 = vrot.lane.b32.xlu0 %v16319_v17, %s15367_s28 }
0x23f7   :  { %v5013_v8 = vpop.xlane.xlu1 %5012 }
0x23f8   :  { %v5017_v9 = vsub.f32 %v4931_v60, %v5013_v8 }
0x23fa   :  { %v5019_v10 = vmul.f32 1.442695, %v5017_v9 }
0x23fb   :  { %v5188_v23 = vpop.permute.xlu1 %5187 }
0x23fc   :  { %14642 = vpow2.f32 %v5019_v10 }
0x23ff   :  { %v5186_v26 = vpop.permute.xlu1 %5185 }
0x2403   :  { %v5680_v19 = vpop.permute.xlu1 %5679 }
0x2406   :  { %v14643_v11 = vpop.eup %14642 }
0x2407   :  { %v5023_v12 = vsel %vm676_vm6, %v14643_v11, 0.0 }
0x2408   :  { %5024 = vadd.xlane.f32.xlu0 %v5023_v12 }
0x241e   :  { %5033 = vrot.lane.b32.xlu0 %v16321_v24, %s15367_s28 }
0x245c   :  { %v5028_v51 = vpop.xlane.xlu0 %5027 }
0x245d   :  { %14644 = vrcp.f32 %v5028_v51 }
0x2460   :  { %v5110_v13 = vpop.permute.xlu0 %5109 }
0x2461   :  { %13734 = vmatpush3.msra.mxu1 %v5110_v13 }
0x2462   :  { %13743 = vmatprep.subr.mxu1 %v15361_v46 }
0x2467   :  { %v14645_v14 = vpop.eup %14644 }
0x2468   :  { %v5032_v16 = vmul.f32 %v14645_v14, %v14641_v3 }
0x246a   :  { %13736 = vmatmul.mubr.msk.f32.vlgmr.msra.gmra.mrb[54].mxu1 %vm676_vm6, %v5032_v16  ;;  %v4853_v16 = vld [vmem:[%s17312_s16 + $0x8] sm:$0xff] }
0x246b   :  { %13744 = vmatpush3.xpose.msk.msra.mxu1 %vm676_vm6, %v5266_v6  ;;  %13745 = vmatprep.mubr.msk.f32.mxu1 %vm15362_vm5, %v15361_v46 }
0x246c   :  { %13753 = vmatprep.subr.mxu1 %v15361_v46 }
0x246e   :  { %13746 = vmatmul.mubr.msk.f32.vlgmr.msra.gmra.mrb[56].mxu1 %vm676_vm6, %v5264_v49 }
0x246f   :  { %13755 = vmatprep.mubr.msk.f32.mxu1 %vm15362_vm5, %v15361_v46 }
0x2495   :  { %v5025_v18 = vpop.xlane.xlu0 %5024 }
0x2496   :  { %14646 = vrcp.f32 %v5025_v18  ;;  %v4852_v18 = vld [vmem:[%s17312_s16] sm:$0xff] }
0x2499   :  { %v5034_v21 = vpop.permute.xlu0 %5033 }
0x249a   :  { %13729 = vmatpush3.msra.mxu0 %v5034_v21 }
0x249b   :  { %13738 = vmatprep.subr.mxu0 %v15361_v46 }
0x24a0   :  { %v14647_v7 = vpop.eup %14646 }
0x24a1   :  { %v5030_v25 = vmul.f32 %v14647_v7, %v14643_v11 }
0x24a3   :  { %13731 = vmatmul.mubr.msk.f32.vlgmr.msra.gmra.mrb[32].mxu0 %vm676_vm6, %v5030_v25 }
0x24a4   :  { %13739 = vmatpush3.xpose.msk.msra.mxu0 %vm676_vm6, %v5188_v23  ;;  %13740 = vmatprep.mubr.msk.f32.mxu0 %vm15362_vm5, %v15361_v46 }
0x24a5   :  { %13748 = vmatprep.subr.mxu0 %v15361_v46 }
0x24a7   :  { %13741 = vmatmul.mubr.msk.f32.vlgmr.msra.gmra.mrb[34].mxu0 %vm676_vm6, %v5186_v26 }
0x24a8   :  { %13750 = vmatprep.mubr.msk.f32.mxu0 %vm15362_vm5, %v15361_v46 }
0x253d   :  { %v16390_v1 = vpop.f32.mrb[54].mxu1 }
0x253e   :  { %v13737_v57 = vpop.f32.mrb[55].mxu1 }
0x2541   :  { %v5337_v58 = vpop.f32.mrb[56].mxu1 }
0x2542   :  { %v5338_v27 = vadd.f32 %v5337_v58, %v16347_v48  ;;  %v13747_v50 = vpop.f32.mrb[57].mxu1 }
0x2544   :  { %v5344_v0 = vsel %vm676_vm6, %v5338_v27, -inf }
0x2545   :  { %5345 = vmax.xlane.f32.xlu0 %v5344_v0 }
0x255b   :  { %5439 = vrot.lane.b32.xlu0 %v16319_v17, %s15368_s29 }
0x255f   :  { %5677 = vrot.lane.b32.xlu0 %v16321_v24, %s15369_s17 }
0x2563   :  { %5755 = vrot.lane.b32.xlu0 %v16319_v17, %s15369_s17 }
0x2576   :  { %v16400_v5 = vpop.f32.mrb[32].mxu0 }
0x2577   :  { %v13732_v28 = vpop.f32.mrb[33].mxu0 }
0x257a   :  { %v5259_v56 = vpop.f32.mrb[34].mxu0 }
0x257b   :  { %v13742_v22 = vpop.f32.mrb[35].mxu0  ;;  %v5260_v61 = vadd.f32 %v5259_v56, %v16356_v55 }
0x257d   :  { %v5341_v35 = vsel %vm676_vm6, %v5260_v61, -inf }
0x25d2   :  { %v5346_v54 = vpop.xlane.xlu0 %5345 }
0x25d3   :  { %v5348_v32 = vsub.f32 %v5338_v27, %v5346_v54 }
0x25d5   :  { %v5351_v33 = vmul.f32 1.442695, %v5348_v32  ;;  %v4854_v32 = vld [vmem:[%s17312_s16 + $0x10] sm:$0xff] }
0x25d6   :  { %v5440_v15 = vpop.permute.xlu0 %5439 }
0x25d7   :  { %14648 = vpow2.f32 %v5351_v33  ;;  %13754 = vmatpush3.msra.mxu1 %v5440_v15 }
0x25d8   :  { %13768 = vmatprep.subr.mxu1 %v15361_v46 }
0x25da   :  { %v5678_v44 = vpop.permute.xlu0 %5677 }
0x25de   :  { %v5756_v29 = vpop.permute.xlu0 %5755 }
0x25e1   :  { %v14649_v30 = vpop.eup %14648 }
0x25e2   :  { %v5356_v34 = vsel %vm676_vm6, %v14649_v30, 0.0 }
0x25e3   :  { %5357 = vadd.xlane.f32.xlu1 %v5356_v34 }
0x25f4   :  { %5757 = vrot.lane.b32.xlu1 %v16319_v17, %s15366_s26 }
0x2618   :  { %5342 = vmax.xlane.f32.xlu1 %v5341_v35 }
0x2670   :  { %v5358_v20 = vpop.xlane.xlu1 %5357 }
0x2671   :  { %14650 = vrcp.f32 %v5358_v20 }
0x2674   :  { %v5758_v47 = vpop.permute.xlu1 %5757 }
0x267b   :  { %v14651_v36 = vpop.eup %14650 }
0x267c   :  { %v5362_v38 = vmul.f32 %v14651_v36, %v14649_v30 }
0x267e   :  { %13756 = vmatmul.mubr.msk.f32.vlgmr.msra.gmra.mrb[58].mxu1 %vm676_vm6, %v5362_v38 }
0x267f   :  { %13769 = vmatpush3.xpose.msk.msra.mxu1 %vm676_vm6, %v5680_v19  ;;  %13770 = vmatprep.mubr.msk.f32.mxu1 %vm15362_vm5, %v15361_v46 }
0x2680   :  { %13773 = vmatprep.subr.mxu1 %v15361_v46 }
0x2682   :  { %13771 = vmatmul.mubr.msk.f32.vlgmr.msra.gmra.mrb[60].mxu1 %vm676_vm6, %v5678_v44 }
0x2683   :  { %13774 = vmatpush3.xpose.msk.msra.mxu1 %vm676_vm6, %v5758_v47  ;;  %13775 = vmatprep.mubr.msk.f32.mxu1 %vm15362_vm5, %v15361_v46 }
0x2684   :  { %13783 = vmatprep.subr.mxu1 %v15361_v46 }
0x2686   :  { %13776 = vmatmul.mubr.msk.f32.vlgmr.msra.gmra.mrb[62].mxu1 %vm676_vm6, %v5756_v29 }
0x2687   :  { %13785 = vmatprep.mubr.msk.f32.mxu1 %vm15362_vm5, %v15361_v46 }
0x26a5   :  { %v5343_v31 = vpop.xlane.xlu1 %5342 }
0x26a6   :  { %v5347_v52 = vsub.f32 %v5260_v61, %v5343_v31 }
0x26a8   :  { %v5349_v53 = vmul.f32 1.442695, %v5347_v52 }
0x26aa   :  { %14652 = vpow2.f32 %v5349_v53 }
0x26b4   :  { %v14653_v60 = vpop.eup %14652 }
0x26b5   :  { %v5353_v62 = vsel %vm676_vm6, %v14653_v60, 0.0 }
0x26b6   :  { %5354 = vadd.xlane.f32.xlu0 %v5353_v62 }
0x26cc   :  { %5363 = vrot.lane.b32.xlu0 %v16321_v24, %s15368_s29 }
0x26d0   :  { %5931 = vrot.lane.b32.xlu0 %v16319_v17, %s15370_s14 }
0x26d4   :  { %6092 = vrot.lane.b32.xlu0 %v16321_v24, %s15371_s21 }
0x26d8   :  { %6170 = vrot.lane.b32.xlu0 %v16319_v17, %s15371_s21 }
0x26dc   :  { %6090 = vrot.lane.b32.xlu0 %v16321_v24, %s15372_s1 }
0x2743   :  { %v5355_v63 = vpop.xlane.xlu0 %5354 }
0x2744   :  { %14654 = vrcp.f32 %v5355_v63 }
0x2747   :  { %v5364_v59 = vpop.permute.xlu0 %5363 }
0x2748   :  { %13749 = vmatpush3.msra.mxu0 %v5364_v59 }
0x2749   :  { %13758 = vmatprep.subr.mxu0 %v4853_v16 }
0x274b   :  { %v5932_v2 = vpop.permute.xlu0 %5931 }
0x274c   :  { %13784 = vmatpush3.msra.mxu1 %v5932_v2 }
0x274d   :  { %13793 = vmatprep.subr.mxu1 %v15361_v46 }
0x274e   :  { %v14655_v3 = vpop.eup %14654 }
0x274f   :  { %v5360_v4 = vmul.f32 %v14655_v3, %v14653_v60  ;;  %v6093_v15 = vpop.permute.xlu0 %6092 }
0x2751   :  { %13751 = vmatmul.mubr.msk.f32.vlgmr.msra.gmra.mrb[36].mxu0 %vm676_vm6, %v5360_v4  ;;  %v5511_v6 = vpop.f32.mrb[58].mxu1 }
0x2752   :  { %v13757_v49 = vpop.f32.mrb[59].mxu1  ;;  %13759 = vmatpush3.msra.mxu0 %v4853_v16 }
0x2753   :  { %13763 = vmatprep.subr.mxu0 %v4852_v18  ;;  %v6171_v61 = vpop.permute.xlu0 %6170 }
0x2755   :  { %v5751_v8 = vpop.f32.mrb[60].mxu1 }
0x2756   :  { %v5752_v9 = vadd.f32 %v5751_v8, %v16356_v55  ;;  %v13772_v10 = vpop.f32.mrb[61].mxu1 }
0x2757   :  { %v6091_v35 = vpop.permute.xlu0 %6090 }
0x2758   :  { %v5833_v11 = vsel %vm676_vm6, %v5752_v9, -inf }
0x2759   :  { %v5829_v12 = vpop.f32.mrb[62].mxu1  ;;  %5834 = vmax.xlane.f32.xlu1 %v5833_v11 }
0x275a   :  { %v5830_v51 = vadd.f32 %v5829_v12, %v16347_v48  ;;  %v13777_v13 = vpop.f32.mrb[63].mxu1 }
0x275c   :  { %v5836_v14 = vsel %vm676_vm6, %v5830_v51, -inf }
0x275d   :  { %5837 = vmax.xlane.f32.xlu1 %v5836_v14 }
0x27e6   :  { %v5835_v21 = vpop.xlane.xlu1 %5834 }
0x27e7   :  { %v5839_v7 = vsub.f32 %v5752_v9, %v5835_v21  ;;  %v4855_v21 = vld [vmem:[%s17312_s16 + $0x18] sm:$0xff]  ;;  %s17330_s16 = sld [smem:[#allocation76_spill]] }
0x27e9   :  { %v5841_v23 = vmul.f32 1.442695, %v5839_v7 }
0x27ea   :  { %v5838_v25 = vpop.xlane.xlu1 %5837 }
0x27eb   :  { %14656 = vpow2.f32 %v5841_v23  ;;  %v5840_v26 = vsub.f32 %v5830_v51, %v5838_v25 }
0x27ed   :  { %v5843_v57 = vmul.f32 1.442695, %v5840_v26 }
0x27ef   :  { %14658 = vpow2.f32 %v5843_v57 }
0x27f5   :  { %v14657_v58 = vpop.eup %14656 }
0x27f6   :  { %v5845_v27 = vsel %vm676_vm6, %v14657_v58, 0.0 }
0x27f7   :  { %5846 = vadd.xlane.f32.xlu1 %v5845_v27  ;;  %v12910_v27 = vld [vmem:[%s17313_s25] ss:$0 sm:$0xff]  ;;  %s17331_s25 = sld [smem:[#allocation75_spill]] }
0x27f9   :  { %v14659_v50 = vpop.eup %14658 }
0x27fa   :  { %v5848_v0 = vsel %vm676_vm6, %v14659_v50, 0.0 }
0x27fb   :  { %5849 = vadd.xlane.f32.xlu1 %v5848_v0 }
0x280c   :  { %5855 = vrot.lane.b32.xlu1 %v16321_v24, %s15370_s14 }
0x2810   :  { %6168 = vrot.lane.b32.xlu1 %v16319_v17, %s15372_s1 }
0x2824   :  { %v5435_v28 = vpop.f32.mrb[36].mxu0 }
0x2825   :  { %v13752_v56 = vpop.f32.mrb[37].mxu0  ;;  %13760 = vmatprep.mubr.msk.f32.mxu0 %vm676_vm6, %v5435_v28 }
0x2826   :  { %13761 = vmatmul.mubr.msk.f32.vlgmr.msra.gmra.mrb[38].mxu0 %vm676_vm6, %v5511_v6  ;;  %v4632_v6 = vadd.f32 %v16339_v37, %v16344_v40 }
0x2827   :  { %13765 = vmatprep.mubr.msk.f32.mxu0 %vm676_vm6, %v16400_v5  ;;  %13764 = vmatpush3.msra.mxu0 %v4852_v18 }
0x2828   :  { %13778 = vmatprep.subr.mxu0 %v15361_v46  ;;  %v4640_v49 = vadd.f32 %v4632_v6, %v16240_v42  ;;  %v4641_v42 = vadd.f32 %v16342_v39, %v16237_v41 }
0x282a   :  { %v4644_v8 = vsel %vm517_vm0, %v4640_v49, 0.0 }
0x282e   :  { %13766 = vmatmul.mubr.msk.f32.vlgmr.msra.gmra.mrb[38].mxu0 %vm676_vm6, %v16390_v1 }
0x282f   :  { %13780 = vmatprep.mubr.msk.f32.mxu0 %vm15362_vm5, %v15361_v46 }
0x2884   :  { %v5847_v22 = vpop.xlane.xlu1 %5846 }
0x2885   :  { %14660 = vrcp.f32 %v5847_v22 }
0x2888   :  { %v5850_v54 = vpop.xlane.xlu1 %5849 }
0x2889   :  { %14662 = vrcp.f32 %v5850_v54 }
0x288c   :  { %v5856_v33 = vpop.permute.xlu1 %5855 }
0x288d   :  { %13779 = vmatpush3.msra.mxu0 %v5856_v33 }
0x288e   :  { %13788 = vmatprep.subr.mxu0 %v4854_v32 }
0x288f   :  { %v14661_v30 = vpop.eup %14660 }
0x2890   :  { %v5852_v5 = vmul.f32 %v14661_v30, %v14657_v58  ;;  %v6169_v44 = vpop.permute.xlu1 %6168 }
0x2892   :  { %13781 = vmatmul.mubr.msk.f32.vlgmr.msra.gmra.mrb[40].mxu0 %vm676_vm6, %v5852_v5 }
0x2893   :  { %v14663_v34 = vpop.eup %14662  ;;  %13789 = vmatpush3.msra.mxu0 %v4854_v32 }
0x2894   :  { %v5854_v1 = vmul.f32 %v14663_v34, %v14659_v50  ;;  %13798 = vmatprep.subr.mxu0 %v15361_v46 }
0x2896   :  { %13786 = vmatmul.mubr.msk.f32.vlgmr.msra.gmra.mrb[64].mxu1 %vm676_vm6, %v5854_v1  ;;  %v6664_v1 = vld [vmem:[%s17314_s5 + $0x8] sm:$0xff] }
0x2897   :  { %13794 = vmatpush3.xpose.msk.msra.mxu1 %vm676_vm6, %v6093_v15  ;;  %13795 = vmatprep.mubr.msk.f32.mxu1 %vm15362_vm5, %v15361_v46 }
0x2898   :  { %13803 = vmatprep.subr.mxu1 %v15361_v46 }
0x289a   :  { %13796 = vmatmul.mubr.msk.f32.vlgmr.msra.gmra.mrb[66].mxu1 %vm676_vm6, %v6091_v35  ;;  %v6665_v35 = vld [vmem:[%s17314_s5 + $0x10] sm:$0xff] }
0x289b   :  { %13805 = vmatprep.mubr.msk.f32.mxu1 %vm15362_vm5, %v15361_v46 }
0x2965   :  { %v5927_v19 = vpop.f32.mrb[40].mxu0 }
0x2966   :  { %v13782_v20 = vpop.f32.mrb[41].mxu0  ;;  %13790 = vmatprep.mubr.msk.f32.mxu0 %vm676_vm6, %v5927_v19 }
0x2967   :  { %v6666_v20 = vld [vmem:[%s17314_s5 + $0x18] sm:$0xff] }
0x2969   :  { %v6003_v36 = vpop.f32.mrb[64].mxu1 }
0x296a   :  { %v13787_v38 = vpop.f32.mrb[65].mxu1  ;;  %13791 = vmatmul.mubr.msk.f32.vlgmr.msra.gmra.mrb[38].mxu0 %vm676_vm6, %v6003_v36  ;;  %v14317_v36 = vpack.c.bf16 %v6666_v20, %v6665_v35 }
0x296b   :  { %13799 = vmatpush3.xpose.msk.msra.mxu0 %vm676_vm6, %v6171_v61  ;;  %13800 = vmatprep.mubr.msk.f32.mxu0 %vm15362_vm5, %v15361_v46  ;;  %v6663_v61 = vld [vmem:[%s17314_s5] sm:$0xff]  ;;  %s17332_s5 = sld [smem:[#allocation74_spill]] }
0x296c   :  { %13808 = vmatprep.subr.mxu0 %v15361_v46  ;;  %v14313_v19 = vpack.c.bf16 %v6664_v1, %v6663_v61 }
0x296d   :  { %v6164_v47 = vpop.f32.mrb[66].mxu1 }
0x296e   :  { %v6165_v29 = vadd.f32 %v6164_v47, %v16356_v55  ;;  %v13797_v31 = vpop.f32.mrb[67].mxu1  ;;  %13801 = vmatmul.mubr.msk.f32.vlgmr.msra.gmra.mrb[42].mxu0 %vm676_vm6, %v6169_v44 }
0x296f   :  { %13810 = vmatprep.mubr.msk.f32.mxu0 %vm15362_vm5, %v15361_v46 }
0x2970   :  { %v6246_v52 = vsel %vm676_vm6, %v6165_v29, -inf }
0x2971   :  { %6247 = vmax.xlane.f32.xlu0 %v6246_v52 }
0x29fe   :  { %v6248_v53 = vpop.xlane.xlu0 %6247 }
0x29ff   :  { %v6252_v60 = vsub.f32 %v6165_v29, %v6248_v53 }
0x2a01   :  { %v6254_v62 = vmul.f32 1.442695, %v6252_v60 }
0x2a03   :  { %14664 = vpow2.f32 %v6254_v62 }
0x2a0d   :  { %v14665_v63 = vpop.eup %14664 }
0x2a0e   :  { %v6258_v59 = vsel %vm676_vm6, %v14665_v63, 0.0 }
0x2a0f   :  { %6259 = vadd.xlane.f32.xlu0 %v6258_v59 }
0x2a41   :  { %v6242_v2 = vpop.f32.mrb[42].mxu0 }
0x2a42   :  { %v6243_v55 = vadd.f32 %v6242_v2, %v16347_v48  ;;  %v13802_v3 = vpop.f32.mrb[43].mxu0 }
0x2a44   :  { %v6249_v4 = vsel %vm676_vm6, %v6243_v55, -inf }
0x2a45   :  { %6250 = vmax.xlane.f32.xlu1 %v6249_v4 }
0x2a56   :  { %6344 = vrot.lane.b32.xlu1 %v16319_v17, %s15373_s9  ;;  %v4647_v17 = vsel %vm517_vm0, %v4641_v42, 0.0 }
0x2a7a   :  { %4645 = vadd.xlane.f32.xlu1 %v4644_v8 }
0x2a9c   :  { %v6260_v37 = vpop.xlane.xlu0 %6259 }
0x2ad2   :  { %v6251_v9 = vpop.xlane.xlu1 %6250 }
0x2ad3   :  { %v6253_v10 = vsub.f32 %v6243_v55, %v6251_v9 }
0x2ad5   :  { %v6256_v11 = vmul.f32 1.442695, %v6253_v10 }
0x2ad6   :  { %v6345_v12 = vpop.permute.xlu1 %6344 }
0x2ad7   :  { %14666 = vpow2.f32 %v6256_v11  ;;  %13809 = vmatpush3.msra.mxu0 %v6345_v12 }
0x2ad8   :  { %14668 = vrcp.f32 %v6260_v37  ;;  %13813 = vmatprep.subr.mxu0 %v4855_v21  ;;  %v12871_v37 = vld [vmem:[#allocation29] ss:$0 sm:$0xff] }
0x2ae1   :  { %v14667_v48 = vpop.eup %14666 }
0x2ae2   :  { %v6261_v51 = vsel %vm676_vm6, %v14667_v48, 0.0  ;;  %v14669_v13 = vpop.eup %14668 }
0x2ae3   :  { %6262 = vadd.xlane.f32.xlu0 %v6261_v51  ;;  %v6265_v16 = vmul.f32 %v14669_v13, %v14665_v63 }
0x2af9   :  { %6268 = vrot.lane.b32.xlu0 %v16321_v24, %s15373_s9 }
0x2b07   :  { %v4646_v26 = vpop.xlane.xlu1 %4645 }
0x2b08   :  { %v4650_v58 = vmul.f32 0.03125, %v4646_v26 }
0x2b0a   :  { %v16500_v22 = vsub.f32 %v4640_v49, %v4650_v58 }
0x2b0c   :  { %v4654_v34 = vmul.f32 %v16500_v22, %v16500_v22 }
0x2b18   :  { %4648 = vadd.xlane.f32.xlu0 %v4647_v17 }
0x2b70   :  { %v6263_v40 = vpop.xlane.xlu0 %6262 }
0x2b71   :  { %14670 = vrcp.f32 %v6263_v40 }
0x2b74   :  { %v6269_v14 = vpop.permute.xlu0 %6268 }
0x2b75   :  { %13804 = vmatpush3.msra.mxu1 %v6269_v14  ;;  %v4684_v14 = vmul.f32 %v12871_v37, %v16500_v22 }
0x2b76   :  { %13806 = vmatmul.mubr.msk.f32.vlgmr.msra.gmra.mrb[68].mxu1 %vm676_vm6, %v6265_v16 }
0x2b7b   :  { %v14671_v18 = vpop.eup %14670 }
0x2b7c   :  { %v6267_v24 = vmul.f32 %v14671_v18, %v14667_v48  ;;  %v12872_v18 = vld [vmem:[#allocation28] ss:$0 sm:$0xff] }
0x2b7e   :  { %13811 = vmatmul.mubr.msk.f32.vlgmr.msra.gmra.mrb[44].mxu0 %vm676_vm6, %v6267_v24 }
0x2b7f   :  { %13814 = vmatpush3.msra.mxu0 %v4855_v21 }
0x2b80   :  { %14314 = vmatprep.subr.bf16.mxu0 %v14313_v19 }
0x2ba5   :  { %v4649_v25 = vpop.xlane.xlu0 %4648 }
0x2ba6   :  { %v4651_v57 = vmul.f32 0.03125, %v4649_v25  ;;  %v6573_v25 = vld [vmem:[%s17315_s6 + $0x10] sm:$0xff] }
0x2ba8   :  { %v16498_v0 = vsub.f32 %v4641_v42, %v4651_v57  ;;  %v6574_v57 = vld [vmem:[%s17315_s6 + $0x18] sm:$0xff] }
0x2ba9   :  { %v14309_v58 = vpack.c.bf16 %v6574_v57, %v6573_v25 }
0x2baa   :  { %v4655_v30 = vmul.f32 %v16498_v0, %v16498_v0  ;;  %v4685_v40 = vmul.f32 %v12871_v37, %v16498_v0 }
0x2c49   :  { %v6340_v41 = vpop.f32.mrb[68].mxu1 }
0x2c4a   :  { %v13807_v39 = vpop.f32.mrb[69].mxu1  ;;  %13815 = vmatprep.mubr.msk.f32.mxu0 %vm676_vm6, %v6340_v41 }
0x2c51   :  { %v6416_v7 = vpop.f32.mrb[44].mxu0 }
0x2c52   :  { %v13812_v23 = vpop.f32.mrb[45].mxu0  ;;  %13816 = vmatmul.mubr.msk.f32.vlgmr.msra.gmra.mrb[38].mxu0 %vm676_vm6, %v6416_v7  ;;  %v6571_v7 = vld [vmem:[%s17315_s6] sm:$0xff] }
0x2c53   :  { %14316 = vmatpush3.bf16.msra.mxu0 %v14313_v19  ;;  %v6572_v23 = vld [vmem:[%s17315_s6 + $0x8] sm:$0xff]  ;;  %v12911_v19 = vld [vmem:[%s17316_s13] ss:$0 sm:$0xff]  ;;  %s17338_s6 = sld [smem:[#allocation78_spill]]  ;;  %s17339_s13 = sld [smem:[#allocation77_spill]] }
0x2c54   :  { %14318 = vmatprep.subr.bf16.mxu0 %v14317_v36  ;;  %v14305_v26 = vpack.c.bf16 %v6572_v23, %v6571_v7 }
0x2c56   :  { %14306 = vmatprep.subr.bf16.mxu1 %v14305_v26 }
0x2c57   :  { %14320 = vmatpush3.bf16.msra.mxu0 %v14317_v36  ;;  %14308 = vmatpush3.bf16.msra.mxu1 %v14305_v26 }
0x2c58   :  { %13850 = vmatprep.subr.mxu0 %v15361_v46  ;;  %14310 = vmatprep.subr.bf16.mxu1 %v14309_v58 }
0x2c5b   :  { %14312 = vmatpush3.bf16.msra.mxu1 %v14309_v58 }
0x2c5c   :  { %13840 = vmatprep.subr.mxu1 %v15361_v46 }
0x2d25   :  { %v13817_v50 = vpop.f32.mrb[38].mxu0 }
0x2d26   :  { %v6510_v28 = vadd.f32 %v13817_v50, %v12910_v27  ;;  %v6492_v56 = vpop.f32.mrb[39].mxu0 }
0x2d27   :  { %v6509_v54 = vadd.f32 %v12910_v27, %v6492_v56 }
0x2d28   :  { %v16503_v32 = vadd.f32 %v6510_v28, %v16248_v45  ;;  %v4659_v45 = vsel %vm517_vm0, %v4655_v30, 0.0 }
0x2d29   :  { %v16506_v33 = vadd.f32 %v6509_v54, %v16243_v43  ;;  %v4656_v43 = vsel %vm517_vm0, %v4654_v34, 0.0 }
0x2d2a   :  { %v6518_v15 = vsel %vm517_vm0, %v16503_v32, 0.0 }
0x2d2b   :  { %6519 = vadd.xlane.f32.xlu1 %v6518_v15  ;;  %v6515_v5 = vsel %vm517_vm0, %v16506_v33, 0.0 }
0x2d2c   :  { %6516 = vadd.xlane.f32.xlu0 %v6515_v5 }
0x2d2f   :  { %4660 = vadd.xlane.f32.xlu1 %v4659_v45 }
0x2d30   :  { %4657 = vadd.xlane.f32.xlu0 %v4656_v43 }
0x2db8   :  { %v6520_v38 = vpop.xlane.xlu1 %6519 }
0x2db9   :  { %v6522_v44 = vmul.f32 0.03125, %v6520_v38  ;;  %v6517_v47 = vpop.xlane.xlu0 %6516 }
0x2dba   :  { %v6521_v29 = vmul.f32 0.03125, %v6517_v47  ;;  %v12912_v47 = vld [vmem:[%s17317_s27] ss:$0 sm:$0xff]  ;;  %s17340_s27 = sld [smem:[#allocation73_spill]] }
0x2dbb   :  { %v16524_v31 = vsub.f32 %v16503_v32, %v6522_v44 }
0x2dbc   :  { %v16527_v52 = vsub.f32 %v16506_v33, %v6521_v29  ;;  %v4661_v53 = vpop.xlane.xlu1 %4660 }
0x2dbd   :  { %v4663_v60 = vmul.f32 0.032258064, %v4661_v53  ;;  %v4658_v62 = vpop.xlane.xlu0 %4657  ;;  %v6526_v63 = vmul.f32 %v16524_v31, %v16524_v31  ;;  %v6556_v20 = vmul.f32 %v12911_v19, %v16524_v31 }
0x2dbe   :  { %v4662_v59 = vmul.f32 0.032258064, %v4658_v62  ;;  %v6525_v2 = vmul.f32 %v16527_v52, %v16527_v52  ;;  %v6555_v38 = vmul.f32 %v12911_v19, %v16527_v52 }
0x2dbf   :  { %14672 = vrsqrt.f32 %v4663_v60  ;;  %v6530_v55 = vsel %vm517_vm0, %v6526_v63, 0.0  ;;  %vm4673_vm12 = vcmp.eq.f32.partialorder %v4663_v60, inf  ;;  %v4676_v8 = vand.u32 2147483648, %v4663_v60  ;;  %v12916_v63 = vld [vmem:[%s17318_s4] ss:$0 sm:$0xff]  ;;  %s17348_s4 = sld [smem:[#allocation69_spill]] }
0x2dc0   :  { %14674 = vrsqrt.f32 %v4662_v59  ;;  %v6527_v3 = vsel %vm517_vm0, %v6525_v2, 0.0  ;;  %6531 = vadd.xlane.f32.xlu1 %v6530_v55  ;;  %vm4675_vm13 = vcmp.eq.f32.partialorder %v4663_v60, 0.0  ;;  %vm4666_vm14 = vcmp.eq.f32.partialorder %v4662_v59, inf  ;;  %v12913_v55 = vld [vmem:[%s17319_s2] ss:$0 sm:$0xff]  ;;  %s15374_s2 = smov [#allocation31]  }
0x2dc1   :  { %6528 = vadd.xlane.f32.xlu0 %v6527_v3  ;;  %v4669_v11 = vand.u32 2147483648, %v4662_v59  ;;  %vm4668_vm15 = vcmp.eq.f32.partialorder %v4662_v59, 0.0 }
0x2dc9   :  { %v14673_v4 = vpop.eup %14672 }
0x2dca   :  { %v14675_v6 = vpop.eup %14674  ;;  %v4672_v49 = vmul.f32 %v14673_v4, %v4663_v60 }
0x2dcb   :  { %v4665_v9 = vmul.f32 %v14675_v6, %v4662_v59 }
0x2dcc   :  { %v4674_v10 = vsel %vm4673_vm12, %v4663_v60, %v4672_v49 }
0x2dcd   :  { %v4677_v12 = vsel %vm4675_vm13, %v4676_v8, %v4674_v10  ;;  %v4667_v48 = vsel %vm4666_vm14, %v4662_v59, %v4665_v9  ;;  %v16587_v10 = vld [vmem:[%s17320_s8 + $0x8] sm:$0xff] }
0x2dce   :  { %v4687_v51 = vadd.f32 1e-06, %v4677_v12  ;;  %v4670_v42 = vsel %vm4668_vm15, %v4669_v11, %v4667_v48 }
0x2dcf   :  { %v4686_v17 = vadd.f32 1e-06, %v4670_v42 }
0x2dd0   :  { %14676 = vrcp.f32 %v4687_v51 }
0x2dd1   :  { %14678 = vrcp.f32 %v4686_v17 }
0x2dda   :  { %v14677_v13 = vpop.eup %14676 }
0x2ddb   :  { %v14679_v16 = vpop.eup %14678  ;;  %v4691_v24 = vmul.f32 %v14677_v13, %v4685_v40 }
0x2ddc   :  { %v4689_v21 = vmul.f32 %v14679_v16, %v4684_v14  ;;  %v16598_v16 = vld [vmem:[%s17320_s8] sm:$0xff] }
0x2ddd   :  { %v16539_v39 = vadd.f32 %v12872_v18, %v4691_v24 }
0x2dde   :  { %v16537_v41 = vadd.f32 %v12872_v18, %v4689_v21 }
0x2de0   :  { %13837 = vmatprep.mubr.msk.f32.mxu0 %vm517_vm0, %v16537_v41 }
0x2de1   :  { %13838 = vmatmul.mubr.msk.f32.vlgmr.msra.gmra.mrb[46].mxu0 %vm517_vm0, %v16539_v39 }
0x2de2   :  { %13852 = vmatprep.mubr.msk.f32.mxu0 %vm15362_vm5, %v15361_v46 }
0x2e4d   :  { %v6532_v27 = vpop.xlane.xlu1 %6531 }
0x2e4e   :  { %v6529_v50 = vpop.xlane.xlu0 %6528  ;;  %v6534_v0 = vmul.f32 0.032258064, %v6532_v27 }
0x2e4f   :  { %v6533_v28 = vmul.f32 0.032258064, %v6529_v50 }
0x2e50   :  { %14680 = vrsqrt.f32 %v6534_v0  ;;  %vm6544_vm1 = vcmp.eq.f32.partialorder %v6534_v0, inf  ;;  %v6547_v15 = vand.u32 2147483648, %v6534_v0  ;;  %vm6546_vm2 = vcmp.eq.f32.partialorder %v6534_v0, 0.0 }
0x2e51   :  { %14682 = vrsqrt.f32 %v6533_v28  ;;  %vm6537_vm3 = vcmp.eq.f32.partialorder %v6533_v28, inf  ;;  %v6540_v34 = vand.u32 2147483648, %v6533_v28  ;;  %vm6539_vm4 = vcmp.eq.f32.partialorder %v6533_v28, 0.0 }
0x2e5a   :  { %v14681_v56 = vpop.eup %14680 }
0x2e5b   :  { %v14683_v22 = vpop.eup %14682  ;;  %v6543_v54 = vmul.f32 %v14681_v56, %v6534_v0 }
0x2e5c   :  { %v6536_v30 = vmul.f32 %v14683_v22, %v6533_v28 }
0x2e5d   :  { %v6545_v5 = vsel %vm6544_vm1, %v6534_v0, %v6543_v54 }
0x2e5e   :  { %v6548_v45 = vsel %vm6546_vm2, %v6547_v15, %v6545_v5  ;;  %v6538_v43 = vsel %vm6537_vm3, %v6533_v28, %v6536_v30 }
0x2e5f   :  { %v6558_v61 = vadd.f32 1e-06, %v6548_v45  ;;  %v6541_v1 = vsel %vm6539_vm4, %v6540_v34, %v6538_v43 }
0x2e60   :  { %v6557_v35 = vadd.f32 1e-06, %v6541_v1 }
0x2e61   :  { %14684 = vrcp.f32 %v6558_v61 }
0x2e62   :  { %14686 = vrcp.f32 %v6557_v35 }
0x2e6b   :  { %v14685_v36 = vpop.eup %14684 }
0x2e6c   :  { %v14687_v44 = vpop.eup %14686  ;;  %v6562_v29 = vmul.f32 %v14685_v36, %v6556_v20 }
0x2e6d   :  { %v6560_v53 = vmul.f32 %v14687_v44, %v6555_v38 }
0x2e6e   :  { %v6570_v62 = vadd.f32 %v12912_v47, %v6562_v29 }
0x2e6f   :  { %v6569_v60 = vadd.f32 %v12912_v47, %v6560_v53 }
0x2e71   :  { %13826 = vmatprep.mubr.msk.f32.mxu1 %vm517_vm0, %v6569_v60 }
0x2e72   :  { %13827 = vmatmul.mubr.msk.f32.vlgmr.msra.gmra.mrb[70].mxu1 %vm517_vm0, %v6570_v62 }
0x2e73   :  { %13842 = vmatprep.mubr.msk.f32.mxu1 %vm15362_vm5, %v15361_v46 }
0x2eb4   :  { %v13839_v59 = vpop.f32.mrb[46].mxu0 }
0x2eb5   :  { %v16561_v31 = vadd.f32 %v13839_v59, %v12916_v63  ;;  %v6746_v2 = vpop.f32.mrb[47].mxu0 }
0x2eb6   :  { %v16563_v52 = vadd.f32 %v12916_v63, %v6746_v2 }
0x2eb7   :  { %7166 = vrot.lane.b32.xlu1 %v16561_v31, %s15365_s23 }
0x2eb8   :  { %13841 = vmatpush3.xpose.msk.msra.mxu1 %vm676_vm6, %v16563_v52 }
0x2eb9   :  { %13845 = vmatprep.subr.mxu1 %v15361_v46 }
0x2f29   :  { %v7167_v21 = vpop.permute.xlu1 %7166 }
0x2f45   :  { %v13828_v3 = vpop.f32.mrb[70].mxu1 }
0x2f46   :  { %v6654_v4 = vpop.f32.mrb[71].mxu1  ;;  %v16579_v49 = vadd.f32 %v13828_v3, %v12913_v55 }
0x2f47   :  { %v16571_v6 = vadd.f32 %v12913_v55, %v6654_v4 }
0x2f49   :  { %13843 = vmatmul.mubr.msk.f32.vlgmr.msra.gmra.mrb[72].mxu1 %vm676_vm6, %v16571_v6 }
0x2f4a   :  { %13846 = vmatpush3.xpose.msk.msra.mxu1 %vm676_vm6, %v16561_v31  ;;  %13847 = vmatprep.mubr.msk.f32.mxu1 %vm15362_vm5, %v15361_v46 }
0x2f4b   :  { %13855 = vmatprep.subr.mxu1 %v15361_v46 }
0x2f4d   :  { %13848 = vmatmul.mubr.msk.f32.vlgmr.msra.gmra.mrb[74].mxu1 %vm676_vm6, %v16579_v49 }
0x2f4e   :  { %13857 = vmatprep.mubr.msk.f32.mxu1 %vm15362_vm5, %v15361_v46 }
0x301c   :  { %v6832_v8 = vpop.f32.mrb[72].mxu1 }
0x301d   :  { %v13844_v9 = vpop.f32.mrb[73].mxu1  ;;  %v6833_v18 = vadd.f32 %v6832_v8, %v16598_v16 }
0x301f   :  { %v6912_v24 = vsel %vm676_vm6, %v6833_v18, -inf }
0x3020   :  { %v6908_v11 = vpop.f32.mrb[74].mxu1 }
0x3021   :  { %v6909_v12 = vadd.f32 %v6908_v11, %v16587_v10  ;;  %v13849_v48 = vpop.f32.mrb[75].mxu1 }
0x3023   :  { %v6915_v51 = vsel %vm676_vm6, %v6909_v12, -inf }
0x3024   :  { %6916 = vmax.xlane.f32.xlu0 %v6915_v51 }
0x303a   :  { %7010 = vrot.lane.b32.xlu0 %v16561_v31, %s15363_s18 }
0x30b1   :  { %v6917_v42 = vpop.xlane.xlu0 %6916 }
0x30b2   :  { %v6919_v17 = vsub.f32 %v6909_v12, %v6917_v42 }
0x30b4   :  { %v6922_v37 = vmul.f32 1.442695, %v6919_v17 }
0x30b5   :  { %v7011_v40 = vpop.permute.xlu0 %7010 }
0x30b6   :  { %14688 = vpow2.f32 %v6922_v37  ;;  %13856 = vmatpush3.msra.mxu1 %v7011_v40 }
0x30b7   :  { %13865 = vmatprep.subr.mxu1 %v15361_v46 }
0x30c0   :  { %v14689_v13 = vpop.eup %14688 }
0x30c1   :  { %v6927_v14 = vsel %vm676_vm6, %v14689_v13, 0.0 }
0x30c2   :  { %6928 = vadd.xlane.f32.xlu1 %v6927_v14 }
0x30d3   :  { %7164 = vrot.lane.b32.xlu1 %v16579_v49, %s15365_s23 }
0x30f7   :  { %6913 = vmax.xlane.f32.xlu1 %v6912_v24 }
0x3108   :  { %7088 = vrot.lane.b32.xlu1 %v16563_v52, %s15365_s23 }
0x310c   :  { %7086 = vrot.lane.b32.xlu1 %v16571_v6, %s15365_s23 }
0x3110   :  { %7580 = vrot.lane.b32.xlu1 %v16563_v52, %s15369_s17 }
0x314f   :  { %v6929_v7 = vpop.xlane.xlu1 %6928 }
0x3150   :  { %14690 = vrcp.f32 %v6929_v7 }
0x3153   :  { %v7165_v26 = vpop.permute.xlu1 %7164 }
0x315a   :  { %v14691_v23 = vpop.eup %14690 }
0x315b   :  { %v6933_v25 = vmul.f32 %v14691_v23, %v14689_v13 }
0x315d   :  { %13858 = vmatmul.mubr.msk.f32.vlgmr.msra.gmra.mrb[76].mxu1 %vm676_vm6, %v6933_v25 }
0x315e   :  { %13866 = vmatpush3.xpose.msk.msra.mxu1 %vm676_vm6, %v7167_v21  ;;  %13867 = vmatprep.mubr.msk.f32.mxu1 %vm15362_vm5, %v15361_v46 }
0x315f   :  { %13875 = vmatprep.subr.mxu1 %v15361_v46 }
0x3161   :  { %13868 = vmatmul.mubr.msk.f32.vlgmr.msra.gmra.mrb[78].mxu1 %vm676_vm6, %v7165_v26 }
0x3162   :  { %13877 = vmatprep.mubr.msk.f32.mxu1 %vm15362_vm5, %v15361_v46 }
0x3184   :  { %v6914_v57 = vpop.xlane.xlu1 %6913 }
0x3185   :  { %v6918_v58 = vsub.f32 %v6833_v18, %v6914_v57 }
0x3187   :  { %v6920_v27 = vmul.f32 1.442695, %v6918_v58 }
0x3188   :  { %v7089_v54 = vpop.permute.xlu1 %7088 }
0x3189   :  { %14692 = vpow2.f32 %v6920_v27  ;;  %v6756_v27 = vld [vmem:[%s17321_s30 + $0x8] sm:$0xff] }
0x318c   :  { %v7087_v34 = vpop.permute.xlu1 %7086 }
0x3190   :  { %v7581_v59 = vpop.permute.xlu1 %7580 }
0x3193   :  { %v14693_v50 = vpop.eup %14692 }
0x3194   :  { %v6924_v0 = vsel %vm676_vm6, %v14693_v50, 0.0 }
0x3195   :  { %6925 = vadd.xlane.f32.xlu0 %v6924_v0 }
0x31ab   :  { %6934 = vrot.lane.b32.xlu0 %v16563_v52, %s15363_s18 }
0x3222   :  { %v6926_v28 = vpop.xlane.xlu0 %6925 }
0x3223   :  { %14694 = vrcp.f32 %v6926_v28 }
0x3226   :  { %v6935_v56 = vpop.permute.xlu0 %6934 }
0x3227   :  { %13851 = vmatpush3.msra.mxu0 %v6935_v56 }
0x3228   :  { %13860 = vmatprep.subr.mxu0 %v15361_v46 }
0x322d   :  { %v14695_v22 = vpop.eup %14694 }
0x322e   :  { %v6931_v15 = vmul.f32 %v14695_v22, %v14693_v50  ;;  %v6755_v50 = vld [vmem:[%s17321_s30] sm:$0xff] }
0x3230   :  { %13853 = vmatmul.mubr.msk.f32.vlgmr.msra.gmra.mrb[48].mxu0 %vm676_vm6, %v6931_v15  ;;  %v16621_v30 = vpop.f32.mrb[76].mxu1 }
0x3231   :  { %13861 = vmatpush3.xpose.msk.msra.mxu0 %vm676_vm6, %v7089_v54  ;;  %v13859_v5 = vpop.f32.mrb[77].mxu1  ;;  %13862 = vmatprep.mubr.msk.f32.mxu0 %vm15362_vm5, %v15361_v46 }
0x3232   :  { %13870 = vmatprep.subr.mxu0 %v15361_v46 }
0x3234   :  { %13863 = vmatmul.mubr.msk.f32.vlgmr.msra.gmra.mrb[50].mxu0 %vm676_vm6, %v7087_v34  ;;  %v7238_v45 = vpop.f32.mrb[78].mxu1 }
0x3235   :  { %v7239_v43 = vadd.f32 %v7238_v45, %v16587_v10  ;;  %v13869_v61 = vpop.f32.mrb[79].mxu1  ;;  %13872 = vmatprep.mubr.msk.f32.mxu0 %vm15362_vm5, %v15361_v46 }
0x3237   :  { %v7245_v1 = vsel %vm676_vm6, %v7239_v43, -inf }
0x3238   :  { %7246 = vmax.xlane.f32.xlu0 %v7245_v1 }
0x324e   :  { %7340 = vrot.lane.b32.xlu0 %v16561_v31, %s15364_s22 }
0x3252   :  { %7578 = vrot.lane.b32.xlu0 %v16571_v6, %s15369_s17 }
0x3256   :  { %7656 = vrot.lane.b32.xlu0 %v16579_v49, %s15369_s17 }
0x32c5   :  { %v7247_v35 = vpop.xlane.xlu0 %7246 }
0x32c6   :  { %v7249_v19 = vsub.f32 %v7239_v43, %v7247_v35 }
0x32c8   :  { %v7252_v20 = vmul.f32 1.442695, %v7249_v19  ;;  %v6757_v19 = vld [vmem:[%s17321_s30 + $0x10] sm:$0xff] }
0x32c9   :  { %v7341_v36 = vpop.permute.xlu0 %7340 }
0x32ca   :  { %14696 = vpow2.f32 %v7252_v20  ;;  %13876 = vmatpush3.msra.mxu1 %v7341_v36 }
0x32cb   :  { %13890 = vmatprep.subr.mxu1 %v15361_v46 }
0x32cd   :  { %v7579_v4 = vpop.permute.xlu0 %7578 }
0x32d1   :  { %v7657_v9 = vpop.permute.xlu0 %7656 }
0x32d4   :  { %v14697_v38 = vpop.eup %14696 }
0x32d5   :  { %v7257_v44 = vsel %vm676_vm6, %v14697_v38, 0.0 }
0x32d6   :  { %7258 = vadd.xlane.f32.xlu1 %v7257_v44 }
0x32e7   :  { %7658 = vrot.lane.b32.xlu1 %v16561_v31, %s15369_s17 }
0x3303   :  { %v16642_v47 = vpop.f32.mrb[48].mxu0 }
0x3304   :  { %v13854_v29 = vpop.f32.mrb[49].mxu0 }
0x3307   :  { %v7160_v53 = vpop.f32.mrb[50].mxu0 }
0x3308   :  { %v7161_v60 = vadd.f32 %v7160_v53, %v16598_v16  ;;  %v13864_v62 = vpop.f32.mrb[51].mxu0 }
0x330a   :  { %v7242_v63 = vsel %vm676_vm6, %v7161_v60, -inf }
0x330b   :  { %7243 = vmax.xlane.f32.xlu1 %v7242_v63 }
0x3363   :  { %v7259_v2 = vpop.xlane.xlu1 %7258 }
0x3364   :  { %14698 = vrcp.f32 %v7259_v2 }
0x3367   :  { %v7659_v8 = vpop.permute.xlu1 %7658 }
0x336e   :  { %v14699_v55 = vpop.eup %14698 }
0x336f   :  { %v7263_v3 = vmul.f32 %v14699_v55, %v14697_v38 }
0x3371   :  { %13878 = vmatmul.mubr.msk.f32.vlgmr.msra.gmra.mrb[80].mxu1 %vm676_vm6, %v7263_v3 }
0x3372   :  { %13891 = vmatpush3.xpose.msk.msra.mxu1 %vm676_vm6, %v7581_v59  ;;  %13892 = vmatprep.mubr.msk.f32.mxu1 %vm15362_vm5, %v15361_v46 }
0x3373   :  { %13895 = vmatprep.subr.mxu1 %v15361_v46 }
0x3375   :  { %13893 = vmatmul.mubr.msk.f32.vlgmr.msra.gmra.mrb[82].mxu1 %vm676_vm6, %v7579_v4 }
0x3376   :  { %13896 = vmatpush3.xpose.msk.msra.mxu1 %vm676_vm6, %v7659_v8  ;;  %13897 = vmatprep.mubr.msk.f32.mxu1 %vm15362_vm5, %v15361_v46 }
0x3377   :  { %13905 = vmatprep.subr.mxu1 %v15361_v46 }
0x3379   :  { %13898 = vmatmul.mubr.msk.f32.vlgmr.msra.gmra.mrb[84].mxu1 %vm676_vm6, %v7657_v9 }
0x337a   :  { %13907 = vmatprep.mubr.msk.f32.mxu1 %vm15362_vm5, %v15361_v46 }
0x3398   :  { %v7244_v11 = vpop.xlane.xlu1 %7243 }
0x3399   :  { %v7248_v12 = vsub.f32 %v7161_v60, %v7244_v11 }
0x339b   :  { %v7250_v48 = vmul.f32 1.442695, %v7248_v12 }
0x339d   :  { %14700 = vpow2.f32 %v7250_v48 }
0x33a7   :  { %v14701_v51 = vpop.eup %14700 }
0x33a8   :  { %v7254_v42 = vsel %vm676_vm6, %v14701_v51, 0.0 }
0x33a9   :  { %7255 = vadd.xlane.f32.xlu0 %v7254_v42 }
0x33bf   :  { %7264 = vrot.lane.b32.xlu0 %v16563_v52, %s15364_s22 }
0x33c3   :  { %7832 = vrot.lane.b32.xlu0 %v16561_v31, %s15366_s26 }
0x33c7   :  { %7993 = vrot.lane.b32.xlu0 %v16563_v52, %s15372_s1 }
0x33cb   :  { %8071 = vrot.lane.b32.xlu0 %v16561_v31, %s15372_s1 }
0x33cf   :  { %7991 = vrot.lane.b32.xlu0 %v16571_v6, %s15372_s1 }
0x3436   :  { %v7256_v17 = vpop.xlane.xlu0 %7255 }
0x3437   :  { %14702 = vrcp.f32 %v7256_v17 }
0x343a   :  { %v7265_v37 = vpop.permute.xlu0 %7264 }
0x343b   :  { %13871 = vmatpush3.msra.mxu0 %v7265_v37 }
0x343c   :  { %13880 = vmatprep.subr.mxu0 %v6756_v27 }
0x343e   :  { %v7833_v40 = vpop.permute.xlu0 %7832 }
0x343f   :  { %13906 = vmatpush3.msra.mxu1 %v7833_v40 }
0x3440   :  { %13915 = vmatprep.subr.mxu1 %v15361_v46 }
0x3441   :  { %v14703_v13 = vpop.eup %14702 }
0x3442   :  { %v7261_v14 = vmul.f32 %v14703_v13, %v14701_v51  ;;  %v7994_v36 = vpop.permute.xlu0 %7993 }
0x3444   :  { %13873 = vmatmul.mubr.msk.f32.vlgmr.msra.gmra.mrb[52].mxu0 %vm676_vm6, %v7261_v14  ;;  %v7412_v18 = vpop.f32.mrb[80].mxu1 }
0x3445   :  { %v13879_v24 = vpop.f32.mrb[81].mxu1  ;;  %13881 = vmatpush3.msra.mxu0 %v6756_v27 }
0x3446   :  { %13885 = vmatprep.subr.mxu0 %v6755_v50  ;;  %v8072_v29 = vpop.permute.xlu0 %8071 }
0x3448   :  { %v7652_v21 = vpop.f32.mrb[82].mxu1 }
0x3449   :  { %v7653_v7 = vadd.f32 %v7652_v21, %v16598_v16  ;;  %v13894_v6 = vpop.f32.mrb[83].mxu1 }
0x344a   :  { %v7992_v53 = vpop.permute.xlu0 %7991 }
0x344b   :  { %v7734_v23 = vsel %vm676_vm6, %v7653_v7, -inf }
0x344c   :  { %7735 = vmax.xlane.f32.xlu1 %v7734_v23  ;;  %v7730_v25 = vpop.f32.mrb[84].mxu1 }
0x344d   :  { %v7731_v26 = vadd.f32 %v7730_v25, %v16587_v10  ;;  %v13899_v57 = vpop.f32.mrb[85].mxu1 }
0x344e   :  { %v6758_v57 = vld [vmem:[%s17321_s30 + $0x18] sm:$0xff] }
0x344f   :  { %v7737_v58 = vsel %vm676_vm6, %v7731_v26, -inf }
0x3450   :  { %7738 = vmax.xlane.f32.xlu1 %v7737_v58 }
0x34d9   :  { %v7736_v0 = vpop.xlane.xlu1 %7735 }
0x34da   :  { %v7740_v28 = vsub.f32 %v7653_v7, %v7736_v0  ;;  %v12951_v0 = vld [vmem:[%s17322_s7] ss:$0 sm:$0xff] }
0x34dc   :  { %v7742_v56 = vmul.f32 1.442695, %v7740_v28 }
0x34dd   :  { %v7739_v22 = vpop.xlane.xlu1 %7738 }
0x34de   :  { %14704 = vpow2.f32 %v7742_v56  ;;  %v7741_v54 = vsub.f32 %v7731_v26, %v7739_v22 }
0x34e0   :  { %v7744_v15 = vmul.f32 1.442695, %v7741_v54 }
0x34e2   :  { %14706 = vpow2.f32 %v7744_v15 }
0x34e8   :  { %v14705_v5 = vpop.eup %14704 }
0x34e9   :  { %v7746_v34 = vsel %vm676_vm6, %v14705_v5, 0.0 }
0x34ea   :  { %7747 = vadd.xlane.f32.xlu1 %v7746_v34 }
0x34ec   :  { %v14707_v45 = vpop.eup %14706 }
0x34ed   :  { %v7749_v43 = vsel %vm676_vm6, %v14707_v45, 0.0 }
0x34ee   :  { %7750 = vadd.xlane.f32.xlu1 %v7749_v43 }
0x34ff   :  { %7756 = vrot.lane.b32.xlu1 %v16563_v52, %s15366_s26 }
0x3503   :  { %8069 = vrot.lane.b32.xlu1 %v16579_v49, %s15372_s1 }
0x3517   :  { %v7336_v61 = vpop.f32.mrb[52].mxu0 }
0x3518   :  { %v13874_v1 = vpop.f32.mrb[53].mxu0  ;;  %13882 = vmatprep.mubr.msk.f32.mxu0 %vm676_vm6, %v7336_v61 }
0x3519   :  { %13883 = vmatmul.mubr.msk.f32.vlgmr.msra.gmra.mrb[54].mxu0 %vm676_vm6, %v7412_v18 }
0x351a   :  { %13887 = vmatprep.mubr.msk.f32.mxu0 %vm676_vm6, %v16642_v47  ;;  %13886 = vmatpush3.msra.mxu0 %v6755_v50 }
0x351b   :  { %13900 = vmatprep.subr.mxu0 %v15361_v46 }
0x3521   :  { %13888 = vmatmul.mubr.msk.f32.vlgmr.msra.gmra.mrb[54].mxu0 %vm676_vm6, %v16621_v30 }
0x3522   :  { %13902 = vmatprep.mubr.msk.f32.mxu0 %vm15362_vm5, %v15361_v46 }
0x3577   :  { %v7748_v35 = vpop.xlane.xlu1 %7747 }
0x3578   :  { %14708 = vrcp.f32 %v7748_v35 }
0x357b   :  { %v7751_v49 = vpop.xlane.xlu1 %7750 }
0x357c   :  { %14710 = vrcp.f32 %v7751_v49 }
0x357f   :  { %v7757_v20 = vpop.permute.xlu1 %7756 }
0x3580   :  { %13901 = vmatpush3.msra.mxu0 %v7757_v20 }
0x3581   :  { %13910 = vmatprep.subr.mxu0 %v6757_v19 }
0x3582   :  { %v14709_v38 = vpop.eup %14708 }
0x3583   :  { %v7753_v44 = vmul.f32 %v14709_v38, %v14705_v5  ;;  %v8070_v2 = vpop.permute.xlu1 %8069  ;;  %v8472_v38 = vld [vmem:[%s17323_s10] sm:$0xff] }
0x3585   :  { %13903 = vmatmul.mubr.msk.f32.vlgmr.msra.gmra.mrb[56].mxu0 %vm676_vm6, %v7753_v44  ;;  %v8473_v44 = vld [vmem:[%s17323_s10 + $0x8] sm:$0xff] }
0x3586   :  { %v14711_v47 = vpop.eup %14710  ;;  %13911 = vmatpush3.msra.mxu0 %v6757_v19 }
0x3587   :  { %v7755_v30 = vmul.f32 %v14711_v47, %v14707_v45  ;;  %13920 = vmatprep.subr.mxu0 %v15361_v46  ;;  %v8474_v47 = vld [vmem:[%s17323_s10 + $0x10] sm:$0xff] }
0x3589   :  { %13908 = vmatmul.mubr.msk.f32.vlgmr.msra.gmra.mrb[86].mxu1 %vm676_vm6, %v7755_v30  ;;  %v8475_v30 = vld [vmem:[%s17323_s10 + $0x18] sm:$0xff] }
0x358a   :  { %13916 = vmatpush3.xpose.msk.msra.mxu1 %vm676_vm6, %v7994_v36  ;;  %13917 = vmatprep.mubr.msk.f32.mxu1 %vm15362_vm5, %v15361_v46 }
0x358b   :  { %13925 = vmatprep.subr.mxu1 %v15361_v46 }
0x358d   :  { %13918 = vmatmul.mubr.msk.f32.vlgmr.msra.gmra.mrb[88].mxu1 %vm676_vm6, %v7992_v53  ;;  %v14325_v53 = vpack.c.bf16 %v8475_v30, %v8474_v47 }
0x358e   :  { %13927 = vmatprep.mubr.msk.f32.mxu1 %vm15362_vm5, %v15361_v46 }
0x3658   :  { %v7828_v60 = vpop.f32.mrb[56].mxu0 }
0x3659   :  { %v13904_v62 = vpop.f32.mrb[57].mxu0  ;;  %13912 = vmatprep.mubr.msk.f32.mxu0 %vm676_vm6, %v7828_v60  ;;  %v8566_v60 = vld [vmem:[%s17324_s11] sm:$0xff] }
0x365a   :  { %v8567_v62 = vld [vmem:[%s17324_s11 + $0x8] sm:$0xff] }
0x365c   :  { %v7904_v63 = vpop.f32.mrb[86].mxu1 }
0x365d   :  { %v13909_v59 = vpop.f32.mrb[87].mxu1  ;;  %13913 = vmatmul.mubr.msk.f32.vlgmr.msra.gmra.mrb[54].mxu0 %vm676_vm6, %v7904_v63  ;;  %v8568_v63 = vld [vmem:[%s17324_s11 + $0x10] sm:$0xff] }
0x365e   :  { %13921 = vmatpush3.xpose.msk.msra.mxu0 %vm676_vm6, %v8072_v29  ;;  %13922 = vmatprep.mubr.msk.f32.mxu0 %vm15362_vm5, %v15361_v46  ;;  %v14321_v29 = vpack.c.bf16 %v8473_v44, %v8472_v38  ;;  %v14329_v59 = vpack.c.bf16 %v8567_v62, %v8566_v60 }
0x365f   :  { %13930 = vmatprep.subr.mxu0 %v15361_v46 }
0x3660   :  { %v8065_v55 = vpop.f32.mrb[88].mxu1 }
0x3661   :  { %v8066_v3 = vadd.f32 %v8065_v55, %v16598_v16  ;;  %v13919_v4 = vpop.f32.mrb[89].mxu1  ;;  %13923 = vmatmul.mubr.msk.f32.vlgmr.msra.gmra.mrb[58].mxu0 %vm676_vm6, %v8070_v2  ;;  %v8569_v2 = vld [vmem:[%s17324_s11 + $0x18] sm:$0xff] }
0x3662   :  { %13932 = vmatprep.mubr.msk.f32.mxu0 %vm15362_vm5, %v15361_v46  ;;  %v14333_v55 = vpack.c.bf16 %v8569_v2, %v8568_v63  ;;  %v8571_v4 = vld [vmem:[%s17324_s11 + $0x28] sm:$0xff] }
0x3663   :  { %v8147_v8 = vsel %vm676_vm6, %v8066_v3, -inf  ;;  %v8723_v2 = vld [vmem:[%s17329_s12 + $0x8] sm:$0xff] }
0x3664   :  { %8148 = vmax.xlane.f32.xlu0 %v8147_v8 }
0x36f1   :  { %v8149_v9 = vpop.xlane.xlu0 %8148 }
0x36f2   :  { %v8153_v11 = vsub.f32 %v8066_v3, %v8149_v9  ;;  %v8570_v3 = vld [vmem:[%s17324_s11 + $0x20] sm:$0xff] }
0x36f3   :  { %v14337_v8 = vpack.c.bf16 %v8571_v4, %v8570_v3  ;;  %v8725_v4 = vld [vmem:[%s17329_s12 + $0x18] sm:$0xff] }
0x36f4   :  { %v8155_v12 = vmul.f32 1.442695, %v8153_v11 }
0x36f6   :  { %14712 = vpow2.f32 %v8155_v12 }
0x3700   :  { %v14713_v48 = vpop.eup %14712 }
0x3701   :  { %v8159_v51 = vsel %vm676_vm6, %v14713_v48, 0.0 }
0x3702   :  { %8160 = vadd.xlane.f32.xlu0 %v8159_v51 }
0x3734   :  { %v8143_v42 = vpop.f32.mrb[58].mxu0 }
0x3735   :  { %v8144_v16 = vadd.f32 %v8143_v42, %v16587_v10  ;;  %v13924_v17 = vpop.f32.mrb[59].mxu0 }
0x3737   :  { %v8150_v37 = vsel %vm676_vm6, %v8144_v16, -inf }
0x3738   :  { %8151 = vmax.xlane.f32.xlu1 %v8150_v37 }
0x3749   :  { %8245 = vrot.lane.b32.xlu1 %v16561_v31, %s15371_s21 }
0x378f   :  { %v8161_v10 = vpop.xlane.xlu0 %8160 }
0x37c5   :  { %v8152_v40 = vpop.xlane.xlu1 %8151 }
0x37c6   :  { %v8154_v13 = vsub.f32 %v8144_v16, %v8152_v40 }
0x37c8   :  { %v8157_v14 = vmul.f32 1.442695, %v8154_v13 }
0x37c9   :  { %v8246_v18 = vpop.permute.xlu1 %8245 }
0x37ca   :  { %14714 = vpow2.f32 %v8157_v14  ;;  %13931 = vmatpush3.msra.mxu0 %v8246_v18 }
0x37cb   :  { %14716 = vrcp.f32 %v8161_v10  ;;  %13935 = vmatprep.subr.mxu0 %v6758_v57 }
0x37d4   :  { %v14715_v24 = vpop.eup %14714 }
0x37d5   :  { %v8162_v21 = vsel %vm676_vm6, %v14715_v24, 0.0  ;;  %v14717_v6 = vpop.eup %14716 }
0x37d6   :  { %8163 = vadd.xlane.f32.xlu0 %v8162_v21  ;;  %v8166_v23 = vmul.f32 %v14717_v6, %v14713_v48 }
0x37ec   :  { %8169 = vrot.lane.b32.xlu0 %v16563_v52, %s15371_s21 }
0x3863   :  { %v8164_v7 = vpop.xlane.xlu0 %8163 }
0x3864   :  { %14718 = vrcp.f32 %v8164_v7  ;;  %v12952_v7 = vld [vmem:[%s17325_s19] ss:$0 sm:$0xff] }
0x3867   :  { %v8170_v31 = vpop.permute.xlu0 %8169 }
0x3868   :  { %13926 = vmatpush3.msra.mxu1 %v8170_v31 }
0x3869   :  { %13928 = vmatmul.mubr.msk.f32.vlgmr.msra.gmra.mrb[90].mxu1 %vm676_vm6, %v8166_v23  ;;  %14322 = vmatprep.subr.bf16.mxu1 %v14321_v29 }
0x386a   :  { %14324 = vmatpush3.bf16.msra.mxu1 %v14321_v29 }
0x386b   :  { %14326 = vmatprep.subr.bf16.mxu1 %v14325_v53 }
0x386e   :  { %v14719_v25 = vpop.eup %14718  ;;  %14328 = vmatpush3.bf16.msra.mxu1 %v14325_v53 }
0x386f   :  { %v8168_v26 = vmul.f32 %v14719_v25, %v14715_v24 }
0x3871   :  { %13933 = vmatmul.mubr.msk.f32.vlgmr.msra.gmra.mrb[60].mxu0 %vm676_vm6, %v8168_v26  ;;  %v12953_v26 = vld [vmem:[%s17326_s3] ss:$0 sm:$0xff] }
0x3872   :  { %13936 = vmatpush3.msra.mxu0 %v6758_v57 }
0x3873   :  { %14330 = vmatprep.subr.bf16.mxu0 %v14329_v59 }
0x393c   :  { %v8241_v58 = vpop.f32.mrb[90].mxu1 }
0x393d   :  { %v13929_v52 = vpop.f32.mrb[91].mxu1  ;;  %13937 = vmatprep.mubr.msk.f32.mxu0 %vm676_vm6, %v8241_v58 }
0x3944   :  { %v8317_v27 = vpop.f32.mrb[60].mxu0 }
0x3945   :  { %v13934_v50 = vpop.f32.mrb[61].mxu0  ;;  %13938 = vmatmul.mubr.msk.f32.vlgmr.msra.gmra.mrb[54].mxu0 %vm676_vm6, %v8317_v27 }
0x3946   :  { %14332 = vmatpush3.bf16.msra.mxu0 %v14329_v59  ;;  %v8572_v50 = vld [vmem:[%s17324_s11 + $0x30] sm:$0xff]  ;;  %v8722_v59 = vld [vmem:[%s17329_s12] sm:$0xff] }
0x3947   :  { %14334 = vmatprep.subr.bf16.mxu0 %v14333_v55  ;;  %v14345_v3 = vpack.c.bf16 %v8723_v2, %v8722_v59 }
0x3949   :  { %14346 = vmatprep.subr.bf16.mxu1 %v14345_v3 }
0x394a   :  { %14336 = vmatpush3.bf16.msra.mxu0 %v14333_v55  ;;  %v8724_v55 = vld [vmem:[%s17329_s12 + $0x10] sm:$0xff] }
0x394b   :  { %14338 = vmatprep.subr.bf16.mxu0 %v14337_v8 }
0x394e   :  { %14340 = vmatpush3.bf16.msra.mxu0 %v14337_v8  ;;  %v14349_v8 = vpack.c.bf16 %v8725_v4, %v8724_v55 }
0x3a18   :  { %v13939_v28 = vpop.f32.mrb[54].mxu0 }
0x3a19   :  { %v8411_v56 = vadd.f32 %v13939_v28, %v12951_v0  ;;  %v8393_v22 = vpop.f32.mrb[55].mxu0 }
0x3a1a   :  { %v8410_v54 = vadd.f32 %v12951_v0, %v8393_v22  ;;  %v8573_v0 = vld [vmem:[%s17324_s11 + $0x38] sm:$0xff] }
0x3a1b   :  { %v16730_v15 = vadd.f32 %v8411_v56, %v16503_v32  ;;  %v14341_v28 = vpack.c.bf16 %v8573_v0, %v8572_v50  ;;  %v12954_v56 = vld [vmem:[%s17327_s15] ss:$0 sm:$0xff] }
0x3a1c   :  { %v16733_v5 = vadd.f32 %v8410_v54, %v16506_v33  ;;  %v12962_v50 = vld [vmem:[%s17332_s5] ss:$0 sm:$0xff] }
0x3a1d   :  { %v8419_v34 = vsel %vm517_vm0, %v16730_v15, 0.0  ;;  %14342 = vmatprep.subr.bf16.mxu0 %v14341_v28 }
0x3a1e   :  { %8420 = vadd.xlane.f32.xlu0 %v8419_v34  ;;  %v8416_v45 = vsel %vm517_vm0, %v16733_v5, 0.0  ;;  %14344 = vmatpush3.bf16.msra.mxu0 %v14341_v28 }
0x3a1f   :  { %8417 = vadd.xlane.f32.xlu1 %v8416_v45  ;;  %13991 = vmatprep.subr.mxu0 %v15361_v46 }
0x3aab   :  { %v8421_v43 = vpop.xlane.xlu0 %8420 }
0x3aac   :  { %v8423_v61 = vmul.f32 0.03125, %v8421_v43  ;;  %v8418_v1 = vpop.xlane.xlu1 %8417 }
0x3aad   :  { %v8422_v32 = vmul.f32 0.03125, %v8418_v1  ;;  %v12957_v1 = vld [vmem:[%s17328_s24] ss:$0 sm:$0xff] }
0x3aae   :  { %v8425_v35 = vsub.f32 %v16730_v15, %v8423_v61 }
0x3aaf   :  { %v8424_v33 = vsub.f32 %v16733_v5, %v8422_v32 }
0x3ab0   :  { %v8427_v49 = vmul.f32 %v8425_v35, %v8425_v35  ;;  %v8457_v6 = vmul.f32 %v12952_v7, %v8425_v35 }
0x3ab1   :  { %v8426_v19 = vmul.f32 %v8424_v33, %v8424_v33  ;;  %v8456_v23 = vmul.f32 %v12952_v7, %v8424_v33  ;;  %v12960_v7 = vld [vmem:[%s17330_s16] ss:$0 sm:$0xff] }
0x3ab2   :  { %v8431_v20 = vsel %vm517_vm0, %v8427_v49, 0.0 }
0x3ab3   :  { %8432 = vadd.xlane.f32.xlu1 %v8431_v20  ;;  %v8428_v36 = vsel %vm517_vm0, %v8426_v19, 0.0 }
0x3ab4   :  { %8429 = vadd.xlane.f32.xlu0 %v8428_v36 }
0x3b40   :  { %v8433_v9 = vpop.xlane.xlu1 %8432 }
0x3b41   :  { %v8435_v11 = vmul.f32 0.032258064, %v8433_v9  ;;  %v8430_v12 = vpop.xlane.xlu0 %8429 }
0x3b42   :  { %v8434_v48 = vmul.f32 0.032258064, %v8430_v12 }
0x3b43   :  { %14720 = vrsqrt.f32 %v8435_v11  ;;  %vm8445_vm7 = vcmp.eq.f32.partialorder %v8435_v11, inf  ;;  %v8448_v17 = vand.u32 2147483648, %v8435_v11  ;;  %vm8447_vm8 = vcmp.eq.f32.partialorder %v8435_v11, 0.0 }
0x3b44   :  { %14722 = vrsqrt.f32 %v8434_v48  ;;  %vm8438_vm9 = vcmp.eq.f32.partialorder %v8434_v48, inf  ;;  %v8441_v13 = vand.u32 2147483648, %v8434_v48  ;;  %vm8440_vm10 = vcmp.eq.f32.partialorder %v8434_v48, 0.0 }
0x3b4d   :  { %v14721_v51 = vpop.eup %14720 }
0x3b4e   :  { %v14723_v42 = vpop.eup %14722  ;;  %v8444_v16 = vmul.f32 %v14721_v51, %v8435_v11 }
0x3b4f   :  { %v8437_v37 = vmul.f32 %v14723_v42, %v8434_v48 }
0x3b50   :  { %v8446_v40 = vsel %vm8445_vm7, %v8435_v11, %v8444_v16 }
0x3b51   :  { %v8449_v14 = vsel %vm8447_vm8, %v8448_v17, %v8446_v40  ;;  %v8439_v18 = vsel %vm8438_vm9, %v8434_v48, %v8437_v37 }
0x3b52   :  { %v8459_v24 = vadd.f32 1e-06, %v8449_v14  ;;  %v8442_v21 = vsel %vm8440_vm10, %v8441_v13, %v8439_v18 }
0x3b53   :  { %v8458_v10 = vadd.f32 1e-06, %v8442_v21 }
0x3b54   :  { %14724 = vrcp.f32 %v8459_v24 }
0x3b55   :  { %14726 = vrcp.f32 %v8458_v10 }
0x3b5e   :  { %v14725_v31 = vpop.eup %14724 }
0x3b5f   :  { %v14727_v25 = vpop.eup %14726  ;;  %v8463_v57 = vmul.f32 %v14725_v31, %v8457_v6 }
0x3b60   :  { %v8461_v58 = vmul.f32 %v14727_v25, %v8456_v23 }
0x3b61   :  { %v8471_v27 = vadd.f32 %v12953_v26, %v8463_v57 }
0x3b62   :  { %v8470_v52 = vadd.f32 %v12953_v26, %v8461_v58  ;;  %v12961_v26 = vld [vmem:[%s17331_s25] ss:$0 sm:$0xff] }
0x3b64   :  { %13948 = vmatprep.mubr.msk.f32.mxu1 %vm517_vm0, %v8470_v52 }
0x3b65   :  { %13949 = vmatmul.mubr.msk.f32.vlgmr.msra.gmra.mrb[92].mxu1 %vm517_vm0, %v8471_v27 }
0x3b66   :  { %14348 = vmatpush3.bf16.msra.mxu1 %v14345_v3 }
0x3b67   :  { %14350 = vmatprep.subr.bf16.mxu1 %v14349_v8 }
0x3b6a   :  { %14352 = vmatpush3.bf16.msra.mxu1 %v14349_v8 }
0x3b6b   :  { %13981 = vmatprep.subr.mxu1 %v15361_v46 }
0x3c38   :  { %v13950_v22 = vpop.f32.mrb[92].mxu1 }
0x3c39   :  { %v8561_v54 = vadd.f32 %v13950_v22, %v12954_v56  ;;  %v8555_v34 = vpop.f32.mrb[93].mxu1 }
0x3c3a   :  { %v8556_v45 = vadd.f32 %v12954_v56, %v8555_v34 }
0x3c3b   :  { %v8565_v61 = vmax.f32 %v8561_v54, 0.0 }
0x3c3c   :  { %v8564_v43 = vmax.f32 %v8556_v45, 0.0 }
0x3c3e   :  { %13967 = vmatprep.mubr.msk.f32.mxu0 %vm2497_vm11, %v8564_v43 }
0x3c3f   :  { %13968 = vmatmul.mubr.msk.f32.vlgmr.msra.gmra.mrb[62].mxu0 %vm2497_vm11, %v8565_v61 }
0x3c40   :  { %13993 = vmatprep.mubr.msk.f32.mxu0 %vm15362_vm5, %v15361_v46 }
0x3d12   :  { %v13969_v32 = vpop.f32.mrb[62].mxu0 }
0x3d13   :  { %v8659_v35 = vadd.f32 %v13969_v32, %v12957_v1  ;;  %v8653_v33 = vpop.f32.mrb[63].mxu0 }
0x3d14   :  { %v8654_v49 = vadd.f32 %v12957_v1, %v8653_v33  ;;  %v16813_v1 = vld [vmem:[%s17311_s0 + $0x8] sm:$0xff] }
0x3d15   :  { %v16767_v19 = vadd.f32 %v8659_v35, %v16730_v15 }
0x3d16   :  { %v16770_v20 = vadd.f32 %v8654_v49, %v16733_v5  ;;  %v16822_v49 = vld [vmem:[%s17311_s0] sm:$0xff]  ;;  %s17337_s0 = sld [smem:[#allocation86_spill]] }
0x3d17   :  { %v8669_v36 = vsel %vm517_vm0, %v16767_v19, 0.0 }
0x3d18   :  { %8670 = vadd.xlane.f32.xlu1 %v8669_v36  ;;  %v8666_v38 = vsel %vm517_vm0, %v16770_v20, 0.0 }
0x3d19   :  { %8667 = vadd.xlane.f32.xlu0 %v8666_v38 }
0x3da5   :  { %v8671_v44 = vpop.xlane.xlu1 %8670 }
0x3da6   :  { %v8673_v47 = vmul.f32 0.03125, %v8671_v44  ;;  %v8668_v29 = vpop.xlane.xlu0 %8667 }
0x3da7   :  { %v8672_v15 = vmul.f32 0.03125, %v8668_v29 }
0x3da8   :  { %v8675_v30 = vsub.f32 %v16767_v19, %v8673_v47 }
0x3da9   :  { %v8674_v5 = vsub.f32 %v16770_v20, %v8672_v15 }
0x3daa   :  { %v8677_v53 = vmul.f32 %v8675_v30, %v8675_v30  ;;  %v8707_v6 = vmul.f32 %v12960_v7, %v8675_v30 }
0x3dab   :  { %v8676_v60 = vmul.f32 %v8674_v5, %v8674_v5  ;;  %v8706_v23 = vmul.f32 %v12960_v7, %v8674_v5 }
0x3dac   :  { %v8681_v62 = vsel %vm517_vm0, %v8677_v53, 0.0 }
0x3dad   :  { %8682 = vadd.xlane.f32.xlu1 %v8681_v62  ;;  %v8678_v63 = vsel %vm517_vm0, %v8676_v60, 0.0 }
0x3dae   :  { %8679 = vadd.xlane.f32.xlu0 %v8678_v63 }
0x3e3a   :  { %v8683_v9 = vpop.xlane.xlu1 %8682 }
0x3e3b   :  { %v8685_v11 = vmul.f32 0.032258064, %v8683_v9  ;;  %v8680_v12 = vpop.xlane.xlu0 %8679 }
0x3e3c   :  { %v8684_v48 = vmul.f32 0.032258064, %v8680_v12 }
0x3e3d   :  { %14728 = vrsqrt.f32 %v8685_v11  ;;  %vm8695_vm12 = vcmp.eq.f32.partialorder %v8685_v11, inf  ;;  %v8698_v17 = vand.u32 2147483648, %v8685_v11  ;;  %vm8697_vm13 = vcmp.eq.f32.partialorder %v8685_v11, 0.0 }
0x3e3e   :  { %14730 = vrsqrt.f32 %v8684_v48  ;;  %vm8688_vm14 = vcmp.eq.f32.partialorder %v8684_v48, inf  ;;  %v8691_v13 = vand.u32 2147483648, %v8684_v48  ;;  %vm8690_vm15 = vcmp.eq.f32.partialorder %v8684_v48, 0.0 }
0x3e47   :  { %v14729_v51 = vpop.eup %14728 }
0x3e48   :  { %v14731_v42 = vpop.eup %14730  ;;  %v8694_v16 = vmul.f32 %v14729_v51, %v8685_v11 }
0x3e49   :  { %v8687_v37 = vmul.f32 %v14731_v42, %v8684_v48 }
0x3e4a   :  { %v8696_v40 = vsel %vm8695_vm12, %v8685_v11, %v8694_v16 }
0x3e4b   :  { %v8699_v14 = vsel %vm8697_vm13, %v8698_v17, %v8696_v40  ;;  %v8689_v18 = vsel %vm8688_vm14, %v8684_v48, %v8687_v37 }
0x3e4c   :  { %v8709_v24 = vadd.f32 1e-06, %v8699_v14  ;;  %v8692_v21 = vsel %vm8690_vm15, %v8691_v13, %v8689_v18 }
0x3e4d   :  { %v8708_v10 = vadd.f32 1e-06, %v8692_v21 }
0x3e4e   :  { %14732 = vrcp.f32 %v8709_v24 }
0x3e4f   :  { %14734 = vrcp.f32 %v8708_v10 }
0x3e58   :  { %v14733_v31 = vpop.eup %14732 }
0x3e59   :  { %v14735_v25 = vpop.eup %14734  ;;  %v8713_v57 = vmul.f32 %v14733_v31, %v8707_v6 }
0x3e5a   :  { %v8711_v58 = vmul.f32 %v14735_v25, %v8706_v23 }
0x3e5b   :  { %v8721_v27 = vadd.f32 %v12961_v26, %v8713_v57 }
0x3e5c   :  { %v8720_v52 = vadd.f32 %v12961_v26, %v8711_v58 }
0x3e5e   :  { %13978 = vmatprep.mubr.msk.f32.mxu1 %vm517_vm0, %v8720_v52 }
0x3e5f   :  { %13979 = vmatmul.mubr.msk.f32.vlgmr.msra.gmra.mrb[94].mxu1 %vm517_vm0, %v8721_v27 }
0x3e60   :  { %13983 = vmatprep.mubr.msk.f32.mxu1 %vm15362_vm5, %v15361_v46 }
0x3f32   :  { %v13980_v0 = vpop.f32.mrb[94].mxu1 }
0x3f33   :  { %v16792_v28 = vadd.f32 %v13980_v0, %v12962_v50  ;;  %v8805_v56 = vpop.f32.mrb[95].mxu1 }
0x3f34   :  { %v16794_v22 = vadd.f32 %v12962_v50, %v8805_v56 }
0x3f35   :  { %8897 = vrot.lane.b32.xlu1 %v16792_v28, %s15363_s18 }
0x3f36   :  { %8820 = vrot.lane.b32.xlu0 %v16794_v22, %s15363_s18 }
0x3fa7   :  { %v8898_v34 = vpop.permute.xlu1 %8897 }
0x3fa8   :  { %v8821_v54 = vpop.permute.xlu0 %8820 }
0x3fa9   :  { %13982 = vmatpush3.xpose.msk.msra.mxu1 %vm676_vm6, %v8821_v54 }
0x3faa   :  { %13986 = vmatprep.subr.mxu1 %v15361_v46 }
0x3fac   :  { %13984 = vmatmul.mubr.msk.f32.vlgmr.msra.gmra.mrb[96].mxu1 %vm676_vm6, %v16794_v22 }
0x3fad   :  { %13987 = vmatpush3.xpose.msk.msra.mxu1 %vm676_vm6, %v8898_v34  ;;  %13988 = vmatprep.mubr.msk.f32.mxu1 %vm15362_vm5, %v15361_v46 }
0x3fae   :  { %13996 = vmatprep.subr.mxu1 %v15361_v46 }
0x3fb0   :  { %13989 = vmatmul.mubr.msk.f32.vlgmr.msra.gmra.mrb[98].mxu1 %vm676_vm6, %v16792_v28 }
0x3fb1   :  { %13998 = vmatprep.mubr.msk.f32.mxu1 %vm15362_vm5, %v15361_v46 }
0x407f   :  { %v8892_v45 = vpop.f32.mrb[96].mxu1 }
0x4080   :  { %v13985_v43 = vpop.f32.mrb[97].mxu1  ;;  %v8893_v36 = vadd.f32 %v16822_v49, %v8892_v45 }
0x4082   :  { %v8973_v38 = vsel %vm676_vm6, %v8893_v36, -inf }
0x4083   :  { %v8969_v61 = vpop.f32.mrb[98].mxu1 }
0x4084   :  { %v8970_v32 = vadd.f32 %v16813_v1, %v8969_v61  ;;  %v13990_v35 = vpop.f32.mrb[99].mxu1 }
0x4086   :  { %v8976_v33 = vsel %vm676_vm6, %v8970_v32, -inf }
0x4087   :  { %8977 = vmax.xlane.f32.xlu1 %v8976_v33 }
0x4098   :  { %9227 = vrot.lane.b32.xlu1 %v16792_v28, %s15364_s22 }
0x409c   :  { %9225 = vrot.lane.b32.xlu1 %v16792_v28, %s15365_s23 }
0x40c0   :  { %8974 = vmax.xlane.f32.xlu1 %v8973_v38 }
0x40d1   :  { %9149 = vrot.lane.b32.xlu1 %v16794_v22, %s15364_s22 }
0x40d5   :  { %9147 = vrot.lane.b32.xlu1 %v16794_v22, %s15365_s23 }
0x40d9   :  { %9641 = vrot.lane.b32.xlu1 %v16794_v22, %s15366_s26 }
0x4114   :  { %v8978_v44 = vpop.xlane.xlu1 %8977 }
0x4115   :  { %v8980_v47 = vsub.f32 %v8970_v32, %v8978_v44 }
0x4117   :  { %v8983_v29 = vmul.f32 1.442695, %v8980_v47 }
0x4118   :  { %v9228_v5 = vpop.permute.xlu1 %9227 }
0x4119   :  { %14736 = vpow2.f32 %v8983_v29 }
0x411c   :  { %v9226_v53 = vpop.permute.xlu1 %9225 }
0x4123   :  { %v14737_v15 = vpop.eup %14736 }
0x4124   :  { %v8988_v30 = vsel %vm676_vm6, %v14737_v15, 0.0 }
0x4125   :  { %8989 = vadd.xlane.f32.xlu0 %v8988_v30 }
0x413b   :  { %9071 = vrot.lane.b32.xlu0 %v16792_v28, %s15367_s28 }
0x414d   :  { %v8975_v60 = vpop.xlane.xlu1 %8974 }
0x414e   :  { %v8979_v62 = vsub.f32 %v8893_v36, %v8975_v60 }
0x4150   :  { %v8981_v63 = vmul.f32 1.442695, %v8979_v62 }
0x4151   :  { %v9150_v48 = vpop.permute.xlu1 %9149 }
0x4152   :  { %14738 = vpow2.f32 %v8981_v63 }
0x4155   :  { %v9148_v42 = vpop.permute.xlu1 %9147 }
0x4159   :  { %v9642_v52 = vpop.permute.xlu1 %9641 }
0x415c   :  { %v14739_v59 = vpop.eup %14738 }
0x415d   :  { %v8985_v2 = vsel %vm676_vm6, %v14739_v59, 0.0 }
0x415e   :  { %8986 = vadd.xlane.f32.xlu0 %v8985_v2 }
0x4174   :  { %8995 = vrot.lane.b32.xlu0 %v16794_v22, %s15367_s28  ;;  %s17333_s28 = sld [smem:[#allocation85_spill]] }
0x41b2   :  { %v8990_v55 = vpop.xlane.xlu0 %8989 }
0x41b3   :  { %14740 = vrcp.f32 %v8990_v55  ;;  %v8815_v55 = vld [vmem:[%s17333_s28 + $0x8] sm:$0xff] }
0x41b6   :  { %v9072_v3 = vpop.permute.xlu0 %9071 }
0x41b7   :  { %13997 = vmatpush3.msra.mxu1 %v9072_v3  ;;  %v8814_v3 = vld [vmem:[%s17333_s28] sm:$0xff] }
0x41b8   :  { %14006 = vmatprep.subr.mxu1 %v15361_v46 }
0x41bd   :  { %v14741_v4 = vpop.eup %14740 }
0x41be   :  { %v8994_v8 = vmul.f32 %v14741_v4, %v14737_v15 }
0x41c0   :  { %13999 = vmatmul.mubr.msk.f32.vlgmr.msra.gmra.mrb[100].mxu1 %vm676_vm6, %v8994_v8 }
0x41c1   :  { %14007 = vmatpush3.xpose.msk.msra.mxu1 %vm676_vm6, %v9228_v5  ;;  %14008 = vmatprep.mubr.msk.f32.mxu1 %vm15362_vm5, %v15361_v46 }
0x41c2   :  { %14016 = vmatprep.subr.mxu1 %v15361_v46 }
0x41c4   :  { %14009 = vmatmul.mubr.msk.f32.vlgmr.msra.gmra.mrb[102].mxu1 %vm676_vm6, %v9226_v53 }
0x41c5   :  { %14018 = vmatprep.mubr.msk.f32.mxu1 %vm15362_vm5, %v15361_v46 }
0x41eb   :  { %v8987_v9 = vpop.xlane.xlu0 %8986 }
0x41ec   :  { %14742 = vrcp.f32 %v8987_v9 }
0x41ef   :  { %v8996_v11 = vpop.permute.xlu0 %8995 }
0x41f0   :  { %13992 = vmatpush3.msra.mxu0 %v8996_v11 }
0x41f1   :  { %14001 = vmatprep.subr.mxu0 %v15361_v46 }
0x41f6   :  { %v14743_v12 = vpop.eup %14742 }
0x41f7   :  { %v8992_v51 = vmul.f32 %v14743_v12, %v14739_v59 }
0x41f9   :  { %13994 = vmatmul.mubr.msk.f32.vlgmr.msra.gmra.mrb[64].mxu0 %vm676_vm6, %v8992_v51 }
0x41fa   :  { %14002 = vmatpush3.xpose.msk.msra.mxu0 %vm676_vm6, %v9150_v48  ;;  %14003 = vmatprep.mubr.msk.f32.mxu0 %vm15362_vm5, %v15361_v46 }
0x41fb   :  { %14011 = vmatprep.subr.mxu0 %v15361_v46 }
0x41fd   :  { %14004 = vmatmul.mubr.msk.f32.vlgmr.msra.gmra.mrb[66].mxu0 %vm676_vm6, %v9148_v42 }
0x41fe   :  { %14013 = vmatprep.mubr.msk.f32.mxu0 %vm15362_vm5, %v15361_v46 }
0x4293   :  { %v16856_v16 = vpop.f32.mrb[100].mxu1 }
0x4294   :  { %v14000_v17 = vpop.f32.mrb[101].mxu1 }
0x4297   :  { %v9299_v37 = vpop.f32.mrb[102].mxu1 }
0x4298   :  { %v9300_v40 = vadd.f32 %v16813_v1, %v9299_v37  ;;  %v14010_v13 = vpop.f32.mrb[103].mxu1 }
0x429a   :  { %v9306_v14 = vsel %vm676_vm6, %v9300_v40, -inf }
0x429b   :  { %9307 = vmax.xlane.f32.xlu0 %v9306_v14 }
0x42b1   :  { %9401 = vrot.lane.b32.xlu0 %v16792_v28, %s15368_s29 }
0x42b5   :  { %9639 = vrot.lane.b32.xlu0 %v16794_v22, %s15369_s17 }
0x42b9   :  { %9717 = vrot.lane.b32.xlu0 %v16792_v28, %s15369_s17 }
0x42cc   :  { %v16866_v18 = vpop.f32.mrb[64].mxu0 }
0x42cd   :  { %v13995_v24 = vpop.f32.mrb[65].mxu0 }
0x42d0   :  { %v9221_v21 = vpop.f32.mrb[66].mxu0 }
0x42d1   :  { %v14005_v10 = vpop.f32.mrb[67].mxu0  ;;  %v9222_v57 = vadd.f32 %v16822_v49, %v9221_v21  ;;  %v8816_v21 = vld [vmem:[%s17333_s28 + $0x10] sm:$0xff] }
0x42d3   :  { %v9303_v58 = vsel %vm676_vm6, %v9222_v57, -inf }
0x4328   :  { %v9308_v7 = vpop.xlane.xlu0 %9307 }
0x4329   :  { %v9310_v6 = vsub.f32 %v9300_v40, %v9308_v7 }
0x432b   :  { %v9313_v31 = vmul.f32 1.442695, %v9310_v6 }
0x432c   :  { %v9402_v23 = vpop.permute.xlu0 %9401 }
0x432d   :  { %14744 = vpow2.f32 %v9313_v31  ;;  %14017 = vmatpush3.msra.mxu1 %v9402_v23 }
0x432e   :  { %14031 = vmatprep.subr.mxu1 %v15361_v46 }
0x4330   :  { %v9640_v56 = vpop.permute.xlu0 %9639 }
0x4334   :  { %v9718_v34 = vpop.permute.xlu0 %9717 }
0x4337   :  { %v14745_v25 = vpop.eup %14744 }
0x4338   :  { %v9318_v26 = vsel %vm676_vm6, %v14745_v25, 0.0 }
0x4339   :  { %9319 = vadd.xlane.f32.xlu1 %v9318_v26 }
0x434a   :  { %9719 = vrot.lane.b32.xlu1 %v16792_v28, %s15366_s26 }
0x436e   :  { %9304 = vmax.xlane.f32.xlu1 %v9303_v58 }
0x43c6   :  { %v9320_v27 = vpop.xlane.xlu1 %9319 }
0x43c7   :  { %14746 = vrcp.f32 %v9320_v27 }
0x43ca   :  { %v9720_v54 = vpop.permute.xlu1 %9719 }
0x43d1   :  { %v14747_v50 = vpop.eup %14746 }
0x43d2   :  { %v9324_v0 = vmul.f32 %v14747_v50, %v14745_v25 }
0x43d4   :  { %14019 = vmatmul.mubr.msk.f32.vlgmr.msra.gmra.mrb[104].mxu1 %vm676_vm6, %v9324_v0 }
0x43d5   :  { %14032 = vmatpush3.xpose.msk.msra.mxu1 %vm676_vm6, %v9642_v52  ;;  %14033 = vmatprep.mubr.msk.f32.mxu1 %vm15362_vm5, %v15361_v46 }
0x43d6   :  { %14036 = vmatprep.subr.mxu1 %v15361_v46 }
0x43d8   :  { %14034 = vmatmul.mubr.msk.f32.vlgmr.msra.gmra.mrb[106].mxu1 %vm676_vm6, %v9640_v56 }
0x43d9   :  { %14037 = vmatpush3.xpose.msk.msra.mxu1 %vm676_vm6, %v9720_v54  ;;  %14038 = vmatprep.mubr.msk.f32.mxu1 %vm15362_vm5, %v15361_v46 }
0x43da   :  { %14046 = vmatprep.subr.mxu1 %v15361_v46 }
0x43dc   :  { %14039 = vmatmul.mubr.msk.f32.vlgmr.msra.gmra.mrb[108].mxu1 %vm676_vm6, %v9718_v34 }
0x43dd   :  { %14048 = vmatprep.mubr.msk.f32.mxu1 %vm15362_vm5, %v15361_v46 }
0x43fb   :  { %v9305_v45 = vpop.xlane.xlu1 %9304 }
0x43fc   :  { %v9309_v43 = vsub.f32 %v9222_v57, %v9305_v45 }
0x43fe   :  { %v9311_v61 = vmul.f32 1.442695, %v9309_v43 }
0x4400   :  { %14748 = vpow2.f32 %v9311_v61 }
0x440a   :  { %v14749_v32 = vpop.eup %14748 }
0x440b   :  { %v9315_v35 = vsel %vm676_vm6, %v14749_v32, 0.0 }
0x440c   :  { %9316 = vadd.xlane.f32.xlu0 %v9315_v35 }
0x4422   :  { %9325 = vrot.lane.b32.xlu0 %v16794_v22, %s15368_s29  ;;  %s17334_s29 = sld [smem:[#allocation83_spill]] }
0x4426   :  { %9893 = vrot.lane.b32.xlu0 %v16792_v28, %s15370_s14 }
0x442a   :  { %10054 = vrot.lane.b32.xlu0 %v16794_v22, %s15371_s21 }
0x442e   :  { %10132 = vrot.lane.b32.xlu0 %v16792_v28, %s15371_s21 }
0x4432   :  { %10052 = vrot.lane.b32.xlu0 %v16794_v22, %s15372_s1 }
0x4499   :  { %v9317_v33 = vpop.xlane.xlu0 %9316 }
0x449a   :  { %14750 = vrcp.f32 %v9317_v33 }
0x449d   :  { %v9326_v36 = vpop.permute.xlu0 %9325 }
0x449e   :  { %14012 = vmatpush3.msra.mxu0 %v9326_v36 }
0x449f   :  { %14021 = vmatprep.subr.mxu0 %v8815_v55 }
0x44a1   :  { %v9894_v38 = vpop.permute.xlu0 %9893 }
0x44a2   :  { %14047 = vmatpush3.msra.mxu1 %v9894_v38 }
0x44a3   :  { %14056 = vmatprep.subr.mxu1 %v15361_v46 }
0x44a4   :  { %v14751_v44 = vpop.eup %14750 }
0x44a5   :  { %v9322_v47 = vmul.f32 %v14751_v44, %v14749_v32  ;;  %v10055_v7 = vpop.permute.xlu0 %10054 }
0x44a7   :  { %14014 = vmatmul.mubr.msk.f32.vlgmr.msra.gmra.mrb[68].mxu0 %vm676_vm6, %v9322_v47  ;;  %v9473_v29 = vpop.f32.mrb[104].mxu1 }
0x44a8   :  { %v14020_v15 = vpop.f32.mrb[105].mxu1  ;;  %14022 = vmatpush3.msra.mxu0 %v8815_v55 }
0x44a9   :  { %14026 = vmatprep.subr.mxu0 %v8814_v3  ;;  %v10133_v23 = vpop.permute.xlu0 %10132 }
0x44ab   :  { %v9713_v30 = vpop.f32.mrb[106].mxu1 }
0x44ac   :  { %v9714_v5 = vadd.f32 %v16822_v49, %v9713_v30  ;;  %v14035_v53 = vpop.f32.mrb[107].mxu1 }
0x44ad   :  { %v10053_v25 = vpop.permute.xlu0 %10052 }
0x44ae   :  { %v9795_v60 = vsel %vm676_vm6, %v9714_v5, -inf }
0x44af   :  { %9796 = vmax.xlane.f32.xlu1 %v9795_v60  ;;  %v9791_v62 = vpop.f32.mrb[108].mxu1 }
0x44b0   :  { %v9792_v63 = vadd.f32 %v16813_v1, %v9791_v62  ;;  %v14040_v59 = vpop.f32.mrb[109].mxu1 }
0x44b1   :  { %v8817_v59 = vld [vmem:[%s17333_s28 + $0x18] sm:$0xff] }
0x44b2   :  { %v9798_v2 = vsel %vm676_vm6, %v9792_v63, -inf }
0x44b3   :  { %9799 = vmax.xlane.f32.xlu1 %v9798_v2  ;;  %v10626_v2 = vld [vmem:[%s17334_s29 + $0x8] sm:$0xff] }
0x453c   :  { %v9797_v4 = vpop.xlane.xlu1 %9796 }
0x453d   :  { %v9801_v8 = vsub.f32 %v9714_v5, %v9797_v4 }
0x453f   :  { %v9803_v9 = vmul.f32 1.442695, %v9801_v8  ;;  %v10627_v8 = vld [vmem:[%s17334_s29 + $0x10] sm:$0xff] }
0x4540   :  { %v9800_v11 = vpop.xlane.xlu1 %9799 }
0x4541   :  { %14752 = vpow2.f32 %v9803_v9  ;;  %v9802_v12 = vsub.f32 %v9792_v63, %v9800_v11  ;;  %v10628_v9 = vld [vmem:[%s17334_s29 + $0x18] sm:$0xff] }
0x4542   :  { %v14365_v11 = vpack.c.bf16 %v10628_v9, %v10627_v8 }
0x4543   :  { %v9805_v48 = vmul.f32 1.442695, %v9802_v12 }
0x4545   :  { %14754 = vpow2.f32 %v9805_v48 }
0x454b   :  { %v14753_v51 = vpop.eup %14752 }
0x454c   :  { %v9807_v42 = vsel %vm676_vm6, %v14753_v51, 0.0 }
0x454d   :  { %9808 = vadd.xlane.f32.xlu1 %v9807_v42 }
0x454f   :  { %v14755_v17 = vpop.eup %14754 }
0x4550   :  { %v9810_v37 = vsel %vm676_vm6, %v14755_v17, 0.0 }
0x4551   :  { %9811 = vadd.xlane.f32.xlu1 %v9810_v37 }
0x4562   :  { %9817 = vrot.lane.b32.xlu1 %v16794_v22, %s15370_s14  ;;  %s17335_s14 = sld [smem:[#allocation72_spill]] }
0x4566   :  { %10130 = vrot.lane.b32.xlu1 %v16792_v28, %s15372_s1 }
0x457a   :  { %v9397_v40 = vpop.f32.mrb[68].mxu0 }
0x457b   :  { %v14015_v13 = vpop.f32.mrb[69].mxu0  ;;  %14023 = vmatprep.mubr.msk.f32.mxu0 %vm676_vm6, %v9397_v40 }
0x457c   :  { %14024 = vmatmul.mubr.msk.f32.vlgmr.msra.gmra.mrb[70].mxu0 %vm676_vm6, %v9473_v29 }
0x457d   :  { %14028 = vmatprep.mubr.msk.f32.mxu0 %vm676_vm6, %v16866_v18  ;;  %14027 = vmatpush3.msra.mxu0 %v8814_v3 }
0x457e   :  { %14041 = vmatprep.subr.mxu0 %v15361_v46 }
0x4584   :  { %14029 = vmatmul.mubr.msk.f32.vlgmr.msra.gmra.mrb[70].mxu0 %vm676_vm6, %v16856_v16 }
0x4585   :  { %14043 = vmatprep.mubr.msk.f32.mxu0 %vm15362_vm5, %v15361_v46 }
0x45da   :  { %v9809_v14 = vpop.xlane.xlu1 %9808 }
0x45db   :  { %14756 = vrcp.f32 %v9809_v14 }
0x45de   :  { %v9812_v24 = vpop.xlane.xlu1 %9811 }
0x45df   :  { %14758 = vrcp.f32 %v9812_v24 }
0x45e2   :  { %v9818_v10 = vpop.permute.xlu1 %9817 }
0x45e3   :  { %14042 = vmatpush3.msra.mxu0 %v9818_v10 }
0x45e4   :  { %14051 = vmatprep.subr.mxu0 %v8816_v21 }
0x45e5   :  { %v14757_v6 = vpop.eup %14756 }
0x45e6   :  { %v9814_v18 = vmul.f32 %v14757_v6, %v14753_v51  ;;  %v10131_v27 = vpop.permute.xlu1 %10130  ;;  %v12997_v51 = vld [vmem:[%s17335_s14] ss:$0 sm:$0xff] }
0x45e8   :  { %14044 = vmatmul.mubr.msk.f32.vlgmr.msra.gmra.mrb[72].mxu0 %vm676_vm6, %v9814_v18 }
0x45e9   :  { %v14759_v31 = vpop.eup %14758  ;;  %14052 = vmatpush3.msra.mxu0 %v8816_v21 }
0x45ea   :  { %v9816_v16 = vmul.f32 %v14759_v31, %v14755_v17  ;;  %14061 = vmatprep.subr.mxu0 %v15361_v46 }
0x45ec   :  { %14049 = vmatmul.mubr.msk.f32.vlgmr.msra.gmra.mrb[110].mxu1 %vm676_vm6, %v9816_v16 }
0x45ed   :  { %14057 = vmatpush3.xpose.msk.msra.mxu1 %vm676_vm6, %v10055_v7  ;;  %14058 = vmatprep.mubr.msk.f32.mxu1 %vm15362_vm5, %v15361_v46 }
0x45ee   :  { %14066 = vmatprep.subr.mxu1 %v15361_v46 }
0x45f0   :  { %14059 = vmatmul.mubr.msk.f32.vlgmr.msra.gmra.mrb[112].mxu1 %vm676_vm6, %v10053_v25 }
0x45f1   :  { %14068 = vmatprep.mubr.msk.f32.mxu1 %vm15362_vm5, %v15361_v46 }
0x46bb   :  { %v9889_v26 = vpop.f32.mrb[72].mxu0 }
0x46bc   :  { %v14045_v57 = vpop.f32.mrb[73].mxu0  ;;  %14053 = vmatprep.mubr.msk.f32.mxu0 %vm676_vm6, %v9889_v26 }
0x46bf   :  { %v9965_v58 = vpop.f32.mrb[110].mxu1 }
0x46c0   :  { %v14050_v52 = vpop.f32.mrb[111].mxu1  ;;  %14054 = vmatmul.mubr.msk.f32.vlgmr.msra.gmra.mrb[70].mxu0 %vm676_vm6, %v9965_v58 }
0x46c1   :  { %14062 = vmatpush3.xpose.msk.msra.mxu0 %vm676_vm6, %v10133_v23  ;;  %14063 = vmatprep.mubr.msk.f32.mxu0 %vm15362_vm5, %v15361_v46  ;;  %v10533_v52 = vld [vmem:[%s17337_s0] sm:$0xff] }
0x46c2   :  { %14071 = vmatprep.subr.mxu0 %v15361_v46 }
0x46c3   :  { %v10126_v50 = vpop.f32.mrb[112].mxu1 }
0x46c4   :  { %v10127_v0 = vadd.f32 %v16822_v49, %v10126_v50  ;;  %v14060_v56 = vpop.f32.mrb[113].mxu1  ;;  %14064 = vmatmul.mubr.msk.f32.vlgmr.msra.gmra.mrb[74].mxu0 %vm676_vm6, %v10131_v27  ;;  %v10534_v27 = vld [vmem:[%s17337_s0 + $0x8] sm:$0xff]  ;;  %v10535_v50 = vld [vmem:[%s17337_s0 + $0x10] sm:$0xff] }
0x46c5   :  { %14073 = vmatprep.mubr.msk.f32.mxu0 %vm15362_vm5, %v15361_v46  ;;  %v10536_v56 = vld [vmem:[%s17337_s0 + $0x18] sm:$0xff] }
0x46c6   :  { %v10208_v54 = vsel %vm676_vm6, %v10127_v0, -inf }
0x46c7   :  { %10209 = vmax.xlane.f32.xlu0 %v10208_v54  ;;  %v14357_v54 = vpack.c.bf16 %v10536_v56, %v10535_v50 }
0x4754   :  { %v10210_v34 = vpop.xlane.xlu0 %10209 }
0x4755   :  { %v10214_v45 = vsub.f32 %v10127_v0, %v10210_v34  ;;  %v14353_v0 = vpack.c.bf16 %v10534_v27, %v10533_v52 }
0x4757   :  { %v10216_v43 = vmul.f32 1.442695, %v10214_v45 }
0x4759   :  { %14760 = vpow2.f32 %v10216_v43 }
0x4763   :  { %v14761_v61 = vpop.eup %14760 }
0x4764   :  { %v10220_v32 = vsel %vm676_vm6, %v14761_v61, 0.0 }
0x4765   :  { %10221 = vadd.xlane.f32.xlu0 %v10220_v32 }
0x4797   :  { %v10204_v35 = vpop.f32.mrb[74].mxu0 }
0x4798   :  { %v10205_v49 = vadd.f32 %v16813_v1, %v10204_v35  ;;  %v14065_v33 = vpop.f32.mrb[75].mxu0 }
0x479a   :  { %v10211_v36 = vsel %vm676_vm6, %v10205_v49, -inf }
0x479b   :  { %10212 = vmax.xlane.f32.xlu1 %v10211_v36 }
0x47ac   :  { %10306 = vrot.lane.b32.xlu1 %v16792_v28, %s15373_s9 }
0x47f2   :  { %v10222_v1 = vpop.xlane.xlu0 %10221 }
0x4828   :  { %v10213_v38 = vpop.xlane.xlu1 %10212 }
0x4829   :  { %v10215_v44 = vsub.f32 %v10205_v49, %v10213_v38 }
0x482b   :  { %v10218_v47 = vmul.f32 1.442695, %v10215_v44 }
0x482c   :  { %v10307_v29 = vpop.permute.xlu1 %10306 }
0x482d   :  { %14762 = vpow2.f32 %v10218_v47  ;;  %14072 = vmatpush3.msra.mxu0 %v10307_v29 }
0x482e   :  { %14764 = vrcp.f32 %v10222_v1  ;;  %14076 = vmatprep.subr.mxu0 %v8817_v59 }
0x4837   :  { %v14763_v15 = vpop.eup %14762 }
0x4838   :  { %v10223_v30 = vsel %vm676_vm6, %v14763_v15, 0.0  ;;  %v14765_v28 = vpop.eup %14764 }
0x4839   :  { %10224 = vadd.xlane.f32.xlu0 %v10223_v30  ;;  %v10227_v53 = vmul.f32 %v14765_v28, %v14761_v61 }
0x484f   :  { %10230 = vrot.lane.b32.xlu0 %v16794_v22, %s15373_s9  ;;  %v10625_v22 = vld [vmem:[%s17334_s29] sm:$0xff]  ;;  %s17336_s9 = sld [smem:[#allocation70_spill]] }
0x4850   :  { %v14361_v55 = vpack.c.bf16 %v10626_v2, %v10625_v22 }
0x4855   :  { %v13003_v24 = vld [vmem:[%s17336_s9] ss:$0 sm:$0xff] }
0x48c6   :  { %v10225_v5 = vpop.xlane.xlu0 %10224 }
0x48c7   :  { %14766 = vrcp.f32 %v10225_v5  ;;  %v12998_v5 = vld [vmem:[%s17338_s6] ss:$0 sm:$0xff] }
0x48ca   :  { %v10231_v60 = vpop.permute.xlu0 %10230 }
0x48cb   :  { %14067 = vmatpush3.msra.mxu1 %v10231_v60 }
0x48cc   :  { %14069 = vmatmul.mubr.msk.f32.vlgmr.msra.gmra.mrb[114].mxu1 %vm676_vm6, %v10227_v53  ;;  %14354 = vmatprep.subr.bf16.mxu1 %v14353_v0 }
0x48cd   :  { %14356 = vmatpush3.bf16.msra.mxu1 %v14353_v0 }
0x48ce   :  { %14358 = vmatprep.subr.bf16.mxu1 %v14357_v54 }
0x48d1   :  { %v14767_v62 = vpop.eup %14766  ;;  %14360 = vmatpush3.bf16.msra.mxu1 %v14357_v54 }
0x48d2   :  { %v10229_v63 = vmul.f32 %v14767_v62, %v14763_v15  ;;  %14103 = vmatprep.subr.mxu1 %v15361_v46 }
0x48d4   :  { %14074 = vmatmul.mubr.msk.f32.vlgmr.msra.gmra.mrb[76].mxu0 %vm676_vm6, %v10229_v63  ;;  %v12999_v63 = vld [vmem:[%s17339_s13] ss:$0 sm:$0xff] }
0x48d5   :  { %14077 = vmatpush3.msra.mxu0 %v8817_v59 }
0x48d6   :  { %14362 = vmatprep.subr.bf16.mxu0 %v14361_v55 }
0x499f   :  { %v10302_v3 = vpop.f32.mrb[114].mxu1 }
0x49a0   :  { %v14070_v4 = vpop.f32.mrb[115].mxu1  ;;  %14078 = vmatprep.mubr.msk.f32.mxu0 %vm676_vm6, %v10302_v3  ;;  %v13000_v3 = vld [vmem:[%s17340_s27] ss:$0 sm:$0xff] }
0x49a7   :  { %v10378_v12 = vpop.f32.mrb[76].mxu0 }
0x49a8   :  { %v14075_v48 = vpop.f32.mrb[77].mxu0  ;;  %14079 = vmatmul.mubr.msk.f32.vlgmr.msra.gmra.mrb[70].mxu0 %vm676_vm6, %v10378_v12 }
0x49a9   :  { %14364 = vmatpush3.bf16.msra.mxu0 %v14361_v55  ;;  %14100 = vmatprep.mubr.msk.f32.mxu0 %vm517_vm0, %v16537_v41 }
0x49aa   :  { %14366 = vmatprep.subr.bf16.mxu0 %v14365_v11 }
0x49ad   :  { %14368 = vmatpush3.bf16.msra.mxu0 %v14365_v11 }
0x49ae   :  { %14113 = vmatprep.subr.mxu0 %v15361_v46 }
0x49b0   :  { %14101 = vmatmul.mubr.msk.f32.vlgmr.msra.gmra.mrb[78].mxu0 %vm517_vm0, %v16539_v39 }
0x49b1   :  { %14115 = vmatprep.mubr.msk.f32.mxu0 %vm15362_vm5, %v15361_v46 }
0x4a7b   :  { %v14080_v42 = vpop.f32.mrb[70].mxu0 }
0x4a7c   :  { %v10472_v17 = vadd.f32 %v14080_v42, %v12997_v51  ;;  %v10454_v37 = vpop.f32.mrb[71].mxu0  ;;  %v17020_v42 = vld [vmem:[%s17320_s8 + $0x8] sm:$0xff] }
0x4a7d   :  { %v10471_v40 = vadd.f32 %v12997_v51, %v10454_v37 }
0x4a7e   :  { %v16969_v13 = vadd.f32 %v10472_v17, %v16767_v19 }
0x4a7f   :  { %v16972_v41 = vadd.f32 %v10471_v40, %v16770_v20 }
0x4a80   :  { %v10480_v14 = vsel %vm517_vm0, %v16969_v13, 0.0 }
0x4a81   :  { %10481 = vadd.xlane.f32.xlu0 %v10480_v14  ;;  %v10477_v39 = vsel %vm517_vm0, %v16972_v41, 0.0 }
0x4a82   :  { %10478 = vadd.xlane.f32.xlu1 %v10477_v39 }
0x4a83   :  { %v14102_v21 = vpop.f32.mrb[78].mxu0 }
0x4a84   :  { %v10702_v10 = vpop.f32.mrb[79].mxu0  ;;  %v16985_v58 = vadd.f32 %v14102_v21, %v13003_v24 }
0x4a85   :  { %v16979_v7 = vadd.f32 %v13003_v24, %v10702_v10 }
0x4b0e   :  { %v10482_v19 = vpop.xlane.xlu0 %10481 }
0x4b0f   :  { %v10484_v6 = vmul.f32 0.03125, %v10482_v19  ;;  %v10479_v20 = vpop.xlane.xlu1 %10478 }
0x4b10   :  { %v10483_v18 = vmul.f32 0.03125, %v10479_v20 }
0x4b11   :  { %v10486_v31 = vsub.f32 %v16969_v13, %v10484_v6  ;;  %v17031_v6 = vld [vmem:[%s17320_s8] sm:$0xff]  ;;  %s12685_s8 = sshll.u32 %s15374_s2, 4  ;;  %s12686_s8 = int_to_ptr.vmem [resolvable:$true] %s12685_s8 }
0x4b12   :  { %v10485_v23 = vsub.f32 %v16972_v41, %v10483_v18  ;;  %s15226_s30 = scalar_lea.vmem %s12686_s8, 256  ;;  %p15231_p5 = scmp.lt.s32.totalorder %s12686_s8, %s12686_s8 }
0x4b13   :  { %v10488_v16 = vmul.f32 %v10486_v31, %v10486_v31  ;;  %v10518_v28 = vmul.f32 %v12998_v5, %v10486_v31  ;;  %p15227_p4 = scmp.ne.s32.totalorder %s12686_s8, %s15226_s30  ;;  %p15232_p6 = scmp.lt.s32.totalorder %s15226_s30, %s15226_s30 }
0x4b14   :  { %v10487_v25 = vmul.f32 %v10485_v23, %v10485_v23  ;;  %v10517_v60 = vmul.f32 %v12998_v5, %v10485_v23 }
0x4b15   :  { %v10492_v26 = vsel %vm517_vm0, %v10488_v16, 0.0  ;;  %p15233_p7 = por %p15232_p6, %p15231_p5 }
0x4b16   :  { %10493 = vadd.xlane.f32.xlu1 %v10492_v26  ;;  %v10489_v57 = vsel %vm517_vm0, %v10487_v25, 0.0 }
0x4b17   :  { %10490 = vadd.xlane.f32.xlu0 %v10489_v57  ;;  %p15234_p8 = pnand %p15233_p7, %p15227_p4 }
0x4b27   :  { %11122 = vrot.lane.b32.xlu1 %v16985_v58, %s15365_s23 }
0x4ba3   :  { %v10494_v34 = vpop.xlane.xlu1 %10493 }
0x4ba4   :  { %v10496_v45 = vmul.f32 0.032258064, %v10494_v34  ;;  %v10491_v43 = vpop.xlane.xlu0 %10490 }
0x4ba5   :  { %v10495_v61 = vmul.f32 0.032258064, %v10491_v43 }
0x4ba6   :  { %14768 = vrsqrt.f32 %v10496_v45  ;;  %vm10506_vm1 = vcmp.eq.f32.partialorder %v10496_v45, inf  ;;  %v10509_v33 = vand.u32 2147483648, %v10496_v45  ;;  %vm10508_vm2 = vcmp.eq.f32.partialorder %v10496_v45, 0.0 }
0x4ba7   :  { %14770 = vrsqrt.f32 %v10495_v61  ;;  %vm10499_vm3 = vcmp.eq.f32.partialorder %v10495_v61, inf  ;;  %v10502_v44 = vand.u32 2147483648, %v10495_v61  ;;  %vm10501_vm4 = vcmp.eq.f32.partialorder %v10495_v61, 0.0  ;;  %v11123_v31 = vpop.permute.xlu1 %11122 }
0x4bb0   :  { %v14769_v32 = vpop.eup %14768 }
0x4bb1   :  { %v14771_v35 = vpop.eup %14770  ;;  %v10505_v49 = vmul.f32 %v14769_v32, %v10496_v45 }
0x4bb2   :  { %v10498_v36 = vmul.f32 %v14771_v35, %v10495_v61 }
0x4bb3   :  { %v10507_v38 = vsel %vm10506_vm1, %v10496_v45, %v10505_v49 }
0x4bb4   :  { %v10510_v47 = vsel %vm10508_vm2, %v10509_v33, %v10507_v38  ;;  %v10500_v29 = vsel %vm10499_vm3, %v10495_v61, %v10498_v36 }
0x4bb5   :  { %v10520_v15 = vadd.f32 1e-06, %v10510_v47  ;;  %v10503_v30 = vsel %vm10501_vm4, %v10502_v44, %v10500_v29 }
0x4bb6   :  { %v10519_v1 = vadd.f32 1e-06, %v10503_v30 }
0x4bb7   :  { %14772 = vrcp.f32 %v10520_v15 }
0x4bb8   :  { %14774 = vrcp.f32 %v10519_v1 }
0x4bc1   :  { %v14773_v53 = vpop.eup %14772 }
0x4bc2   :  { %v14775_v62 = vpop.eup %14774  ;;  %v10524_v59 = vmul.f32 %v14773_v53, %v10518_v28 }
0x4bc3   :  { %v10522_v22 = vmul.f32 %v14775_v62, %v10517_v60 }
0x4bc4   :  { %v10532_v55 = vadd.f32 %v12999_v63, %v10524_v59 }
0x4bc5   :  { %v10531_v2 = vadd.f32 %v12999_v63, %v10522_v22 }
0x4bc7   :  { %14089 = vmatprep.mubr.msk.f32.mxu1 %vm517_vm0, %v10531_v2 }
0x4bc8   :  { %14090 = vmatmul.mubr.msk.f32.vlgmr.msra.gmra.mrb[116].mxu1 %vm517_vm0, %v10532_v55 }
0x4bc9   :  { %14104 = vmatpush3.xpose.msk.msra.mxu1 %vm676_vm6, %v16979_v7  ;;  %14105 = vmatprep.mubr.msk.f32.mxu1 %vm15362_vm5, %v15361_v46 }
0x4bca   :  { %14108 = vmatprep.subr.mxu1 %v15361_v46 }
0x4c9b   :  { %v14091_v4 = vpop.f32.mrb[116].mxu1 }
0x4c9c   :  { %v10616_v8 = vpop.f32.mrb[117].mxu1  ;;  %v17012_v11 = vadd.f32 %v14091_v4, %v13000_v3 }
0x4c9d   :  { %v17004_v9 = vadd.f32 %v13000_v3, %v10616_v8 }
0x4c9f   :  { %14106 = vmatmul.mubr.msk.f32.vlgmr.msra.gmra.mrb[118].mxu1 %vm676_vm6, %v17004_v9 }
0x4ca0   :  { %14109 = vmatpush3.xpose.msk.msra.mxu1 %vm676_vm6, %v16985_v58  ;;  %14110 = vmatprep.mubr.msk.f32.mxu1 %vm15362_vm5, %v15361_v46 }
0x4ca1   :  { %14118 = vmatprep.subr.mxu1 %v15361_v46 }
0x4ca3   :  { %14111 = vmatmul.mubr.msk.f32.vlgmr.msra.gmra.mrb[120].mxu1 %vm676_vm6, %v17012_v11 }
0x4ca4   :  { %14120 = vmatprep.mubr.msk.f32.mxu1 %vm15362_vm5, %v15361_v46 }
0x4d72   :  { %v10788_v12 = vpop.f32.mrb[118].mxu1 }
0x4d73   :  { %v14107_v48 = vpop.f32.mrb[119].mxu1  ;;  %v10789_v20 = vadd.f32 %v17031_v6, %v10788_v12 }
0x4d75   :  { %v10868_v18 = vsel %vm676_vm6, %v10789_v20, -inf }
0x4d76   :  { %v10864_v51 = vpop.f32.mrb[120].mxu1 }
0x4d77   :  { %v10865_v17 = vadd.f32 %v17020_v42, %v10864_v51  ;;  %v14112_v37 = vpop.f32.mrb[121].mxu1 }
0x4d79   :  { %v10871_v40 = vsel %vm676_vm6, %v10865_v17, -inf }
0x4d7a   :  { %10872 = vmax.xlane.f32.xlu0 %v10871_v40 }
0x4d90   :  { %10966 = vrot.lane.b32.xlu0 %v16985_v58, %s15363_s18 }
0x4e07   :  { %v10873_v14 = vpop.xlane.xlu0 %10872 }
0x4e08   :  { %v10875_v39 = vsub.f32 %v10865_v17, %v10873_v14 }
0x4e0a   :  { %v10878_v24 = vmul.f32 1.442695, %v10875_v39 }
0x4e0b   :  { %v10967_v21 = vpop.permute.xlu0 %10966 }
0x4e0c   :  { %14776 = vpow2.f32 %v10878_v24  ;;  %14119 = vmatpush3.msra.mxu1 %v10967_v21 }
0x4e0d   :  { %14128 = vmatprep.subr.mxu1 %v15361_v46 }
0x4e16   :  { %v14777_v10 = vpop.eup %14776 }
0x4e17   :  { %v10883_v19 = vsel %vm676_vm6, %v14777_v10, 0.0 }
0x4e18   :  { %10884 = vadd.xlane.f32.xlu1 %v10883_v19 }
0x4e29   :  { %11120 = vrot.lane.b32.xlu1 %v17012_v11, %s15365_s23 }
0x4e4d   :  { %10869 = vmax.xlane.f32.xlu1 %v10868_v18 }
0x4e5e   :  { %11044 = vrot.lane.b32.xlu1 %v16979_v7, %s15365_s23 }
0x4e62   :  { %11042 = vrot.lane.b32.xlu1 %v17004_v9, %s15365_s23  ;;  %s17343_s23 = sld [smem:[#allocation81_spill]] }
0x4e66   :  { %11536 = vrot.lane.b32.xlu1 %v16979_v7, %s15369_s17 }
0x4ea5   :  { %v10885_v23 = vpop.xlane.xlu1 %10884 }
0x4ea6   :  { %14778 = vrcp.f32 %v10885_v23 }
0x4ea9   :  { %v11121_v26 = vpop.permute.xlu1 %11120 }
0x4eb0   :  { %v14779_v16 = vpop.eup %14778 }
0x4eb1   :  { %v10889_v25 = vmul.f32 %v14779_v16, %v14777_v10 }
0x4eb3   :  { %14121 = vmatmul.mubr.msk.f32.vlgmr.msra.gmra.mrb[122].mxu1 %vm676_vm6, %v10889_v25 }
0x4eb4   :  { %14129 = vmatpush3.xpose.msk.msra.mxu1 %vm676_vm6, %v11123_v31  ;;  %14130 = vmatprep.mubr.msk.f32.mxu1 %vm15362_vm5, %v15361_v46 }
0x4eb5   :  { %14138 = vmatprep.subr.mxu1 %v15361_v46 }
0x4eb7   :  { %14131 = vmatmul.mubr.msk.f32.vlgmr.msra.gmra.mrb[124].mxu1 %vm676_vm6, %v11121_v26 }
0x4eb8   :  { %14140 = vmatprep.mubr.msk.f32.mxu1 %vm15362_vm5, %v15361_v46 }
0x4eda   :  { %v10870_v57 = vpop.xlane.xlu1 %10869 }
0x4edb   :  { %v10874_v52 = vsub.f32 %v10789_v20, %v10870_v57 }
0x4edd   :  { %v10876_v27 = vmul.f32 1.442695, %v10874_v52 }
0x4ede   :  { %v11045_v45 = vpop.permute.xlu1 %11044 }
0x4edf   :  { %14780 = vpow2.f32 %v10876_v27 }
0x4ee2   :  { %v11043_v35 = vpop.permute.xlu1 %11042 }
0x4ee6   :  { %v11537_v59 = vpop.permute.xlu1 %11536 }
0x4ee9   :  { %v14781_v50 = vpop.eup %14780 }
0x4eea   :  { %v10880_v0 = vsel %vm676_vm6, %v14781_v50, 0.0 }
0x4eeb   :  { %10881 = vadd.xlane.f32.xlu0 %v10880_v0 }
0x4f01   :  { %10890 = vrot.lane.b32.xlu0 %v16979_v7, %s15363_s18  ;;  %s17341_s18 = sld [smem:[#allocation84_spill]] }
0x4f07   :  { %v10712_v57 = vld [vmem:[%s17341_s18 + $0x8] sm:$0xff]  ;;  %v10711_v52 = vld [vmem:[%s17341_s18] sm:$0xff] }
0x4f78   :  { %v10882_v56 = vpop.xlane.xlu0 %10881 }
0x4f79   :  { %14782 = vrcp.f32 %v10882_v56 }
0x4f7c   :  { %v10891_v54 = vpop.permute.xlu0 %10890 }
0x4f7d   :  { %14114 = vmatpush3.msra.mxu0 %v10891_v54 }
0x4f7e   :  { %14123 = vmatprep.subr.mxu0 %v15361_v46 }
0x4f83   :  { %v14783_v34 = vpop.eup %14782 }
0x4f84   :  { %v10887_v43 = vmul.f32 %v14783_v34, %v14781_v50 }
0x4f86   :  { %14116 = vmatmul.mubr.msk.f32.vlgmr.msra.gmra.mrb[80].mxu0 %vm676_vm6, %v10887_v43  ;;  %v17054_v61 = vpop.f32.mrb[122].mxu1 }
0x4f87   :  { %14124 = vmatpush3.xpose.msk.msra.mxu0 %vm676_vm6, %v11045_v45  ;;  %v14122_v32 = vpop.f32.mrb[123].mxu1  ;;  %14125 = vmatprep.mubr.msk.f32.mxu0 %vm15362_vm5, %v15361_v46 }
0x4f88   :  { %14133 = vmatprep.subr.mxu0 %v15361_v46 }
0x4f8a   :  { %14126 = vmatmul.mubr.msk.f32.vlgmr.msra.gmra.mrb[82].mxu0 %vm676_vm6, %v11043_v35  ;;  %v11194_v49 = vpop.f32.mrb[124].mxu1 }
0x4f8b   :  { %v11195_v33 = vadd.f32 %v17020_v42, %v11194_v49  ;;  %v14132_v36 = vpop.f32.mrb[125].mxu1  ;;  %14135 = vmatprep.mubr.msk.f32.mxu0 %vm15362_vm5, %v15361_v46 }
0x4f8d   :  { %v11201_v38 = vsel %vm676_vm6, %v11195_v33, -inf }
0x4f8e   :  { %11202 = vmax.xlane.f32.xlu0 %v11201_v38  ;;  %v10713_v38 = vld [vmem:[%s17341_s18 + $0x10] sm:$0xff] }
0x4fa4   :  { %11296 = vrot.lane.b32.xlu0 %v16985_v58, %s15364_s22 }
0x4fa8   :  { %11534 = vrot.lane.b32.xlu0 %v17004_v9, %s15369_s17 }
0x4fac   :  { %11612 = vrot.lane.b32.xlu0 %v17012_v11, %s15369_s17 }
0x501b   :  { %v11203_v44 = vpop.xlane.xlu0 %11202 }
0x501c   :  { %v11205_v47 = vsub.f32 %v11195_v33, %v11203_v44 }
0x501e   :  { %v11208_v29 = vmul.f32 1.442695, %v11205_v47 }
0x501f   :  { %v11297_v15 = vpop.permute.xlu0 %11296 }
0x5020   :  { %14784 = vpow2.f32 %v11208_v29  ;;  %14139 = vmatpush3.msra.mxu1 %v11297_v15 }
0x5021   :  { %14153 = vmatprep.subr.mxu1 %v15361_v46 }
0x5023   :  { %v11535_v3 = vpop.permute.xlu0 %11534 }
0x5027   :  { %v11613_v8 = vpop.permute.xlu0 %11612 }
0x502a   :  { %v14785_v30 = vpop.eup %14784 }
0x502b   :  { %v11213_v1 = vsel %vm676_vm6, %v14785_v30, 0.0 }
0x502c   :  { %11214 = vadd.xlane.f32.xlu1 %v11213_v1 }
0x503d   :  { %11614 = vrot.lane.b32.xlu1 %v16985_v58, %s15369_s17  ;;  %s17345_s17 = sld [smem:[#allocation80_spill]] }
0x5059   :  { %v17075_v5 = vpop.f32.mrb[80].mxu0 }
0x505a   :  { %v14117_v28 = vpop.f32.mrb[81].mxu0 }
0x505d   :  { %v11116_v53 = vpop.f32.mrb[82].mxu0 }
0x505e   :  { %v11117_v60 = vadd.f32 %v17031_v6, %v11116_v53  ;;  %v14127_v62 = vpop.f32.mrb[83].mxu0 }
0x5060   :  { %v11198_v63 = vsel %vm676_vm6, %v11117_v60, -inf }
0x5061   :  { %11199 = vmax.xlane.f32.xlu1 %v11198_v63 }
0x50b9   :  { %v11215_v22 = vpop.xlane.xlu1 %11214 }
0x50ba   :  { %14786 = vrcp.f32 %v11215_v22 }
0x50bd   :  { %v11615_v4 = vpop.permute.xlu1 %11614 }
0x50c4   :  { %v14787_v2 = vpop.eup %14786 }
0x50c5   :  { %v11219_v55 = vmul.f32 %v14787_v2, %v14785_v30 }
0x50c7   :  { %14141 = vmatmul.mubr.msk.f32.vlgmr.msra.gmra.mrb[126].mxu1 %vm676_vm6, %v11219_v55 }
0x50c8   :  { %14154 = vmatpush3.xpose.msk.msra.mxu1 %vm676_vm6, %v11537_v59  ;;  %14155 = vmatprep.mubr.msk.f32.mxu1 %vm15362_vm5, %v15361_v46 }
0x50c9   :  { %14158 = vmatprep.subr.mxu1 %v15361_v46 }
0x50cb   :  { %14156 = vmatmul.mubr.msk.f32.vlgmr.msra.gmra.mrb[128].mxu1 %vm676_vm6, %v11535_v3 }
0x50cc   :  { %14159 = vmatpush3.xpose.msk.msra.mxu1 %vm676_vm6, %v11615_v4  ;;  %14160 = vmatprep.mubr.msk.f32.mxu1 %vm15362_vm5, %v15361_v46 }
0x50cd   :  { %14168 = vmatprep.subr.mxu1 %v15361_v46 }
0x50cf   :  { %14161 = vmatmul.mubr.msk.f32.vlgmr.msra.gmra.mrb[130].mxu1 %vm676_vm6, %v11613_v8 }
0x50d0   :  { %14170 = vmatprep.mubr.msk.f32.mxu1 %vm15362_vm5, %v15361_v46 }
0x50ee   :  { %v11200_v12 = vpop.xlane.xlu1 %11199 }
0x50ef   :  { %v11204_v48 = vsub.f32 %v11117_v60, %v11200_v12 }
0x50f1   :  { %v11206_v51 = vmul.f32 1.442695, %v11204_v48 }
0x50f3   :  { %14788 = vpow2.f32 %v11206_v51 }
0x50fd   :  { %v14789_v17 = vpop.eup %14788 }
0x50fe   :  { %v11210_v37 = vsel %vm676_vm6, %v14789_v17, 0.0 }
0x50ff   :  { %11211 = vadd.xlane.f32.xlu0 %v11210_v37 }
0x5115   :  { %11220 = vrot.lane.b32.xlu0 %v16979_v7, %s15364_s22  ;;  %s17342_s22 = sld [smem:[#allocation71_spill]] }
0x5119   :  { %11788 = vrot.lane.b32.xlu0 %v16985_v58, %s15366_s26 }
0x511d   :  { %11949 = vrot.lane.b32.xlu0 %v16979_v7, %s15372_s1 }
0x5121   :  { %12027 = vrot.lane.b32.xlu0 %v16985_v58, %s15372_s1 }
0x5125   :  { %11947 = vrot.lane.b32.xlu0 %v17004_v9, %s15372_s1 }
0x518c   :  { %v11212_v40 = vpop.xlane.xlu0 %11211 }
0x518d   :  { %14790 = vrcp.f32 %v11212_v40 }
0x5190   :  { %v11221_v14 = vpop.permute.xlu0 %11220 }
0x5191   :  { %14134 = vmatpush3.msra.mxu0 %v11221_v14 }
0x5192   :  { %14143 = vmatprep.subr.mxu0 %v10712_v57 }
0x5194   :  { %v11789_v39 = vpop.permute.xlu0 %11788 }
0x5195   :  { %14169 = vmatpush3.msra.mxu1 %v11789_v39 }
0x5196   :  { %14178 = vmatprep.subr.mxu1 %v15361_v46 }
0x5197   :  { %v14791_v24 = vpop.eup %14790 }
0x5198   :  { %v11217_v21 = vmul.f32 %v14791_v24, %v14789_v17  ;;  %v11950_v47 = vpop.permute.xlu0 %11949 }
0x519a   :  { %14136 = vmatmul.mubr.msk.f32.vlgmr.msra.gmra.mrb[84].mxu0 %vm676_vm6, %v11217_v21  ;;  %v11368_v10 = vpop.f32.mrb[126].mxu1 }
0x519b   :  { %v14142_v19 = vpop.f32.mrb[127].mxu1  ;;  %14144 = vmatpush3.msra.mxu0 %v10712_v57 }
0x519c   :  { %14148 = vmatprep.subr.mxu0 %v10711_v52  ;;  %v12028_v1 = vpop.permute.xlu0 %12027 }
0x519e   :  { %v11608_v20 = vpop.f32.mrb[128].mxu1 }
0x519f   :  { %v11609_v18 = vadd.f32 %v17031_v6, %v11608_v20  ;;  %v14157_v9 = vpop.f32.mrb[129].mxu1 }
0x51a1   :  { %v11690_v31 = vsel %vm676_vm6, %v11609_v18, -inf }
0x51a2   :  { %11691 = vmax.xlane.f32.xlu1 %v11690_v31  ;;  %v11686_v23 = vpop.f32.mrb[130].mxu1  ;;  %v10714_v31 = vld [vmem:[%s17341_s18 + $0x18] sm:$0xff] }
0x51a3   :  { %v11687_v16 = vadd.f32 %v17020_v42, %v11686_v23  ;;  %v14162_v25 = vpop.f32.mrb[131].mxu1 }
0x51a5   :  { %v11693_v26 = vsel %vm676_vm6, %v11687_v16, -inf }
0x51a6   :  { %11694 = vmax.xlane.f32.xlu1 %v11693_v26  ;;  %v13038_v26 = vld [vmem:[%s17342_s22] ss:$0 sm:$0xff] }
0x522f   :  { %v11692_v27 = vpop.xlane.xlu1 %11691 }
0x5230   :  { %v11696_v50 = vsub.f32 %v11609_v18, %v11692_v27 }
0x5232   :  { %v11698_v0 = vmul.f32 1.442695, %v11696_v50 }
0x5233   :  { %v11695_v56 = vpop.xlane.xlu1 %11694 }
0x5234   :  { %14792 = vpow2.f32 %v11698_v0  ;;  %v11697_v54 = vsub.f32 %v11687_v16, %v11695_v56 }
0x5236   :  { %v11700_v34 = vmul.f32 1.442695, %v11697_v54 }
0x5238   :  { %14794 = vpow2.f32 %v11700_v34 }
0x523e   :  { %v14793_v45 = vpop.eup %14792 }
0x523f   :  { %v11702_v43 = vsel %vm676_vm6, %v14793_v45, 0.0 }
0x5240   :  { %11703 = vadd.xlane.f32.xlu1 %v11702_v43 }
0x5242   :  { %v14795_v32 = vpop.eup %14794 }
0x5243   :  { %v11705_v35 = vsel %vm676_vm6, %v14795_v32, 0.0 }
0x5244   :  { %11706 = vadd.xlane.f32.xlu1 %v11705_v35 }
0x5255   :  { %11712 = vrot.lane.b32.xlu1 %v16979_v7, %s15366_s26  ;;  %s17344_s26 = sld [smem:[#allocation82_spill]] }
0x5259   :  { %12025 = vrot.lane.b32.xlu1 %v17012_v11, %s15372_s1  ;;  %s17347_s1 = sld [smem:[#allocation68_spill]] }
0x526d   :  { %v11292_v49 = vpop.f32.mrb[84].mxu0 }
0x526e   :  { %v14137_v33 = vpop.f32.mrb[85].mxu0  ;;  %14145 = vmatprep.mubr.msk.f32.mxu0 %vm676_vm6, %v11292_v49 }
0x526f   :  { %14146 = vmatmul.mubr.msk.f32.vlgmr.msra.gmra.mrb[86].mxu0 %vm676_vm6, %v11368_v10 }
0x5270   :  { %14150 = vmatprep.mubr.msk.f32.mxu0 %vm676_vm6, %v17075_v5  ;;  %14149 = vmatpush3.msra.mxu0 %v10711_v52  ;;  %v11948_v5 = vpop.permute.xlu0 %11947 }
0x5271   :  { %14163 = vmatprep.subr.mxu0 %v15361_v46 }
0x5277   :  { %14151 = vmatmul.mubr.msk.f32.vlgmr.msra.gmra.mrb[86].mxu0 %vm676_vm6, %v17054_v61 }
0x5278   :  { %14165 = vmatprep.mubr.msk.f32.mxu0 %vm15362_vm5, %v15361_v46 }
0x52cd   :  { %v11704_v36 = vpop.xlane.xlu1 %11703 }
0x52ce   :  { %14796 = vrcp.f32 %v11704_v36 }
0x52d1   :  { %v11707_v11 = vpop.xlane.xlu1 %11706 }
0x52d2   :  { %14798 = vrcp.f32 %v11707_v11 }
0x52d5   :  { %v11713_v44 = vpop.permute.xlu1 %11712 }
0x52d6   :  { %14164 = vmatpush3.msra.mxu0 %v11713_v44  ;;  %v12429_v44 = vld [vmem:[%s17343_s23 + $0x8] sm:$0xff] }
0x52d7   :  { %14173 = vmatprep.subr.mxu0 %v10713_v38 }
0x52d8   :  { %v14797_v29 = vpop.eup %14796 }
0x52d9   :  { %v11709_v15 = vmul.f32 %v14797_v29, %v14793_v45  ;;  %v12026_v63 = vpop.permute.xlu1 %12025 }
0x52db   :  { %14166 = vmatmul.mubr.msk.f32.vlgmr.msra.gmra.mrb[88].mxu0 %vm676_vm6, %v11709_v15  ;;  %v12431_v15 = vld [vmem:[%s17343_s23 + $0x18] sm:$0xff] }
0x52dc   :  { %v14799_v30 = vpop.eup %14798  ;;  %14174 = vmatpush3.msra.mxu0 %v10713_v38  ;;  %v12428_v38 = vld [vmem:[%s17343_s23] sm:$0xff] }
0x52dd   :  { %v11711_v61 = vmul.f32 %v14799_v30, %v14795_v32  ;;  %14183 = vmatprep.subr.mxu0 %v15361_v46  ;;  %v14369_v29 = vpack.c.bf16 %v12429_v44, %v12428_v38 }
0x52df   :  { %14171 = vmatmul.mubr.msk.f32.vlgmr.msra.gmra.mrb[132].mxu1 %vm676_vm6, %v11711_v61  ;;  %v12523_v61 = vld [vmem:[%s17344_s26 + $0x8] sm:$0xff] }
0x52e0   :  { %14179 = vmatpush3.xpose.msk.msra.mxu1 %vm676_vm6, %v11950_v47  ;;  %14180 = vmatprep.mubr.msk.f32.mxu1 %vm15362_vm5, %v15361_v46  ;;  %v12430_v47 = vld [vmem:[%s17343_s23 + $0x10] sm:$0xff] }
0x52e1   :  { %14188 = vmatprep.subr.mxu1 %v15361_v46  ;;  %v14373_v30 = vpack.c.bf16 %v12431_v15, %v12430_v47 }
0x52e3   :  { %14181 = vmatmul.mubr.msk.f32.vlgmr.msra.gmra.mrb[134].mxu1 %vm676_vm6, %v11948_v5  ;;  %v12524_v5 = vld [vmem:[%s17344_s26 + $0x10] sm:$0xff] }
0x52e4   :  { %14190 = vmatprep.mubr.msk.f32.mxu1 %vm15362_vm5, %v15361_v46 }
0x53ae   :  { %v11784_v28 = vpop.f32.mrb[88].mxu0 }
0x53af   :  { %v14167_v53 = vpop.f32.mrb[89].mxu0  ;;  %14175 = vmatprep.mubr.msk.f32.mxu0 %vm676_vm6, %v11784_v28 }
0x53b0   :  { %v12525_v53 = vld [vmem:[%s17344_s26 + $0x18] sm:$0xff] }
0x53b2   :  { %v11860_v60 = vpop.f32.mrb[132].mxu1 }
0x53b3   :  { %v14172_v62 = vpop.f32.mrb[133].mxu1  ;;  %14176 = vmatmul.mubr.msk.f32.vlgmr.msra.gmra.mrb[86].mxu0 %vm676_vm6, %v11860_v60  ;;  %v14381_v60 = vpack.c.bf16 %v12525_v53, %v12524_v5 }
0x53b4   :  { %14184 = vmatpush3.xpose.msk.msra.mxu0 %vm676_vm6, %v12028_v1  ;;  %14185 = vmatprep.mubr.msk.f32.mxu0 %vm15362_vm5, %v15361_v46  ;;  %v12522_v1 = vld [vmem:[%s17344_s26] sm:$0xff] }
0x53b5   :  { %14193 = vmatprep.subr.mxu0 %v15361_v46  ;;  %v14377_v28 = vpack.c.bf16 %v12523_v61, %v12522_v1  ;;  %v12526_v62 = vld [vmem:[%s17344_s26 + $0x20] sm:$0xff] }
0x53b6   :  { %v12021_v59 = vpop.f32.mrb[134].mxu1 }
0x53b7   :  { %v12022_v22 = vadd.f32 %v17031_v6, %v12021_v59  ;;  %v14182_v2 = vpop.f32.mrb[135].mxu1  ;;  %14186 = vmatmul.mubr.msk.f32.vlgmr.msra.gmra.mrb[90].mxu0 %vm676_vm6, %v12026_v63  ;;  %v12527_v63 = vld [vmem:[%s17344_s26 + $0x28] sm:$0xff] }
0x53b8   :  { %14195 = vmatprep.mubr.msk.f32.mxu0 %vm15362_vm5, %v15361_v46  ;;  %v14385_v59 = vpack.c.bf16 %v12527_v63, %v12526_v62 }
0x53b9   :  { %v12103_v55 = vsel %vm676_vm6, %v12022_v22, -inf }
0x53ba   :  { %12104 = vmax.xlane.f32.xlu0 %v12103_v55 }
0x5447   :  { %v12105_v3 = vpop.xlane.xlu0 %12104 }
0x5448   :  { %v12109_v4 = vsub.f32 %v12022_v22, %v12105_v3 }
0x544a   :  { %v12111_v8 = vmul.f32 1.442695, %v12109_v4 }
0x544c   :  { %14800 = vpow2.f32 %v12111_v8 }
0x5456   :  { %v14801_v12 = vpop.eup %14800 }
0x5457   :  { %v12115_v48 = vsel %vm676_vm6, %v14801_v12, 0.0 }
0x5458   :  { %12116 = vadd.xlane.f32.xlu0 %v12115_v48 }
0x548a   :  { %v12099_v51 = vpop.f32.mrb[90].mxu0 }
0x548b   :  { %v12100_v6 = vadd.f32 %v17020_v42, %v12099_v51  ;;  %v14187_v17 = vpop.f32.mrb[91].mxu0 }
0x548d   :  { %v12106_v37 = vsel %vm676_vm6, %v12100_v6, -inf }
0x548e   :  { %12107 = vmax.xlane.f32.xlu1 %v12106_v37 }
0x549f   :  { %12201 = vrot.lane.b32.xlu1 %v16985_v58, %s15371_s21 }
0x54e5   :  { %v12117_v42 = vpop.xlane.xlu0 %12116 }
0x551b   :  { %v12108_v46 = vpop.xlane.xlu1 %12107 }
0x551c   :  { %v12110_v40 = vsub.f32 %v12100_v6, %v12108_v46 }
0x551e   :  { %v12113_v14 = vmul.f32 1.442695, %v12110_v40 }
0x551f   :  { %v12202_v39 = vpop.permute.xlu1 %12201 }
0x5520   :  { %14802 = vpow2.f32 %v12113_v14  ;;  %14194 = vmatpush3.msra.mxu0 %v12202_v39 }
0x5521   :  { %14804 = vrcp.f32 %v12117_v42  ;;  %14198 = vmatprep.subr.mxu0 %v10714_v31 }
0x552a   :  { %v14803_v24 = vpop.eup %14802 }
0x552b   :  { %v12118_v21 = vsel %vm676_vm6, %v14803_v24, 0.0  ;;  %v14805_v19 = vpop.eup %14804 }
0x552c   :  { %12119 = vadd.xlane.f32.xlu0 %v12118_v21  ;;  %v12122_v58 = vmul.f32 %v14805_v19, %v14801_v12 }
0x5542   :  { %12125 = vrot.lane.b32.xlu0 %v16979_v7, %s15371_s21  ;;  %s17346_s21 = sld [smem:[#allocation79_spill]] }
0x55b9   :  { %v12120_v10 = vpop.xlane.xlu0 %12119 }
0x55ba   :  { %14806 = vrcp.f32 %v12120_v10 }
0x55bd   :  { %v12126_v20 = vpop.permute.xlu0 %12125 }
0x55be   :  { %14189 = vmatpush3.msra.mxu1 %v12126_v20 }
0x55bf   :  { %14191 = vmatmul.mubr.msk.f32.vlgmr.msra.gmra.mrb[136].mxu1 %vm676_vm6, %v12122_v58  ;;  %14370 = vmatprep.subr.bf16.mxu1 %v14369_v29  ;;  %v13040_v58 = vld [vmem:[%s17346_s21] ss:$0 sm:$0xff] }
0x55c0   :  { %14372 = vmatpush3.bf16.msra.mxu1 %v14369_v29 }
0x55c1   :  { %14374 = vmatprep.subr.bf16.mxu1 %v14373_v30 }
0x55c4   :  { %v14807_v18 = vpop.eup %14806  ;;  %14376 = vmatpush3.bf16.msra.mxu1 %v14373_v30 }
0x55c5   :  { %v12124_v9 = vmul.f32 %v14807_v18, %v14803_v24  ;;  %v13039_v24 = vld [vmem:[%s17345_s17] ss:$0 sm:$0xff] }
0x55c7   :  { %14196 = vmatmul.mubr.msk.f32.vlgmr.msra.gmra.mrb[92].mxu0 %vm676_vm6, %v12124_v9 }
0x55c8   :  { %14199 = vmatpush3.msra.mxu0 %v10714_v31 }
0x55c9   :  { %14378 = vmatprep.subr.bf16.mxu0 %v14377_v28 }
0x5692   :  { %v12197_v23 = vpop.f32.mrb[136].mxu1 }
0x5693   :  { %v14192_v7 = vpop.f32.mrb[137].mxu1  ;;  %14200 = vmatprep.mubr.msk.f32.mxu0 %vm676_vm6, %v12197_v23  ;;  %v12528_v23 = vld [vmem:[%s17344_s26 + $0x30] sm:$0xff] }
0x5694   :  { %v12529_v7 = vld [vmem:[%s17344_s26 + $0x38] sm:$0xff] }
0x569a   :  { %v12273_v16 = vpop.f32.mrb[92].mxu0 }
0x569b   :  { %v14197_v25 = vpop.f32.mrb[93].mxu0  ;;  %14201 = vmatmul.mubr.msk.f32.vlgmr.msra.gmra.mrb[86].mxu0 %vm676_vm6, %v12273_v16  ;;  %v14389_v16 = vpack.c.bf16 %v12529_v7, %v12528_v23 }
0x569c   :  { %14380 = vmatpush3.bf16.msra.mxu0 %v14377_v28  ;;  %v13041_v25 = vld [vmem:[%s17347_s1] ss:$0 sm:$0xff] }
0x569d   :  { %14382 = vmatprep.subr.bf16.mxu0 %v14381_v60 }
0x56a0   :  { %14384 = vmatpush3.bf16.msra.mxu0 %v14381_v60 }
0x56a1   :  { %14386 = vmatprep.subr.bf16.mxu0 %v14385_v59 }
0x56a4   :  { %14388 = vmatpush3.bf16.msra.mxu0 %v14385_v59 }
0x56a5   :  { %14390 = vmatprep.subr.bf16.mxu0 %v14389_v16 }
0x56a8   :  { %14392 = vmatpush3.bf16.msra.mxu0 %v14389_v16 }
0x576e   :  { %v14202_v57 = vpop.f32.mrb[86].mxu0 }
0x576f   :  { %v12367_v52 = vadd.f32 %v14202_v57, %v13038_v26  ;;  %v12349_v27 = vpop.f32.mrb[87].mxu0 }
0x5770   :  { %v12366_v50 = vadd.f32 %v13038_v26, %v12349_v27 }
0x5771   :  { %v17163_v0 = vadd.f32 %v12367_v52, %v16969_v13 }
0x5772   :  { %v17166_v56 = vadd.f32 %v12366_v50, %v16972_v41 }
0x5773   :  { %v12375_v54 = vsel %vm517_vm0, %v17163_v0, 0.0 }
0x5774   :  { %12376 = vadd.xlane.f32.xlu0 %v12375_v54  ;;  %v12372_v34 = vsel %vm517_vm0, %v17166_v56, 0.0 }
0x5775   :  { %12373 = vadd.xlane.f32.xlu1 %v12372_v34  ;;  %v13044_v34 = vld [vmem:[%s17348_s4] ss:$0 sm:$0xff] }
0x5801   :  { %v12377_v45 = vpop.xlane.xlu0 %12376 }
0x5802   :  { %v12379_v43 = vmul.f32 0.03125, %v12377_v45  ;;  %v12374_v32 = vpop.xlane.xlu1 %12373 }
0x5803   :  { %v12378_v13 = vmul.f32 0.03125, %v12374_v32 }
0x5804   :  { %v12381_v35 = vsub.f32 %v17163_v0, %v12379_v43 }
0x5805   :  { %v12380_v41 = vsub.f32 %v17166_v56, %v12378_v13 }
0x5806   :  { %v12383_v49 = vmul.f32 %v12381_v35, %v12381_v35  ;;  %v12413_v21 = vmul.f32 %v13039_v24, %v12381_v35 }
0x5807   :  { %v12382_v33 = vmul.f32 %v12380_v41, %v12380_v41  ;;  %v12412_v10 = vmul.f32 %v13039_v24, %v12380_v41 }
0x5808   :  { %v12387_v36 = vsel %vm517_vm0, %v12383_v49, 0.0 }
0x5809   :  { %12388 = vadd.xlane.f32.xlu1 %v12387_v36  ;;  %v12384_v11 = vsel %vm517_vm0, %v12382_v33, 0.0 }
0x580a   :  { %12385 = vadd.xlane.f32.xlu0 %v12384_v11 }
0x5896   :  { %v12389_v22 = vpop.xlane.xlu1 %12388 }
0x5897   :  { %v12391_v2 = vmul.f32 0.032258064, %v12389_v22  ;;  %v12386_v55 = vpop.xlane.xlu0 %12385 }
0x5898   :  { %v12390_v3 = vmul.f32 0.032258064, %v12386_v55 }
0x5899   :  { %14808 = vrsqrt.f32 %v12391_v2  ;;  %vm12401_vm5 = vcmp.eq.f32.partialorder %v12391_v2, inf  ;;  %v12404_v48 = vand.u32 2147483648, %v12391_v2  ;;  %vm12403_vm6 = vcmp.eq.f32.partialorder %v12391_v2, 0.0 }
0x589a   :  { %14810 = vrsqrt.f32 %v12390_v3  ;;  %vm12394_vm7 = vcmp.eq.f32.partialorder %v12390_v3, inf  ;;  %v12397_v17 = vand.u32 2147483648, %v12390_v3  ;;  %vm12396_vm8 = vcmp.eq.f32.partialorder %v12390_v3, 0.0 }
0x58a3   :  { %v14809_v4 = vpop.eup %14808 }
0x58a4   :  { %v14811_v8 = vpop.eup %14810  ;;  %v12400_v12 = vmul.f32 %v14809_v4, %v12391_v2 }
0x58a5   :  { %v12393_v51 = vmul.f32 %v14811_v8, %v12390_v3 }
0x58a6   :  { %v12402_v6 = vsel %vm12401_vm5, %v12391_v2, %v12400_v12 }
0x58a7   :  { %v12405_v37 = vsel %vm12403_vm6, %v12404_v48, %v12402_v6  ;;  %v12395_v46 = vsel %vm12394_vm7, %v12390_v3, %v12393_v51  ;;  %v13047_v48 = vld [vmem:[#allocation5] ss:$0 sm:$0xff] }
0x58a8   :  { %v12415_v40 = vadd.f32 1e-06, %v12405_v37  ;;  %v12398_v14 = vsel %vm12396_vm8, %v12397_v17, %v12395_v46  ;;  %v13048_v37 = vld [vmem:[#allocation2] ss:$0 sm:$0xff] }
0x58a9   :  { %v12414_v39 = vadd.f32 1e-06, %v12398_v14 }
0x58aa   :  { %14812 = vrcp.f32 %v12415_v40 }
0x58ab   :  { %14814 = vrcp.f32 %v12414_v39 }
0x58b4   :  { %v14813_v42 = vpop.eup %14812 }
0x58b5   :  { %v14815_v19 = vpop.eup %14814  ;;  %v12419_v20 = vmul.f32 %v14813_v42, %v12413_v21 }
0x58b6   :  { %v12417_v18 = vmul.f32 %v14815_v19, %v12412_v10 }
0x58b7   :  { %v12427_v31 = vadd.f32 %v13040_v58, %v12419_v20 }
0x58b8   :  { %v12426_v9 = vadd.f32 %v13040_v58, %v12417_v18 }
0x58ba   :  { %14211 = vmatprep.mubr.msk.f32.mxu1 %vm517_vm0, %v12426_v9 }
0x58bb   :  { %14212 = vmatmul.mubr.msk.f32.vlgmr.msra.gmra.mrb[138].mxu1 %vm517_vm0, %v12427_v31 }
0x598e   :  { %v14213_v26 = vpop.f32.mrb[138].mxu1 }
0x598f   :  { %v12517_v57 = vadd.f32 %v14213_v26, %v13041_v25  ;;  %v12511_v52 = vpop.f32.mrb[139].mxu1 }
0x5990   :  { %v12512_v27 = vadd.f32 %v13041_v25, %v12511_v52 }
0x5991   :  { %v12521_v54 = vmax.f32 %v12517_v57, 0.0 }
0x5992   :  { %v12520_v50 = vmax.f32 %v12512_v27, 0.0 }
0x5994   :  { %14230 = vmatprep.mubr.msk.f32.mxu0 %vm2497_vm11, %v12520_v50 }
0x5995   :  { %14231 = vmatmul.mubr.msk.f32.vlgmr.msra.gmra.mrb[94].mxu0 %vm2497_vm11, %v12521_v54 }
0x5a68   :  { %v14232_v45 = vpop.f32.mrb[94].mxu0 }
0x5a69   :  { %v12615_v43 = vadd.f32 %v14232_v45, %v13044_v34  ;;  %v12609_v32 = vpop.f32.mrb[95].mxu0 }
0x5a6a   :  { %v12610_v13 = vadd.f32 %v13044_v34, %v12609_v32 }
0x5a6b   :  { %v12619_v35 = vadd.f32 %v12615_v43, %v17163_v0 }
0x5a6c   :  { %v12618_v41 = vadd.f32 %v12610_v13, %v17166_v56 }
0x5a6d   :  { %v12625_v49 = vsel %vm517_vm0, %v12619_v35, 0.0 }
0x5a6e   :  { %12626 = vadd.xlane.f32.xlu1 %v12625_v49  ;;  %v12622_v33 = vsel %vm517_vm0, %v12618_v41, 0.0 }
0x5a6f   :  { %12623 = vadd.xlane.f32.xlu0 %v12622_v33 }
0x5afb   :  { %v12627_v36 = vpop.xlane.xlu1 %12626 }
0x5afc   :  { %v12629_v11 = vmul.f32 0.03125, %v12627_v36  ;;  %v12624_v38 = vpop.xlane.xlu0 %12623 }
0x5afd   :  { %v12628_v44 = vmul.f32 0.03125, %v12624_v38 }
0x5afe   :  { %v12631_v47 = vsub.f32 %v12619_v35, %v12629_v11 }
0x5aff   :  { %v12630_v29 = vsub.f32 %v12618_v41, %v12628_v44 }
0x5b00   :  { %v12633_v15 = vmul.f32 %v12631_v47, %v12631_v47  ;;  %v12663_v51 = vmul.f32 %v13047_v48, %v12631_v47 }
0x5b01   :  { %v12632_v30 = vmul.f32 %v12630_v29, %v12630_v29  ;;  %v12662_v17 = vmul.f32 %v13047_v48, %v12630_v29 }
0x5b02   :  { %v12637_v1 = vsel %vm517_vm0, %v12633_v15, 0.0 }
0x5b03   :  { %12638 = vadd.xlane.f32.xlu1 %v12637_v1  ;;  %v12634_v0 = vsel %vm517_vm0, %v12632_v30, 0.0 }
0x5b04   :  { %12635 = vadd.xlane.f32.xlu0 %v12634_v0 }
0x5b90   :  { %v12639_v56 = vpop.xlane.xlu1 %12638 }
0x5b91   :  { %v12641_v61 = vmul.f32 0.032258064, %v12639_v56  ;;  %v12636_v5 = vpop.xlane.xlu0 %12635 }
0x5b92   :  { %v12640_v28 = vmul.f32 0.032258064, %v12636_v5 }
0x5b93   :  { %14816 = vrsqrt.f32 %v12641_v61  ;;  %vm12651_vm11 = vcmp.eq.f32.partialorder %v12641_v61, inf  ;;  %v12654_v63 = vand.u32 2147483648, %v12641_v61  ;;  %vm12653_vm9 = vcmp.eq.f32.partialorder %v12641_v61, 0.0 }
0x5b94   :  { %14818 = vrsqrt.f32 %v12640_v28  ;;  %vm12644_vm10 = vcmp.eq.f32.partialorder %v12640_v28, inf  ;;  %v12647_v2 = vand.u32 2147483648, %v12640_v28  ;;  %vm12646_vm12 = vcmp.eq.f32.partialorder %v12640_v28, 0.0 }
0x5b9d   :  { %v14817_v53 = vpop.eup %14816 }
0x5b9e   :  { %v14819_v60 = vpop.eup %14818  ;;  %v12650_v62 = vmul.f32 %v14817_v53, %v12641_v61 }
0x5b9f   :  { %v12643_v59 = vmul.f32 %v14819_v60, %v12640_v28 }
0x5ba0   :  { %v12652_v22 = vsel %vm12651_vm11, %v12641_v61, %v12650_v62 }
0x5ba1   :  { %v12655_v55 = vsel %vm12653_vm9, %v12654_v63, %v12652_v22  ;;  %v12645_v3 = vsel %vm12644_vm10, %v12640_v28, %v12643_v59 }
0x5ba2   :  { %v12665_v4 = vadd.f32 1e-06, %v12655_v55  ;;  %v12648_v8 = vsel %vm12646_vm12, %v12647_v2, %v12645_v3 }
0x5ba3   :  { %v12664_v12 = vadd.f32 1e-06, %v12648_v8 }
0x5ba4   :  { %14820 = vrcp.f32 %v12665_v4 }
0x5ba5   :  { %14822 = vrcp.f32 %v12664_v12 }
0x5bae   :  { %v14821_v6 = vpop.eup %14820 }
0x5baf   :  { %v14823_v46 = vpop.eup %14822  ;;  %v12669_v40 = vmul.f32 %v14821_v6, %v12663_v51 }
0x5bb0   :  { %v12667_v14 = vmul.f32 %v14823_v46, %v12662_v17 }
0x5bb1   :  { %v12677_v39 = vadd.f32 %v13048_v37, %v12669_v40 }
0x5bb2   :  { %v12676_v24 = vadd.f32 %v13048_v37, %v12667_v14 }
0x5bb3   :  { %12679 = vst.msk [vmem:[#allocation31 + $0x8] sm:$0xff] %vm517_vm0, %v12677_v39 }
0x5bb4   :  { %12678 = vst.msk [vmem:[#allocation31] sm:$0xff] %vm517_vm0, %v12676_v24 }
0x5bb5   :  { %15237 = shalt.err (!%p15234_p8)
}
0x5bb6   :  { %s15238_s7 = scalar_lea.hbm %s15750_s20, 256 }
0x5bb7   :  { %p15239_p9 = scmp.ne.s32.totalorder %s15750_s20, %s15238_s7  ;;  %p15242_p10 = scmp.lt.u32.totalorder %s15238_s7, %s15750_s20 }
0x5bb9   :  { %p15244_p11 = pnand %p15242_p10, %p15239_p9 }
0x5bbb   :  { %15247 = shalt.err (!%p15244_p11)
}
0x5bbc   :  { %s15375_s10 = smov 128   ;;  %s15376_s11 = smov 8  }
0x5bbd   :  { %12691 = dma.vmem_to_hbm [thread:$0]  %s12686_s8, 256, %s15750_s20, [#allocation4], %s15375_s10, %s15375_s10, %s15376_s11  }
0x5bbe   :  { %15268 = dma.done.wait [#allocation4], 256  }
0x5bbf   :  { %15269 = vsyncadd [#allocation4], 4294967040 }
0x5bc0   :  { %12695 = vsyncpa [#allocation3], 1 }
0x5bc1   :  { %12696 = vsyncpa [#allocation6], 1 }
0x5bc2   :  { %12697 = vsyncpa [#allocation9], 1 }
0x5bc3   :  { %12698 = vsyncpa [#allocation12], 1 }
0x5bc4   :  { %12699 = vsyncpa [#allocation15], 1 }
0x5bc5   :  { %12700 = vsyncpa [#allocation18], 1 }
0x5bc6   :  { %12701 = vsyncpa [#allocation21], 1 }
0x5bc7   :  { %12702 = vsyncpa [#allocation24], 1 }
0x5bc8   :  { %12703 = vsyncpa [#allocation27], 1 }
0x5bc9   :  { %12704 = vsyncpa [#allocation30], 1 }
0x5bca   :  { %12705 = vsyncpa [#allocation4], 1 }

</bundles_post_ra>
